<compile_context>
chip_gen: v7x
topology: tpu7x:2x2x1
jax: 0.10.0
libtpu: 0.0.40
codegen_flags: <defaults>
</compile_context>

<pallas_src>
import functools

import jax
import jax.numpy as jnp
from jax.experimental import pallas as pl
from jax.experimental.pallas import tpu as pltpu


# ---------------------------------------------------------------------------
# Fused kernel: runs the whole DnCNN stack for one batch sample.
# ---------------------------------------------------------------------------
def _dncnn_fused_kernel(xp_ref, w0_ref, b0_ref, wm_ref, sm_ref, bm_ref, wl_ref,
                        o_ref, act_ref, *, n_mid, H, W, feat):
    # xp_ref: (1, H+2, W+2, Cin) f32  zero-padded network input (one sample)
    # w0_ref: (9*Cin, feat)      bf16 first-layer weights (im2col packed)
    # b0_ref: (1, feat)          f32  first-layer bias
    # wm_ref: (n_mid, 9*feat, feat) bf16 middle-layer weights
    # sm_ref: (n_mid, 1, feat)   f32  folded BN scale
    # bm_ref: (n_mid, 1, feat)   f32  folded BN bias
    # wl_ref: (9*feat, Cout)     bf16 last-layer weights
    # o_ref:  (1, H, W, Cout)    f32
    # act_ref: VMEM (2, H+2, W+2, feat) f32 ping-pong activation scratch
    Cout = o_ref.shape[-1]

    def im2col(x):
        # x: (H+2, W+2, C) -> (H*W, 9*C) bf16 patch matrix.
        # Feature order (dy, dx, c) matches w.reshape(9*C, Cout) of HWIO weights.
        C = x.shape[-1]
        parts = [x[dy:dy + H, dx:dx + W, :]
                 for dy in range(3) for dx in range(3)]
        p = jnp.concatenate(parts, axis=-1)                # (H, W, 9*C)
        return p.reshape(H * W, 9 * C).astype(jnp.bfloat16)

    # Zero the ping-pong scratch once: the 1-px halo stays zero for every layer
    # (implements 'same' zero padding); interiors are overwritten each layer.
    act_ref[...] = jnp.zeros_like(act_ref)

    # ---- layer 0: channels -> features, conv + bias + ReLU ------------------
    y0 = jnp.dot(im2col(xp_ref[0]), w0_ref[...],
                 preferred_element_type=jnp.float32)
    y0 = jnp.maximum(y0 + b0_ref[0], 0.0)
    act_ref[0, pl.ds(1, H), pl.ds(1, W), :] = y0.reshape(H, W, feat)

    # ---- middle layers: conv (no bias) + folded BN + ReLU -------------------
    def body(i, carry):
        src = i % 2
        dst = 1 - src
        p = im2col(act_ref[src])
        y = jnp.dot(p, wm_ref[i], preferred_element_type=jnp.float32)
        y = jnp.maximum(y * sm_ref[i] + bm_ref[i], 0.0)
        act_ref[dst, pl.ds(1, H), pl.ds(1, W), :] = y.reshape(H, W, feat)
        return carry

    jax.lax.fori_loop(0, n_mid, body, 0)

    # ---- last layer: features -> channels, conv only (no bias / ReLU) -------
    yl = jnp.dot(im2col(act_ref[n_mid % 2]), wl_ref[...],
                 preferred_element_type=jnp.float32)
    o_ref[0] = yl.reshape(H, W, Cout)


# ---------------------------------------------------------------------------
# Wrapper: pack per-layer params into MXU-friendly slabs and call the kernel.
# ---------------------------------------------------------------------------
def _pack_params(layers):
    first, mids, last = layers[0], layers[1:-1], layers[-1]
    cin, feat = first["w"].shape[2], first["w"].shape[3]
    cout = last["w"].shape[3]
    w0 = first["w"].reshape(9 * cin, feat).astype(jnp.bfloat16)
    b0 = first["bias"].reshape(1, feat).astype(jnp.float32)
    wm = jnp.stack([m["w"].reshape(9 * feat, feat) for m in mids]
                   ).astype(jnp.bfloat16)
    sm = jnp.stack([m["scale"].reshape(1, feat) for m in mids]
                   ).astype(jnp.float32)
    bm = jnp.stack([m["bias"].reshape(1, feat) for m in mids]
                   ).astype(jnp.float32)
    wl = last["w"].reshape(9 * feat, cout).astype(jnp.bfloat16)
    return w0, b0, wm, sm, bm, wl


def dncnn_forward(x_nhwc, layers):
    """x_nhwc: (N,H,W,Cin) f32. Returns (N,H,W,Cout) f32."""
    N, H, W, cin = x_nhwc.shape
    w0, b0, wm, sm, bm, wl = _pack_params(layers)
    n_mid = wm.shape[0]
    feat = w0.shape[1]
    cout = wl.shape[1]

    # Single pad of the small Cin-channel network input; all subsequent layers
    # handle the halo inside the kernel via the zeroed VMEM scratch.
    xp = jnp.pad(x_nhwc, ((0, 0), (1, 1), (1, 1), (0, 0)))

    kernel = functools.partial(_dncnn_fused_kernel, n_mid=n_mid, H=H, W=W,
                               feat=feat)
    return pl.pallas_call(
        kernel,
        out_shape=jax.ShapeDtypeStruct((N, H, W, cout), jnp.float32),
        grid=(N,),
        in_specs=[
            pl.BlockSpec((1, H + 2, W + 2, cin), lambda n: (n, 0, 0, 0)),
            pl.BlockSpec((9 * cin, feat), lambda n: (0, 0)),
            pl.BlockSpec((1, feat), lambda n: (0, 0)),
            pl.BlockSpec((n_mid, 9 * feat, feat), lambda n: (0, 0, 0)),
            pl.BlockSpec((n_mid, 1, feat), lambda n: (0, 0, 0)),
            pl.BlockSpec((n_mid, 1, feat), lambda n: (0, 0, 0)),
            pl.BlockSpec((9 * feat, cout), lambda n: (0, 0)),
        ],
        out_specs=pl.BlockSpec((1, H, W, cout), lambda n: (n, 0, 0, 0)),
        scratch_shapes=[pltpu.VMEM((2, H + 2, W + 2, feat), jnp.float32)],
        compiler_params=pltpu.CompilerParams(
            dimension_semantics=("parallel",)),
    )(xp, w0, b0, wm, sm, bm, wl)


# ---------------------------------------------------------------------------
# Parameter construction (deterministic, synthetic — mirrors __init__ shapes).
# ---------------------------------------------------------------------------
def init_dncnn_params(key, channels=3, num_layers=17, features=64):
    eps = 1e-5
    layers = []  # each entry: dict(w, scale, bias, relu)
    n_mid = num_layers - 2
    keys = jax.random.split(key, 2 + n_mid * 5 + 1)
    ki = 0

    # First conv: channels -> features, bias=True, ReLU
    w0 = jax.random.normal(keys[ki], (3, 3, channels, features), jnp.float32) * 0.05
    ki += 1
    b0 = jax.random.normal(keys[ki], (features,), jnp.float32) * 0.05
    ki += 1
    layers.append(dict(w=w0, scale=jnp.ones((features,), jnp.float32),
                       bias=b0, relu=True))

    # Middle blocks: conv (no bias) + BatchNorm2d (eval mode, folded) + ReLU
    for _ in range(n_mid):
        w = jax.random.normal(keys[ki], (3, 3, features, features), jnp.float32) * 0.05
        ki += 1
        gamma = 1.0 + 0.1 * jax.random.normal(keys[ki], (features,), jnp.float32); ki += 1
        beta = 0.1 * jax.random.normal(keys[ki], (features,), jnp.float32); ki += 1
        run_mean = 0.1 * jax.random.normal(keys[ki], (features,), jnp.float32); ki += 1
        run_var = jnp.abs(1.0 + 0.1 * jax.random.normal(keys[ki], (features,), jnp.float32)); ki += 1
        scale = gamma / jnp.sqrt(run_var + eps)
        bias = beta - run_mean * scale
        layers.append(dict(w=w, scale=scale, bias=bias, relu=True))

    # Final conv: features -> channels, no bias, no ReLU
    wl = jax.random.normal(keys[ki], (3, 3, features, channels), jnp.float32) * 0.05
    layers.append(dict(w=wl, scale=jnp.ones((channels,), jnp.float32),
                       bias=jnp.zeros((channels,), jnp.float32), relu=False))
    return layers


# ---------------------------------------------------------------------------
# Pure-JAX reference (lax conv, matching the kernel's bf16 matmul inputs with
# f32 accumulation) for a correctness check.
# ---------------------------------------------------------------------------
def dncnn_reference(x_nhwc, layers):
    y = x_nhwc
    for layer in layers:
        y = jax.lax.conv_general_dilated(
            y.astype(jnp.bfloat16), layer["w"].astype(jnp.bfloat16),
            window_strides=(1, 1), padding="SAME",
            dimension_numbers=("NHWC", "HWIO", "NHWC"),
            preferred_element_type=jnp.float32)
        y = y * layer["scale"] + layer["bias"]
        if layer["relu"]:
            y = jnp.maximum(y, 0.0)
    return y


if __name__ == "__main__":
    key = jax.random.PRNGKey(0)
    k_x, k_p = jax.random.split(key)

    # Small shapes consistent with the module: NCHW (2, 3, 16, 16) input.
    N, C, H, W = 2, 3, 16, 16
    num_layers, features = 17, 64

    x_nchw = jax.random.normal(k_x, (N, C, H, W), jnp.float32)
    x_nhwc = jnp.transpose(x_nchw, (0, 2, 3, 1))          # glue: NCHW -> NHWC

    params = init_dncnn_params(k_p, channels=C, num_layers=num_layers,
                               features=features)

    fwd = jax.jit(dncnn_forward)
    out_nhwc = fwd(x_nhwc, params)
    out_nchw = jnp.transpose(out_nhwc, (0, 3, 1, 2))      # back to NCHW
    jax.block_until_ready(out_nchw)

    ref = jnp.transpose(dncnn_reference(x_nhwc, params), (0, 3, 1, 2))
    assert out_nchw.shape == (N, C, H, W)
    assert jnp.allclose(out_nchw, ref, atol=2e-2, rtol=2e-2), (
        float(jnp.max(jnp.abs(out_nchw - ref))))

    print("KERNEL_OK")
</pallas_src>

<mosaic_0001>
module attributes {stable_mosaic.version = 11 : i64} {
  func.func @_dncnn_fused_kernel(%arg0: i32, %arg1: memref<1x18x18x3xf32, #tpu.memory_space<vmem>>, %arg2: memref<27x64xbf16, #tpu.memory_space<vmem>>, %arg3: memref<1x64xf32, #tpu.memory_space<vmem>>, %arg4: memref<15x576x64xbf16, #tpu.memory_space<vmem>>, %arg5: memref<15x1x64xf32, #tpu.memory_space<vmem>>, %arg6: memref<15x1x64xf32, #tpu.memory_space<vmem>>, %arg7: memref<576x3xbf16, #tpu.memory_space<vmem>>, %arg8: memref<1x16x16x3xf32, #tpu.memory_space<vmem>>, %arg9: memref<2x18x18x64xf32, #tpu.memory_space<vmem>>) attributes {dimension_semantics = [#tpu.dimension_semantics<parallel>], iteration_bounds = array<i64: 2>, scalar_prefetch = 0 : i64, scratch_operands = 1 : i64, tpu.core_type = #tpu.core_type<tc>, window_params = [{transform_indices = @transform_0, window_bounds = array<i64: 1, 18, 18, 3>}, {pipeline_mode = #tpu.pipeline_mode<synchronous>, transform_indices = @transform_1, window_bounds = array<i64: 27, 64>}, {pipeline_mode = #tpu.pipeline_mode<synchronous>, transform_indices = @transform_2, window_bounds = array<i64: 1, 64>}, {pipeline_mode = #tpu.pipeline_mode<synchronous>, transform_indices = @transform_3, window_bounds = array<i64: 15, 576, 64>}, {pipeline_mode = #tpu.pipeline_mode<synchronous>, transform_indices = @transform_4, window_bounds = array<i64: 15, 1, 64>}, {pipeline_mode = #tpu.pipeline_mode<synchronous>, transform_indices = @transform_5, window_bounds = array<i64: 15, 1, 64>}, {pipeline_mode = #tpu.pipeline_mode<synchronous>, transform_indices = @transform_6, window_bounds = array<i64: 576, 3>}, {transform_indices = @transform_7, window_bounds = array<i64: 1, 16, 16, 3>}]} {
    %cst = arith.constant 0.000000e+00 : f32
    %0 = vector.broadcast %cst : f32 to vector<2x18x18x64xf32>
    %c0 = arith.constant 0 : index
    %c0_0 = arith.constant 0 : index
    %c0_1 = arith.constant 0 : index
    %c0_2 = arith.constant 0 : index
    %1 = vector.load %arg9[%c0, %c0_0, %c0_1, %c0_2] : memref<2x18x18x64xf32, #tpu.memory_space<vmem>>, vector<2x18x18x64xf32>
    tpu.vector_store %arg9[%c0, %c0_0, %c0_1, %c0_2], %0 {strides = array<i32>} : memref<2x18x18x64xf32, #tpu.memory_space<vmem>>, vector<2x18x18x64xf32>,
    %c0_3 = arith.constant 0 : index
    %c0_4 = arith.constant 0 : index
    %c0_5 = arith.constant 0 : index
    %c0_6 = arith.constant 0 : index
    %2 = vector.load %arg1[%c0_3, %c0_4, %c0_5, %c0_6] : memref<1x18x18x3xf32, #tpu.memory_space<vmem>>, vector<1x18x18x3xf32>
    %3 = vector.shape_cast %2 : vector<1x18x18x3xf32> to vector<18x18x3xf32>
    %4 = vector.extract_strided_slice %3 {offsets = [0, 0, 0], sizes = [16, 16, 3], strides = [1, 1, 1]} : vector<18x18x3xf32> to vector<16x16x3xf32>
    %5 = vector.extract_strided_slice %3 {offsets = [0, 1, 0], sizes = [16, 16, 3], strides = [1, 1, 1]} : vector<18x18x3xf32> to vector<16x16x3xf32>
    %6 = vector.extract_strided_slice %3 {offsets = [0, 2, 0], sizes = [16, 16, 3], strides = [1, 1, 1]} : vector<18x18x3xf32> to vector<16x16x3xf32>
    %7 = vector.extract_strided_slice %3 {offsets = [1, 0, 0], sizes = [16, 16, 3], strides = [1, 1, 1]} : vector<18x18x3xf32> to vector<16x16x3xf32>
    %8 = vector.extract_strided_slice %3 {offsets = [1, 1, 0], sizes = [16, 16, 3], strides = [1, 1, 1]} : vector<18x18x3xf32> to vector<16x16x3xf32>
    %9 = vector.extract_strided_slice %3 {offsets = [1, 2, 0], sizes = [16, 16, 3], strides = [1, 1, 1]} : vector<18x18x3xf32> to vector<16x16x3xf32>
    %10 = vector.extract_strided_slice %3 {offsets = [2, 0, 0], sizes = [16, 16, 3], strides = [1, 1, 1]} : vector<18x18x3xf32> to vector<16x16x3xf32>
    %11 = vector.extract_strided_slice %3 {offsets = [2, 1, 0], sizes = [16, 16, 3], strides = [1, 1, 1]} : vector<18x18x3xf32> to vector<16x16x3xf32>
    %12 = vector.extract_strided_slice %3 {offsets = [2, 2, 0], sizes = [16, 16, 3], strides = [1, 1, 1]} : vector<18x18x3xf32> to vector<16x16x3xf32>
    %13 = tpu.concatenate %4, %5, %6, %7, %8, %9, %10, %11, %12 in 2 : vector<16x16x3xf32>, vector<16x16x3xf32>, vector<16x16x3xf32>, vector<16x16x3xf32>, vector<16x16x3xf32>, vector<16x16x3xf32>, vector<16x16x3xf32>, vector<16x16x3xf32>, vector<16x16x3xf32> -> vector<16x16x27xf32>
    %14 = vector.shape_cast %13 : vector<16x16x27xf32> to vector<256x27xf32>
    %15 = arith.truncf %14 : vector<256x27xf32> to vector<256x27xbf16>
    %c0_7 = arith.constant 0 : index
    %c0_8 = arith.constant 0 : index
    %16 = vector.load %arg2[%c0_7, %c0_8] : memref<27x64xbf16, #tpu.memory_space<vmem>>, vector<27x64xbf16>
    %cst_9 = arith.constant dense<0.000000e+00> : vector<256x64xf32>
    %17 = tpu.matmul %15, %16, %cst_9 {dimension_numbers = #tpu.dot_dimension_numbers<[1], [0], [0], [1], [0, 0, 1, 1], [], []>} : vector<256x27xbf16>, vector<27x64xbf16>, vector<256x64xf32> -> vector<256x64xf32>
    %c0_10 = arith.constant 0 : index
    %c0_11 = arith.constant 0 : index
    %18 = vector.load %arg3[%c0_10, %c0_11] : memref<1x64xf32, #tpu.memory_space<vmem>>, vector<1x64xf32>
    %19 = vector.shape_cast %18 : vector<1x64xf32> to vector<64xf32>
    %20 = vector.shape_cast %19 : vector<64xf32> to vector<1x64xf32>
    %21 = vector.broadcast %20 : vector<1x64xf32> to vector<256x64xf32>
    %22 = arith.addf %17, %21 : vector<256x64xf32>
    %cst_12 = arith.constant 0.000000e+00 : f32
    %23 = vector.broadcast %cst_12 : f32 to vector<256x64xf32>
    %24 = arith.maximumf %22, %23 : vector<256x64xf32>
    %25 = vector.shape_cast %24 : vector<256x64xf32> to vector<16x16x64xf32>
    %c0_13 = arith.constant 0 : index
    %c1 = arith.constant 1 : index
    %c1_14 = arith.constant 1 : index
    %c0_15 = arith.constant 0 : index
    %26 = vector.load %arg9[%c0_13, %c1, %c1_14, %c0_15] : memref<2x18x18x64xf32, #tpu.memory_space<vmem>>, vector<1x16x16x64xf32>
    %27 = vector.shape_cast %26 : vector<1x16x16x64xf32> to vector<16x16x64xf32>
    %28 = vector.shape_cast %25 : vector<16x16x64xf32> to vector<1x16x16x64xf32>
    tpu.vector_store %arg9[%c0_13, %c1, %c1_14, %c0_15], %28 {strides = array<i32>} : memref<2x18x18x64xf32, #tpu.memory_space<vmem>>, vector<1x16x16x64xf32>,
    %c0_i32 = arith.constant 0 : i32
    %c15_i32 = arith.constant 15 : i32
    %29 = arith.addi %c0_i32, %c15_i32 : i32
    %c1_i32 = arith.constant 1 : i32
    scf.for %arg10 = %c0_i32 to %29 step %c1_i32  : i32 {
      %c2_i32 = arith.constant 2 : i32
      %c0_i32_28 = arith.constant 0 : i32
      %50 = arith.cmpi eq, %c2_i32, %c0_i32_28 : i32
      %c1_i32_29 = arith.constant 1 : i32
      %51 = arith.select %50, %c1_i32_29, %c2_i32 : i32
      %52 = arith.remsi %arg10, %51 : i32
      %c0_i32_30 = arith.constant 0 : i32
      %53 = arith.cmpi ne, %52, %c0_i32_30 : i32
      %c0_i32_31 = arith.constant 0 : i32
      %54 = arith.cmpi slt, %52, %c0_i32_31 : i32
      %c0_i32_32 = arith.constant 0 : i32
      %55 = arith.cmpi slt, %51, %c0_i32_32 : i32
      %56 = arith.xori %54, %55 : i1
      %57 = arith.andi %56, %53 : i1
      %58 = arith.addi %52, %51 : i32
      %59 = arith.select %57, %58, %52 : i32
      %c1_i32_33 = arith.constant 1 : i32
      %60 = arith.subi %c1_i32_33, %59 : i32
      %61 = arith.index_cast %59 : i32 to index
      %c0_34 = arith.constant 0 : index
      %c0_35 = arith.constant 0 : index
      %c0_36 = arith.constant 0 : index
      %62 = vector.load %arg9[%61, %c0_34, %c0_35, %c0_36] : memref<2x18x18x64xf32, #tpu.memory_space<vmem>>, vector<1x18x18x64xf32>
      %63 = vector.shape_cast %62 : vector<1x18x18x64xf32> to vector<18x18x64xf32>
      %64 = vector.extract_strided_slice %63 {offsets = [0, 0, 0], sizes = [16, 16, 64], strides = [1, 1, 1]} : vector<18x18x64xf32> to vector<16x16x64xf32>
      %65 = vector.extract_strided_slice %63 {offsets = [0, 1, 0], sizes = [16, 16, 64], strides = [1, 1, 1]} : vector<18x18x64xf32> to vector<16x16x64xf32>
      %66 = vector.extract_strided_slice %63 {offsets = [0, 2, 0], sizes = [16, 16, 64], strides = [1, 1, 1]} : vector<18x18x64xf32> to vector<16x16x64xf32>
      %67 = vector.extract_strided_slice %63 {offsets = [1, 0, 0], sizes = [16, 16, 64], strides = [1, 1, 1]} : vector<18x18x64xf32> to vector<16x16x64xf32>
      %68 = vector.extract_strided_slice %63 {offsets = [1, 1, 0], sizes = [16, 16, 64], strides = [1, 1, 1]} : vector<18x18x64xf32> to vector<16x16x64xf32>
      %69 = vector.extract_strided_slice %63 {offsets = [1, 2, 0], sizes = [16, 16, 64], strides = [1, 1, 1]} : vector<18x18x64xf32> to vector<16x16x64xf32>
      %70 = vector.extract_strided_slice %63 {offsets = [2, 0, 0], sizes = [16, 16, 64], strides = [1, 1, 1]} : vector<18x18x64xf32> to vector<16x16x64xf32>
      %71 = vector.extract_strided_slice %63 {offsets = [2, 1, 0], sizes = [16, 16, 64], strides = [1, 1, 1]} : vector<18x18x64xf32> to vector<16x16x64xf32>
      %72 = vector.extract_strided_slice %63 {offsets = [2, 2, 0], sizes = [16, 16, 64], strides = [1, 1, 1]} : vector<18x18x64xf32> to vector<16x16x64xf32>
      %73 = tpu.concatenate %64, %65, %66, %67, %68, %69, %70, %71, %72 in 2 : vector<16x16x64xf32>, vector<16x16x64xf32>, vector<16x16x64xf32>, vector<16x16x64xf32>, vector<16x16x64xf32>, vector<16x16x64xf32>, vector<16x16x64xf32>, vector<16x16x64xf32>, vector<16x16x64xf32> -> vector<16x16x576xf32>
      %74 = vector.shape_cast %73 : vector<16x16x576xf32> to vector<256x576xf32>
      %75 = arith.truncf %74 : vector<256x576xf32> to vector<256x576xbf16>
      %76 = arith.index_cast %arg10 : i32 to index
      %c0_37 = arith.constant 0 : index
      %c0_38 = arith.constant 0 : index
      %77 = vector.load %arg4[%76, %c0_37, %c0_38] : memref<15x576x64xbf16, #tpu.memory_space<vmem>>, vector<1x576x64xbf16>
      %78 = vector.shape_cast %77 : vector<1x576x64xbf16> to vector<576x64xbf16>
      %cst_39 = arith.constant dense<0.000000e+00> : vector<256x64xf32>
      %79 = tpu.matmul %75, %78, %cst_39 {dimension_numbers = #tpu.dot_dimension_numbers<[1], [0], [0], [1], [0, 0, 1, 1], [], []>} : vector<256x576xbf16>, vector<576x64xbf16>, vector<256x64xf32> -> vector<256x64xf32>
      %80 = arith.index_cast %arg10 : i32 to index
      %c0_40 = arith.constant 0 : index
      %c0_41 = arith.constant 0 : index
      %81 = vector.load %arg5[%80, %c0_40, %c0_41] : memref<15x1x64xf32, #tpu.memory_space<vmem>>, vector<1x1x64xf32>
      %82 = vector.shape_cast %81 : vector<1x1x64xf32> to vector<1x64xf32>
      %83 = vector.broadcast %82 : vector<1x64xf32> to vector<256x64xf32>
      %84 = arith.mulf %79, %83 : vector<256x64xf32>
      %85 = arith.index_cast %arg10 : i32 to index
      %c0_42 = arith.constant 0 : index
      %c0_43 = arith.constant 0 : index
      %86 = vector.load %arg6[%85, %c0_42, %c0_43] : memref<15x1x64xf32, #tpu.memory_space<vmem>>, vector<1x1x64xf32>
      %87 = vector.shape_cast %86 : vector<1x1x64xf32> to vector<1x64xf32>
      %88 = vector.broadcast %87 : vector<1x64xf32> to vector<256x64xf32>
      %89 = arith.addf %84, %88 : vector<256x64xf32>
      %cst_44 = arith.constant 0.000000e+00 : f32
      %90 = vector.broadcast %cst_44 : f32 to vector<256x64xf32>
      %91 = arith.maximumf %89, %90 : vector<256x64xf32>
      %92 = vector.shape_cast %91 : vector<256x64xf32> to vector<16x16x64xf32>
      %93 = arith.index_cast %60 : i32 to index
      %c1_45 = arith.constant 1 : index
      %c1_46 = arith.constant 1 : index
      %c0_47 = arith.constant 0 : index
      %94 = vector.load %arg9[%93, %c1_45, %c1_46, %c0_47] : memref<2x18x18x64xf32, #tpu.memory_space<vmem>>, vector<1x16x16x64xf32>
      %95 = vector.shape_cast %94 : vector<1x16x16x64xf32> to vector<16x16x64xf32>
      %96 = vector.shape_cast %92 : vector<16x16x64xf32> to vector<1x16x16x64xf32>
      tpu.vector_store %arg9[%93, %c1_45, %c1_46, %c0_47], %96 {strides = array<i32>} : memref<2x18x18x64xf32, #tpu.memory_space<vmem>>, vector<1x16x16x64xf32>,
    }
    %c15_i32_16 = arith.constant 15 : i32
    %c1_17 = arith.constant 1 : index
    %c0_18 = arith.constant 0 : index
    %c0_19 = arith.constant 0 : index
    %c0_20 = arith.constant 0 : index
    %30 = vector.load %arg9[%c1_17, %c0_18, %c0_19, %c0_20] : memref<2x18x18x64xf32, #tpu.memory_space<vmem>>, vector<1x18x18x64xf32>
    %31 = vector.shape_cast %30 : vector<1x18x18x64xf32> to vector<18x18x64xf32>
    %32 = vector.extract_strided_slice %31 {offsets = [0, 0, 0], sizes = [16, 16, 64], strides = [1, 1, 1]} : vector<18x18x64xf32> to vector<16x16x64xf32>
    %33 = vector.extract_strided_slice %31 {offsets = [0, 1, 0], sizes = [16, 16, 64], strides = [1, 1, 1]} : vector<18x18x64xf32> to vector<16x16x64xf32>
    %34 = vector.extract_strided_slice %31 {offsets = [0, 2, 0], sizes = [16, 16, 64], strides = [1, 1, 1]} : vector<18x18x64xf32> to vector<16x16x64xf32>
    %35 = vector.extract_strided_slice %31 {offsets = [1, 0, 0], sizes = [16, 16, 64], strides = [1, 1, 1]} : vector<18x18x64xf32> to vector<16x16x64xf32>
    %36 = vector.extract_strided_slice %31 {offsets = [1, 1, 0], sizes = [16, 16, 64], strides = [1, 1, 1]} : vector<18x18x64xf32> to vector<16x16x64xf32>
    %37 = vector.extract_strided_slice %31 {offsets = [1, 2, 0], sizes = [16, 16, 64], strides = [1, 1, 1]} : vector<18x18x64xf32> to vector<16x16x64xf32>
    %38 = vector.extract_strided_slice %31 {offsets = [2, 0, 0], sizes = [16, 16, 64], strides = [1, 1, 1]} : vector<18x18x64xf32> to vector<16x16x64xf32>
    %39 = vector.extract_strided_slice %31 {offsets = [2, 1, 0], sizes = [16, 16, 64], strides = [1, 1, 1]} : vector<18x18x64xf32> to vector<16x16x64xf32>
    %40 = vector.extract_strided_slice %31 {offsets = [2, 2, 0], sizes = [16, 16, 64], strides = [1, 1, 1]} : vector<18x18x64xf32> to vector<16x16x64xf32>
    %41 = tpu.concatenate %32, %33, %34, %35, %36, %37, %38, %39, %40 in 2 : vector<16x16x64xf32>, vector<16x16x64xf32>, vector<16x16x64xf32>, vector<16x16x64xf32>, vector<16x16x64xf32>, vector<16x16x64xf32>, vector<16x16x64xf32>, vector<16x16x64xf32>, vector<16x16x64xf32> -> vector<16x16x576xf32>
    %42 = vector.shape_cast %41 : vector<16x16x576xf32> to vector<256x576xf32>
    %43 = arith.truncf %42 : vector<256x576xf32> to vector<256x576xbf16>
    %c0_21 = arith.constant 0 : index
    %c0_22 = arith.constant 0 : index
    %44 = vector.load %arg7[%c0_21, %c0_22] : memref<576x3xbf16, #tpu.memory_space<vmem>>, vector<576x3xbf16>
    %cst_23 = arith.constant dense<0.000000e+00> : vector<256x3xf32>
    %45 = tpu.matmul %43, %44, %cst_23 {dimension_numbers = #tpu.dot_dimension_numbers<[1], [0], [0], [1], [0, 0, 1, 1], [], []>} : vector<256x576xbf16>, vector<576x3xbf16>, vector<256x3xf32> -> vector<256x3xf32>
    %46 = vector.shape_cast %45 : vector<256x3xf32> to vector<16x16x3xf32>
    %c0_24 = arith.constant 0 : index
    %c0_25 = arith.constant 0 : index
    %c0_26 = arith.constant 0 : index
    %c0_27 = arith.constant 0 : index
    %47 = vector.load %arg8[%c0_24, %c0_25, %c0_26, %c0_27] : memref<1x16x16x3xf32, #tpu.memory_space<vmem>>, vector<1x16x16x3xf32>
    %48 = vector.shape_cast %47 : vector<1x16x16x3xf32> to vector<16x16x3xf32>
    %49 = vector.shape_cast %46 : vector<16x16x3xf32> to vector<1x16x16x3xf32>
    tpu.vector_store %arg8[%c0_24, %c0_25, %c0_26, %c0_27], %49 {strides = array<i32>} : memref<1x16x16x3xf32, #tpu.memory_space<vmem>>, vector<1x16x16x3xf32>,
    return
  }
  func.func @transform_0(%arg0: i32) -> (i32, i32, i32, i32) {
    %c0_i32 = arith.constant 0 : i32
    %c0_i32_0 = arith.constant 0 : i32
    %c0_i32_1 = arith.constant 0 : i32
    %c0_i32_2 = arith.constant 0 : i32
    return %arg0, %c0_i32, %c0_i32_0, %c0_i32_1 : i32, i32, i32, i32
  }
  func.func @transform_1(%arg0: i32) -> (i32, i32) {
    %c0_i32 = arith.constant 0 : i32
    %c0_i32_0 = arith.constant 0 : i32
    %c0_i32_1 = arith.constant 0 : i32
    return %c0_i32, %c0_i32_0 : i32, i32
  }
  func.func @transform_2(%arg0: i32) -> (i32, i32) {
    %c0_i32 = arith.constant 0 : i32
    %c0_i32_0 = arith.constant 0 : i32
    %c0_i32_1 = arith.constant 0 : i32
    return %c0_i32, %c0_i32_0 : i32, i32
  }
  func.func @transform_3(%arg0: i32) -> (i32, i32, i32) {
    %c0_i32 = arith.constant 0 : i32
    %c0_i32_0 = arith.constant 0 : i32
    %c0_i32_1 = arith.constant 0 : i32
    %c0_i32_2 = arith.constant 0 : i32
    return %c0_i32, %c0_i32_0, %c0_i32_1 : i32, i32, i32
  }
  func.func @transform_4(%arg0: i32) -> (i32, i32, i32) {
    %c0_i32 = arith.constant 0 : i32
    %c0_i32_0 = arith.constant 0 : i32
    %c0_i32_1 = arith.constant 0 : i32
    %c0_i32_2 = arith.constant 0 : i32
    return %c0_i32, %c0_i32_0, %c0_i32_1 : i32, i32, i32
  }
  func.func @transform_5(%arg0: i32) -> (i32, i32, i32) {
    %c0_i32 = arith.constant 0 : i32
    %c0_i32_0 = arith.constant 0 : i32
    %c0_i32_1 = arith.constant 0 : i32
    %c0_i32_2 = arith.constant 0 : i32
    return %c0_i32, %c0_i32_0, %c0_i32_1 : i32, i32, i32
  }
  func.func @transform_6(%arg0: i32) -> (i32, i32) {
    %c0_i32 = arith.constant 0 : i32
    %c0_i32_0 = arith.constant 0 : i32
    %c0_i32_1 = arith.constant 0 : i32
    return %c0_i32, %c0_i32_0 : i32, i32
  }
  func.func @transform_7(%arg0: i32) -> (i32, i32, i32, i32) {
    %c0_i32 = arith.constant 0 : i32
    %c0_i32_0 = arith.constant 0 : i32
    %c0_i32_1 = arith.constant 0 : i32
    %c0_i32_2 = arith.constant 0 : i32
    return %arg0, %c0_i32, %c0_i32_0, %c0_i32_1 : i32, i32, i32, i32
  }
}

</mosaic_0001>

<bundles_post_ra>
// kernel: dncnn_forward.1
= control target key start
LH: loop header
LB: loop body
LE: loop exit
PB: predicated region body
PF: predicated region fallthrough
CT: control target
= control target key end

     0   :  { %s7758_s24 = smov 0   ;;  %s11763_s0 = inlined_call_operand.vmem [shape: f32[2,18,18,3], index: 0, kind: input, shape index: {}]   ;;  %s11764_s1 = inlined_call_operand.vmem [shape: bf16[27,64], index: 1, kind: input, shape index: {}]   ;;  %s11765_s2 = inlined_call_operand.vmem [shape: f32[1,64], index: 2, kind: input, shape index: {}]   ;;  %s11766_s3 = inlined_call_operand.vmem [shape: bf16[15,576,64], index: 3, kind: input, shape index: {}]   ;;  %s11767_s4 = inlined_call_operand.vmem [shape: f32[15,1,64], index: 4, kind: input, shape index: {}]   ;;  %s11768_s5 = inlined_call_operand.vmem [shape: f32[15,1,64], index: 5, kind: input, shape index: {}]   ;;  %s11769_s6 = inlined_call_operand.vmem [shape: bf16[576,3], index: 6, kind: input, shape index: {}]   ;;  %s11770_s7 = inlined_call_operand.vmem [shape: f32[2,16,16,3], index: 7, kind: output, shape index: {}]  }
   0x1 LB: > { %s5586_s25 = sadd.s32 4294967295, %s7700_s24   ;;  %p5590_p0 = scmp.ge.s32.totalorder %s7700_s24, 1  ;;  %s7700_s24 = sphi %s7758_s24, %s17_s24  }
   0x2   : > { %p237_p1 = scmp.lt.s32.totalorder %s7700_s24, 3 }
   0x4   : > { %p238_p2 = pnand %p5590_p0, %p237_p1 }
   0x6   : > { %241 = sbr.rel (%p238_p2) target bundleno = 1646 (0x66e), region = 48 }
   0xd   : > { %p269_p3 = scmp.lt.s32.totalorder %s5586_s25, 1  ;;  %vm492_vm0 = vcmask 1046528   ;;  %s7706_s11 = smov 3   ;;  %vm669_vm1 = vcmask 1045504   ;;  %vm1799_vm2 = vcmask 1044480   ;;  %vm1448_vm3 = vcmask 23552  }
   0xe   : > { %s7707_s12 = smov 6   ;;  %s7708_s13 = smov 9   ;;  %vm1481_vm4 = vcmask 48128   ;;  %vm1514_vm5 = vcmask 72704   ;;  %vm1547_vm6 = vcmask 97280   ;;  %vm1580_vm7 = vcmask 121856  }
   0xf   : > { %s12198_s25 = smov (!%p269_p3, %s5586_s25), 1  ;;  %s7709_s14 = smov 12   ;;  %vm1613_vm8 = vcmask 146432   ;;  %vm1646_vm9 = vcmask 171008   ;;  %vm1679_vm10 = vcmask 195584   ;;  %vm1750_vm11 = vcmask 220160  }
  0x10   : > { %s6417_s26 = smul.u32 432, %s12198_s25  ;;  %s5757_s27 = sshll.u32 %s12198_s25, 8  ;;  %vm280_vm12 = vcmask 523264   ;;  %vm283_vm13 = vcmask 517120  }
  0x11   : > { %s7769_s30 = scalar_lea.vmem %s11770_s7, %s5757_s27  ;;  %s7710_s15 = smov 15  }
  0x12   : > { %s7774_s10 = scalar_lea.vmem %s11763_s0, %s6417_s26  ;;  %s7711_s16 = smov 18  }
  0x13   : > { %v7777_v0 = vld [vmem:[%s7774_s10 + $0x30] sm:$0xff]  ;;  %v7780_v1 = vld [vmem:[%s7774_s10 + $0x38] sm:$0xff]  ;;  %v7783_v2 = vld [vmem:[%s7774_s10 + $0x40] sm:$0x3]  ;;  %s7712_s19 = smov 21   ;;  %s7714_s22 = smov 24  }
  0x14   : > { %v503_v3 = vrot.slane %v7777_v0, 1  ;;  %v504_v4 = vrot.slane %v7780_v1, 1  ;;  %v506_v5 = vrot.slane %v7783_v2, 1  ;;  %v7789_v6 = vld [vmem:[%s7774_s10] sm:$0xff]  ;;  %v7792_v7 = vld [vmem:[%s7774_s10 + $0x8] sm:$0xff]  ;;  %v7803_v12 = vld [vmem:[%s7774_s10 + $0x50] sm:$0xff] }
  0x15   : > { %v7795_v8 = vld [vmem:[%s7774_s10 + $0x10] sm:$0x3]  ;;  %v493_v9 = vrot.slane %v7789_v6, 1  ;;  %v494_v10 = vrot.slane %v7792_v7, 1  ;;  %v7800_v11 = vld [vmem:[%s7774_s10 + $0x48] sm:$0xff]  ;;  %v7812_v17 = vld [vmem:[%s7774_s10 + $0x18] sm:$0xff] }
  0x16   : > { %v505_v13 = vsel %vm492_vm0, %v503_v3, %v504_v4  ;;  %v507_v14 = vsel %vm492_vm0, %v504_v4, %v506_v5  ;;  %v496_v15 = vrot.slane %v7795_v8, 1  ;;  %v7809_v16 = vld [vmem:[%s7774_s10 + $0x58] sm:$0x3]  ;;  %v7815_v18 = vld [vmem:[%s7774_s10 + $0x20] sm:$0xff]  ;;  %v508_v21 = vrot.slane %v7800_v11, 1  ;;  %v7847_v36 = vld [vmem:[%s7774_s10 + $0x68] sm:$0xff] }
  0x17   : > { %v7817_v19 = vpack.i.bf16 %v507_v14, %v505_v13  ;;  %v495_v20 = vsel %vm492_vm0, %v493_v9, %v494_v10  ;;  %v509_v22 = vrot.slane %v7803_v12, 1  ;;  %v7823_v23 = vld [vmem:[%s7774_s10 + $0x28] sm:$0x3]  ;;  %v7826_v24 = vld [vmem:[%s7774_s10 + $0x78] sm:$0xff]  ;;  %v7829_v25 = vld [vmem:[%s7774_s10 + $0x80] sm:$0xff]  ;;  %v511_v27 = vrot.slane %v7809_v16, 1 }
  0x18   : > { %v497_v26 = vsel %vm492_vm0, %v494_v10, %v496_v15  ;;  %v498_v28 = vrot.slane %v7812_v17, 1  ;;  %v499_v29 = vrot.slane %v7815_v18, 1  ;;  %v7836_v30 = vld [vmem:[%s7774_s10 + $0x88] sm:$0x3]  ;;  %v7839_v31 = vld [vmem:[%s7774_s10 + $0x60] sm:$0xff]  ;;  %v501_v34 = vrot.slane %v7823_v23, 1 }
  0x19   : > { %11925 = vst [vmem:[#allocation3_spill] sm:$0xff] %v7817_v19  ;;  %6457 = vrot.lane.b32.xlu1 %v7817_v19, %s7706_s11  ;;  %v6446_v32 = vpack.i.bf16 %v497_v26, %v495_v20  ;;  %v510_v33 = vsel %vm492_vm0, %v508_v21, %v509_v22  ;;  %v518_v35 = vrot.slane %v7826_v24, 1  ;;  %v7850_v37 = vld [vmem:[%s7774_s10 + $0x70] sm:$0x3]  ;;  %v512_v38 = vsel %vm492_vm0, %v509_v22, %v511_v27  ;;  %v7857_v42 = vld [vmem:[%s7774_s10 + $0xa8] sm:$0xff]  ;;  %v7875_v50 = vld [vmem:[%s7774_s10 + $0x98] sm:$0xff] }
  0x1a   : > { %v500_v39 = vsel %vm492_vm0, %v498_v28, %v499_v29  ;;  %v519_v40 = vrot.slane %v7829_v25, 1  ;;  %v521_v41 = vrot.slane %v7836_v30, 1  ;;  %v7860_v43 = vld [vmem:[%s7774_s10 + $0xb0] sm:$0xff]  ;;  %v7863_v44 = vpack.i.bf16 %v512_v38, %v510_v33  ;;  %v7869_v48 = vld [vmem:[%s7774_s10 + $0xb8] sm:$0x3]  ;;  %v7896_v61 = vld [vmem:[%s7774_s10 + $0xe0] sm:$0xff] }
  0x1b   : > { %6447 = vrot.lane.b32.xlu0 %v6446_v32, %s7706_s11  ;;  %v502_v45 = vsel %vm492_vm0, %v499_v29, %v501_v34  ;;  %v513_v46 = vrot.slane %v7839_v31, 1  ;;  %v514_v47 = vrot.slane %v7847_v36, 1  ;;  %v7872_v49 = vld [vmem:[%s7774_s10 + $0x90] sm:$0xff]  ;;  %v516_v54 = vrot.slane %v7850_v37, 1  ;;  %v7883_v55 = vld [vmem:[%s7774_s10 + $0xa0] sm:$0x3] }
  0x1c   : > { %11926 = vst [vmem:[#allocation4_spill] sm:$0xff] %v7863_v44  ;;  %v7877_v51 = vpack.i.bf16 %v502_v45, %v500_v39  ;;  %v520_v52 = vsel %vm492_vm0, %v518_v35, %v519_v40  ;;  %v522_v53 = vsel %vm492_vm0, %v519_v40, %v521_v41  ;;  %v7886_v56 = vld [vmem:[%s7774_s10 + $0xd8] sm:$0xff]  ;;  %v528_v59 = vrot.slane %v7857_v42, 1  ;;  %v7899_v62 = vld [vmem:[%s7774_s10 + $0xe8] sm:$0x3]  ;;  %v7906_v9 = vld [vmem:[%s7774_s10 + $0xc0] sm:$0xff] }
  0x1d   : > { %6462 = vrot.lane.b32.xlu1 %v7863_v44, %s7706_s11  ;;  %v7890_v57 = vpack.i.bf16 %v522_v53, %v520_v52  ;;  %v515_v58 = vsel %vm492_vm0, %v513_v46, %v514_v47  ;;  %v529_v60 = vrot.slane %v7860_v43, 1  ;;  %v517_v63 = vsel %vm492_vm0, %v514_v47, %v516_v54  ;;  %v7909_v10 = vld [vmem:[%s7774_s10 + $0xc8] sm:$0xff]  ;;  %v7919_v21 = vld [vmem:[%s7774_s10 + $0xd0] sm:$0x3]  ;;  %v7939_v39 = vld [vmem:[%s7774_s10 + $0x118] sm:$0x3] }
  0x1e   : > { %11927 = vst [vmem:[#allocation5_spill] sm:$0xff] %v7877_v51  ;;  %v531_v3 = vrot.slane %v7869_v48, 1  ;;  %v523_v4 = vrot.slane %v7872_v49, 1  ;;  %v524_v5 = vrot.slane %v7875_v50, 1  ;;  %v7913_v13 = vpack.i.bf16 %v517_v63, %v515_v58  ;;  %v7926_v29 = vld [vmem:[%s7774_s10 + $0x108] sm:$0xff]  ;;  %v7929_v32 = vld [vmem:[%s7774_s10 + $0x110] sm:$0xff] }
  0x1f   : > { %11928 = vst [vmem:[#allocation6_spill] sm:$0xff] %v7890_v57  ;;  %6452 = vrot.lane.b32.xlu0 %v7877_v51, %s7706_s11  ;;  %v530_v14 = vsel %vm492_vm0, %v528_v59, %v529_v60  ;;  %v526_v15 = vrot.slane %v7883_v55, 1  ;;  %v538_v20 = vrot.slane %v7886_v56, 1  ;;  %v539_v27 = vrot.slane %v7896_v61, 1  ;;  %v7942_v40 = vld [vmem:[%s7774_s10 + $0xf0] sm:$0xff]  ;;  %v7945_v41 = vld [vmem:[%s7774_s10 + $0xf8] sm:$0xff] }
  0x20   : > { %11929 = vst [vmem:[#allocation7_spill] sm:$0xff] %v7913_v13  ;;  %v532_v22 = vsel %vm492_vm0, %v529_v60, %v531_v3  ;;  %v525_v26 = vsel %vm492_vm0, %v523_v4, %v524_v5  ;;  %v541_v28 = vrot.slane %v7899_v62, 1  ;;  %v533_v35 = vrot.slane %v7906_v9, 1  ;;  %v7951_v52 = vld [vmem:[%s7774_s10 + $0x100] sm:$0x3]  ;;  %v7961_v60 = vld [vmem:[%s7774_s10 + $0x138] sm:$0xff] }
  0x21   : > { %6472 = vrot.lane.b32.xlu1 %v7890_v57, %s7706_s11  ;;  %v7933_v33 = vpack.i.bf16 %v532_v22, %v530_v14  ;;  %v527_v34 = vsel %vm492_vm0, %v524_v5, %v526_v15  ;;  %v534_v38 = vrot.slane %v7909_v10, 1  ;;  %v540_v45 = vsel %vm492_vm0, %v538_v20, %v539_v27  ;;  %v7964_v63 = vld [vmem:[%s7774_s10 + $0x140] sm:$0xff]  ;;  %v7967_v3 = vld [vmem:[%s7774_s10 + $0x148] sm:$0x3]  ;;  %s9502_s26 = smov 0  }
  0x22   : > { %v542_v46 = vsel %vm492_vm0, %v539_v27, %v541_v28  ;;  %v536_v47 = vrot.slane %v7919_v21, 1  ;;  %v7955_v53 = vpack.i.bf16 %v527_v34, %v525_v26  ;;  %v548_v58 = vrot.slane %v7926_v29, 1  ;;  %v7974_v20 = vld [vmem:[%s7774_s10 + $0x120] sm:$0xff]  ;;  %v7977_v22 = vld [vmem:[%s7774_s10 + $0x128] sm:$0xff]  ;;  %v7986_v34 = vld [vmem:[%s7774_s10 + $0x130] sm:$0x3] }
  0x23   : > { %11930 = vst [vmem:[#allocation8_spill] sm:$0xff] %v7933_v33  ;;  %6467 = vrot.lane.b32.xlu0 %v7913_v13, %s7706_s11  ;;  %v535_v54 = vsel %vm492_vm0, %v533_v35, %v534_v38  ;;  %v549_v59 = vrot.slane %v7929_v32, 1  ;;  %v551_v5 = vrot.slane %v7939_v39, 1  ;;  %v543_v14 = vrot.slane %v7942_v40, 1  ;;  %11932 = vst [vmem:[#allocation10_spill] sm:$0xff] %v7974_v20  ;;  %v7993_v13 = vld [vmem:[%s7774_s10 + $0x168] sm:$0xff] }
  0x24   : > { %11931 = vst [vmem:[#allocation9_spill] sm:$0xff] %v7955_v53  ;;  %v537_v4 = vsel %vm492_vm0, %v534_v38, %v536_v47  ;;  %v544_v15 = vrot.slane %v7945_v41, 1  ;;  %11933 = vst [vmem:[#allocation11_spill] sm:$0xff] %v7977_v22  ;;  %v7981_v26 = vpack.i.bf16 %v542_v46, %v540_v45  ;;  %v546_v28 = vrot.slane %v7951_v52, 1  ;;  %v7996_v45 = vld [vmem:[%s7774_s10 + $0x170] sm:$0xff] }
  0x25   : > { %6482 = vrot.lane.b32.xlu1 %v7933_v33, %s7706_s11  ;;  %v550_v27 = vsel %vm492_vm0, %v548_v58, %v549_v59  ;;  %11935 = vst [vmem:[#allocation13_spill] sm:$0xff] %v7986_v34  ;;  %v552_v35 = vsel %vm492_vm0, %v549_v59, %v551_v5  ;;  %v558_v38 = vrot.slane %v7961_v60, 1  ;;  %v559_v47 = vrot.slane %v7964_v63, 1  ;;  %11936 = vst [vmem:[#allocation14_spill] sm:$0xff] %v7993_v13  ;;  %v8005_v5 = vld [vmem:[%s7774_s10 + $0x178] sm:$0x3] }
  0x26   : > { %11934 = vst [vmem:[#allocation12_spill] sm:$0xff] %v7981_v26  ;;  %v561_v57 = vrot.slane %v7967_v3, 1  ;;  %11937 = vst [vmem:[#allocation15_spill] sm:$0xff] %v7996_v45  ;;  %v8000_v46 = vpack.i.bf16 %v537_v4, %v535_v54  ;;  %v553_v58 = vrot.slane %v7974_v20, 1  ;;  %v554_v59 = vrot.slane %v7977_v22, 1  ;;  %v8020_v22 = vld [vmem:[%s7774_s10 + $0x158] sm:$0xff] }
  0x27   : > { %6477 = vrot.lane.b32.xlu0 %v7955_v53, %s7706_s11  ;;  %v545_v33 = vsel %vm492_vm0, %v543_v14, %v544_v15  ;;  %v547_v44 = vsel %vm492_vm0, %v544_v15, %v546_v28  ;;  %v556_v51 = vrot.slane %v7986_v34, 1  ;;  %v8012_v19 = vpack.i.bf16 %v552_v35, %v550_v27  ;;  %v8017_v53 = vld [vmem:[%s7774_s10 + $0x150] sm:$0xff]  ;;  %v8023_v20 = vld [vmem:[%s7774_s10 + $0x160] sm:$0x3] }
  0x28   : > { %11938 = vst [vmem:[#allocation16_spill] sm:$0xff] %v8000_v46  ;;  %v568_v54 = vrot.slane %v7993_v13, 1  ;;  %v569_v4 = vrot.slane %v7996_v45, 1  ;;  %v560_v14 = vsel %vm492_vm0, %v558_v38, %v559_v47  ;;  %v562_v15 = vsel %vm492_vm0, %v559_v47, %v561_v57 }
  0x29   : > { %6492 = vrot.lane.b32.xlu1 %v7981_v26, %s7706_s11  ;;  %v571_v28 = vrot.slane %v8005_v5, 1  ;;  %v8030_v27 = vpack.i.bf16 %v547_v44, %v545_v33  ;;  %v555_v35 = vsel %vm492_vm0, %v553_v58, %v554_v59  ;;  %v557_v26 = vsel %vm492_vm0, %v554_v59, %v556_v51 }
  0x2a   : > { %v563_v45 = vrot.slane %v8017_v53, 1  ;;  %v564_v13 = vrot.slane %v8020_v22, 1  ;;  %v566_v34 = vrot.slane %v8023_v20, 1  ;;  %v8039_v57 = vpack.i.bf16 %v562_v15, %v560_v14 }
  0x2b   : > { %6487 = vrot.lane.b32.xlu0 %v8000_v46, %s7706_s11  ;;  %v570_v38 = vsel %vm492_vm0, %v568_v54, %v569_v4  ;;  %v572_v44 = vsel %vm492_vm0, %v569_v4, %v571_v28  ;;  %v675_v33 = vrot.slane %v7812_v17, 2  ;;  %v676_v47 = vrot.slane %v7815_v18, 2 }
  0x2c   : > { %v678_v51 = vrot.slane %v7823_v23, 2  ;;  %v8048_v58 = vpack.i.bf16 %v557_v26, %v555_v35  ;;  %v670_v59 = vrot.slane %v7789_v6, 2  ;;  %v671_v14 = vrot.slane %v7792_v7, 2 }
  0x2d   : > { %6502 = vrot.lane.b32.xlu1 %v8012_v19, %s7706_s11  ;;  %v673_v54 = vrot.slane %v7795_v8, 2  ;;  %v565_v4 = vsel %vm492_vm0, %v563_v45, %v564_v13  ;;  %v567_v15 = vsel %vm492_vm0, %v564_v13, %v566_v34  ;;  %v8057_v23 = vpack.i.bf16 %v572_v44, %v570_v38 }
  0x2e   : > { %v685_v28 = vrot.slane %v7800_v11, 2  ;;  %v686_v26 = vrot.slane %v7803_v12, 2  ;;  %v688_v35 = vrot.slane %v7809_v16, 2  ;;  %v683_v6 = vrot.slane %v7783_v2, 2 }
  0x2f   : > { %6497 = vrot.lane.b32.xlu0 %v8030_v27, %s7706_s11  ;;  %11939 = vst [vmem:[#allocation17_spill] sm:$0xff] %v8057_v23  ;;  %v677_v7 = vsel %vm669_vm1, %v675_v33, %v676_v47  ;;  %v679_v8 = vsel %vm669_vm1, %v676_v47, %v678_v51  ;;  %v8067_v13 = vpack.i.bf16 %v567_v15, %v565_v4  ;;  %v680_v45 = vrot.slane %v7777_v0, 2 }
  0x30   : > { %v672_v34 = vsel %vm669_vm1, %v670_v59, %v671_v14  ;;  %v681_v38 = vrot.slane %v7780_v1, 2  ;;  %v674_v44 = vsel %vm669_vm1, %v671_v14, %v673_v54  ;;  %v695_v16 = vrot.slane %v7826_v24, 2 }
  0x31   : > { %6512 = vrot.lane.b32.xlu1 %v8039_v57, %s7706_s11  ;;  %v696_v2 = vrot.slane %v7829_v25, 2  ;;  %v698_v33 = vrot.slane %v7836_v30, 2  ;;  %v8078_v47 = vpack.i.bf16 %v679_v8, %v677_v7  ;;  %v687_v51 = vsel %vm669_vm1, %v685_v28, %v686_v26 }
  0x32   : > { %v689_v59 = vsel %vm669_vm1, %v686_v26, %v688_v35  ;;  %v690_v4 = vrot.slane %v7839_v31, 2  ;;  %v691_v15 = vrot.slane %v7847_v36, 2  ;;  %v693_v14 = vrot.slane %v7850_v37, 2 }
  0x33   : > { %6507 = vrot.lane.b32.xlu0 %v8048_v58, %s7706_s11  ;;  %v6526_v54 = vpack.i.bf16 %v674_v44, %v672_v34  ;;  %v682_v30 = vsel %vm669_vm1, %v680_v45, %v681_v38  ;;  %v684_v46 = vsel %vm669_vm1, %v681_v38, %v683_v6  ;;  %v8089_v7 = vpack.i.bf16 %v689_v59, %v687_v51 }
  0x34   : > { %v697_v28 = vsel %vm669_vm1, %v695_v16, %v696_v2  ;;  %v699_v26 = vsel %vm669_vm1, %v696_v2, %v698_v33  ;;  %v705_v35 = vrot.slane %v7857_v42, 2  ;;  %v706_v37 = vrot.slane %v7860_v43, 2 }
  0x35   : > { %6522 = vrot.lane.b32.xlu1 %v8057_v23, %s7706_s11  ;;  %v708_v8 = vrot.slane %v7869_v48, 2  ;;  %v700_v34 = vrot.slane %v7872_v49, 2  ;;  %v701_v6 = vrot.slane %v7875_v50, 2  ;;  %v692_v45 = vsel %vm669_vm1, %v690_v4, %v691_v15 }
  0x36   : > { %v694_v38 = vsel %vm669_vm1, %v691_v15, %v693_v14  ;;  %v703_v44 = vrot.slane %v7883_v55, 2  ;;  %v8104_v16 = vpack.i.bf16 %v684_v46, %v682_v30  ;;  %v715_v2 = vrot.slane %v7886_v56, 2 }
  0x37   : > { %6517 = vrot.lane.b32.xlu0 %v8067_v13, %s7706_s11  ;;  %v716_v33 = vrot.slane %v7896_v61, 2  ;;  %v718_v48 = vrot.slane %v7899_v62, 2  ;;  %v8109_v51 = vpack.i.bf16 %v699_v26, %v697_v28  ;;  %v8113_v59 = vpack.i.bf16 %v694_v38, %v692_v45 }
  0x38   : > { %v707_v4 = vsel %vm669_vm1, %v705_v35, %v706_v37  ;;  %v709_v55 = vsel %vm669_vm1, %v706_v37, %v708_v8  ;;  %v702_v46 = vsel %vm669_vm1, %v700_v34, %v701_v6  ;;  %v704_v15 = vsel %vm669_vm1, %v701_v6, %v703_v44 }
  0x39   : > { %6532 = vrot.lane.b32.xlu1 %v8078_v47, %s7707_s12  ;;  %v710_v14 = vrot.slane %v7906_v9, 2  ;;  %v713_v62 = vrot.slane %v7919_v21, 2  ;;  %v717_v30 = vsel %vm669_vm1, %v715_v2, %v716_v33  ;;  %v719_v28 = vsel %vm669_vm1, %v716_v33, %v718_v48 }
  0x3a   : > { %v725_v26 = vrot.slane %v7926_v29, 2  ;;  %v726_v35 = vrot.slane %v7929_v32, 2  ;;  %v728_v37 = vrot.slane %v7939_v39, 2  ;;  %v720_v8 = vrot.slane %v7942_v40, 2 }
  0x3b   : > { %6527 = vrot.lane.b32.xlu0 %v6526_v54, %s7707_s12  ;;  %v711_v54 = vrot.slane %v7909_v10, 2  ;;  %v721_v34 = vrot.slane %v7945_v41, 2  ;;  %v723_v6 = vrot.slane %v7951_v52, 2  ;;  %v8134_v21 = vpack.i.bf16 %v709_v55, %v707_v4 }
  0x3c   : > { %v735_v45 = vrot.slane %v7961_v60, 2  ;;  %v736_v38 = vrot.slane %v7964_v63, 2  ;;  %v738_v44 = vrot.slane %v7967_v3, 2  ;;  %v8139_v2 = vpack.i.bf16 %v704_v15, %v702_v46  ;;  %v11942_v3 = vld [vmem:[#allocation10_spill] sm:$0xff] }
  0x3d   : > { %6542 = vrot.lane.b32.xlu1 %v8089_v7, %s7707_s12  ;;  %11940 = vst [vmem:[#allocation18_spill] sm:$0xff] %v8134_v21  ;;  %v8143_v39 = vpack.i.bf16 %v719_v28, %v717_v30  ;;  %v712_v52 = vsel %vm669_vm1, %v710_v14, %v711_v54  ;;  %v714_v33 = vsel %vm669_vm1, %v711_v54, %v713_v62  ;;  %v730_v46 = vrot.slane %v11942_v3, 2  ;;  %v11943_v14 = vld [vmem:[#allocation11_spill] sm:$0xff]  ;;  %v11944_v54 = vld [vmem:[#allocation13_spill] sm:$0xff] }
  0x3e   : > { %v727_v48 = vsel %vm669_vm1, %v725_v26, %v726_v35  ;;  %v729_v4 = vsel %vm669_vm1, %v726_v35, %v728_v37  ;;  %v722_v55 = vsel %vm669_vm1, %v720_v8, %v721_v34  ;;  %v724_v23 = vsel %vm669_vm1, %v721_v34, %v723_v6  ;;  %v11945_v35 = vld [vmem:[#allocation14_spill] sm:$0xff]  ;;  %v11946_v8 = vld [vmem:[#allocation15_spill] sm:$0xff] }
  0x3f   : > { %6537 = vrot.lane.b32.xlu0 %v8104_v16, %s7707_s12  ;;  %11941 = vst [vmem:[#allocation19_spill] sm:$0xff] %v8143_v39  ;;  %v737_v15 = vsel %vm669_vm1, %v735_v45, %v736_v38  ;;  %v739_v30 = vsel %vm669_vm1, %v736_v38, %v738_v44  ;;  %v731_v28 = vrot.slane %v11943_v14, 2  ;;  %v733_v62 = vrot.slane %v11944_v54, 2 }
  0x40   : > { %v8160_v26 = vpack.i.bf16 %v714_v33, %v712_v52  ;;  %v745_v37 = vrot.slane %v11945_v35, 2  ;;  %v746_v34 = vrot.slane %v11946_v8, 2  ;;  %v748_v6 = vrot.slane %v8005_v5, 2 }
  0x41   : > { %6552 = vrot.lane.b32.xlu1 %v8109_v51, %s7707_s12  ;;  %v8167_v45 = vpack.i.bf16 %v724_v23, %v722_v55  ;;  %v8169_v38 = vpack.i.bf16 %v739_v30, %v737_v15  ;;  %v732_v44 = vsel %vm669_vm1, %v730_v46, %v731_v28  ;;  %v734_v52 = vsel %vm669_vm1, %v731_v28, %v733_v62 }
  0x42   : > { %v747_v33 = vsel %vm669_vm1, %v745_v37, %v746_v34  ;;  %v749_v5 = vsel %vm669_vm1, %v746_v34, %v748_v6  ;;  %v741_v23 = vrot.slane %v8020_v22, 2  ;;  %v8186_v55 = vpack.i.bf16 %v734_v52, %v732_v44 }
  0x43   : > { %6547 = vrot.lane.b32.xlu0 %v8113_v59, %s7707_s12  ;;  %v8192_v30 = vpack.i.bf16 %v749_v5, %v747_v33  ;;  %v6611_v28 = vpack.i.bf16 %v7780_v1, %v7777_v0  ;;  %v6606_v54 = vpack.i.bf16 %v7815_v18, %v7812_v17  ;;  %v8209_v62 = vpack.i.bf16 %v7847_v36, %v7839_v31 }
  0x44   : > { %v6616_v37 = vpack.i.bf16 %v7803_v12, %v7800_v11  ;;  %v8218_v0 = vpack.i.bf16 %v7875_v50, %v7872_v49  ;;  %v8223_v1 = vpack.i.bf16 %v7829_v25, %v7826_v24  ;;  %v6641_v11 = vpack.i.bf16 %v7909_v10, %v7906_v9 }
  0x45   : > { %6562 = vrot.lane.b32.xlu1 %v8134_v21, %s7707_s12  ;;  %v8165_v21 = vpack.i.bf16 %v729_v4, %v727_v48  ;;  %v740_v48 = vrot.slane %v8017_v53, 2  ;;  %v743_v4 = vrot.slane %v8023_v20, 2  ;;  %v6636_v12 = vpack.i.bf16 %v7860_v43, %v7857_v42 }
  0x46   : > { %v6651_v17 = vpack.i.bf16 %v7945_v41, %v7942_v40  ;;  %v6646_v18 = vpack.i.bf16 %v7896_v61, %v7886_v56  ;;  %v8242_v9 = vpack.i.bf16 %v11943_v14, %v11942_v3  ;;  %v6656_v10 = vpack.i.bf16 %v7929_v32, %v7926_v29  ;;  %v438_v41 = vld [vmem:[%s7774_s10 + $0x180] sm:$0xff]  ;;  %v439_v56 = vld [vmem:[%s7774_s10 + $0x188] sm:$0xff]  ;;  %v440_v32 = vld [vmem:[%s7774_s10 + $0x190] sm:$0x3] }
  0x47   : > { %6557 = vrot.lane.b32.xlu0 %v8139_v2, %s7707_s12  ;;  %v742_v46 = vsel %vm669_vm1, %v740_v48, %v741_v23  ;;  %v744_v15 = vsel %vm669_vm1, %v741_v23, %v743_v4  ;;  %v8251_v40 = vpack.i.bf16 %v8020_v22, %v8017_v53  ;;  %v8258_v61 = vpack.i.bf16 %v7964_v63, %v7961_v60 }
  0x48   : > { %v8196_v20 = vpack.i.bf16 %v744_v15, %v742_v46  ;;  %v946_v34 = vrot.slane %v439_v56, 1  ;;  %v945_v6 = vrot.slane %v438_v41, 1  ;;  %v8262_v29 = vpack.i.bf16 %v439_v56, %v438_v41  ;;  %v11948_v46 = vld [vmem:[#allocation3_spill] sm:$0xff] }
  0x49   : > { %6572 = vrot.lane.b32.xlu1 %v8143_v39, %s7707_s12  ;;  %v948_v44 = vrot.slane %v440_v32, 1  ;;  %v8269_v52 = vpack.i.bf16 %v11946_v8, %v11945_v35  ;;  %v1047_v23 = vrot.slane %v439_v56, 2  ;;  %v1046_v4 = vrot.slane %v438_v41, 2  ;;  %v11951_v56 = vld [vmem:[#allocation4_spill] sm:$0xff] }
  0x4a   : > { %11947 = vst [vmem:[#allocation10_spill] sm:$0xff] %v8262_v29  ;;  %v947_v33 = vsel %vm492_vm0, %v945_v6, %v946_v34  ;;  %v1049_v15 = vrot.slane %v440_v32, 2 }
  0x4b   : > { %6567 = vrot.lane.b32.xlu0 %v8160_v26, %s7707_s12  ;;  %v949_v5 = vsel %vm492_vm0, %v946_v34, %v948_v44  ;;  %v7713_v44 = vmov 65535  }
  0x4c   : > { %v8275_v48 = vpack.i.bf16 %v949_v5, %v947_v33  ;;  %v1800_v33 = vsel %vm1799_vm2, 4294967295, %v7713_v44 }
  0x4d   : > { %6582 = vrot.lane.b32.xlu1 %v8165_v21, %s7707_s12  ;;  %v1801_v5 = vsel %vm669_vm1, %v1800_v33, 0 }
  0x4f   : > { %6577 = vrot.lane.b32.xlu0 %v8167_v45, %s7707_s12 }
  0x51   : > { %6592 = vrot.lane.b32.xlu1 %v8169_v38, %s7707_s12 }
  0x53   : > { %6587 = vrot.lane.b32.xlu0 %v8186_v55, %s7707_s12 }
  0x55   : > { %6602 = vrot.lane.b32.xlu1 %v8192_v30, %s7707_s12 }
  0x57   : > { %6597 = vrot.lane.b32.xlu0 %v8196_v20, %s7707_s12 }
  0x59   : > { %6612 = vrot.lane.b32.xlu1 %v6611_v28, %s7708_s13 }
  0x5b   : > { %6607 = vrot.lane.b32.xlu0 %v6606_v54, %s7708_s13  ;;  %v11949_v54 = vld [vmem:[#allocation5_spill] sm:$0xff] }
  0x5d   : > { %6622 = vrot.lane.b32.xlu1 %v8209_v62, %s7708_s13 }
  0x5f   : > { %6617 = vrot.lane.b32.xlu0 %v6616_v37, %s7708_s13 }
  0x61   : > { %6632 = vrot.lane.b32.xlu1 %v8218_v0, %s7708_s13 }
  0x63   : > { %6627 = vrot.lane.b32.xlu0 %v8223_v1, %s7708_s13 }
  0x65   : > { %6642 = vrot.lane.b32.xlu1 %v6641_v11, %s7708_s13  ;;  %v1048_v11 = vsel %vm669_vm1, %v1046_v4, %v1047_v23 }
  0x67   : > { %6637 = vrot.lane.b32.xlu0 %v6636_v12, %s7708_s13  ;;  %v1050_v12 = vsel %vm669_vm1, %v1047_v23, %v1049_v15 }
  0x68   : > { %v8287_v34 = vpack.i.bf16 %v1050_v12, %v1048_v11 }
  0x69   : > { %6652 = vrot.lane.b32.xlu1 %v6651_v17, %s7708_s13 }
  0x6b   : > { %6647 = vrot.lane.b32.xlu0 %v6646_v18, %s7708_s13  ;;  %v11950_v18 = vld [vmem:[#allocation12_spill] sm:$0xff] }
  0x6d   : > { %6662 = vrot.lane.b32.xlu1 %v8242_v9, %s7708_s13 }
  0x6f   : > { %6657 = vrot.lane.b32.xlu0 %v6656_v10, %s7708_s13 }
  0x71   : > { %6672 = vrot.lane.b32.xlu1 %v8251_v40, %s7708_s13 }
  0x73   : > { %6667 = vrot.lane.b32.xlu0 %v8258_v61, %s7708_s13 }
  0x75   : > { %6682 = vrot.lane.b32.xlu1 %v8262_v29, %s7708_s13 }
  0x77   : > { %6677 = vrot.lane.b32.xlu0 %v8269_v52, %s7708_s13 }
  0x79   : > { %6692 = vrot.lane.b32.xlu1 %v11948_v46, %s7709_s14 }
  0x7b   : > { %6687 = vrot.lane.b32.xlu0 %v11949_v54, %s7709_s14 }
  0x7d   : > { %6702 = vrot.lane.b32.xlu1 %v11950_v18, %s7709_s14 }
  0x7f   : > { %6697 = vrot.lane.b32.xlu0 %v11951_v56, %s7709_s14 }
  0x81   : > { %6712 = vrot.lane.b32.xlu1 %v8078_v47, %s7710_s15  ;;  %v7086_v47 = vld [vmem:[%s11764_s1] sm:$0xff]  }
  0x82   : > { %6265 = vmatprep.subr.bf16.mxu0 %v7086_v47  ;;  %6381 = vmatprep.subr.bf16.mxu1 %v7086_v47 }
  0x83   : > { %6707 = vrot.lane.b32.xlu0 %v8030_v27, %s7709_s14  ;;  %6266 = vmatpush3.bf16.msra.mxu0 %v7086_v47 }
  0x84   : > { %6383 = vmatpush3.bf16.msra.mxu1 %v7086_v47 }
  0x85   : > { %6722 = vrot.lane.b32.xlu1 %v8104_v16, %s7710_s15 }
  0x87   : > { %6717 = vrot.lane.b32.xlu0 %v8143_v39, %s7710_s15 }
  0x89   : > { %6732 = vrot.lane.b32.xlu1 %v6611_v28, %s7711_s16 }
  0x8b   : > { %6727 = vrot.lane.b32.xlu0 %v8167_v45, %s7710_s15  ;;  %v8302_v41 = vpop.permute.xlu1 %6457 }
  0x8d   : > { %v8304_v6 = vpop.permute.xlu0 %6447  ;;  %6742 = vrot.lane.b32.xlu1 %v6616_v37, %s7711_s16  ;;  %v7087_v37 = vld [vmem:[%s11764_s1 + $0x8] sm:$0x3f]  }
  0x8e   : > { %v1803_v4 = vand.u32 %v7087_v37, %v1801_v5 }
  0x8f   : > { %6737 = vrot.lane.b32.xlu0 %v6651_v17, %s7711_s16  ;;  %v8311_v32 = vpop.permute.xlu1 %6462 }
  0x90   : > { %11952 = vst [vmem:[#allocation11_spill] sm:$0xff] %v8311_v32  ;;  %6267 = vmatprep.subr.bf16.mxu0 %v1803_v4  ;;  %6382 = vmatprep.subr.bf16.mxu1 %v1803_v4 }
  0x91   : > { %v8313_v28 = vpop.permute.xlu0 %6452  ;;  %6752 = vrot.lane.b32.xlu1 %v11948_v46, %s7712_s19  ;;  %6268 = vmatpush3.bf16.msra.mxu0 %v1803_v4 }
  0x92   : > { %6384 = vmatpush3.bf16.msra.mxu1 %v1803_v4 }
  0x93   : > { %6747 = vrot.lane.b32.xlu0 %v6656_v10, %s7711_s16  ;;  %v6473_v17 = vpop.permute.xlu1 %6472 }
  0x94   : > { %v6475_v33 = vunpack.i.h.bf16 %v6473_v17  ;;  %v6474_v5 = vunpack.i.l.bf16 %v6473_v17 }
  0x95   : > { %v6468_v23 = vpop.permute.xlu0 %6467  ;;  %6762 = vrot.lane.b32.xlu1 %v11951_v56, %s7712_s19  ;;  %v11955_v56 = vld [vmem:[#allocation7_spill] sm:$0xff] }
  0x96   : > { %v1459_v17 = vsel %vm1448_vm3, %v7826_v24, %v6474_v5 }
  0x97   : > { %6757 = vrot.lane.b32.xlu0 %v8030_v27, %s7712_s19  ;;  %v8326_v46 = vpop.permute.xlu1 %6482 }
  0x98   : > { %v6485_v39 = vunpack.i.h.bf16 %v8326_v46 }
  0x99   : > { %v8328_v15 = vpop.permute.xlu0 %6477  ;;  %6772 = vrot.lane.b32.xlu1 %v8104_v16, %s7714_s22 }
  0x9b   : > { %6767 = vrot.lane.b32.xlu0 %v8012_v19, %s7712_s19  ;;  %v8334_v10 = vpop.permute.xlu1 %6492 }
  0x9d   : > { %v8336_v54 = vpop.permute.xlu0 %6487  ;;  %6782 = vrot.lane.b32.xlu1 %v8089_v7, %s7714_s22 }
  0x9f   : > { %6777 = vrot.lane.b32.xlu0 %v8167_v45, %s7714_s22  ;;  %v8342_v27 = vpop.permute.xlu1 %6502 }
  0xa0   : > { %11953 = vst [vmem:[#allocation13_spill] sm:$0xff] %v8342_v27 }
  0xa1   : > { %v8344_v11 = vpop.permute.xlu0 %6497  ;;  %6792 = vrot.lane.b32.xlu1 %v8012_v19, %s7709_s14 }
  0xa2   : > { %11954 = vst [vmem:[#allocation14_spill] sm:$0xff] %v8344_v11 }
  0xa3   : > { %6787 = vrot.lane.b32.xlu0 %v8165_v21, %s7714_s22  ;;  %v8350_v16 = vpop.permute.xlu1 %6512 }
  0xa5   : > { %v8352_v12 = vpop.permute.xlu0 %6507  ;;  %6802 = vrot.lane.b32.xlu1 %v8048_v58, %s7709_s14 }
  0xa7   : > { %6797 = vrot.lane.b32.xlu0 %v11955_v56, %s7709_s14  ;;  %v8358_v45 = vpop.permute.xlu1 %6522 }
  0xa9   : > { %v8360_v47 = vpop.permute.xlu0 %6517  ;;  %6812 = vrot.lane.b32.xlu1 %v8165_v21, %s7710_s15  ;;  %v6469_v21 = vunpack.i.l.bf16 %v6468_v23 }
  0xab   : > { %6807 = vrot.lane.b32.xlu0 %v8089_v7, %s7710_s15  ;;  %v8366_v19 = vpop.permute.xlu1 %6532  ;;  %v6470_v7 = vunpack.i.h.bf16 %v6468_v23  ;;  %v1457_v24 = vsel %vm1448_vm3, %v7839_v31, %v6469_v21 }
  0xad   : > { %v8368_v37 = vpop.permute.xlu0 %6527  ;;  %6822 = vrot.lane.b32.xlu1 %v8186_v55, %s7710_s15 }
  0xaf   : > { %6817 = vrot.lane.b32.xlu0 %v8113_v59, %s7710_s15  ;;  %v8374_v44 = vpop.permute.xlu1 %6542 }
  0xb0   : > { %11956 = vst [vmem:[#allocation15_spill] sm:$0xff] %v8374_v44  ;;  %v1460_v44 = vsel %vm1448_vm3, %v7829_v25, %v6475_v33  ;;  %v1458_v25 = vsel %vm1448_vm3, %v7847_v36, %v6470_v7  ;;  %v6479_v33 = vunpack.i.l.bf16 %v8328_v15  ;;  %v1464_v36 = vsel %vm1448_vm3, %v7860_v43, %v6485_v39 }
  0xb1   : > { %v8376_v4 = vpop.permute.xlu0 %6537  ;;  %6832 = vrot.lane.b32.xlu1 %v8242_v9, %s7711_s16  ;;  %v6484_v9 = vunpack.i.l.bf16 %v8326_v46  ;;  %v6480_v46 = vunpack.i.h.bf16 %v8328_v15 }
  0xb2   : > { %v1461_v43 = vsel %vm1448_vm3, %v7872_v49, %v6479_v33 }
  0xb3   : > { %6827 = vrot.lane.b32.xlu0 %v8209_v62, %s7711_s16  ;;  %v6553_v11 = vpop.permute.xlu1 %6552  ;;  %v1463_v31 = vsel %vm1448_vm3, %v7857_v42, %v6484_v9  ;;  %v1462_v21 = vsel %vm1448_vm3, %v7875_v50, %v6480_v46  ;;  %v11957_v50 = vld [vmem:[#allocation6_spill] sm:$0xff]  ;;  %v6514_v9 = vunpack.i.l.bf16 %v8350_v16 }
  0xb4   : > { %v6555_v27 = vunpack.i.h.bf16 %v6553_v11  ;;  %v6554_v32 = vunpack.i.l.bf16 %v6553_v11 }
  0xb5   : > { %v6548_v18 = vpop.permute.xlu0 %6547  ;;  %6842 = vrot.lane.b32.xlu1 %v8258_v61, %s7711_s16 }
  0xb6   : > { %v8391_v62 = vsel %vm1481_vm4, %v1460_v44, %v6555_v27  ;;  %v8394_v23 = vsel %vm1481_vm4, %v1459_v17, %v6554_v32  ;;  %v6550_v11 = vunpack.i.h.bf16 %v6548_v18  ;;  %v6549_v29 = vunpack.i.l.bf16 %v6548_v18 }
  0xb7   : > { %6837 = vrot.lane.b32.xlu0 %v8223_v1, %s7711_s16  ;;  %v6563_v61 = vpop.permute.xlu1 %6562 }
  0xb8   : > { %v8405_v27 = vsel %vm1481_vm4, %v1457_v24, %v6549_v29  ;;  %v8408_v32 = vsel %vm1481_vm4, %v1458_v25, %v6550_v11  ;;  %v6565_v18 = vunpack.i.h.bf16 %v6563_v61  ;;  %v6564_v44 = vunpack.i.l.bf16 %v6563_v61 }
  0xb9   : > { %v6558_v5 = vpop.permute.xlu0 %6557  ;;  %6852 = vrot.lane.b32.xlu1 %v8048_v58, %s7712_s19  ;;  %v6510_v25 = vunpack.i.h.bf16 %v8352_v12  ;;  %v6509_v24 = vunpack.i.l.bf16 %v8352_v12 }
  0xba   : > { %v8417_v1 = vsel %vm1481_vm4, %v1464_v36, %v6565_v18  ;;  %v8420_v29 = vsel %vm1481_vm4, %v1463_v31, %v6564_v44  ;;  %v6560_v15 = vunpack.i.h.bf16 %v6558_v5  ;;  %v6559_v7 = vunpack.i.l.bf16 %v6558_v5 }
  0xbb   : > { %6847 = vrot.lane.b32.xlu0 %v11955_v56, %s7712_s19  ;;  %v8428_v42 = vpop.permute.xlu1 %6572  ;;  %v6515_v56 = vunpack.i.h.bf16 %v8350_v16  ;;  %v1475_v16 = vsel %vm1448_vm3, %v7961_v60, %v6514_v9  ;;  %v6525_v44 = vunpack.i.h.bf16 %v8358_v45  ;;  %v1473_v60 = vsel %vm1448_vm3, %v11942_v3, %v6509_v24 }
  0xbc   : > { %v8431_v58 = vsel %vm1481_vm4, %v1461_v43, %v6559_v7  ;;  %v8434_v39 = vsel %vm1481_vm4, %v1462_v21, %v6560_v15  ;;  %v6519_v15 = vunpack.i.l.bf16 %v8360_v47 }
  0xbd   : > { %v8436_v17 = vpop.permute.xlu0 %6567  ;;  %6862 = vrot.lane.b32.xlu1 %v8039_v57, %s7712_s19  ;;  %v1476_v18 = vsel %vm1448_vm3, %v7964_v63, %v6515_v56  ;;  %v1474_v63 = vsel %vm1448_vm3, %v11943_v14, %v6510_v25  ;;  %v1480_v14 = vsel %vm1448_vm3, %v11946_v8, %v6525_v44 }
  0xbe   : > { %v1477_v8 = vsel %vm1448_vm3, %v8017_v53, %v6519_v15 }
  0xbf   : > { %6857 = vrot.lane.b32.xlu0 %v11957_v50, %s7712_s19  ;;  %v8442_v49 = vpop.permute.xlu1 %6582 }
  0xc1   : > { %v8446_v11 = vpop.permute.xlu0 %6577  ;;  %6872 = vrot.lane.b32.xlu1 %v8186_v55, %s7714_s22  ;;  %v6524_v55 = vunpack.i.l.bf16 %v8358_v45  ;;  %v6520_v45 = vunpack.i.h.bf16 %v8360_v47 }
  0xc3   : > { %6867 = vrot.lane.b32.xlu0 %v8113_v59, %s7714_s22  ;;  %v6593_v46 = vpop.permute.xlu1 %6592  ;;  %v1479_v3 = vsel %vm1448_vm3, %v11945_v35, %v6524_v55 }
  0xc4   : > { %v6595_v33 = vunpack.i.h.bf16 %v6593_v46  ;;  %v6594_v61 = vunpack.i.l.bf16 %v6593_v46 }
  0xc5   : > { %v6588_v36 = vpop.permute.xlu0 %6587  ;;  %6882 = vrot.lane.b32.xlu1 %v8169_v38, %s7714_s22 }
  0xc6   : > { %v8463_v12 = vsel %vm1481_vm4, %v1476_v18, %v6595_v33  ;;  %v8466_v59 = vsel %vm1481_vm4, %v1475_v16, %v6594_v61  ;;  %v6590_v31 = vunpack.i.h.bf16 %v6588_v36  ;;  %v6589_v5 = vunpack.i.l.bf16 %v6588_v36 }
  0xc7   : > { %6877 = vrot.lane.b32.xlu0 %v8109_v51, %s7714_s22  ;;  %v6603_v7 = vpop.permute.xlu1 %6602  ;;  %v1478_v61 = vsel %vm1448_vm3, %v8020_v22, %v6520_v45  ;;  %v11958_v22 = vld [vmem:[#allocation9_spill] sm:$0xff] }
  0xc8   : > { %v8477_v21 = vsel %vm1481_vm4, %v1473_v60, %v6589_v5  ;;  %v8480_v43 = vsel %vm1481_vm4, %v1474_v63, %v6590_v31  ;;  %v6605_v56 = vunpack.i.h.bf16 %v6603_v7  ;;  %v6604_v9 = vunpack.i.l.bf16 %v6603_v7 }
  0xc9   : > { %v6598_v25 = vpop.permute.xlu0 %6597  ;;  %6892 = vrot.lane.b32.xlu1 %v8039_v57, %s7709_s14 }
  0xca   : > { %v8489_v47 = vsel %vm1481_vm4, %v1480_v14, %v6605_v56  ;;  %v8492_v24 = vsel %vm1481_vm4, %v1479_v3, %v6604_v9  ;;  %v6600_v46 = vunpack.i.h.bf16 %v6598_v25  ;;  %v6599_v33 = vunpack.i.l.bf16 %v6598_v25  ;;  %v7088_v3 = vld [vmem:[%s7774_s10 + $0xa8] sm:$0xff]  ;;  %v7089_v25 = vld [vmem:[%s7774_s10 + $0xb0] sm:$0xff] }
  0xcb   : > { %6887 = vrot.lane.b32.xlu0 %v11957_v50, %s7709_s14  ;;  %v8500_v35 = vpop.permute.xlu1 %6612 }
  0xcc   : > { %v8503_v57 = vsel %vm1481_vm4, %v1477_v8, %v6599_v33  ;;  %v8506_v18 = vsel %vm1481_vm4, %v1478_v61, %v6600_v46  ;;  %v6936_v46 = vpack.i.bf16 %v7089_v25, %v7088_v3 }
  0xcd   : > { %v8508_v16 = vpop.permute.xlu0 %6607  ;;  %6902 = vrot.lane.b32.xlu1 %v8067_v13, %s7709_s14 }
  0xcf   : > { %6897 = vrot.lane.b32.xlu0 %v11958_v22, %s7709_s14  ;;  %v8514_v53 = vpop.permute.xlu1 %6622 }
  0xd1   : > { %v8516_v44 = vpop.permute.xlu0 %6617  ;;  %6912 = vrot.lane.b32.xlu1 %v8169_v38, %s7710_s15 }
  0xd3   : > { %6907 = vrot.lane.b32.xlu0 %v8109_v51, %s7710_s15  ;;  %v6633_v50 = vpop.permute.xlu1 %6632 }
  0xd4   : > { %v6635_v55 = vunpack.i.h.bf16 %v6633_v50  ;;  %v6634_v36 = vunpack.i.l.bf16 %v6633_v50  ;;  %v11965_v50 = vld [vmem:[#allocation17_spill] sm:$0xff] }
  0xd5   : > { %v6628_v31 = vpop.permute.xlu0 %6627  ;;  %6922 = vrot.lane.b32.xlu1 %v8196_v20, %s7710_s15 }
  0xd6   : > { %v8526_v5 = vsel %vm1514_vm5, %v8394_v23, %v6634_v36  ;;  %v8530_v63 = vsel %vm1514_vm5, %v8391_v62, %v6635_v55  ;;  %v6630_v38 = vunpack.i.h.bf16 %v6628_v31  ;;  %v6629_v60 = vunpack.i.l.bf16 %v6628_v31 }
  0xd7   : > { %11959 = vst [vmem:[#allocation3_spill] sm:$0xff] %v8526_v5  ;;  %11960 = vst [vmem:[#allocation5_spill] sm:$0xff] %v8530_v63  ;;  %6917 = vrot.lane.b32.xlu0 %v8139_v2, %s7710_s15  ;;  %v6643_v51 = vpop.permute.xlu1 %6642 }
  0xd8   : > { %v8536_v45 = vsel %vm1514_vm5, %v8405_v27, %v6629_v60  ;;  %v8540_v23 = vsel %vm1514_vm5, %v8408_v32, %v6630_v38  ;;  %v6645_v15 = vunpack.i.h.bf16 %v6643_v51  ;;  %v6644_v7 = vunpack.i.l.bf16 %v6643_v51 }
  0xd9   : > { %v6638_v62 = vpop.permute.xlu0 %6637  ;;  %6932 = vrot.lane.b32.xlu1 %v8251_v40, %s7711_s16 }
  0xda   : > { %v8546_v56 = vsel %vm1514_vm5, %v8420_v29, %v6644_v7  ;;  %v8550_v9 = vsel %vm1514_vm5, %v8417_v1, %v6645_v15  ;;  %v6640_v27 = vunpack.i.h.bf16 %v6638_v62  ;;  %v6639_v14 = vunpack.i.l.bf16 %v6638_v62  ;;  %v8602_v15 = vld [vmem:[%s7774_s10 + $0x1a8] sm:$0x3] }
  0xdb   : > { %11961 = vst [vmem:[#allocation4_spill] sm:$0xff] %v8546_v56  ;;  %11962 = vst [vmem:[#allocation7_spill] sm:$0xff] %v8550_v9  ;;  %6927 = vrot.lane.b32.xlu0 %v8218_v0, %s7711_s16  ;;  %v8554_v32 = vpop.permute.xlu1 %6652  ;;  %v6450_v9 = vunpack.i.h.bf16 %v8304_v6 }
  0xdc   : > { %v8560_v40 = vsel %vm1514_vm5, %v8431_v58, %v6639_v14  ;;  %v8564_v29 = vsel %vm1514_vm5, %v8434_v39, %v6640_v27 }
  0xdd   : > { %11963 = vst [vmem:[#allocation6_spill] sm:$0xff] %v8560_v40  ;;  %11964 = vst [vmem:[#allocation9_spill] sm:$0xff] %v8564_v29  ;;  %v8566_v1 = vpop.permute.xlu0 %6647  ;;  %6942 = vrot.lane.b32.xlu1 %v8269_v52, %s7711_s16  ;;  %v7099_v40 = vld [vmem:[%s7774_s10 + $0x18] sm:$0xff] }
  0xdf   : > { %6937 = vrot.lane.b32.xlu0 %v6936_v46, %s7711_s16  ;;  %v8571_v0 = vpop.permute.xlu1 %6662  ;;  %v6460_v46 = vunpack.i.h.bf16 %v8302_v41 }
  0xe1   : > { %v8573_v33 = vpop.permute.xlu0 %6657  ;;  %6952 = vrot.lane.b32.xlu1 %v8067_v13, %s7712_s19 }
  0xe3   : > { %6947 = vrot.lane.b32.xlu0 %v11958_v22, %s7712_s19  ;;  %v6673_v58 = vpop.permute.xlu1 %6672  ;;  %v11966_v22 = vld [vmem:[#allocation8_spill] sm:$0xff] }
  0xe4   : > { %v6675_v39 = vunpack.i.h.bf16 %v6673_v58  ;;  %v6674_v61 = vunpack.i.l.bf16 %v6673_v58  ;;  %v6459_v58 = vunpack.i.l.bf16 %v8302_v41 }
  0xe5   : > { %v6668_v8 = vpop.permute.xlu0 %6667  ;;  %6962 = vrot.lane.b32.xlu1 %v11965_v50, %s7712_s19 }
  0xe6   : > { %v8583_v52 = vsel %vm1514_vm5, %v8466_v59, %v6674_v61  ;;  %v8587_v55 = vsel %vm1514_vm5, %v8463_v12, %v6675_v39  ;;  %v6670_v13 = vunpack.i.h.bf16 %v6668_v8  ;;  %v6669_v36 = vunpack.i.l.bf16 %v6668_v8 }
  0xe7   : > { %6957 = vrot.lane.b32.xlu0 %v11966_v22, %s7712_s19  ;;  %v6683_v31 = vpop.permute.xlu1 %6682  ;;  %v6620_v61 = vunpack.i.h.bf16 %v8516_v44  ;;  %v6619_v8 = vunpack.i.l.bf16 %v8516_v44  ;;  %v7092_v44 = vld [vmem:[%s7774_s10 + $0x38] sm:$0xff] }
  0xe8   : > { %v8593_v38 = vsel %vm1514_vm5, %v8477_v21, %v6669_v36  ;;  %v8597_v59 = vsel %vm1514_vm5, %v8480_v43, %v6670_v13  ;;  %v6685_v60 = vunpack.i.h.bf16 %v6683_v31  ;;  %v6684_v51 = vunpack.i.l.bf16 %v6683_v31  ;;  %v8613_v43 = vld [vmem:[%s7774_s10 + $0x1a0] sm:$0xff]  ;;  %v11971_v13 = vld [vmem:[#allocation18_spill] sm:$0xff]  ;;  %v8651_v31 = vld [vmem:[%s7774_s10 + $0xc8] sm:$0xff] }
  0xe9   : > { %v6678_v12 = vpop.permute.xlu0 %6677  ;;  %6972 = vrot.lane.b32.xlu1 %v8196_v20, %s7714_s22  ;;  %v8620_v20 = vld [vmem:[%s7774_s10 + $0x198] sm:$0xff]  ;;  %v1247_v3 = vrot.slane %v8613_v43, 1  ;;  %v8648_v36 = vld [vmem:[%s7774_s10 + $0xc0] sm:$0xff] }
  0xea   : > { %v8606_v7 = vsel %vm1514_vm5, %v8492_v24, %v6684_v51  ;;  %v8610_v21 = vsel %vm1514_vm5, %v8489_v47, %v6685_v60  ;;  %v6680_v62 = vunpack.i.h.bf16 %v6678_v12  ;;  %v6679_v27 = vunpack.i.l.bf16 %v6678_v12 }
  0xeb   : > { %11967 = vst [vmem:[#allocation17_spill] sm:$0xff] %v8606_v7  ;;  %11968 = vst [vmem:[#allocation8_spill] sm:$0xff] %v8610_v21  ;;  %6967 = vrot.lane.b32.xlu0 %v8139_v2, %s7714_s22  ;;  %v8617_v14 = vpop.permute.xlu1 %6692  ;;  %v1246_v25 = vrot.slane %v8620_v20, 1  ;;  %v1249_v2 = vrot.slane %v8602_v15, 1  ;;  %v1348_v51 = vrot.slane %v8613_v43, 2  ;;  %v6449_v21 = vunpack.i.l.bf16 %v8304_v6 }
  0xec   : > { %v8625_v24 = vsel %vm1514_vm5, %v8503_v57, %v6679_v27  ;;  %v8629_v47 = vsel %vm1514_vm5, %v8506_v18, %v6680_v62  ;;  %v6540_v57 = vunpack.i.h.bf16 %v8376_v4  ;;  %v6539_v18 = vunpack.i.l.bf16 %v8376_v4  ;;  %v7093_v27 = vld [vmem:[%s7774_s10 + $0x30] sm:$0xff] }
  0xed   : > { %11969 = vst [vmem:[#allocation20_spill] sm:$0xff] %v8625_v24  ;;  %11970 = vst [vmem:[#allocation21_spill] sm:$0xff] %v8629_v47  ;;  %v8635_v39 = vpop.permute.xlu0 %6687  ;;  %6982 = vrot.lane.b32.xlu1 %v8192_v30, %s7714_s22  ;;  %v8657_v4 = vsel %vm492_vm0, %v1246_v25, %v1247_v3  ;;  %v8660_v12 = vsel %vm492_vm0, %v1247_v3, %v1249_v2  ;;  %v1454_v62 = vsel %vm1448_vm3, %v7092_v44, %v6460_v46 }
  0xee   : > { %v1453_v56 = vsel %vm1448_vm3, %v7093_v27, %v6459_v58  ;;  %v1487_v25 = vsel %vm1481_vm4, %v1454_v62, %v6540_v57  ;;  %v1347_v44 = vrot.slane %v8620_v20, 2  ;;  %v7096_v27 = vld [vmem:[%s7774_s10 + $0x8] sm:$0xff]  ;;  %v6529_v24 = vunpack.i.l.bf16 %v8368_v37 }
  0xef   : > { %6977 = vrot.lane.b32.xlu0 %v11971_v13, %s7714_s22  ;;  %v8645_v41 = vpop.permute.xlu1 %6702  ;;  %v1486_v3 = vsel %vm1481_vm4, %v1453_v56, %v6539_v18  ;;  %v1520_v58 = vsel %vm1514_vm5, %v1487_v25, %v6620_v61  ;;  %v8689_v61 = vld [vmem:[%s7774_s10 + $0xd8] sm:$0xff]  ;;  %v1450_v25 = vsel %vm1448_vm3, %v7096_v27, %v6450_v9  ;;  %v6489_v9 = vunpack.i.l.bf16 %v8336_v54 }
  0xf0   : > { %v1519_v46 = vsel %vm1514_vm5, %v1486_v3, %v6619_v8  ;;  %v8692_v8 = vld [vmem:[%s7774_s10 + $0xe0] sm:$0xff]  ;;  %v6534_v27 = vunpack.i.l.bf16 %v8366_v19 }
  0xf1   : > { %v6698_v60 = vpop.permute.xlu0 %6697  ;;  %6992 = vrot.lane.b32.xlu1 %v11965_v50, %s7709_s14  ;;  %v1350_v50 = vrot.slane %v8602_v15, 2  ;;  %v6454_v15 = vunpack.i.l.bf16 %v8313_v28  ;;  %v7097_v3 = vld [vmem:[%s7774_s10] sm:$0xff] }
  0xf2   : > { %v6700_v2 = vunpack.i.h.bf16 %v6698_v60  ;;  %v6699_v7 = vunpack.i.l.bf16 %v6698_v60  ;;  %v6455_v60 = vunpack.i.h.bf16 %v8313_v28  ;;  %v6494_v28 = vunpack.i.l.bf16 %v8334_v10 }
  0xf3   : > { %6987 = vrot.lane.b32.xlu0 %v11966_v22, %s7709_s14  ;;  %v8676_v6 = vpop.permute.xlu1 %6712  ;;  %v11972_v22 = vld [vmem:[#allocation16_spill] sm:$0xff]  ;;  %v8719_v29 = vsel %vm669_vm1, %v1348_v51, %v1350_v50  ;;  %v1451_v47 = vsel %vm1448_vm3, %v7099_v40, %v6454_v15 }
  0xf4   : > { %v8681_v57 = vsel %vm1547_vm6, %v1519_v46, %v6699_v7  ;;  %v8684_v56 = vsel %vm1547_vm6, %v1520_v58, %v6700_v2  ;;  %v1449_v2 = vsel %vm1448_vm3, %v7097_v3, %v6449_v21  ;;  %v6495_v46 = vunpack.i.h.bf16 %v8334_v10  ;;  %v7098_v10 = vld [vmem:[%s7774_s10 + $0x20] sm:$0xff] }
  0xf5   : > { %v8698_v62 = vpop.permute.xlu0 %6707  ;;  %7002 = vrot.lane.b32.xlu1 %v8275_v48, %s7709_s14  ;;  %v6490_v58 = vunpack.i.h.bf16 %v8336_v54  ;;  %v8716_v7 = vsel %vm669_vm1, %v1347_v44, %v1348_v51  ;;  %v6535_v21 = vunpack.i.h.bf16 %v8366_v19  ;;  %v1452_v3 = vsel %vm1448_vm3, %v7098_v10, %v6455_v60 }
  0xf6   : > { %v1468_v54 = vsel %vm1448_vm3, %v8692_v8, %v6495_v46  ;;  %v6530_v51 = vunpack.i.h.bf16 %v8368_v37  ;;  %v6575_v19 = vunpack.i.h.bf16 %v8428_v42  ;;  %v1467_v40 = vsel %vm1448_vm3, %v8689_v61, %v6494_v28 }
  0xf7   : > { %6997 = vrot.lane.b32.xlu0 %v11972_v22, %s7709_s14  ;;  %v8713_v18 = vpop.permute.xlu1 %6722  ;;  %v1466_v50 = vsel %vm1448_vm3, %v8651_v31, %v6490_v58  ;;  %v6574_v60 = vunpack.i.l.bf16 %v8428_v42  ;;  %v1465_v37 = vsel %vm1448_vm3, %v8648_v36, %v6489_v9  ;;  %v1484_v46 = vsel %vm1481_vm4, %v1451_v47, %v6534_v27 }
  0xf8   : > { %v1485_v10 = vsel %vm1481_vm4, %v1452_v3, %v6535_v21  ;;  %v6570_v28 = vunpack.i.h.bf16 %v8436_v17  ;;  %v1482_v58 = vsel %vm1481_vm4, %v1449_v2, %v6529_v24  ;;  %v6615_v42 = vunpack.i.h.bf16 %v8500_v35 }
  0xf9   : > { %v8729_v5 = vpop.permute.xlu0 %6717  ;;  %7012 = vrot.lane.b32.xlu1 %v8192_v30, %s7710_s15  ;;  %v6569_v30 = vunpack.i.l.bf16 %v8436_v17  ;;  %v6614_v44 = vunpack.i.l.bf16 %v8500_v35  ;;  %v1483_v47 = vsel %vm1481_vm4, %v1450_v25, %v6530_v51  ;;  %v1501_v9 = vsel %vm1481_vm4, %v1468_v54, %v6575_v19 }
  0xfa   : > { %v6610_v17 = vunpack.i.h.bf16 %v8508_v16  ;;  %v6654_v21 = vunpack.i.l.bf16 %v8554_v32  ;;  %v1500_v24 = vsel %vm1481_vm4, %v1467_v40, %v6574_v60  ;;  %v6655_v35 = vunpack.i.h.bf16 %v8554_v32 }
  0xfb   : > { %7007 = vrot.lane.b32.xlu0 %v11971_v13, %s7710_s15  ;;  %v8747_v15 = vpop.permute.xlu1 %6732  ;;  %v6609_v13 = vunpack.i.l.bf16 %v8508_v16  ;;  %v1498_v2 = vsel %vm1481_vm4, %v1465_v37, %v6569_v30  ;;  %v6649_v27 = vunpack.i.l.bf16 %v8566_v1  ;;  %v1499_v25 = vsel %vm1481_vm4, %v1466_v50, %v6570_v28  ;;  %v11973_v37 = vld [vmem:[#allocation10_spill] sm:$0xff] }
  0xfc   : > { %v6650_v16 = vunpack.i.h.bf16 %v8566_v1  ;;  %v6695_v54 = vunpack.i.h.bf16 %v8617_v14  ;;  %v6694_v51 = vunpack.i.l.bf16 %v8617_v14  ;;  %v1517_v19 = vsel %vm1514_vm5, %v1484_v46, %v6614_v44 }
  0xfd   : > { %v8758_v63 = vpop.permute.xlu0 %6727  ;;  %7022 = vrot.lane.b32.xlu1 %v8287_v34, %s7710_s15  ;;  %v1518_v32 = vsel %vm1514_vm5, %v1485_v10, %v6615_v42  ;;  %v1515_v40 = vsel %vm1514_vm5, %v1482_v58, %v6609_v13  ;;  %v6689_v60 = vunpack.i.l.bf16 %v8635_v39  ;;  %v1516_v1 = vsel %vm1514_vm5, %v1483_v47, %v6610_v17 }
  0xfe   : > { %v8788_v50 = vsel %vm1514_vm5, %v1500_v24, %v6654_v21  ;;  %v6690_v14 = vunpack.i.h.bf16 %v8635_v39  ;;  %v6704_v44 = vunpack.i.l.bf16 %v8645_v41  ;;  %v8793_v46 = vsel %vm1514_vm5, %v1501_v9, %v6655_v35 }
  0xff   : > { %7017 = vrot.lane.b32.xlu0 %v8160_v26, %s7710_s15  ;;  %v8772_v3 = vpop.permute.xlu1 %6742  ;;  %v1531_v10 = vsel %vm1514_vm5, %v1498_v2, %v6649_v27  ;;  %v6705_v28 = vunpack.i.h.bf16 %v8645_v41  ;;  %v6714_v58 = vunpack.i.l.bf16 %v8676_v6  ;;  %v11974_v42 = vpack.i.bf16 %v8651_v31, %v8648_v36 }
 0x100   : > { %v1532_v39 = vsel %vm1514_vm5, %v1499_v25, %v6650_v16  ;;  %v1550_v47 = vsel %vm1547_vm6, %v1517_v19, %v6694_v51  ;;  %v1551_v9 = vsel %vm1547_vm6, %v1518_v32, %v6695_v54  ;;  %v6715_v17 = vunpack.i.h.bf16 %v8676_v6 }
 0x101   : > { %v8782_v30 = vpop.permute.xlu0 %6737  ;;  %7032 = vrot.lane.b32.xlu1 %v11973_v37, %s7711_s16  ;;  %v1548_v21 = vsel %vm1547_vm6, %v1515_v40, %v6689_v60  ;;  %v6725_v41 = vunpack.i.h.bf16 %v8713_v18  ;;  %v6724_v24 = vunpack.i.l.bf16 %v8713_v18  ;;  %v6719_v2 = vunpack.i.l.bf16 %v8729_v5 }
 0x102   : > { %v11975_v31 = vpack.i.bf16 %v8613_v43, %v8620_v20  ;;  %v1549_v35 = vsel %vm1547_vm6, %v1516_v1, %v6690_v14  ;;  %v1564_v27 = vsel %vm1547_vm6, %v1531_v10, %v6704_v44  ;;  %v6720_v6 = vunpack.i.h.bf16 %v8729_v5 }
 0x103   : > { %7027 = vrot.lane.b32.xlu0 %v11974_v42, %s7711_s16  ;;  %v6753_v13 = vpop.permute.xlu1 %6752  ;;  %v6734_v25 = vunpack.i.l.bf16 %v8747_v15  ;;  %v1565_v18 = vsel %vm1547_vm6, %v1532_v39, %v6705_v28  ;;  %v1581_v16 = vsel %vm1580_vm7, %v1548_v21, %v6714_v58  ;;  %v6735_v54 = vunpack.i.h.bf16 %v8747_v15 }
 0x104   : > { %v6744_v51 = vunpack.i.l.bf16 %v8772_v3  ;;  %v11976_v43 = vpack.i.bf16 %v8692_v8, %v8689_v61  ;;  %v1582_v5 = vsel %vm1580_vm7, %v1549_v35, %v6715_v17  ;;  %v6710_v19 = vunpack.i.h.bf16 %v8698_v62 }
 0x105   : > { %v8810_v36 = vpop.permute.xlu0 %6747  ;;  %7042 = vrot.lane.b32.xlu1 %v11975_v31, %s7711_s16  ;;  %v6709_v32 = vunpack.i.l.bf16 %v8698_v62  ;;  %v6754_v40 = vunpack.i.l.bf16 %v6753_v13  ;;  %v1583_v60 = vsel %vm1580_vm7, %v1550_v47, %v6724_v24  ;;  %v1584_v15 = vsel %vm1580_vm7, %v1551_v9, %v6725_v41 }
 0x106   : > { %v1597_v37 = vsel %vm1580_vm7, %v1564_v27, %v6719_v2  ;;  %v6755_v1 = vunpack.i.h.bf16 %v6753_v13  ;;  %v1598_v61 = vsel %vm1580_vm7, %v1565_v18, %v6720_v6  ;;  %v1614_v8 = vsel %vm1613_vm8, %v1581_v16, %v6734_v25  ;;  %v11978_v25 = vld [vmem:[#allocation12_spill] sm:$0xff] }
 0x107   : > { %7037 = vrot.lane.b32.xlu0 %v11976_v43, %s7711_s16  ;;  %v8828_v20 = vpop.permute.xlu1 %6762  ;;  %v6745_v44 = vunpack.i.h.bf16 %v8772_v3  ;;  %v6739_v10 = vunpack.i.l.bf16 %v8782_v30  ;;  %v1615_v28 = vsel %vm1613_vm8, %v1582_v5, %v6735_v54  ;;  %v6730_v58 = vunpack.i.h.bf16 %v8758_v63 }
 0x108   : > { %v6729_v42 = vunpack.i.l.bf16 %v8758_v63  ;;  %v8848_v13 = vsel %vm1613_vm8, %v1583_v60, %v6744_v51  ;;  %v6740_v39 = vunpack.i.h.bf16 %v8782_v30  ;;  %v1647_v3 = vsel %vm1646_vm9, %v1614_v8, %v6754_v40 }
 0x109   : > { %v8836_v14 = vpop.permute.xlu0 %6757  ;;  %7052 = vrot.lane.b32.xlu1 %v8275_v48, %s7712_s19  ;;  %v6765_v17 = vunpack.i.h.bf16 %v8828_v20  ;;  %v6764_v21 = vunpack.i.l.bf16 %v8828_v20  ;;  %v11977_v2 = vpack.i.bf16 %v8660_v12, %v8657_v4  ;;  %v8865_v30 = vsel %vm1613_vm8, %v1584_v15, %v6745_v44 }
 0x10a   : > { %v6759_v41 = vunpack.i.l.bf16 %v8836_v14  ;;  %v8868_v31 = vsel %vm1613_vm8, %v1597_v37, %v6739_v10  ;;  %v6760_v6 = vunpack.i.h.bf16 %v8836_v14  ;;  %v8884_v18 = vsel %vm1613_vm8, %v1598_v61, %v6740_v39 }
 0x10b   : > { %7047 = vrot.lane.b32.xlu0 %v11972_v22, %s7712_s19  ;;  %v6773_v48 = vpop.permute.xlu1 %6772  ;;  %v1648_v22 = vsel %vm1646_vm9, %v1615_v28, %v6755_v1  ;;  %v6750_v16 = vunpack.i.h.bf16 %v8810_v36  ;;  %v7715_v43 = vmov 0.0   ;;  %v6749_v5 = vunpack.i.l.bf16 %v8810_v36 }
 0x10c   : > { %v6775_v47 = vunpack.i.h.bf16 %v6773_v48  ;;  %v6774_v9 = vunpack.i.l.bf16 %v6773_v48  ;;  %281 = vst.msk [vmem:[#allocation2] sm:$0xff] %vm280_vm12, %v7715_v43  ;;  %282 = vst.msk [vmem:[#allocation2 + $0x8] sm:$0xff] %vm280_vm12, %v7715_v43  ;;  %v1649_v40 = vsel %vm1646_vm9, %v8848_v13, %v6764_v21  ;;  %v1650_v60 = vsel %vm1646_vm9, %v8865_v30, %v6765_v17  ;;  %v11980_v17 = vld [vmem:[#allocation19_spill] sm:$0xff] }
 0x10d   : > { %v8857_v24 = vpop.permute.xlu0 %6767  ;;  %7062 = vrot.lane.b32.xlu1 %v11977_v2, %s7712_s19  ;;  %288 = vst.msk [vmem:[#allocation2 + $0x30] sm:$0xff] %vm280_vm12, %v7715_v43  ;;  %289 = vst.msk [vmem:[#allocation2 + $0x38] sm:$0xff] %vm280_vm12, %v7715_v43  ;;  %v1663_v37 = vsel %vm1646_vm9, %v8868_v31, %v6759_v41  ;;  %v1664_v13 = vsel %vm1646_vm9, %v8884_v18, %v6760_v6  ;;  %v1567_v48 = vsel %vm1547_vm6, %v8793_v46, %v6710_v19 }
 0x10e   : > { %v8871_v35 = vsel %vm1679_vm10, %v1647_v3, %v6774_v9  ;;  %v8874_v27 = vsel %vm1679_vm10, %v1648_v22, %v6775_v47  ;;  %333 = vst.msk [vmem:[#allocation2 + $0x198] sm:$0xff] %vm280_vm12, %v7715_v43  ;;  %334 = vst.msk [vmem:[#allocation2 + $0x1a0] sm:$0xff] %vm280_vm12, %v7715_v43  ;;  %v6770_v8 = vunpack.i.h.bf16 %v8857_v24  ;;  %v6769_v44 = vunpack.i.l.bf16 %v8857_v24  ;;  %v11981_v22 = vld [vmem:[#allocation11_spill] sm:$0xff] }
 0x10f   : > { %7057 = vrot.lane.b32.xlu0 %v11978_v25, %s7712_s19  ;;  %v8879_v4 = vpop.permute.xlu1 %6782  ;;  %v1712_v12 = vpack.c.bf16 %v8874_v27, %v8871_v35  ;;  %336 = vst.msk [vmem:[#allocation2 + $0x1b0] sm:$0xff] %vm280_vm12, %v7715_v43  ;;  %337 = vst.msk [vmem:[#allocation2 + $0x1b8] sm:$0xff] %vm280_vm12, %v7715_v43  ;;  %v1566_v39 = vsel %vm1547_vm6, %v8788_v50, %v6709_v32  ;;  %v1600_v9 = vsel %vm1580_vm7, %v1567_v48, %v6730_v58  ;;  %v11982_v35 = vld [vmem:[#allocation13_spill] sm:$0xff]  ;;  %v11983_v25 = vld [vmem:[#allocation14_spill] sm:$0xff] }
 0x110   : > { %v6785_v54 = vunpack.i.h.bf16 %v8879_v4  ;;  %v6784_v51 = vunpack.i.l.bf16 %v8879_v4  ;;  %339 = vst.msk [vmem:[#allocation2 + $0x1c8] sm:$0xff] %vm280_vm12, %v7715_v43  ;;  %340 = vst.msk [vmem:[#allocation2 + $0x1d0] sm:$0xff] %vm280_vm12, %v7715_v43  ;;  %v1599_v14 = vsel %vm1580_vm7, %v1566_v39, %v6729_v42  ;;  %v11979_v62 = vpack.i.bf16 %v8719_v29, %v8716_v7  ;;  %v7105_v48 = vld [vmem:[%s7774_s10 + $0xf0] sm:$0xff] }
 0x111   : > { %342 = vst.msk [vmem:[#allocation2 + $0x1e0] sm:$0xff] %vm280_vm12, %v7715_v43  ;;  %343 = vst.msk [vmem:[#allocation2 + $0x1e8] sm:$0xff] %vm280_vm12, %v7715_v43  ;;  %v6778_v15 = vpop.permute.xlu0 %6777  ;;  %7072 = vrot.lane.b32.xlu1 %v8287_v34, %s7714_s22  ;;  %6269 = vmatprep.mubr.msk.bf16.mxu0 %vm1750_vm11, %v1712_v12  ;;  %v1632_v46 = vsel %vm1613_vm8, %v1599_v14, %v6749_v5  ;;  %v1633_v19 = vsel %vm1613_vm8, %v1600_v9, %v6750_v16  ;;  %v6465_v30 = vunpack.i.h.bf16 %v11981_v22  ;;  %v11984_v16 = vld [vmem:[#allocation15_spill] sm:$0xff] }
 0x112   : > { %345 = vst.msk [vmem:[#allocation2 + $0x1f8] sm:$0xff] %vm280_vm12, %v7715_v43  ;;  %346 = vst.msk [vmem:[#allocation2 + $0x200] sm:$0xff] %vm280_vm12, %v7715_v43  ;;  %v1682_v20 = vsel %vm1679_vm10, %v1649_v40, %v6784_v51  ;;  %v1683_v1 = vsel %vm1679_vm10, %v1650_v60, %v6785_v54  ;;  %v6780_v61 = vunpack.i.h.bf16 %v6778_v15  ;;  %v6779_v34 = vunpack.i.l.bf16 %v6778_v15  ;;  %v7100_v15 = vld [vmem:[%s7774_s10 + $0x50] sm:$0xff] }
 0x113   : > { %348 = vst.msk [vmem:[#allocation2 + $0x210] sm:$0xff] %vm280_vm12, %v7715_v43  ;;  %349 = vst.msk [vmem:[#allocation2 + $0x218] sm:$0xff] %vm280_vm12, %v7715_v43  ;;  %v1713_v10 = vpack.c.bf16 %v1683_v1, %v1682_v20  ;;  %7067 = vrot.lane.b32.xlu0 %v8160_v26, %s7714_s22  ;;  %v9062_v28 = vpop.permute.xlu1 %6792  ;;  %v1665_v63 = vsel %vm1646_vm9, %v1632_v46, %v6769_v44  ;;  %v1666_v58 = vsel %vm1646_vm9, %v1633_v19, %v6770_v8  ;;  %v7101_v20 = vld [vmem:[%s7774_s10 + $0x48] sm:$0xff] }
 0x114   : > { %351 = vst.msk [vmem:[#allocation2 + $0x228] sm:$0xff] %vm280_vm12, %v7715_v43  ;;  %352 = vst.msk [vmem:[#allocation2 + $0x230] sm:$0xff] %vm280_vm12, %v7715_v43  ;;  %v1696_v47 = vsel %vm1679_vm10, %v1663_v37, %v6779_v34  ;;  %v1697_v26 = vsel %vm1679_vm10, %v1664_v13, %v6780_v61  ;;  %v6464_v31 = vunpack.i.l.bf16 %v11981_v22  ;;  %v6505_v27 = vunpack.i.h.bf16 %v11982_v35  ;;  %v7102_v61 = vld [vmem:[%s7774_s10 + $0x110] sm:$0xff]  ;;  %v7103_v8 = vld [vmem:[%s7774_s10 + $0x108] sm:$0xff] }
 0x115   : > { %354 = vst.msk [vmem:[#allocation2 + $0x240] sm:$0xff] %vm280_vm12, %v7715_v43  ;;  %355 = vst.msk [vmem:[#allocation2 + $0x248] sm:$0xff] %vm280_vm12, %v7715_v43  ;;  %v6788_v3 = vpop.permute.xlu0 %6787  ;;  %7082 = vrot.lane.b32.xlu1 %v11979_v62, %s7714_s22  ;;  %6270 = vmatmul.mubr.msk.bf16.vlgmr.msra.gmra.mrb[0].mxu0 %vm1750_vm11, %v1713_v10  ;;  %v1720_v50 = vpack.c.bf16 %v1697_v26, %v1696_v47  ;;  %v6504_v6 = vunpack.i.l.bf16 %v11982_v35  ;;  %v6500_v4 = vunpack.i.h.bf16 %v11983_v25  ;;  %v6499_v12 = vunpack.i.l.bf16 %v11983_v25  ;;  %v7104_v10 = vld [vmem:[%s7774_s10 + $0xf8] sm:$0xff] }
 0x116   : > { %357 = vst.msk [vmem:[#allocation2 + $0x258] sm:$0xff] %vm280_vm12, %v7715_v43  ;;  %358 = vst.msk [vmem:[#allocation2 + $0x260] sm:$0xff] %vm280_vm12, %v7715_v43  ;;  %v6790_v32 = vunpack.i.h.bf16 %v6788_v3  ;;  %v6789_v42 = vunpack.i.l.bf16 %v6788_v3  ;;  %v6545_v54 = vunpack.i.h.bf16 %v11984_v16  ;;  %v6544_v51 = vunpack.i.l.bf16 %v11984_v16 }
 0x117   : > { %360 = vst.msk [vmem:[#allocation2 + $0x270] sm:$0xff] %vm280_vm12, %v7715_v43  ;;  %361 = vst.msk [vmem:[#allocation2 + $0x278] sm:$0xff] %vm280_vm12, %v7715_v43  ;;  %7077 = vrot.lane.b32.xlu0 %v11980_v17, %s7714_s22  ;;  %6285 = vmatprep.mubr.msk.bf16.mxu1 %vm1750_vm11, %v1720_v50  ;;  %v9098_v29 = vpop.permute.xlu1 %6802  ;;  %v6585_v5 = vunpack.i.h.bf16 %v8442_v49  ;;  %v6584_v40 = vunpack.i.l.bf16 %v8442_v49  ;;  %v1456_v37 = vsel %vm1448_vm3, %v7100_v15, %v6465_v30  ;;  %v6580_v39 = vunpack.i.h.bf16 %v8446_v11 }
 0x118   : > { %363 = vst.msk [vmem:[#allocation2 + $0x288] sm:$0xff] %vm280_vm12, %v7715_v43  ;;  %364 = vst.msk [vmem:[#allocation2 + $0x290] sm:$0xff] %vm280_vm12, %v7715_v43  ;;  %v1698_v7 = vsel %vm1679_vm10, %v1665_v63, %v6789_v42  ;;  %v1699_v21 = vsel %vm1679_vm10, %v1666_v58, %v6790_v32  ;;  %v1455_v1 = vsel %vm1448_vm3, %v7101_v20, %v6464_v31  ;;  %v6579_v47 = vunpack.i.l.bf16 %v8446_v11 }
 0x119   : > { %366 = vst.msk [vmem:[#allocation2 + $0x2a0] sm:$0xff] %vm280_vm12, %v7715_v43  ;;  %367 = vst.msk [vmem:[#allocation2 + $0x2a8] sm:$0xff] %vm280_vm12, %v7715_v43  ;;  %v1721_v36 = vpack.c.bf16 %v1699_v21, %v1698_v7  ;;  %v9102_v41 = vpop.permute.xlu0 %6797  ;;  %v1472_v34 = vsel %vm1448_vm3, %v7102_v61, %v6505_v27  ;;  %v1471_v44 = vsel %vm1448_vm3, %v7103_v8, %v6504_v6  ;;  %v6625_v3 = vunpack.i.h.bf16 %v8514_v53 }
 0x11a   : > { %369 = vst.msk [vmem:[#allocation2 + $0x2b8] sm:$0xff] %vm280_vm12, %v7715_v43  ;;  %370 = vst.msk [vmem:[#allocation2 + $0x2c0] sm:$0xff] %vm280_vm12, %v7715_v43  ;;  %v1470_v13 = vsel %vm1448_vm3, %v7104_v10, %v6500_v4  ;;  %v1469_v49 = vsel %vm1448_vm3, %v7105_v48, %v6499_v12  ;;  %v1489_v14 = vsel %vm1481_vm4, %v1456_v37, %v6545_v54  ;;  %v6624_v62 = vunpack.i.l.bf16 %v8514_v53 }
 0x11b   : > { %372 = vst.msk [vmem:[#allocation2 + $0x2d0] sm:$0xff] %vm280_vm12, %v7715_v43  ;;  %373 = vst.msk [vmem:[#allocation2 + $0x2d8] sm:$0xff] %vm280_vm12, %v7715_v43  ;;  %6286 = vmatmul.mubr.msk.bf16.vlgmr.msra.gmra.mrb[0].mxu1 %vm1750_vm11, %v1721_v36  ;;  %v9105_v24 = vpop.permute.xlu1 %6812  ;;  %v1488_v9 = vsel %vm1481_vm4, %v1455_v1, %v6544_v51  ;;  %v1505_v50 = vsel %vm1481_vm4, %v1472_v34, %v6585_v5  ;;  %v1504_v46 = vsel %vm1481_vm4, %v1471_v44, %v6584_v40 }
 0x11c   : > { %375 = vst.msk [vmem:[#allocation2 + $0x2e8] sm:$0xff] %vm280_vm12, %v7715_v43  ;;  %376 = vst.msk [vmem:[#allocation2 + $0x2f0] sm:$0xff] %vm280_vm12, %v7715_v43  ;;  %v6660_v19 = vunpack.i.h.bf16 %v8573_v33  ;;  %v6659_v32 = vunpack.i.l.bf16 %v8573_v33  ;;  %v6665_v11 = vunpack.i.h.bf16 %v8571_v0  ;;  %v6664_v63 = vunpack.i.l.bf16 %v8571_v0 }
 0x11d   : > { %378 = vst.msk [vmem:[#allocation2 + $0x300] sm:$0xff] %vm280_vm12, %v7715_v43  ;;  %379 = vst.msk [vmem:[#allocation2 + $0x308] sm:$0xff] %vm280_vm12, %v7715_v43  ;;  %v9107_v2 = vpop.permute.xlu0 %6807  ;;  %v6795_v58 = vunpack.i.h.bf16 %v9062_v28  ;;  %v6794_v17 = vunpack.i.l.bf16 %v9062_v28  ;;  %v1502_v7 = vsel %vm1481_vm4, %v1469_v49, %v6579_v47  ;;  %v1503_v53 = vsel %vm1481_vm4, %v1470_v13, %v6580_v39 }
 0x11e   : > { %381 = vst.msk [vmem:[#allocation2 + $0x318] sm:$0xff] %vm280_vm12, %v7715_v43  ;;  %382 = vst.msk [vmem:[#allocation2 + $0x320] sm:$0xff] %vm280_vm12, %v7715_v43  ;;  %v6805_v21 = vunpack.i.h.bf16 %v9098_v29  ;;  %v6804_v36 = vunpack.i.l.bf16 %v9098_v29  ;;  %v1521_v33 = vsel %vm1514_vm5, %v1488_v9, %v6624_v62  ;;  %v1522_v30 = vsel %vm1514_vm5, %v1489_v14, %v6625_v3 }
 0x11f   : > { %384 = vst.msk [vmem:[#allocation2 + $0x330] sm:$0xff] %vm280_vm12, %v7715_v43  ;;  %385 = vst.msk [vmem:[#allocation2 + $0x338] sm:$0xff] %vm280_vm12, %v7715_v43  ;;  %v9115_v18 = vpop.permute.xlu1 %6822  ;;  %v6800_v31 = vunpack.i.h.bf16 %v9102_v41  ;;  %v6799_v0 = vunpack.i.l.bf16 %v9102_v41  ;;  %v1535_v35 = vsel %vm1514_vm5, %v1502_v7, %v6659_v32  ;;  %v1536_v28 = vsel %vm1514_vm5, %v1503_v53, %v6660_v19 }
 0x120   : > { %387 = vst.msk [vmem:[#allocation2 + $0x348] sm:$0xff] %vm280_vm12, %v7715_v43  ;;  %388 = vst.msk [vmem:[#allocation2 + $0x350] sm:$0xff] %vm280_vm12, %v7715_v43  ;;  %v6815_v27 = vunpack.i.h.bf16 %v9105_v24  ;;  %v6814_v6 = vunpack.i.l.bf16 %v9105_v24  ;;  %v1537_v29 = vsel %vm1514_vm5, %v1504_v46, %v6664_v63  ;;  %v1538_v4 = vsel %vm1514_vm5, %v1505_v50, %v6665_v11 }
 0x121   : > { %285 = vst.msk [vmem:[#allocation2 + $0x18] sm:$0xff] %vm280_vm12, %v7715_v43  ;;  %286 = vst.msk [vmem:[#allocation2 + $0x20] sm:$0xff] %vm280_vm12, %v7715_v43  ;;  %v9121_v60 = vpop.permute.xlu0 %6817  ;;  %v1568_v12 = vsel %vm1547_vm6, %v1535_v35, %v6794_v17  ;;  %v1569_v16 = vsel %vm1547_vm6, %v1536_v28, %v6795_v58  ;;  %v1570_v41 = vsel %vm1547_vm6, %v1537_v29, %v6804_v36  ;;  %v6810_v51 = vunpack.i.h.bf16 %v9107_v2 }
 0x122   : > { %291 = vst.msk [vmem:[#allocation2 + $0x48] sm:$0xff] %vm280_vm12, %v7715_v43  ;;  %292 = vst.msk [vmem:[#allocation2 + $0x50] sm:$0xff] %vm280_vm12, %v7715_v43  ;;  %v1571_v54 = vsel %vm1547_vm6, %v1538_v4, %v6805_v21  ;;  %v6809_v5 = vunpack.i.l.bf16 %v9107_v2  ;;  %v1555_v24 = vsel %vm1547_vm6, %v1522_v30, %v6800_v31  ;;  %v1554_v15 = vsel %vm1547_vm6, %v1521_v33, %v6799_v0 }
 0x123   : > { %294 = vst.msk [vmem:[#allocation2 + $0x60] sm:$0xff] %vm280_vm12, %v7715_v43  ;;  %295 = vst.msk [vmem:[#allocation2 + $0x68] sm:$0xff] %vm280_vm12, %v7715_v43  ;;  %v9137_v26 = vpop.permute.xlu1 %6832  ;;  %v6825_v37 = vunpack.i.h.bf16 %v9115_v18  ;;  %v6824_v20 = vunpack.i.l.bf16 %v9115_v18  ;;  %v1601_v1 = vsel %vm1580_vm7, %v1568_v12, %v6814_v6  ;;  %v1602_v61 = vsel %vm1580_vm7, %v1569_v16, %v6815_v27 }
 0x124   : > { %297 = vst.msk [vmem:[#allocation2 + $0x78] sm:$0xff] %vm280_vm12, %v7715_v43  ;;  %298 = vst.msk [vmem:[#allocation2 + $0x80] sm:$0xff] %vm280_vm12, %v7715_v43  ;;  %v6820_v34 = vunpack.i.h.bf16 %v9121_v60  ;;  %v6819_v8 = vunpack.i.l.bf16 %v9121_v60  ;;  %v6835_v2 = vunpack.i.h.bf16 %v9137_v26  ;;  %v6834_v10 = vunpack.i.l.bf16 %v9137_v26 }
 0x125   : > { %300 = vst.msk [vmem:[#allocation2 + $0x90] sm:$0xff] %vm280_vm12, %v7715_v43  ;;  %301 = vst.msk [vmem:[#allocation2 + $0x98] sm:$0xff] %vm280_vm12, %v7715_v43  ;;  %v6828_v42 = vpop.permute.xlu0 %6827  ;;  %v1585_v49 = vsel %vm1580_vm7, %v8681_v57, %v6809_v5  ;;  %v1586_v18 = vsel %vm1580_vm7, %v8684_v56, %v6810_v51  ;;  %v1603_v9 = vsel %vm1580_vm7, %v1570_v41, %v6824_v20 }
 0x126   : > { %303 = vst.msk [vmem:[#allocation2 + $0xa8] sm:$0xff] %vm280_vm12, %v7715_v43  ;;  %304 = vst.msk [vmem:[#allocation2 + $0xb0] sm:$0xff] %vm280_vm12, %v7715_v43  ;;  %v6830_v13 = vunpack.i.h.bf16 %v6828_v42  ;;  %v6829_v48 = vunpack.i.l.bf16 %v6828_v42  ;;  %v1604_v60 = vsel %vm1580_vm7, %v1571_v54, %v6825_v37  ;;  %v1587_v26 = vsel %vm1580_vm7, %v1554_v15, %v6819_v8 }
 0x127   : > { %306 = vst.msk [vmem:[#allocation2 + $0xc0] sm:$0xff] %vm280_vm12, %v7715_v43  ;;  %307 = vst.msk [vmem:[#allocation2 + $0xc8] sm:$0xff] %vm280_vm12, %v7715_v43  ;;  %v6843_v22 = vpop.permute.xlu1 %6842  ;;  %v1588_v50 = vsel %vm1580_vm7, %v1555_v24, %v6820_v34  ;;  %v1634_v32 = vsel %vm1613_vm8, %v1601_v1, %v6834_v10  ;;  %v1635_v56 = vsel %vm1613_vm8, %v1602_v61, %v6835_v2 }
 0x128   : > { %309 = vst.msk [vmem:[#allocation2 + $0xd8] sm:$0xff] %vm280_vm12, %v7715_v43  ;;  %310 = vst.msk [vmem:[#allocation2 + $0xe0] sm:$0xff] %vm280_vm12, %v7715_v43  ;;  %v6845_v39 = vunpack.i.h.bf16 %v6843_v22  ;;  %v6844_v47 = vunpack.i.l.bf16 %v6843_v22  ;;  %v1618_v42 = vsel %vm1613_vm8, %v1585_v49, %v6829_v48  ;;  %v1619_v11 = vsel %vm1613_vm8, %v1586_v18, %v6830_v13 }
 0x129   : > { %312 = vst.msk [vmem:[#allocation2 + $0xf0] sm:$0xff] %vm280_vm12, %v7715_v43  ;;  %313 = vst.msk [vmem:[#allocation2 + $0xf8] sm:$0xff] %vm280_vm12, %v7715_v43  ;;  %v9163_v25 = vpop.permute.xlu0 %6837 }
 0x12a   : > { %315 = vst.msk [vmem:[#allocation2 + $0x108] sm:$0xff] %vm280_vm12, %v7715_v43  ;;  %316 = vst.msk [vmem:[#allocation2 + $0x110] sm:$0xff] %vm280_vm12, %v7715_v43  ;;  %v6839_v3 = vunpack.i.l.bf16 %v9163_v25  ;;  %v1636_v63 = vsel %vm1613_vm8, %v1603_v9, %v6844_v47  ;;  %v1637_v58 = vsel %vm1613_vm8, %v1604_v60, %v6845_v39  ;;  %v6840_v17 = vunpack.i.h.bf16 %v9163_v25 }
 0x12b   : > { %318 = vst.msk [vmem:[#allocation2 + $0x120] sm:$0xff] %vm280_vm12, %v7715_v43  ;;  %319 = vst.msk [vmem:[#allocation2 + $0x128] sm:$0xff] %vm280_vm12, %v7715_v43  ;;  %v6853_v40 = vpop.permute.xlu1 %6852 }
 0x12c   : > { %321 = vst.msk [vmem:[#allocation2 + $0x138] sm:$0xff] %vm280_vm12, %v7715_v43  ;;  %322 = vst.msk [vmem:[#allocation2 + $0x140] sm:$0xff] %vm280_vm12, %v7715_v43  ;;  %v6854_v62 = vunpack.i.l.bf16 %v6853_v40  ;;  %v6855_v46 = vunpack.i.h.bf16 %v6853_v40  ;;  %v1620_v21 = vsel %vm1613_vm8, %v1587_v26, %v6839_v3  ;;  %v1621_v15 = vsel %vm1613_vm8, %v1588_v50, %v6840_v17 }
 0x12d   : > { %324 = vst.msk [vmem:[#allocation2 + $0x150] sm:$0xff] %vm280_vm12, %v7715_v43  ;;  %325 = vst.msk [vmem:[#allocation2 + $0x158] sm:$0xff] %vm280_vm12, %v7715_v43  ;;  %v6848_v44 = vpop.permute.xlu0 %6847 }
 0x12e   : > { %327 = vst.msk [vmem:[#allocation2 + $0x168] sm:$0xff] %vm280_vm12, %v7715_v43  ;;  %328 = vst.msk [vmem:[#allocation2 + $0x170] sm:$0xff] %vm280_vm12, %v7715_v43  ;;  %v6849_v19 = vunpack.i.l.bf16 %v6848_v44  ;;  %v6850_v7 = vunpack.i.h.bf16 %v6848_v44  ;;  %v1667_v36 = vsel %vm1646_vm9, %v1634_v32, %v6854_v62  ;;  %v1668_v30 = vsel %vm1646_vm9, %v1635_v56, %v6855_v46 }
 0x12f   : > { %330 = vst.msk [vmem:[#allocation2 + $0x180] sm:$0xff] %vm280_vm12, %v7715_v43  ;;  %331 = vst.msk [vmem:[#allocation2 + $0x188] sm:$0xff] %vm280_vm12, %v7715_v43  ;;  %v6863_v14 = vpop.permute.xlu1 %6862 }
 0x130   : > { %v1651_v31 = vsel %vm1646_vm9, %v1618_v42, %v6849_v19  ;;  %v6865_v0 = vunpack.i.h.bf16 %v6863_v14  ;;  %v6864_v35 = vunpack.i.l.bf16 %v6863_v14  ;;  %v1652_v4 = vsel %vm1646_vm9, %v1619_v11, %v6850_v7  ;;  %284 = vst.msk [vmem:[#allocation2 + $0x10] sm:$0x3] %vm283_vm13, %v7715_v43  ;;  %290 = vst.msk [vmem:[#allocation2 + $0x40] sm:$0x3] %vm283_vm13, %v7715_v43 }
 0x131   : > { %v6858_v57 = vpop.permute.xlu0 %6857  ;;  %335 = vst.msk [vmem:[#allocation2 + $0x1a8] sm:$0x3] %vm283_vm13, %v7715_v43  ;;  %338 = vst.msk [vmem:[#allocation2 + $0x1c0] sm:$0x3] %vm283_vm13, %v7715_v43 }
 0x132   : > { %v6860_v12 = vunpack.i.h.bf16 %v6858_v57  ;;  %v6859_v16 = vunpack.i.l.bf16 %v6858_v57  ;;  %v1669_v37 = vsel %vm1646_vm9, %v1636_v63, %v6864_v35  ;;  %v1670_v20 = vsel %vm1646_vm9, %v1637_v58, %v6865_v0  ;;  %341 = vst.msk [vmem:[#allocation2 + $0x1d8] sm:$0x3] %vm283_vm13, %v7715_v43  ;;  %344 = vst.msk [vmem:[#allocation2 + $0x1f0] sm:$0x3] %vm283_vm13, %v7715_v43 }
 0x133   : > { %v6873_v53 = vpop.permute.xlu1 %6872  ;;  %347 = vst.msk [vmem:[#allocation2 + $0x208] sm:$0x3] %vm283_vm13, %v7715_v43  ;;  %350 = vst.msk [vmem:[#allocation2 + $0x220] sm:$0x3] %vm283_vm13, %v7715_v43 }
 0x134   : > { %v6875_v22 = vunpack.i.h.bf16 %v6873_v53  ;;  %v6874_v33 = vunpack.i.l.bf16 %v6873_v53  ;;  %v1653_v10 = vsel %vm1646_vm9, %v1620_v21, %v6859_v16  ;;  %v1654_v13 = vsel %vm1646_vm9, %v1621_v15, %v6860_v12  ;;  %353 = vst.msk [vmem:[#allocation2 + $0x238] sm:$0x3] %vm283_vm13, %v7715_v43  ;;  %356 = vst.msk [vmem:[#allocation2 + $0x250] sm:$0x3] %vm283_vm13, %v7715_v43 }
 0x135   : > { %v6868_v28 = vpop.permute.xlu0 %6867  ;;  %359 = vst.msk [vmem:[#allocation2 + $0x268] sm:$0x3] %vm283_vm13, %v7715_v43  ;;  %362 = vst.msk [vmem:[#allocation2 + $0x280] sm:$0x3] %vm283_vm13, %v7715_v43 }
 0x136   : > { %v1700_v27 = vsel %vm1679_vm10, %v1667_v36, %v6874_v33  ;;  %v1701_v6 = vsel %vm1679_vm10, %v1668_v30, %v6875_v22  ;;  %v6870_v25 = vunpack.i.h.bf16 %v6868_v28  ;;  %v6869_v29 = vunpack.i.l.bf16 %v6868_v28  ;;  %365 = vst.msk [vmem:[#allocation2 + $0x298] sm:$0x3] %vm283_vm13, %v7715_v43  ;;  %368 = vst.msk [vmem:[#allocation2 + $0x2b0] sm:$0x3] %vm283_vm13, %v7715_v43 }
 0x137   : > { %v1722_v41 = vpack.c.bf16 %v1701_v6, %v1700_v27  ;;  %v6883_v54 = vpop.permute.xlu1 %6882  ;;  %371 = vst.msk [vmem:[#allocation2 + $0x2c8] sm:$0x3] %vm283_vm13, %v7715_v43  ;;  %374 = vst.msk [vmem:[#allocation2 + $0x2e0] sm:$0x3] %vm283_vm13, %v7715_v43 }
 0x138   : > { %v1684_v51 = vsel %vm1679_vm10, %v1651_v31, %v6869_v29  ;;  %v1685_v5 = vsel %vm1679_vm10, %v1652_v4, %v6870_v25  ;;  %v6885_v40 = vunpack.i.h.bf16 %v6883_v54  ;;  %v6884_v24 = vunpack.i.l.bf16 %v6883_v54  ;;  %v11985_v25 = vld [vmem:[#allocation5_spill] sm:$0xff]  ;;  %v11986_v29 = vld [vmem:[#allocation3_spill] sm:$0xff]  ;;  %377 = vst.msk [vmem:[#allocation2 + $0x2f8] sm:$0x3] %vm283_vm13, %v7715_v43  ;;  %380 = vst.msk [vmem:[#allocation2 + $0x310] sm:$0x3] %vm283_vm13, %v7715_v43 }
 0x139   : > { %v1714_v1 = vpack.c.bf16 %v1685_v5, %v1684_v51  ;;  %v6878_v61 = vpop.permute.xlu0 %6877  ;;  %6289 = vmatprep.mubr.msk.bf16.mxu1 %vm1750_vm11, %v1722_v41  ;;  %383 = vst.msk [vmem:[#allocation2 + $0x328] sm:$0x3] %vm283_vm13, %v7715_v43  ;;  %386 = vst.msk [vmem:[#allocation2 + $0x340] sm:$0x3] %vm283_vm13, %v7715_v43 }
 0x13a   : > { %v1702_v34 = vsel %vm1679_vm10, %v1669_v37, %v6884_v24  ;;  %v1703_v8 = vsel %vm1679_vm10, %v1670_v20, %v6885_v40  ;;  %v6880_v44 = vunpack.i.h.bf16 %v6878_v61  ;;  %v6879_v2 = vunpack.i.l.bf16 %v6878_v61  ;;  %389 = vst.msk [vmem:[#allocation2 + $0x358] sm:$0x3] %vm283_vm13, %v7715_v43  ;;  %287 = vst.msk [vmem:[#allocation2 + $0x28] sm:$0x3] %vm283_vm13, %v7715_v43 }
 0x13b   : > { %v1723_v48 = vpack.c.bf16 %v1703_v8, %v1702_v34  ;;  %6273 = vmatprep.mubr.msk.bf16.mxu0 %vm1750_vm11, %v1714_v1  ;;  %v6893_v49 = vpop.permute.xlu1 %6892  ;;  %293 = vst.msk [vmem:[#allocation2 + $0x58] sm:$0x3] %vm283_vm13, %v7715_v43  ;;  %296 = vst.msk [vmem:[#allocation2 + $0x70] sm:$0x3] %vm283_vm13, %v7715_v43 }
 0x13c   : > { %v1686_v18 = vsel %vm1679_vm10, %v1653_v10, %v6879_v2  ;;  %v1687_v39 = vsel %vm1679_vm10, %v1654_v13, %v6880_v44  ;;  %v6895_v57 = vunpack.i.h.bf16 %v6893_v49  ;;  %v6894_v32 = vunpack.i.l.bf16 %v6893_v49  ;;  %299 = vst.msk [vmem:[#allocation2 + $0x88] sm:$0x3] %vm283_vm13, %v7715_v43  ;;  %302 = vst.msk [vmem:[#allocation2 + $0xa0] sm:$0x3] %vm283_vm13, %v7715_v43 }
 0x13d   : > { %v1715_v47 = vpack.c.bf16 %v1687_v39, %v1686_v18  ;;  %v6888_v14 = vpop.permute.xlu0 %6887  ;;  %6290 = vmatmul.mubr.msk.bf16.gmra.mrb[4].mxu1 %vm1750_vm11, %v1723_v48  ;;  %305 = vst.msk [vmem:[#allocation2 + $0xb8] sm:$0x3] %vm283_vm13, %v7715_v43  ;;  %308 = vst.msk [vmem:[#allocation2 + $0xd0] sm:$0x3] %vm283_vm13, %v7715_v43 }
 0x13e   : > { %v6890_v56 = vunpack.i.h.bf16 %v6888_v14  ;;  %v6889_v42 = vunpack.i.l.bf16 %v6888_v14  ;;  %v1572_v22 = vsel %vm1547_vm6, %v8593_v38, %v6894_v32  ;;  %v1573_v33 = vsel %vm1547_vm6, %v8597_v59, %v6895_v57  ;;  %311 = vst.msk [vmem:[#allocation2 + $0xe8] sm:$0x3] %vm283_vm13, %v7715_v43  ;;  %314 = vst.msk [vmem:[#allocation2 + $0x100] sm:$0x3] %vm283_vm13, %v7715_v43 }
 0x13f   : > { %6274 = vmatmul.mubr.msk.bf16.gmra.mrb[4].mxu0 %vm1750_vm11, %v1715_v47  ;;  %v6903_v9 = vpop.permute.xlu1 %6902  ;;  %317 = vst.msk [vmem:[#allocation2 + $0x118] sm:$0x3] %vm283_vm13, %v7715_v43  ;;  %320 = vst.msk [vmem:[#allocation2 + $0x130] sm:$0x3] %vm283_vm13, %v7715_v43 }
 0x140   : > { %v6905_v11 = vunpack.i.h.bf16 %v6903_v9  ;;  %v6904_v63 = vunpack.i.l.bf16 %v6903_v9  ;;  %v1556_v30 = vsel %vm1547_vm6, %v8536_v45, %v6889_v42  ;;  %v1557_v31 = vsel %vm1547_vm6, %v8540_v23, %v6890_v56  ;;  %323 = vst.msk [vmem:[#allocation2 + $0x148] sm:$0x3] %vm283_vm13, %v7715_v43  ;;  %326 = vst.msk [vmem:[#allocation2 + $0x160] sm:$0x3] %vm283_vm13, %v7715_v43 }
 0x141   : > { %v6898_v60 = vpop.permute.xlu0 %6897  ;;  %329 = vst.msk [vmem:[#allocation2 + $0x178] sm:$0x3] %vm283_vm13, %v7715_v43  ;;  %332 = vst.msk [vmem:[#allocation2 + $0x190] sm:$0x3] %vm283_vm13, %v7715_v43 }
 0x142   : > { %v6900_v17 = vunpack.i.h.bf16 %v6898_v60  ;;  %v6899_v7 = vunpack.i.l.bf16 %v6898_v60  ;;  %v1574_v0 = vsel %vm1547_vm6, %v8583_v52, %v6904_v63  ;;  %v1575_v35 = vsel %vm1547_vm6, %v8587_v55, %v6905_v11 }
 0x143   : > { %v6913_v3 = vpop.permute.xlu1 %6912 }
 0x144   : > { %v6915_v53 = vunpack.i.h.bf16 %v6913_v3  ;;  %v6914_v21 = vunpack.i.l.bf16 %v6913_v3  ;;  %v1559_v38 = vsel %vm1547_vm6, %v11985_v25, %v6900_v17  ;;  %v1558_v59 = vsel %vm1547_vm6, %v11986_v29, %v6899_v7 }
 0x145   : > { %v6908_v62 = vpop.permute.xlu0 %6907 }
 0x146   : > { %v6910_v28 = vunpack.i.h.bf16 %v6908_v62  ;;  %v6909_v27 = vunpack.i.l.bf16 %v6908_v62  ;;  %v1605_v12 = vsel %vm1580_vm7, %v1572_v22, %v6914_v21  ;;  %v1606_v23 = vsel %vm1580_vm7, %v1573_v33, %v6915_v53 }
 0x147   : > { %v6923_v26 = vpop.permute.xlu1 %6922 }
 0x148   : > { %v6925_v4 = vunpack.i.h.bf16 %v6923_v26  ;;  %v6924_v45 = vunpack.i.l.bf16 %v6923_v26  ;;  %v1589_v40 = vsel %vm1580_vm7, %v1556_v30, %v6909_v27  ;;  %v1590_v24 = vsel %vm1580_vm7, %v1557_v31, %v6910_v28 }
 0x149   : > { %v6918_v50 = vpop.permute.xlu0 %6917 }
 0x14a   : > { %v6920_v16 = vunpack.i.h.bf16 %v6918_v50  ;;  %v6919_v52 = vunpack.i.l.bf16 %v6918_v50  ;;  %v1607_v1 = vsel %vm1580_vm7, %v1574_v0, %v6924_v45  ;;  %v1608_v61 = vsel %vm1580_vm7, %v1575_v35, %v6925_v4 }
 0x14b   : > { %v6933_v46 = vpop.permute.xlu1 %6932 }
 0x14c   : > { %v6935_v54 = vunpack.i.h.bf16 %v6933_v46  ;;  %v6934_v55 = vunpack.i.l.bf16 %v6933_v46  ;;  %v1591_v44 = vsel %vm1580_vm7, %v1558_v59, %v6919_v52  ;;  %v1592_v2 = vsel %vm1580_vm7, %v1559_v38, %v6920_v16 }
 0x14d   : > { %v6928_v19 = vpop.permute.xlu0 %6927 }
 0x14e   : > { %v6930_v51 = vunpack.i.h.bf16 %v6928_v19  ;;  %v6929_v5 = vunpack.i.l.bf16 %v6928_v19  ;;  %v1638_v49 = vsel %vm1613_vm8, %v1605_v12, %v6934_v55  ;;  %v1639_v18 = vsel %vm1613_vm8, %v1606_v23, %v6935_v54 }
 0x14f   : > { %v6943_v58 = vpop.permute.xlu1 %6942 }
 0x150   : > { %v6945_v15 = vunpack.i.h.bf16 %v6943_v58  ;;  %v6944_v37 = vunpack.i.l.bf16 %v6943_v58  ;;  %v1622_v39 = vsel %vm1613_vm8, %v1589_v40, %v6929_v5  ;;  %v1623_v47 = vsel %vm1613_vm8, %v1590_v24, %v6930_v51 }
 0x151   : > { %v9221_v36 = vpop.permute.xlu0 %6937 }
 0x152   : > { %v6939_v34 = vunpack.i.l.bf16 %v9221_v36  ;;  %v1640_v14 = vsel %vm1613_vm8, %v1607_v1, %v6944_v37  ;;  %v1641_v9 = vsel %vm1613_vm8, %v1608_v61, %v6945_v15  ;;  %v6940_v60 = vunpack.i.h.bf16 %v9221_v36 }
 0x153   : > { %v6953_v6 = vpop.permute.xlu1 %6952 }
 0x154   : > { %v6954_v8 = vunpack.i.l.bf16 %v6953_v6  ;;  %v6955_v10 = vunpack.i.h.bf16 %v6953_v6  ;;  %v1624_v26 = vsel %vm1613_vm8, %v1591_v44, %v6939_v34  ;;  %v1625_v28 = vsel %vm1613_vm8, %v1592_v2, %v6940_v60  ;;  %v11988_v60 = vld [vmem:[#allocation21_spill] sm:$0xff] }
 0x155   : > { %v6948_v41 = vpop.permute.xlu0 %6947 }
 0x156   : > { %v6949_v13 = vunpack.i.l.bf16 %v6948_v41  ;;  %v6950_v3 = vunpack.i.h.bf16 %v6948_v41  ;;  %v1671_v50 = vsel %vm1646_vm9, %v1638_v49, %v6954_v8  ;;  %v1672_v57 = vsel %vm1646_vm9, %v1639_v18, %v6955_v10 }
 0x157   : > { %v6963_v20 = vpop.permute.xlu1 %6962 }
 0x158   : > { %v1655_v32 = vsel %vm1646_vm9, %v1622_v39, %v6949_v13  ;;  %v6965_v56 = vunpack.i.h.bf16 %v6963_v20  ;;  %v6964_v42 = vunpack.i.l.bf16 %v6963_v20  ;;  %v1656_v53 = vsel %vm1646_vm9, %v1623_v47, %v6950_v3 }
 0x159   : > { %v6958_v48 = vpop.permute.xlu0 %6957 }
 0x15a   : > { %v6960_v21 = vunpack.i.h.bf16 %v6958_v48  ;;  %v6959_v36 = vunpack.i.l.bf16 %v6958_v48  ;;  %v1673_v27 = vsel %vm1646_vm9, %v1640_v14, %v6964_v42  ;;  %v1674_v6 = vsel %vm1646_vm9, %v1641_v9, %v6965_v56  ;;  %v11987_v14 = vld [vmem:[#allocation20_spill] sm:$0xff] }
 0x15b   : > { %v6973_v62 = vpop.permute.xlu1 %6972 }
 0x15c   : > { %v6975_v46 = vunpack.i.h.bf16 %v6973_v62  ;;  %v6974_v19 = vunpack.i.l.bf16 %v6973_v62  ;;  %v1657_v12 = vsel %vm1646_vm9, %v1624_v26, %v6959_v36  ;;  %v1658_v23 = vsel %vm1646_vm9, %v1625_v28, %v6960_v21  ;;  %v11989_v62 = vld [vmem:[#allocation6_spill] sm:$0xff] }
 0x15d   : > { %v6968_v11 = vpop.permute.xlu0 %6967 }
 0x15e   : > { %v1704_v63 = vsel %vm1679_vm10, %v1671_v50, %v6974_v19  ;;  %v1705_v58 = vsel %vm1679_vm10, %v1672_v57, %v6975_v46  ;;  %v6970_v17 = vunpack.i.h.bf16 %v6968_v11  ;;  %v6969_v7 = vunpack.i.l.bf16 %v6968_v11  ;;  %v11990_v50 = vld [vmem:[#allocation9_spill] sm:$0xff] }
 0x15f   : > { %v1724_v22 = vpack.c.bf16 %v1705_v58, %v1704_v63  ;;  %v6983_v33 = vpop.permute.xlu1 %6982  ;;  %v11991_v19 = vld [vmem:[#allocation17_spill] sm:$0xff]  ;;  %v11993_v58 = vld [vmem:[#allocation7_spill] sm:$0xff] }
 0x160   : > { %v1688_v30 = vsel %vm1679_vm10, %v1655_v32, %v6969_v7  ;;  %v1689_v31 = vsel %vm1679_vm10, %v1656_v53, %v6970_v17  ;;  %v6985_v0 = vunpack.i.h.bf16 %v6983_v33  ;;  %v6984_v35 = vunpack.i.l.bf16 %v6983_v33  ;;  %v11992_v32 = vld [vmem:[#allocation8_spill] sm:$0xff] }
 0x161   : > { %v1716_v25 = vpack.c.bf16 %v1689_v31, %v1688_v30  ;;  %v6978_v38 = vpop.permute.xlu0 %6977  ;;  %6293 = vmatprep.mubr.msk.bf16.mxu1 %vm1750_vm11, %v1724_v22  ;;  %v11994_v7 = vld [vmem:[#allocation4_spill] sm:$0xff] }
 0x162   : > { %v1706_v29 = vsel %vm1679_vm10, %v1673_v27, %v6984_v35  ;;  %v1707_v59 = vsel %vm1679_vm10, %v1674_v6, %v6985_v0  ;;  %v6980_v4 = vunpack.i.h.bf16 %v6978_v38  ;;  %v6979_v45 = vunpack.i.l.bf16 %v6978_v38 }
 0x163   : > { %v1725_v16 = vpack.c.bf16 %v1707_v59, %v1706_v29  ;;  %6277 = vmatprep.mubr.msk.bf16.mxu0 %vm1750_vm11, %v1716_v25  ;;  %v9273_v52 = vpop.permute.xlu1 %6992 }
 0x164   : > { %v1690_v41 = vsel %vm1679_vm10, %v1657_v12, %v6979_v45  ;;  %v1691_v54 = vsel %vm1679_vm10, %v1658_v23, %v6980_v4  ;;  %v6995_v34 = vunpack.i.h.bf16 %v9273_v52  ;;  %v6994_v8 = vunpack.i.l.bf16 %v9273_v52 }
 0x165   : > { %v1717_v55 = vpack.c.bf16 %v1691_v54, %v1690_v41  ;;  %v9277_v51 = vpop.permute.xlu0 %6987  ;;  %6294 = vmatmul.mubr.msk.bf16.gmra.mrb[8].mxu1 %vm1750_vm11, %v1725_v16 }
 0x166   : > { %v6990_v44 = vunpack.i.h.bf16 %v9277_v51  ;;  %v6989_v2 = vunpack.i.l.bf16 %v9277_v51  ;;  %v1576_v9 = vsel %vm1547_vm6, %v11987_v14, %v6994_v8  ;;  %v1577_v3 = vsel %vm1547_vm6, %v11988_v60, %v6995_v34 }
 0x167   : > { %6278 = vmatmul.mubr.msk.bf16.gmra.mrb[8].mxu0 %vm1750_vm11, %v1717_v55  ;;  %v9281_v5 = vpop.permute.xlu1 %7002 }
 0x168   : > { %v7005_v10 = vunpack.i.h.bf16 %v9281_v5  ;;  %v7004_v13 = vunpack.i.l.bf16 %v9281_v5  ;;  %v1560_v26 = vsel %vm1547_vm6, %v11989_v62, %v6989_v2  ;;  %v1561_v46 = vsel %vm1547_vm6, %v11990_v50, %v6990_v44 }
 0x169   : > { %v9283_v40 = vpop.permute.xlu0 %6997 }
 0x16a   : > { %v7000_v49 = vunpack.i.h.bf16 %v9283_v40  ;;  %v6999_v43 = vunpack.i.l.bf16 %v9283_v40  ;;  %v1578_v57 = vsel %vm1547_vm6, %v11991_v19, %v7004_v13  ;;  %v1579_v56 = vsel %vm1547_vm6, %v11992_v32, %v7005_v10 }
 0x16b   : > { %v9285_v24 = vpop.permute.xlu1 %7012 }
 0x16c   : > { %v7015_v18 = vunpack.i.h.bf16 %v9285_v24  ;;  %v7014_v39 = vunpack.i.l.bf16 %v9285_v24  ;;  %v1563_v17 = vsel %vm1547_vm6, %v11993_v58, %v7000_v49  ;;  %v1562_v53 = vsel %vm1547_vm6, %v11994_v7, %v6999_v43 }
 0x16d   : > { %v9287_v15 = vpop.permute.xlu0 %7007 }
 0x16e   : > { %v7010_v42 = vunpack.i.h.bf16 %v9287_v15  ;;  %v7009_v11 = vunpack.i.l.bf16 %v9287_v15  ;;  %v1609_v22 = vsel %vm1580_vm7, %v1576_v9, %v7014_v39  ;;  %v1610_v33 = vsel %vm1580_vm7, %v1577_v3, %v7015_v18 }
 0x16f   : > { %v9289_v37 = vpop.permute.xlu1 %7022 }
 0x170   : > { %v7025_v21 = vunpack.i.h.bf16 %v9289_v37  ;;  %v7024_v36 = vunpack.i.l.bf16 %v9289_v37  ;;  %v1593_v25 = vsel %vm1580_vm7, %v1560_v26, %v7009_v11  ;;  %v1594_v38 = vsel %vm1580_vm7, %v1561_v46, %v7010_v42 }
 0x171   : > { %v7018_v20 = vpop.permute.xlu0 %7017 }
 0x172   : > { %v7020_v30 = vunpack.i.h.bf16 %v7018_v20  ;;  %v7019_v31 = vunpack.i.l.bf16 %v7018_v20  ;;  %v1611_v45 = vsel %vm1580_vm7, %v1578_v57, %v7024_v36  ;;  %v1612_v12 = vsel %vm1580_vm7, %v1579_v56, %v7025_v21 }
 0x173   : > { %v7033_v1 = vpop.permute.xlu1 %7032 }
 0x174   : > { %v7035_v35 = vunpack.i.h.bf16 %v7033_v1  ;;  %v7034_v28 = vunpack.i.l.bf16 %v7033_v1  ;;  %v1595_v52 = vsel %vm1580_vm7, %v1562_v53, %v7019_v31  ;;  %v1596_v41 = vsel %vm1580_vm7, %v1563_v17, %v7020_v30 }
 0x175   : > { %v7028_v61 = vpop.permute.xlu0 %7027 }
 0x176   : > { %v7030_v27 = vunpack.i.h.bf16 %v7028_v61  ;;  %v7029_v6 = vunpack.i.l.bf16 %v7028_v61  ;;  %v1642_v5 = vsel %vm1613_vm8, %v1609_v22, %v7034_v28  ;;  %v1643_v40 = vsel %vm1613_vm8, %v1610_v33, %v7035_v35  ;;  %v9436_v35 = vld [vmem:[%s11765_s2] ss:$0 sm:$0xff] }
 0x177   : > { %v7043_v48 = vpop.permute.xlu1 %7042 }
 0x178   : > { %v7045_v29 = vunpack.i.h.bf16 %v7043_v48  ;;  %v7044_v59 = vunpack.i.l.bf16 %v7043_v48  ;;  %v1626_v24 = vsel %vm1613_vm8, %v1593_v25, %v7029_v6  ;;  %v1627_v15 = vsel %vm1613_vm8, %v1594_v38, %v7030_v27 }
 0x179   : > { %v9373_v47 = vpop.permute.xlu0 %7037 }
 0x17a   : > { %v7039_v23 = vunpack.i.l.bf16 %v9373_v47  ;;  %v1644_v37 = vsel %vm1613_vm8, %v1611_v45, %v7044_v59  ;;  %v1645_v20 = vsel %vm1613_vm8, %v1612_v12, %v7045_v29  ;;  %v7040_v1 = vunpack.i.h.bf16 %v9373_v47 }
 0x17b   : > { %v7053_v63 = vpop.permute.xlu1 %7052 }
 0x17c   : > { %v7054_v16 = vunpack.i.l.bf16 %v7053_v63  ;;  %v7055_v54 = vunpack.i.h.bf16 %v7053_v63  ;;  %v1628_v8 = vsel %vm1613_vm8, %v1595_v52, %v7039_v23  ;;  %v1629_v56 = vsel %vm1613_vm8, %v1596_v41, %v7040_v1 }
 0x17d   : > { %v7048_v0 = vpop.permute.xlu0 %7047 }
 0x17e   : > { %v7049_v55 = vunpack.i.l.bf16 %v7048_v0  ;;  %v7050_v61 = vunpack.i.h.bf16 %v7048_v0  ;;  %v1675_v44 = vsel %vm1646_vm9, %v1642_v5, %v7054_v16  ;;  %v1676_v13 = vsel %vm1646_vm9, %v1643_v40, %v7055_v54 }
 0x17f   : > { %v7063_v4 = vpop.permute.xlu1 %7062 }
 0x180   : > { %v1659_v48 = vsel %vm1646_vm9, %v1626_v24, %v7049_v55  ;;  %v7065_v49 = vunpack.i.h.bf16 %v7063_v4  ;;  %v7064_v43 = vunpack.i.l.bf16 %v7063_v4  ;;  %v1660_v60 = vsel %vm1646_vm9, %v1627_v15, %v7050_v61 }
 0x181   : > { %v7058_v51 = vpop.permute.xlu0 %7057 }
 0x182   : > { %v7060_v3 = vunpack.i.h.bf16 %v7058_v51  ;;  %v7059_v62 = vunpack.i.l.bf16 %v7058_v51  ;;  %v1677_v42 = vsel %vm1646_vm9, %v1644_v37, %v7064_v43  ;;  %v1678_v11 = vsel %vm1646_vm9, %v1645_v20, %v7065_v49 }
 0x183   : > { %v7073_v34 = vpop.permute.xlu1 %7072 }
 0x184   : > { %v7075_v2 = vunpack.i.h.bf16 %v7073_v34  ;;  %v7074_v10 = vunpack.i.l.bf16 %v7073_v34  ;;  %v1661_v36 = vsel %vm1646_vm9, %v1628_v8, %v7059_v62  ;;  %v1662_v22 = vsel %vm1646_vm9, %v1629_v56, %v7060_v3 }
 0x185   : > { %v7068_v18 = vpop.permute.xlu0 %7067 }
 0x186   : > { %v1708_v39 = vsel %vm1679_vm10, %v1675_v44, %v7074_v10  ;;  %v1709_v14 = vsel %vm1679_vm10, %v1676_v13, %v7075_v2  ;;  %v7070_v47 = vunpack.i.h.bf16 %v7068_v18  ;;  %v7069_v9 = vunpack.i.l.bf16 %v7068_v18 }
 0x187   : > { %v1726_v26 = vpack.c.bf16 %v1709_v14, %v1708_v39  ;;  %v7083_v50 = vpop.permute.xlu1 %7082 }
 0x188   : > { %v1692_v46 = vsel %vm1679_vm10, %v1659_v48, %v7069_v9  ;;  %v1693_v19 = vsel %vm1679_vm10, %v1660_v60, %v7070_v47  ;;  %v7085_v57 = vunpack.i.h.bf16 %v7083_v50  ;;  %v7084_v32 = vunpack.i.l.bf16 %v7083_v50 }
 0x189   : > { %v1718_v63 = vpack.c.bf16 %v1693_v19, %v1692_v46  ;;  %v7078_v58 = vpop.permute.xlu0 %7077  ;;  %6297 = vmatprep.mubr.msk.bf16.mxu1 %vm1750_vm11, %v1726_v26 }
 0x18a   : > { %v1710_v17 = vsel %vm1679_vm10, %v1677_v42, %v7084_v32  ;;  %v1711_v7 = vsel %vm1679_vm10, %v1678_v11, %v7085_v57  ;;  %v7080_v53 = vunpack.i.h.bf16 %v7078_v58  ;;  %v7079_v21 = vunpack.i.l.bf16 %v7078_v58 }
 0x18b   : > { %v1727_v33 = vpack.c.bf16 %v1711_v7, %v1710_v17  ;;  %6281 = vmatprep.mubr.msk.bf16.mxu0 %vm1750_vm11, %v1718_v63 }
 0x18c   : > { %v1694_v30 = vsel %vm1679_vm10, %v1661_v36, %v7079_v21  ;;  %v1695_v31 = vsel %vm1679_vm10, %v1662_v22, %v7080_v53 }
 0x18d   : > { %v1719_v0 = vpack.c.bf16 %v1695_v31, %v1694_v30  ;;  %6298 = vmatmul.mubr.msk.bf16.gmra.mrb[12].mxu1 %vm1750_vm11, %v1727_v33 }
 0x18f   : > { %6282 = vmatmul.mubr.msk.bf16.gmra.mrb[12].mxu0 %vm1750_vm11, %v1719_v0 }
 0x1e8   : > { %v6271_v28 = vpop.f32.mrb[0].mxu0 }
 0x1e9   : > { %v1848_v27 = vadd.f32 %v6271_v28, %v9436_v35  ;;  %v1839_v6 = vpop.f32.mrb[1].mxu0 }
 0x1ea   : > { %v1840_v25 = vadd.f32 %v9436_v35, %v1839_v6  ;;  %v6272_v38 = vpop.f32.mrb[2].mxu0 }
 0x1eb   : > { %v1968_v29 = vmax.f32 %v1848_v27, 0.0  ;;  %v1851_v59 = vadd.f32 %v6272_v38, %v9436_v35  ;;  %v1842_v4 = vpop.f32.mrb[3].mxu0 }
 0x1ec   : > { %v1966_v45 = vmax.f32 %v1840_v25, 0.0  ;;  %v1843_v12 = vadd.f32 %v9436_v35, %v1842_v4 }
 0x1ed   : > { %2001 = vst.msk [vmem:[#allocation2 + $0x31] sm:$0xff] %vm280_vm12, %v1968_v29  ;;  %v1969_v23 = vmax.f32 %v1851_v59, 0.0 }
 0x1ee   : > { %1999 = vst.msk [vmem:[#allocation2 + $0x19] sm:$0xff] %vm280_vm12, %v1966_v45  ;;  %v1967_v16 = vmax.f32 %v1843_v12, 0.0  ;;  %v6287_v52 = vpop.f32.mrb[0].mxu1 }
 0x1ef   : > { %2002 = vst.msk [vmem:[#allocation2 + $0x39] sm:$0xff] %vm280_vm12, %v1969_v23  ;;  %v1912_v41 = vadd.f32 %v6287_v52, %v9436_v35  ;;  %v1903_v54 = vpop.f32.mrb[1].mxu1 }
 0x1f0   : > { %2000 = vst.msk [vmem:[#allocation2 + $0x21] sm:$0xff] %vm280_vm12, %v1967_v16  ;;  %v1904_v55 = vadd.f32 %v9436_v35, %v1903_v54  ;;  %v6288_v51 = vpop.f32.mrb[2].mxu1 }
 0x1f1   : > { %v1984_v5 = vmax.f32 %v1912_v41, 0.0  ;;  %v1915_v40 = vadd.f32 %v6288_v51, %v9436_v35  ;;  %v1906_v24 = vpop.f32.mrb[3].mxu1 }
 0x1f2   : > { %v1982_v15 = vmax.f32 %v1904_v55, 0.0  ;;  %v1907_v37 = vadd.f32 %v9436_v35, %v1906_v24 }
 0x1f3   : > { %2017 = vst.msk [vmem:[#allocation2 + $0xf1] sm:$0xff] %vm280_vm12, %v1984_v5  ;;  %v1985_v20 = vmax.f32 %v1915_v40, 0.0 }
 0x1f4   : > { %2015 = vst.msk [vmem:[#allocation2 + $0xd9] sm:$0xff] %vm280_vm12, %v1982_v15  ;;  %v1983_v1 = vmax.f32 %v1907_v37, 0.0 }
 0x1f5   : > { %2018 = vst.msk [vmem:[#allocation2 + $0xf9] sm:$0xff] %vm280_vm12, %v1985_v20 }
 0x1f6   : > { %2016 = vst.msk [vmem:[#allocation2 + $0xe1] sm:$0xff] %vm280_vm12, %v1983_v1 }
 0x210   : > { %v6291_v61 = vpop.f32.mrb[4].mxu1 }
 0x211   : > { %v1928_v34 = vadd.f32 %v6291_v61, %v9436_v35  ;;  %v1919_v8 = vpop.f32.mrb[5].mxu1 }
 0x212   : > { %v6275_v44 = vpop.f32.mrb[4].mxu0  ;;  %v1920_v2 = vadd.f32 %v9436_v35, %v1919_v8  ;;  %v6292_v10 = vpop.f32.mrb[6].mxu1 }
 0x213   : > { %v1864_v13 = vadd.f32 %v6275_v44, %v9436_v35  ;;  %v1988_v48 = vmax.f32 %v1928_v34, 0.0  ;;  %v1855_v49 = vpop.f32.mrb[5].mxu0  ;;  %v1931_v43 = vadd.f32 %v6292_v10, %v9436_v35  ;;  %v1922_v18 = vpop.f32.mrb[7].mxu1 }
 0x214   : > { %v1856_v39 = vadd.f32 %v9436_v35, %v1855_v49  ;;  %v1986_v14 = vmax.f32 %v1920_v2, 0.0  ;;  %v6276_v47 = vpop.f32.mrb[6].mxu0  ;;  %v1923_v9 = vadd.f32 %v9436_v35, %v1922_v18 }
 0x215   : > { %v1972_v60 = vmax.f32 %v1864_v13, 0.0  ;;  %2021 = vst.msk [vmem:[#allocation2 + $0x121] sm:$0xff] %vm280_vm12, %v1988_v48  ;;  %v1867_v3 = vadd.f32 %v6276_v47, %v9436_v35  ;;  %v1989_v62 = vmax.f32 %v1931_v43, 0.0  ;;  %v1858_v26 = vpop.f32.mrb[7].mxu0 }
 0x216   : > { %v1970_v50 = vmax.f32 %v1856_v39, 0.0  ;;  %2019 = vst.msk [vmem:[#allocation2 + $0x109] sm:$0xff] %vm280_vm12, %v1986_v14  ;;  %v1859_v46 = vadd.f32 %v9436_v35, %v1858_v26  ;;  %v1987_v19 = vmax.f32 %v1923_v9, 0.0 }
 0x217   : > { %2005 = vst.msk [vmem:[#allocation2 + $0x61] sm:$0xff] %vm280_vm12, %v1972_v60  ;;  %v1973_v57 = vmax.f32 %v1867_v3, 0.0  ;;  %2022 = vst.msk [vmem:[#allocation2 + $0x129] sm:$0xff] %vm280_vm12, %v1989_v62 }
 0x218   : > { %2003 = vst.msk [vmem:[#allocation2 + $0x49] sm:$0xff] %vm280_vm12, %v1970_v50  ;;  %v1971_v32 = vmax.f32 %v1859_v46, 0.0  ;;  %2020 = vst.msk [vmem:[#allocation2 + $0x111] sm:$0xff] %vm280_vm12, %v1987_v19 }
 0x219   : > { %2006 = vst.msk [vmem:[#allocation2 + $0x69] sm:$0xff] %vm280_vm12, %v1973_v57 }
 0x21a   : > { %2004 = vst.msk [vmem:[#allocation2 + $0x51] sm:$0xff] %vm280_vm12, %v1971_v32 }
 0x238   : > { %v6295_v56 = vpop.f32.mrb[8].mxu1 }
 0x239   : > { %v1944_v42 = vadd.f32 %v6295_v56, %v9436_v35  ;;  %v1935_v11 = vpop.f32.mrb[9].mxu1 }
 0x23a   : > { %v6279_v63 = vpop.f32.mrb[8].mxu0  ;;  %v1936_v58 = vadd.f32 %v9436_v35, %v1935_v11  ;;  %v6296_v17 = vpop.f32.mrb[10].mxu1 }
 0x23b   : > { %v1880_v7 = vadd.f32 %v6279_v63, %v9436_v35  ;;  %v1992_v53 = vmax.f32 %v1944_v42, 0.0  ;;  %v1871_v21 = vpop.f32.mrb[9].mxu0  ;;  %v1947_v36 = vadd.f32 %v6296_v17, %v9436_v35  ;;  %v1938_v22 = vpop.f32.mrb[11].mxu1 }
 0x23c   : > { %v1872_v33 = vadd.f32 %v9436_v35, %v1871_v21  ;;  %v1990_v30 = vmax.f32 %v1936_v58, 0.0  ;;  %v6280_v31 = vpop.f32.mrb[10].mxu0  ;;  %v1939_v0 = vadd.f32 %v9436_v35, %v1938_v22 }
 0x23d   : > { %v1976_v28 = vmax.f32 %v1880_v7, 0.0  ;;  %2025 = vst.msk [vmem:[#allocation2 + $0x151] sm:$0xff] %vm280_vm12, %v1992_v53  ;;  %v1883_v27 = vadd.f32 %v6280_v31, %v9436_v35  ;;  %v1993_v6 = vmax.f32 %v1947_v36, 0.0  ;;  %v1874_v25 = vpop.f32.mrb[11].mxu0 }
 0x23e   : > { %v1974_v38 = vmax.f32 %v1872_v33, 0.0  ;;  %2023 = vst.msk [vmem:[#allocation2 + $0x139] sm:$0xff] %vm280_vm12, %v1990_v30  ;;  %v1875_v29 = vadd.f32 %v9436_v35, %v1874_v25  ;;  %v1991_v59 = vmax.f32 %v1939_v0, 0.0 }
 0x23f   : > { %2009 = vst.msk [vmem:[#allocation2 + $0x91] sm:$0xff] %vm280_vm12, %v1976_v28  ;;  %v1977_v4 = vmax.f32 %v1883_v27, 0.0  ;;  %2026 = vst.msk [vmem:[#allocation2 + $0x159] sm:$0xff] %vm280_vm12, %v1993_v6 }
 0x240   : > { %2007 = vst.msk [vmem:[#allocation2 + $0x79] sm:$0xff] %vm280_vm12, %v1974_v38  ;;  %v1975_v45 = vmax.f32 %v1875_v29, 0.0  ;;  %2024 = vst.msk [vmem:[#allocation2 + $0x141] sm:$0xff] %vm280_vm12, %v1991_v59 }
 0x241   : > { %2010 = vst.msk [vmem:[#allocation2 + $0x99] sm:$0xff] %vm280_vm12, %v1977_v4 }
 0x242   : > { %2008 = vst.msk [vmem:[#allocation2 + $0x81] sm:$0xff] %vm280_vm12, %v1975_v45 }
 0x260   : > { %v6299_v12 = vpop.f32.mrb[12].mxu1 }
 0x261   : > { %v1960_v23 = vadd.f32 %v6299_v12, %v9436_v35  ;;  %v1951_v16 = vpop.f32.mrb[13].mxu1 }
 0x262   : > { %v6283_v52 = vpop.f32.mrb[12].mxu0  ;;  %v1952_v41 = vadd.f32 %v9436_v35, %v1951_v16  ;;  %v6300_v54 = vpop.f32.mrb[14].mxu1 }
 0x263   : > { %v1896_v55 = vadd.f32 %v6283_v52, %v9436_v35  ;;  %v1996_v51 = vmax.f32 %v1960_v23, 0.0  ;;  %v1887_v5 = vpop.f32.mrb[13].mxu0  ;;  %v1963_v40 = vadd.f32 %v6300_v54, %v9436_v35  ;;  %v1954_v24 = vpop.f32.mrb[15].mxu1 }
 0x264   : > { %v1888_v15 = vadd.f32 %v9436_v35, %v1887_v5  ;;  %v1994_v37 = vmax.f32 %v1952_v41, 0.0  ;;  %v6284_v20 = vpop.f32.mrb[14].mxu0  ;;  %v1955_v1 = vadd.f32 %v9436_v35, %v1954_v24 }
 0x265   : > { %v1980_v61 = vmax.f32 %v1896_v55, 0.0  ;;  %2029 = vst.msk [vmem:[#allocation2 + $0x181] sm:$0xff] %vm280_vm12, %v1996_v51  ;;  %v1899_v34 = vadd.f32 %v6284_v20, %v9436_v35  ;;  %v1997_v8 = vmax.f32 %v1963_v40, 0.0  ;;  %v1890_v44 = vpop.f32.mrb[15].mxu0 }
 0x266   : > { %v1978_v2 = vmax.f32 %v1888_v15, 0.0  ;;  %2027 = vst.msk [vmem:[#allocation2 + $0x169] sm:$0xff] %vm280_vm12, %v1994_v37  ;;  %v1891_v10 = vadd.f32 %v9436_v35, %v1890_v44  ;;  %v1995_v13 = vmax.f32 %v1955_v1, 0.0 }
 0x267   : > { %2013 = vst.msk [vmem:[#allocation2 + $0xc1] sm:$0xff] %vm280_vm12, %v1980_v61  ;;  %v1981_v48 = vmax.f32 %v1899_v34, 0.0  ;;  %2030 = vst.msk [vmem:[#allocation2 + $0x189] sm:$0xff] %vm280_vm12, %v1997_v8 }
 0x268   : > { %2011 = vst.msk [vmem:[#allocation2 + $0xa9] sm:$0xff] %vm280_vm12, %v1978_v2  ;;  %v1979_v49 = vmax.f32 %v1891_v10, 0.0  ;;  %2028 = vst.msk [vmem:[#allocation2 + $0x171] sm:$0xff] %vm280_vm12, %v1995_v13 }
 0x269   : > { %2014 = vst.msk [vmem:[#allocation2 + $0xc9] sm:$0xff] %vm280_vm12, %v1981_v48 }
 0x26a   : > { %2012 = vst.msk [vmem:[#allocation2 + $0xb1] sm:$0xff] %vm280_vm12, %v1979_v49 }
 0x26b LB: >> { %p2037_p4 = scmp.lt.s32.totalorder %s7704_s26, 0  ;;  %s2038_s27 = ssub.s32 0, %s7704_s26  ;;  %s7704_s26 = sphi %s9502_s26, %s2036_s26  }
 0x26c   : >> { %s5613_s28 = smin.u32 %s7704_s26, %s2038_s27  ;;  %s5758_s29 = smul.u32 288, %s7704_s26 }
 0x26d   : >> { %s2040_s8 = sand.u32 1, %s5613_s28   ;;  %s7716_s16 = smov 64  }
 0x26e   : >> { %s2041_s9 = ssub.s32 0, %s2040_s8  ;;  %s9514_s12 = scalar_lea.vmem %s11766_s3, %s5758_s29 }
 0x26f   : >> { %s12200_s9 = smov (!%p2037_p4, %s2041_s9), %s2040_s8  ;;  %v7356_v35 = vld [vmem:[%s9514_s12 + $0x40] sm:$0xff]   ;;  %v7358_v18 = vld [vmem:[%s9514_s12 + $0x48] sm:$0xff]   ;;  %v7360_v14 = vld [vmem:[%s9514_s12 + $0x50] sm:$0xff]   ;;  %s3696_s19 = scalar_lea.vmem %s11767_s4, %s7704_s26 }
 0x270   : >> { %v7357_v43 = vld [vmem:[%s9514_s12] sm:$0xff]   ;;  %p5615_p5 = scmp.lt.s32.totalorder %s12200_s9, 0  ;;  %s2047_s13 = sadd.s32 2, %s12200_s9  ;;  %6385 = vmatprep.subr.bf16.mxu1 %v7356_v35  ;;  %5777 = vmatprep.subr.bf16.mxu0 %v7356_v35  ;;  %v7359_v39 = vld [vmem:[%s9514_s12 + $0x8] sm:$0xff]   ;;  %v7361_v47 = vld [vmem:[%s9514_s12 + $0x10] sm:$0xff]  }
 0x271   : >> { %6393 = vmatpush3.bf16.msra.mxu1 %v7357_v43  ;;  %5778 = vmatpush3.bf16.msra.mxu0 %v7357_v43  ;;  %v7362_v9 = vld [vmem:[%s9514_s12 + $0x58] sm:$0xff]   ;;  %s3736_s23 = scalar_lea.vmem %s11768_s5, %s7704_s26  ;;  %s2036_s26 = sadd.s32 1, %s7704_s26  }
 0x272   : >> { %s12202_s13 = smov (!%p5615_p5, %s2047_s13), %s12200_s9  ;;  %6386 = vmatprep.subr.bf16.mxu1 %v7358_v18  ;;  %5779 = vmatprep.subr.bf16.mxu0 %v7358_v18  ;;  %v7363_v26 = vld [vmem:[%s9514_s12 + $0x18] sm:$0xff]   ;;  %p2033_p6 = scmp.ge.s32.totalorder %s2036_s26, 15  }
 0x273   : >> { %s2050_s14 = smul.u32 432, %s12202_s13  ;;  %s2049_s20 = ssub.s32 1, %s12202_s13 }
 0x274   : >> { %s5554_s25 = smul.u32 432, %s2049_s20  ;;  %s7717_s26 = smov (%p2033_p6), 64  }
 0x275   : >> { %6394 = vmatpush3.bf16.msra.mxu1 %v7359_v39  ;;  %5780 = vmatpush3.bf16.msra.mxu0 %v7359_v39  ;;  %s9526_s15 = scalar_lea.vmem [#allocation2], %s2050_s14 }
 0x276   : >> { %6387 = vmatprep.subr.bf16.mxu1 %v7360_v14  ;;  %5781 = vmatprep.subr.bf16.mxu0 %v7360_v14  ;;  %v9529_v60 = vld [vmem:[%s9526_s15 + $0x138] sm:$0xff]  ;;  %v9532_v3 = vld [vmem:[%s9526_s15 + $0x140] sm:$0xff]  ;;  %v9547_v57 = vld [vmem:[%s9526_s15 + $0x128] sm:$0xff]  ;;  %s10520_s27 = scalar_lea.vmem [#allocation2], %s5554_s25 }
 0x277   : >> { %v9535_v62 = vld [vmem:[%s9526_s15 + $0x18] sm:$0xff]  ;;  %v7106_v50 = vpack.i.bf16 %v9532_v3, %v9529_v60  ;;  %v9541_v46 = vld [vmem:[%s9526_s15 + $0x20] sm:$0xff]  ;;  %v2219_v32 = vrot.slane %v9529_v60, 1  ;;  %v2220_v56 = vrot.slane %v9532_v3, 1  ;;  %v9554_v11 = vld [vmem:[%s9526_s15 + $0x130] sm:$0x3] }
 0x278   : >> { %v9544_v19 = vld [vmem:[%s9526_s15 + $0x120] sm:$0xff]  ;;  %v7116_v42 = vpack.i.bf16 %v9541_v46, %v9535_v62  ;;  %v2215_v58 = vrot.slane %v9547_v57, 1  ;;  %v9562_v7 = vld [vmem:[%s9526_s15 + $0x8] sm:$0xff]  ;;  %v2217_v53 = vrot.slane %v9554_v11, 1  ;;  %v9567_v21 = vld [vmem:[%s9526_s15 + $0x10] sm:$0x3] }
 0x279   : >> { %v2214_v63 = vrot.slane %v9544_v19, 1  ;;  %v9559_v17 = vld [vmem:[%s9526_s15] sm:$0xff]  ;;  %6395 = vmatpush3.bf16.msra.mxu1 %v7361_v47  ;;  %5782 = vmatpush3.bf16.msra.mxu0 %v7361_v47  ;;  %v2155_v22 = vrot.slane %v9562_v7, 1  ;;  %v2157_v30 = vrot.slane %v9567_v21, 1  ;;  %v9577_v31 = vld [vmem:[%s9526_s15 + $0x148] sm:$0x3]  ;;  %v9599_v12 = vsel %vm492_vm0, %v2219_v32, %v2220_v56 }
 0x27a   : >> { %7107 = vrot.lane.b32.xlu0 %v7106_v50, %s7716_s16  ;;  %v2154_v36 = vrot.slane %v9559_v17, 1  ;;  %6388 = vmatprep.subr.bf16.mxu1 %v7362_v9  ;;  %v2159_v0 = vrot.slane %v9535_v62, 1  ;;  %v9581_v28 = vsel %vm492_vm0, %v2215_v58, %v2217_v53  ;;  %v9585_v6 = vld [vmem:[%s9526_s15 + $0x150] sm:$0xff]  ;;  %v9588_v25 = vld [vmem:[%s9526_s15 + $0x158] sm:$0xff]  ;;  %v2222_v38 = vrot.slane %v9577_v31, 1  ;;  %11997 = vst [vmem:[#allocation24_spill] sm:$0xff] %v9599_v12 }
 0x27b   : >> { %7117 = vrot.lane.b32.xlu1 %v7116_v42, %s7716_s16  ;;  %v9573_v33 = vsel %vm492_vm0, %v2214_v63, %v2215_v58  ;;  %5783 = vmatprep.subr.bf16.mxu0 %v7362_v9  ;;  %11996 = vst [vmem:[#allocation23_spill] sm:$0xff] %v9581_v28  ;;  %v9592_v29 = vld [vmem:[%s9526_s15 + $0x28] sm:$0x3]  ;;  %v2160_v59 = vrot.slane %v9541_v46, 1  ;;  %v2158_v45 = vsel %vm492_vm0, %v2155_v22, %v2157_v30  ;;  %v9606_v41 = vld [vmem:[%s9526_s15 + $0x160] sm:$0x3] }
 0x27c   : >> { %11995 = vst [vmem:[#allocation22_spill] sm:$0xff] %v9573_v33  ;;  %v2156_v27 = vsel %vm492_vm0, %v2154_v36, %v2155_v22  ;;  %v7111_v4 = vpack.i.bf16 %v9581_v28, %v9573_v33  ;;  %v9602_v16 = vsel %vm492_vm0, %v2220_v56, %v2222_v38  ;;  %v2162_v52 = vrot.slane %v9592_v29, 1  ;;  %v9615_v51 = vld [vmem:[%s9526_s15 + $0x30] sm:$0xff]  ;;  %v9618_v5 = vld [vmem:[%s9526_s15 + $0x38] sm:$0xff]  ;;  %v9630_v1 = vld [vmem:[%s9526_s15 + $0x40] sm:$0x3] }
 0x27d   : >> { %6396 = vmatpush3.bf16.msra.mxu1 %v7363_v26  ;;  %v7141_v23 = vpack.i.bf16 %v2158_v45, %v2156_v27  ;;  %11998 = vst [vmem:[#allocation25_spill] sm:$0xff] %v9602_v16  ;;  %5784 = vmatpush3.bf16.msra.mxu0 %v7363_v26  ;;  %v7121_v54 = vpack.i.bf16 %v9588_v25, %v9585_v6  ;;  %v2224_v15 = vrot.slane %v9585_v6, 1  ;;  %v2225_v37 = vrot.slane %v9588_v25, 1  ;;  %v9639_v8 = vld [vmem:[%s9526_s15 + $0x168] sm:$0xff]  ;;  %v9642_v44 = vld [vmem:[%s9526_s15 + $0x170] sm:$0xff]  ;;  %v9682_v63 = vld [vmem:[%s9526_s15 + $0x180] sm:$0xff] }
 0x27e   : >> { %7112 = vrot.lane.b32.xlu0 %v7111_v4, %s7716_s16  ;;  %v7146_v55 = vpack.i.bf16 %v9602_v16, %v9599_v12  ;;  %v9621_v40 = vsel %vm492_vm0, %v2159_v0, %v2160_v59  ;;  %v9624_v24 = vsel %vm492_vm0, %v2160_v59, %v2162_v52  ;;  %v2227_v20 = vrot.slane %v9606_v41, 1  ;;  %v9654_v35 = vld [vmem:[%s9526_s15 + $0x178] sm:$0x3]  ;;  %v9660_v18 = vld [vmem:[%s9526_s15 + $0x48] sm:$0xff]  ;;  %v9666_v14 = vld [vmem:[%s9526_s15 + $0x50] sm:$0xff] }
 0x27f   : >> { %7142 = vrot.lane.b32.xlu1 %v7141_v23, %s7716_s16  ;;  %v7126_v61 = vpack.i.bf16 %v9618_v5, %v9615_v51  ;;  %v7151_v34 = vpack.i.bf16 %v9624_v24, %v9621_v40  ;;  %v2164_v2 = vrot.slane %v9615_v51, 1  ;;  %v9646_v10 = vsel %vm492_vm0, %v2224_v15, %v2225_v37  ;;  %v9670_v9 = vld [vmem:[%s9526_s15 + $0x58] sm:$0x3]  ;;  %v7364_v26 = vld [vmem:[%s9514_s12 + $0x60] sm:$0xff]   ;;  %v9690_v22 = vld [vmem:[%s9526_s15 + $0x188] sm:$0xff] }
 0x280   : >> { %11999 = vst [vmem:[#allocation26_spill] sm:$0xff] %v9646_v10  ;;  %v9649_v13 = vsel %vm492_vm0, %v2225_v37, %v2227_v20  ;;  %v2165_v48 = vrot.slane %v9618_v5, 1  ;;  %v2167_v49 = vrot.slane %v9630_v1, 1  ;;  %v7131_v43 = vpack.i.bf16 %v9642_v44, %v9639_v8  ;;  %6389 = vmatprep.subr.bf16.mxu1 %v7364_v26  ;;  %v7365_v58 = vld [vmem:[%s9514_s12 + $0x20] sm:$0xff]   ;;  %5785 = vmatprep.subr.bf16.mxu0 %v7364_v26  ;;  %v7366_v53 = vld [vmem:[%s9514_s12 + $0x68] sm:$0xff]  }
 0x281   : >> { %12000 = vst [vmem:[#allocation27_spill] sm:$0xff] %v9649_v13  ;;  %v7156_v39 = vpack.i.bf16 %v9649_v13, %v9646_v10  ;;  %v2229_v47 = vrot.slane %v9639_v8, 1  ;;  %v2230_v56 = vrot.slane %v9642_v44, 1  ;;  %v2232_v42 = vrot.slane %v9654_v35, 1  ;;  %6397 = vmatpush3.bf16.msra.mxu1 %v7365_v58  ;;  %v9705_v45 = vld [vmem:[%s9526_s15 + $0x60] sm:$0xff]  ;;  %5786 = vmatpush3.bf16.msra.mxu0 %v7365_v58  ;;  %v7367_v23 = vld [vmem:[%s9514_s12 + $0x28] sm:$0xff]  }
 0x282   : >> { %7122 = vrot.lane.b32.xlu0 %v7121_v54, %s7716_s16  ;;  %v9674_v50 = vsel %vm492_vm0, %v2164_v2, %v2165_v48  ;;  %v9677_v32 = vsel %vm492_vm0, %v2165_v48, %v2167_v49  ;;  %v7136_v36 = vpack.i.bf16 %v9666_v14, %v9660_v18  ;;  %v2169_v30 = vrot.slane %v9660_v18, 1  ;;  %6390 = vmatprep.subr.bf16.mxu1 %v7366_v53  ;;  %v9709_v52 = vld [vmem:[%s9526_s15 + $0x70] sm:$0x3]  ;;  %v9716_v15 = vld [vmem:[%s9526_s15 + $0x68] sm:$0xff]  ;;  %v9741_v26 = vld [vmem:[%s9526_s15 + $0x80] sm:$0xff] }
 0x283   : >> { %7147 = vrot.lane.b32.xlu1 %v7146_v55, %s7716_s16  ;;  %12001 = vst [vmem:[#allocation28_spill] sm:$0xff] %v9674_v50  ;;  %v7161_v0 = vpack.i.bf16 %v9677_v32, %v9674_v50  ;;  %v2170_v27 = vrot.slane %v9666_v14, 1  ;;  %v2172_v38 = vrot.slane %v9670_v9, 1  ;;  %v9699_v59 = vsel %vm492_vm0, %v2229_v47, %v2230_v56  ;;  %5787 = vmatprep.subr.bf16.mxu0 %v7366_v53  ;;  %v7368_v54 = vld [vmem:[%s9514_s12 + $0x70] sm:$0xff]   ;;  %v9747_v53 = vld [vmem:[%s9526_s15 + $0x88] sm:$0x3] }
 0x284   : >> { %12002 = vst [vmem:[#allocation29_spill] sm:$0xff] %v9699_v59  ;;  %v9702_v4 = vsel %vm492_vm0, %v2230_v56, %v2232_v42  ;;  %v7166_v55 = vpack.i.bf16 %v9690_v22, %v9682_v63  ;;  %v2335_v37 = vrot.slane %v9535_v62, 2  ;;  %v2336_v20 = vrot.slane %v9541_v46, 2  ;;  %v7369_v49 = vld [vmem:[%s9514_s12 + $0x30] sm:$0xff]   ;;  %12007 = vst [vmem:[#allocation34_spill] sm:$0xff] %v9741_v26  ;;  %v9828_v12 = vld [vmem:[%s9526_s15 + $0xa8] sm:$0xff] }
 0x285   : >> { %12003 = vst [vmem:[#allocation30_spill] sm:$0xff] %v9702_v4  ;;  %v9725_v2 = vsel %vm492_vm0, %v2169_v30, %v2170_v27  ;;  %v9728_v48 = vsel %vm492_vm0, %v2170_v27, %v2172_v38  ;;  %6398 = vmatpush3.bf16.msra.mxu1 %v7367_v23  ;;  %5788 = vmatpush3.bf16.msra.mxu0 %v7367_v23  ;;  %v2174_v56 = vrot.slane %v9705_v45, 1  ;;  %v2175_v42 = vrot.slane %v9716_v15, 1  ;;  %v7371_v23 = vld [vmem:[%s9514_s12 + $0x38] sm:$0xff]   ;;  %v9831_v16 = vld [vmem:[%s9526_s15 + $0xb0] sm:$0xff] }
 0x286   : >> { %7127 = vrot.lane.b32.xlu0 %v7126_v61, %s7716_s16  ;;  %v2338_v61 = vrot.slane %v9592_v29, 2  ;;  %12004 = vst [vmem:[#allocation31_spill] sm:$0xff] %v9725_v2  ;;  %12005 = vst [vmem:[#allocation32_spill] sm:$0xff] %v9728_v48  ;;  %6391 = vmatprep.subr.bf16.mxu1 %v7368_v54  ;;  %v7370_v29 = vld [vmem:[%s9514_s12 + $0x78] sm:$0xff]   ;;  %v7181_v47 = vpack.i.bf16 %v9728_v48, %v9725_v2  ;;  %v2177_v58 = vrot.slane %v9709_v52, 1  ;;  %v2341_v27 = vrot.slane %v9618_v5, 2 }
 0x287   : >> { %7152 = vrot.lane.b32.xlu1 %v7151_v34, %s7716_s16  ;;  %v7171_v34 = vpack.i.bf16 %v9702_v4, %v9699_v59  ;;  %5789 = vmatprep.subr.bf16.mxu0 %v7368_v54  ;;  %v2343_v38 = vrot.slane %v9630_v1, 2  ;;  %v7372_v1 = vld [vmem:[%s9514_s12 + $0xc0] sm:$0xff]   ;;  %v2350_v13 = vrot.slane %v9705_v45, 2  ;;  %12014 = vst [vmem:[#allocation41_spill] sm:$0xff] %v9828_v12  ;;  %12015 = vst [vmem:[#allocation42_spill] sm:$0xff] %v9831_v16 }
 0x288   : >> { %v9754_v30 = vsel %vm669_vm1, %v2336_v20, %v2338_v61  ;;  %v9808_v4 = vld [vmem:[%s9526_s15 + $0xa0] sm:$0x3]  ;;  %v9835_v33 = vld [vmem:[%s9526_s15 + $0xb8] sm:$0x3]  ;;  %v9907_v50 = vld [vmem:[%s9526_s15 + $0xe8] sm:$0x3] }
 0x289   : >> { %6399 = vmatpush3.bf16.msra.mxu1 %v7369_v49  ;;  %5790 = vmatpush3.bf16.msra.mxu0 %v7369_v49  ;;  %v2182_v49 = vrot.slane %v9747_v53, 1  ;;  %v2187_v10 = vrot.slane %v9808_v4, 1 }
 0x28a   : >> { %7132 = vrot.lane.b32.xlu0 %v7131_v43, %s7716_s16  ;;  %v7176_v43 = vpack.i.bf16 %v9716_v15, %v9705_v45  ;;  %6392 = vmatprep.subr.bf16.mxu1 %v7370_v29 }
 0x28b   : >> { %7157 = vrot.lane.b32.xlu1 %v7156_v39, %s7716_s16  ;;  %v9734_v39 = vld [vmem:[%s9526_s15 + $0x78] sm:$0xff]  ;;  %5791 = vmatprep.subr.bf16.mxu0 %v7370_v29  ;;  %v9786_v29 = vld [vmem:[%s9526_s15 + $0x90] sm:$0xff] }
 0x28c   : >> { %12006 = vst [vmem:[#allocation33_spill] sm:$0xff] %v9734_v39  ;;  %v2179_v61 = vrot.slane %v9734_v39, 1  ;;  %12010 = vst [vmem:[#allocation37_spill] sm:$0xff] %v9786_v29 }
 0x28d   : >> { %6400 = vmatpush3.bf16.msra.mxu1 %v7371_v23  ;;  %5792 = vmatpush3.bf16.msra.mxu0 %v7371_v23 }
 0x28e   : >> { %7137 = vrot.lane.b32.xlu0 %v7136_v36, %s7716_s16  ;;  %v9751_v36 = vsel %vm669_vm1, %v2335_v37, %v2336_v20  ;;  %v9766_v37 = vsel %vm492_vm0, %v2174_v56, %v2175_v42  ;;  %v9771_v20 = vsel %vm492_vm0, %v2175_v42, %v2177_v58  ;;  %v9783_v56 = vsel %vm669_vm1, %v2341_v27, %v2343_v38 }
 0x28f   : >> { %7162 = vrot.lane.b32.xlu1 %v7161_v0, %s7716_s16  ;;  %v2340_v0 = vrot.slane %v9615_v51, 2  ;;  %v7186_v54 = vpack.i.bf16 %v9754_v30, %v9751_v36  ;;  %12008 = vst [vmem:[#allocation35_spill] sm:$0xff] %v9766_v37  ;;  %12009 = vst [vmem:[#allocation36_spill] sm:$0xff] %v9771_v20  ;;  %v7196_v42 = vpack.i.bf16 %v9771_v20, %v9766_v37  ;;  %v2345_v58 = vrot.slane %v9660_v18, 2 }
 0x290   : >> { %5889 = vmatprep.subr.bf16.mxu1 %v7372_v1 }
 0x291   : >> { %v9780_v59 = vsel %vm669_vm1, %v2340_v0, %v2341_v27  ;;  %v2346_v0 = vrot.slane %v9666_v14, 2 }
 0x292   : >> { %7167 = vrot.lane.b32.xlu0 %v7166_v55, %s7716_s16  ;;  %v7191_v55 = vpack.i.bf16 %v9741_v26, %v9734_v39  ;;  %v7201_v27 = vpack.i.bf16 %v9783_v56, %v9780_v59 }
 0x293   : >> { %7172 = vrot.lane.b32.xlu1 %v7171_v34, %s7716_s16  ;;  %v2180_v34 = vrot.slane %v9741_v26, 1 }
 0x295   : >> { %v9800_v38 = vsel %vm492_vm0, %v2179_v61, %v2180_v34  ;;  %v9803_v23 = vsel %vm492_vm0, %v2180_v34, %v2182_v49  ;;  %v9816_v61 = vsel %vm669_vm1, %v2345_v58, %v2346_v0  ;;  %v2184_v34 = vrot.slane %v9786_v29, 1 }
 0x296   : >> { %7177 = vrot.lane.b32.xlu0 %v7176_v43, %s7716_s16  ;;  %v9777_v43 = vld [vmem:[%s9514_s12 + $0x100] sm:$0xff]   ;;  %12012 = vst [vmem:[#allocation39_spill] sm:$0xff] %v9800_v38  ;;  %12013 = vst [vmem:[#allocation40_spill] sm:$0xff] %v9803_v23  ;;  %v7211_v1 = vpack.i.bf16 %v9803_v23, %v9800_v38  ;;  %v2353_v58 = vrot.slane %v9709_v52, 2  ;;  %v2189_v38 = vrot.slane %v9828_v12, 1  ;;  %v2192_v23 = vrot.slane %v9835_v33, 1 }
 0x297   : >> { %7182 = vrot.lane.b32.xlu1 %v7181_v47, %s7716_s16  ;;  %v9789_v47 = vld [vmem:[%s9526_s15 + $0x98] sm:$0xff]  ;;  %6301 = vmatprep.subr.bf16.mxu0 %v9777_v43 }
 0x298   : >> { %12011 = vst [vmem:[#allocation38_spill] sm:$0xff] %v9789_v47 }
 0x29a   : >> { %7187 = vrot.lane.b32.xlu0 %v7186_v54, %s7716_s16  ;;  %v2348_v54 = vrot.slane %v9670_v9, 2  ;;  %v2185_v9 = vrot.slane %v9789_v47, 1 }
 0x29b   : >> { %7192 = vrot.lane.b32.xlu1 %v7191_v55, %s7716_s16  ;;  %v7206_v55 = vpack.i.bf16 %v9789_v47, %v9786_v29 }
 0x29c   : >> { %v9822_v49 = vsel %vm669_vm1, %v2346_v0, %v2348_v54  ;;  %v9844_v54 = vsel %vm492_vm0, %v2184_v34, %v2185_v9  ;;  %v9847_v28 = vsel %vm492_vm0, %v2185_v9, %v2187_v10  ;;  %v9862_v10 = vld [vmem:[%s9526_s15 + $0xc0] sm:$0xff]  ;;  %v9868_v9 = vld [vmem:[%s9526_s15 + $0xc8] sm:$0xff] }
 0x29d   : >> { %v7216_v0 = vpack.i.bf16 %v9822_v49, %v9816_v61  ;;  %12016 = vst [vmem:[#allocation43_spill] sm:$0xff] %v9844_v54  ;;  %12017 = vst [vmem:[#allocation44_spill] sm:$0xff] %v9847_v28  ;;  %v7226_v34 = vpack.i.bf16 %v9847_v28, %v9844_v54  ;;  %v7236_v28 = vpack.i.bf16 %v9868_v9, %v9862_v10  ;;  %v2194_v20 = vrot.slane %v9862_v10, 1 }
 0x29e   : >> { %7197 = vrot.lane.b32.xlu0 %v7196_v42, %s7716_s16  ;;  %v2351_v42 = vrot.slane %v9716_v15, 2  ;;  %12018 = vst [vmem:[#allocation45_spill] sm:$0xff] %v9862_v10  ;;  %12019 = vst [vmem:[#allocation46_spill] sm:$0xff] %v9868_v9  ;;  %v2195_v2 = vrot.slane %v9868_v9, 1 }
 0x29f   : >> { %7202 = vrot.lane.b32.xlu1 %v7201_v27, %s7716_s16  ;;  %v7221_v27 = vpack.i.bf16 %v9831_v16, %v9828_v12 }
 0x2a0   : >> { %v9850_v52 = vsel %vm669_vm1, %v2350_v13, %v2351_v42 }
 0x2a2   : >> { %7207 = vrot.lane.b32.xlu0 %v7206_v55, %s7716_s16  ;;  %v9853_v55 = vsel %vm669_vm1, %v2351_v42, %v2353_v58  ;;  %v2355_v42 = vrot.slane %v9734_v39, 2  ;;  %v2356_v58 = vrot.slane %v9741_v26, 2  ;;  %v2360_v39 = vrot.slane %v9786_v29, 2 }
 0x2a3   : >> { %7212 = vrot.lane.b32.xlu1 %v7211_v1, %s7716_s16  ;;  %v2190_v1 = vrot.slane %v9831_v16, 1  ;;  %v7231_v13 = vpack.i.bf16 %v9853_v55, %v9850_v52  ;;  %v2361_v26 = vrot.slane %v9789_v47, 2 }
 0x2a5   : >> { %v9874_v37 = vsel %vm492_vm0, %v2189_v38, %v2190_v1  ;;  %v9877_v54 = vsel %vm492_vm0, %v2190_v1, %v2192_v23  ;;  %v9891_v38 = vsel %vm669_vm1, %v2355_v42, %v2356_v58  ;;  %v9897_v1 = vld [vmem:[%s9526_s15 + $0xd8] sm:$0xff]  ;;  %v9925_v29 = vsel %vm669_vm1, %v2360_v39, %v2361_v26 }
 0x2a6   : >> { %7217 = vrot.lane.b32.xlu0 %v7216_v0, %s7716_s16  ;;  %v2358_v0 = vrot.slane %v9747_v53, 2  ;;  %12020 = vst [vmem:[#allocation47_spill] sm:$0xff] %v9874_v37  ;;  %12021 = vst [vmem:[#allocation48_spill] sm:$0xff] %v9877_v54  ;;  %v7241_v53 = vpack.i.bf16 %v9877_v54, %v9874_v37  ;;  %v2202_v54 = vrot.slane %v9907_v50, 1 }
 0x2a7   : >> { %7222 = vrot.lane.b32.xlu1 %v7221_v27, %s7716_s16  ;;  %v9880_v27 = vld [vmem:[%s9526_s15 + $0xd0] sm:$0x3]  ;;  %12022 = vst [vmem:[#allocation49_spill] sm:$0xff] %v9891_v38  ;;  %12023 = vst [vmem:[#allocation50_spill] sm:$0xff] %v9897_v1 }
 0x2a8   : >> { %v9894_v23 = vsel %vm669_vm1, %v2356_v58, %v2358_v0  ;;  %v2197_v48 = vrot.slane %v9880_v27, 1  ;;  %v9915_v0 = vsel %vm492_vm0, %v2194_v20, %v2195_v2  ;;  %12027 = vst [vmem:[#allocation54_spill] sm:$0xff] %v9925_v29 }
 0x2a9   : >> { %v7246_v42 = vpack.i.bf16 %v9894_v23, %v9891_v38  ;;  %12025 = vst [vmem:[#allocation52_spill] sm:$0xff] %v9915_v0 }
 0x2aa   : >> { %7227 = vrot.lane.b32.xlu0 %v7226_v34, %s7716_s16  ;;  %v9900_v34 = vld [vmem:[%s9526_s15 + $0xe0] sm:$0xff]  ;;  %v9919_v37 = vsel %vm492_vm0, %v2195_v2, %v2197_v48  ;;  %v2365_v2 = vrot.slane %v9828_v12, 2  ;;  %v2366_v48 = vrot.slane %v9831_v16, 2 }
 0x2ab   : >> { %7232 = vrot.lane.b32.xlu1 %v7231_v13, %s7716_s16  ;;  %12024 = vst [vmem:[#allocation51_spill] sm:$0xff] %v9900_v34  ;;  %v2363_v13 = vrot.slane %v9808_v4, 2  ;;  %v7251_v58 = vpack.i.bf16 %v9900_v34, %v9897_v1  ;;  %12026 = vst [vmem:[#allocation53_spill] sm:$0xff] %v9919_v37  ;;  %v2199_v4 = vrot.slane %v9897_v1, 1  ;;  %v7256_v20 = vpack.i.bf16 %v9919_v37, %v9915_v0  ;;  %v2084_v37 = vld [vmem:[%s9526_s15 + $0x100] sm:$0x3] }
 0x2ac   : >> { %v2368_v0 = vrot.slane %v9835_v33, 2  ;;  %v9958_v16 = vsel %vm669_vm1, %v2365_v2, %v2366_v48  ;;  %v9968_v33 = vld [vmem:[%s9526_s15 + $0x110] sm:$0xff]  ;;  %v2373_v2 = vrot.slane %v9880_v27, 2 }
 0x2ad   : >> { %v9928_v47 = vsel %vm669_vm1, %v2361_v26, %v2363_v13  ;;  %v9942_v26 = vld [vmem:[%s9526_s15 + $0xf8] sm:$0xff]  ;;  %12033 = vst [vmem:[#allocation60_spill] sm:$0xff] %v9958_v16  ;;  %12036 = vst [vmem:[#allocation63_spill] sm:$0xff] %v9968_v33  ;;  %v2210_v27 = vrot.slane %v9968_v33, 1 }
 0x2ae   : >> { %7237 = vrot.lane.b32.xlu0 %v7236_v28, %s7716_s16  ;;  %v2200_v28 = vrot.slane %v9900_v34, 1  ;;  %12028 = vst [vmem:[#allocation55_spill] sm:$0xff] %v9928_v47  ;;  %v7261_v39 = vpack.i.bf16 %v9928_v47, %v9925_v29  ;;  %12030 = vst [vmem:[#allocation57_spill] sm:$0xff] %v9942_v26  ;;  %v2207_v29 = vrot.slane %v2084_v37, 1  ;;  %v2370_v47 = vrot.slane %v9862_v10, 2 }
 0x2af   : >> { %7242 = vrot.lane.b32.xlu1 %v7241_v53, %s7716_s16  ;;  %v9939_v53 = vld [vmem:[%s9526_s15 + $0xf0] sm:$0xff] }
 0x2b0   : >> { %12029 = vst [vmem:[#allocation56_spill] sm:$0xff] %v9939_v53  ;;  %v9945_v13 = vsel %vm492_vm0, %v2199_v4, %v2200_v28  ;;  %v9965_v4 = vld [vmem:[%s9526_s15 + $0x108] sm:$0xff] }
 0x2b1   : >> { %12031 = vst [vmem:[#allocation58_spill] sm:$0xff] %v9945_v13  ;;  %12035 = vst [vmem:[#allocation62_spill] sm:$0xff] %v9965_v4 }
 0x2b2   : >> { %7247 = vrot.lane.b32.xlu0 %v7246_v42, %s7716_s16  ;;  %v9948_v42 = vsel %vm492_vm0, %v2200_v28, %v2202_v54  ;;  %v9962_v54 = vsel %vm669_vm1, %v2366_v48, %v2368_v0  ;;  %v2204_v28 = vrot.slane %v9939_v53, 1  ;;  %v7281_v48 = vpack.i.bf16 %v9968_v33, %v9965_v4 }
 0x2b3   : >> { %7252 = vrot.lane.b32.xlu1 %v7251_v58, %s7716_s16  ;;  %12032 = vst [vmem:[#allocation59_spill] sm:$0xff] %v9948_v42  ;;  %v7266_v58 = vpack.i.bf16 %v9942_v26, %v9939_v53  ;;  %v7271_v12 = vpack.i.bf16 %v9948_v42, %v9945_v13  ;;  %12034 = vst [vmem:[#allocation61_spill] sm:$0xff] %v9962_v54  ;;  %v2371_v13 = vrot.slane %v9868_v9, 2  ;;  %v2087_v42 = vld [vmem:[%s9526_s15 + $0x118] sm:$0x3] }
 0x2b4   : >> { %v7276_v0 = vpack.i.bf16 %v9962_v54, %v9958_v16  ;;  %v2212_v9 = vrot.slane %v2087_v42, 1  ;;  %v2376_v54 = vrot.slane %v9900_v34, 2  ;;  %v2578_v34 = vrot.slane %v9682_v63, 2 }
 0x2b5   : >> { %v9994_v16 = vsel %vm669_vm1, %v2371_v13, %v2373_v2  ;;  %v2380_v2 = vrot.slane %v9939_v53, 2 }
 0x2b6   : >> { %7257 = vrot.lane.b32.xlu0 %v7256_v20, %s7716_s16  ;;  %v2205_v20 = vrot.slane %v9942_v26, 1 }
 0x2b7   : >> { %7262 = vrot.lane.b32.xlu1 %v7261_v39, %s7716_s16  ;;  %v2209_v39 = vrot.slane %v9965_v4, 1 }
 0x2b8   : >> { %v9984_v38 = vsel %vm492_vm0, %v2204_v28, %v2205_v20  ;;  %v9987_v10 = vsel %vm492_vm0, %v2205_v20, %v2207_v29  ;;  %v2375_v28 = vrot.slane %v9897_v1, 2  ;;  %v2378_v20 = vrot.slane %v9907_v50, 2 }
 0x2b9   : >> { %12037 = vst [vmem:[#allocation64_spill] sm:$0xff] %v9984_v38  ;;  %12038 = vst [vmem:[#allocation65_spill] sm:$0xff] %v9987_v10 }
 0x2ba   : >> { %7267 = vrot.lane.b32.xlu0 %v7266_v58, %s7716_s16  ;;  %v9991_v58 = vsel %vm669_vm1, %v2370_v47, %v2371_v13  ;;  %v10005_v47 = vsel %vm492_vm0, %v2209_v39, %v2210_v27  ;;  %v10008_v13 = vsel %vm492_vm0, %v2210_v27, %v2212_v9  ;;  %v10019_v39 = vsel %vm669_vm1, %v2375_v28, %v2376_v54 }
 0x2bb   : >> { %7272 = vrot.lane.b32.xlu1 %v7271_v12, %s7716_s16  ;;  %v7286_v12 = vpack.i.bf16 %v9987_v10, %v9984_v38  ;;  %v7291_v29 = vpack.i.bf16 %v9994_v16, %v9991_v58  ;;  %12039 = vst [vmem:[#allocation66_spill] sm:$0xff] %v10005_v47  ;;  %12040 = vst [vmem:[#allocation67_spill] sm:$0xff] %v10008_v13  ;;  %v2383_v38 = vrot.slane %v2084_v37, 2  ;;  %v2385_v9 = vrot.slane %v9965_v4, 2 }
 0x2bc   : >> { %v7301_v10 = vpack.i.bf16 %v10008_v13, %v10005_v47  ;;  %12041 = vst [vmem:[#allocation68_spill] sm:$0xff] %v10019_v39  ;;  %v10023_v50 = vsel %vm669_vm1, %v2376_v54, %v2378_v20  ;;  %v2386_v37 = vrot.slane %v9968_v33, 2  ;;  %v2388_v27 = vrot.slane %v2087_v42, 2  ;;  %v2102_v13 = vld [vmem:[%s9526_s15 + $0x190] sm:$0x3] }
 0x2bd   : >> { %v7306_v28 = vpack.i.bf16 %v10023_v50, %v10019_v39  ;;  %v2390_v54 = vrot.slane %v9544_v19, 2  ;;  %v2393_v20 = vrot.slane %v9554_v11, 2  ;;  %v2398_v47 = vrot.slane %v9577_v31, 2 }
 0x2be   : >> { %7277 = vrot.lane.b32.xlu0 %v7276_v0, %s7716_s16  ;;  %v2381_v0 = vrot.slane %v9942_v26, 2  ;;  %v2400_v11 = vrot.slane %v9585_v6, 2  ;;  %v2541_v33 = vrot.slane %v9682_v63, 1  ;;  %v2544_v26 = vrot.slane %v2102_v13, 1 }
 0x2bf   : >> { %7282 = vrot.lane.b32.xlu1 %v7281_v48, %s7716_s16  ;;  %v7296_v48 = vpack.i.bf16 %v9547_v57, %v9544_v19  ;;  %v2581_v39 = vrot.slane %v2102_v13, 2 }
 0x2c0   : >> { %v10031_v53 = vsel %vm669_vm1, %v2381_v0, %v2383_v38  ;;  %v10046_v38 = vsel %vm669_vm1, %v2386_v37, %v2388_v27 }
 0x2c1   : >> { %12043 = vst [vmem:[#allocation70_spill] sm:$0xff] %v10031_v53  ;;  %12045 = vst [vmem:[#allocation72_spill] sm:$0xff] %v10046_v38 }
 0x2c2   : >> { %7287 = vrot.lane.b32.xlu0 %v7286_v12, %s7716_s16  ;;  %v10028_v12 = vsel %vm669_vm1, %v2380_v2, %v2381_v0  ;;  %v10043_v2 = vsel %vm669_vm1, %v2385_v9, %v2386_v37  ;;  %v2395_v0 = vrot.slane %v9529_v60, 2  ;;  %v2403_v9 = vrot.slane %v9606_v41, 2 }
 0x2c3   : >> { %7292 = vrot.lane.b32.xlu1 %v7291_v29, %s7716_s16  ;;  %12042 = vst [vmem:[#allocation69_spill] sm:$0xff] %v10028_v12  ;;  %v2391_v29 = vrot.slane %v9547_v57, 2  ;;  %v7311_v42 = vpack.i.bf16 %v10031_v53, %v10028_v12  ;;  %12044 = vst [vmem:[#allocation71_spill] sm:$0xff] %v10043_v2  ;;  %v7316_v37 = vpack.i.bf16 %v10046_v38, %v10043_v2  ;;  %v2542_v41 = vrot.slane %v9690_v22, 1 }
 0x2c4   : >> { %v2405_v53 = vrot.slane %v9639_v8, 2 }
 0x2c5   : >> { %v10059_v27 = vsel %vm669_vm1, %v2390_v54, %v2391_v29  ;;  %v10062_v4 = vsel %vm669_vm1, %v2391_v29, %v2393_v20  ;;  %v10079_v29 = vld [vmem:[%s9526_s15 + $0x1a0] sm:$0xff]  ;;  %v10082_v20 = vld [vmem:[%s9526_s15 + $0x1a8] sm:$0x3] }
 0x2c6   : >> { %7297 = vrot.lane.b32.xlu0 %v7296_v48, %s7716_s16  ;;  %v2396_v48 = vrot.slane %v9532_v3, 2  ;;  %v7321_v31 = vpack.i.bf16 %v10062_v4, %v10059_v27  ;;  %v2683_v1 = vrot.slane %v10079_v29, 1 }
 0x2c7   : >> { %7302 = vrot.lane.b32.xlu1 %v7301_v10, %s7716_s16  ;;  %v2401_v10 = vrot.slane %v9588_v25, 2 }
 0x2c8   : >> { %v10073_v2 = vsel %vm669_vm1, %v2395_v0, %v2396_v48  ;;  %v10076_v54 = vsel %vm669_vm1, %v2396_v48, %v2398_v47  ;;  %v2406_v47 = vrot.slane %v9642_v44, 2  ;;  %v2408_v0 = vrot.slane %v9654_v35, 2 }
 0x2c9   : >> { %v10088_v38 = vsel %vm669_vm1, %v2401_v10, %v2403_v9  ;;  %v7326_v12 = vpack.i.bf16 %v10076_v54, %v10073_v2  ;;  %v10104_v9 = vsel %vm492_vm0, %v2542_v41, %v2544_v26  ;;  %v2579_v35 = vrot.slane %v9690_v22, 2 }
 0x2ca   : >> { %7307 = vrot.lane.b32.xlu0 %v7306_v28, %s7716_s16  ;;  %v10070_v28 = vld [vmem:[%s9526_s15 + $0x198] sm:$0xff]  ;;  %12048 = vst [vmem:[#allocation75_spill] sm:$0xff] %v10104_v9 }
 0x2cb   : >> { %7312 = vrot.lane.b32.xlu1 %v7311_v42, %s7716_s16  ;;  %12046 = vst [vmem:[#allocation73_spill] sm:$0xff] %v10070_v28  ;;  %v10085_v42 = vsel %vm669_vm1, %v2400_v11, %v2401_v10  ;;  %v2682_v11 = vrot.slane %v10070_v28, 1  ;;  %v10101_v10 = vsel %vm492_vm0, %v2541_v33, %v2542_v41  ;;  %v10112_v28 = vsel %vm669_vm1, %v2405_v53, %v2406_v47 }
 0x2cc   : >> { %v7331_v48 = vpack.i.bf16 %v10088_v38, %v10085_v42  ;;  %12047 = vst [vmem:[#allocation74_spill] sm:$0xff] %v10101_v10  ;;  %v10115_v33 = vsel %vm669_vm1, %v2406_v47, %v2408_v0  ;;  %v7336_v26 = vpack.i.bf16 %v10104_v9, %v10101_v10  ;;  %v10125_v13 = vsel %vm669_vm1, %v2578_v34, %v2579_v35 }
 0x2cd   : >> { %v2684_v63 = vsel %vm492_vm0, %v2682_v11, %v2683_v1  ;;  %v10128_v53 = vsel %vm669_vm1, %v2579_v35, %v2581_v39  ;;  %v2331_v34 = vrot.slane %v9562_v7, 2  ;;  %v2333_v47 = vrot.slane %v9567_v21, 2 }
 0x2ce   : >> { %7317 = vrot.lane.b32.xlu0 %v7316_v37, %s7716_s16  ;;  %v2685_v37 = vrot.slane %v10082_v20, 1  ;;  %v7351_v41 = vpack.i.bf16 %v10128_v53, %v10125_v13 }
 0x2cf   : >> { %7322 = vrot.lane.b32.xlu1 %v7321_v31, %s7716_s16  ;;  %v7341_v31 = vpack.i.bf16 %v10115_v33, %v10112_v28  ;;  %v2334_v35 = vsel %vm669_vm1, %v2331_v34, %v2333_v47 }
 0x2d0   : >> { %v2686_v22 = vsel %vm492_vm0, %v2683_v1, %v2685_v37  ;;  %v2330_v1 = vrot.slane %v9559_v17, 2 }
 0x2d2   : >> { %7327 = vrot.lane.b32.xlu0 %v7326_v12, %s7716_s16  ;;  %v7346_v12 = vpack.i.bf16 %v2686_v22, %v2684_v63  ;;  %v2332_v37 = vsel %vm669_vm1, %v2330_v1, %v2331_v34 }
 0x2d3   : >> { %7332 = vrot.lane.b32.xlu1 %v7331_v48, %s7716_s16 }
 0x2d6   : >> { %7337 = vrot.lane.b32.xlu0 %v7336_v26, %s7716_s16 }
 0x2d7   : >> { %7342 = vrot.lane.b32.xlu1 %v7341_v31, %s7716_s16 }
 0x2da   : >> { %7347 = vrot.lane.b32.xlu0 %v7346_v12, %s7716_s16 }
 0x2db   : >> { %7352 = vrot.lane.b32.xlu1 %v7351_v41, %s7716_s16 }
 0x2ec   : >> { %v7108_v39 = vpop.permute.xlu0 %7107 }
 0x2ed   : >> { %v7110_v0 = vunpack.i.h.bf16 %v7108_v39  ;;  %v7109_v48 = vunpack.i.l.bf16 %v7108_v39  ;;  %v7118_v11 = vpop.permute.xlu1 %7117 }
 0x2ee   : >> { %v7120_v26 = vunpack.i.h.bf16 %v7118_v11  ;;  %v7119_v31 = vunpack.i.l.bf16 %v7118_v11 }
 0x2ef   : >> { %v2764_v63 = vsel %vm280_vm12, %v10059_v27, %v7109_v48  ;;  %v2765_v22 = vsel %vm280_vm12, %v10062_v4, %v7110_v0 }
 0x2f0   : >> { %v2858_v12 = vpack.c.bf16 %v2765_v22, %v2764_v63  ;;  %v2740_v21 = vsel %vm280_vm12, %v2332_v37, %v7119_v31  ;;  %v2741_v41 = vsel %vm280_vm12, %v2334_v35, %v7120_v26  ;;  %v7113_v39 = vpop.permute.xlu0 %7112  ;;  %v7373_v37 = vld [vmem:[%s9514_s12 + $0x80] sm:$0xff]   ;;  %v7374_v22 = vld [vmem:[%s9514_s12 + $0xc8] sm:$0xff]  }
 0x2f1   : >> { %v2809_v10 = vpack.c.bf16 %v2741_v41, %v2740_v21  ;;  %v7115_v1 = vunpack.i.h.bf16 %v7113_v39  ;;  %v7114_v9 = vunpack.i.l.bf16 %v7113_v39  ;;  %v7143_v34 = vpop.permute.xlu1 %7142 }
 0x2f2   : >> { %3341 = vmatprep.mubr.bf16.mxu1 %v2858_v12  ;;  %v7145_v47 = vunpack.i.h.bf16 %v7143_v34  ;;  %v7144_v11 = vunpack.i.l.bf16 %v7143_v34 }
 0x2f3   : >> { %3245 = vmatprep.mubr.bf16.mxu0 %v2809_v10  ;;  %v2733_v48 = vsel %vm280_vm12, %v9547_v57, %v7115_v1  ;;  %v2732_v0 = vsel %vm280_vm12, %v9544_v19, %v7114_v9  ;;  %v7388_v57 = vld [vmem:[%s9514_s12 + $0x108] sm:$0xff]  }
 0x2f4   : >> { %v2709_v35 = vsel %vm280_vm12, %v9562_v7, %v7145_v47  ;;  %v2708_v26 = vsel %vm280_vm12, %v9559_v17, %v7144_v11  ;;  %v7123_v31 = vpop.permute.xlu0 %7122  ;;  %v10156_v63 = vpack.c.bf16 %v2733_v48, %v2732_v0  ;;  %v7376_v9 = vld [vmem:[%s9514_s12 + $0x88] sm:$0xff]   ;;  %v7377_v48 = vld [vmem:[%s9514_s12 + $0xd0] sm:$0xff]  }
 0x2f5   : >> { %v7125_v12 = vunpack.i.h.bf16 %v7123_v31  ;;  %v7124_v10 = vunpack.i.l.bf16 %v7123_v31  ;;  %v7148_v21 = vpop.permute.xlu1 %7147  ;;  %v2808_v41 = vpack.c.bf16 %v2709_v35, %v2708_v26 }
 0x2f6   : >> { %v7150_v39 = vunpack.i.h.bf16 %v7148_v21  ;;  %v7149_v19 = vunpack.i.l.bf16 %v7148_v21  ;;  %3342 = vmatmul.mubr.bf16.vlgmr.msra.gmra.mrb[0].mxu1 %v10156_v63 }
 0x2f7   : >> { %v2767_v7 = vsel %vm280_vm12, %v10076_v54, %v7125_v12  ;;  %v2766_v17 = vsel %vm280_vm12, %v10073_v2, %v7124_v10  ;;  %5890 = vmatpush3.bf16.msra.mxu1 %v7373_v37  ;;  %3246 = vmatmul.mubr.bf16.vlgmr.msra.gmra.mrb[0].mxu0 %v2808_v41  ;;  %v7390_v37 = vld [vmem:[%s9514_s12 + $0x110] sm:$0xff]  }
 0x2f8   : >> { %v2735_v1 = vsel %vm280_vm12, %v9532_v3, %v7150_v39  ;;  %v2734_v34 = vsel %vm280_vm12, %v9529_v60, %v7149_v19  ;;  %v7128_v47 = vpop.permute.xlu0 %7127  ;;  %5891 = vmatprep.subr.bf16.mxu1 %v7374_v22  ;;  %6302 = vmatpush3.bf16.msra.mxu0 %v9777_v43  ;;  %v2862_v11 = vpack.c.bf16 %v2767_v7, %v2766_v17  ;;  %v7378_v22 = vld [vmem:[%s9514_s12 + $0x90] sm:$0xff]   ;;  %v7379_v19 = vld [vmem:[%s9514_s12 + $0xd8] sm:$0xff]  }
 0x2f9   : >> { %v7130_v0 = vunpack.i.h.bf16 %v7128_v47  ;;  %v7129_v35 = vunpack.i.l.bf16 %v7128_v47  ;;  %v7153_v26 = vpop.permute.xlu1 %7152  ;;  %6303 = vmatprep.subr.bf16.mxu0 %v7388_v57  ;;  %v10173_v3 = vpack.c.bf16 %v2735_v1, %v2734_v34 }
 0x2fa   : >> { %v7155_v31 = vunpack.i.h.bf16 %v7153_v26  ;;  %v7154_v12 = vunpack.i.l.bf16 %v7153_v26  ;;  %3349 = vmatprep.mubr.bf16.mxu1 %v2862_v11 }
 0x2fb   : >> { %v2742_v60 = vsel %vm280_vm12, %v9751_v36, %v7129_v35  ;;  %v2743_v43 = vsel %vm280_vm12, %v9754_v30, %v7130_v0  ;;  %5892 = vmatpush3.bf16.msra.mxu1 %v7376_v9  ;;  %v7391_v30 = vld [vmem:[%s9514_s12 + $0x118] sm:$0xff]   ;;  %v7381_v0 = vld [vmem:[%s9514_s12 + $0xe0] sm:$0xff]  }
 0x2fc   : >> { %v2711_v10 = vsel %vm280_vm12, %v9541_v46, %v7155_v31  ;;  %v2710_v21 = vsel %vm280_vm12, %v9535_v62, %v7154_v12  ;;  %v7133_v41 = vpop.permute.xlu0 %7132  ;;  %5893 = vmatprep.subr.bf16.mxu1 %v7377_v48  ;;  %v2814_v39 = vpack.c.bf16 %v2743_v43, %v2742_v60  ;;  %6304 = vmatpush3.bf16.msra.mxu0 %v7388_v57  ;;  %v7380_v57 = vld [vmem:[%s9514_s12 + $0x98] sm:$0xff]  }
 0x2fd   : >> { %v7135_v7 = vunpack.i.h.bf16 %v7133_v41  ;;  %v7134_v36 = vunpack.i.l.bf16 %v7133_v41  ;;  %v7158_v17 = vpop.permute.xlu1 %7157  ;;  %v2813_v1 = vpack.c.bf16 %v2711_v10, %v2710_v21  ;;  %6305 = vmatprep.subr.bf16.mxu0 %v7390_v37  ;;  %v7382_v10 = vld [vmem:[%s9514_s12 + $0xa0] sm:$0xff]  }
 0x2fe   : >> { %v7160_v9 = vunpack.i.h.bf16 %v7158_v17  ;;  %v7159_v34 = vunpack.i.l.bf16 %v7158_v17  ;;  %3253 = vmatprep.mubr.bf16.mxu0 %v2814_v39  ;;  %3350 = vmatmul.mubr.bf16.gmra.mrb[4].mxu1 %v10173_v3 }
 0x2ff   : >> { %v2769_v62 = vsel %vm280_vm12, %v10088_v38, %v7135_v7  ;;  %v2768_v46 = vsel %vm280_vm12, %v10085_v42, %v7134_v36  ;;  %5894 = vmatpush3.bf16.msra.mxu1 %v7378_v22  ;;  %3254 = vmatmul.mubr.bf16.gmra.mrb[4].mxu0 %v2813_v1 }
 0x300   : >> { %v2737_v47 = vsel %vm280_vm12, %v9588_v25, %v7160_v9  ;;  %v2736_v11 = vsel %vm280_vm12, %v9585_v6, %v7159_v34  ;;  %v7138_v48 = vpop.permute.xlu0 %7137  ;;  %5895 = vmatprep.subr.bf16.mxu1 %v7379_v19  ;;  %v2866_v35 = vpack.c.bf16 %v2769_v62, %v2768_v46  ;;  %6306 = vmatpush3.bf16.msra.mxu0 %v7390_v37  ;;  %v7383_v19 = vld [vmem:[%s9514_s12 + $0xe8] sm:$0xff]  }
 0x301   : >> { %v7140_v26 = vunpack.i.h.bf16 %v7138_v48  ;;  %v7139_v31 = vunpack.i.l.bf16 %v7138_v48  ;;  %v7163_v12 = vpop.permute.xlu1 %7162  ;;  %6307 = vmatprep.subr.bf16.mxu0 %v7391_v30  ;;  %v10197_v22 = vpack.c.bf16 %v2737_v47, %v2736_v11  ;;  %v7384_v62 = vld [vmem:[%s9514_s12 + $0xa8] sm:$0xff]   ;;  %v7385_v47 = vld [vmem:[%s9514_s12 + $0xf0] sm:$0xff]  }
 0x302   : >> { %v7165_v60 = vunpack.i.h.bf16 %v7163_v12  ;;  %v7164_v43 = vunpack.i.l.bf16 %v7163_v12  ;;  %3357 = vmatprep.mubr.bf16.mxu1 %v2866_v35 }
 0x303   : >> { %v2745_v25 = vsel %vm280_vm12, %v9783_v56, %v7140_v26  ;;  %v2744_v6 = vsel %vm280_vm12, %v9780_v59, %v7139_v31  ;;  %5896 = vmatpush3.bf16.msra.mxu1 %v7380_v57 }
 0x304   : >> { %v2713_v37 = vsel %vm280_vm12, %v9618_v5, %v7165_v60  ;;  %v2712_v21 = vsel %vm280_vm12, %v9615_v51, %v7164_v43  ;;  %v7168_v41 = vpop.permute.xlu0 %7167  ;;  %5897 = vmatprep.subr.bf16.mxu1 %v7381_v0  ;;  %v2818_v39 = vpack.c.bf16 %v2745_v25, %v2744_v6  ;;  %6308 = vmatpush3.bf16.msra.mxu0 %v7391_v30 }
 0x305   : >> { %v7170_v7 = vunpack.i.h.bf16 %v7168_v41  ;;  %v7169_v36 = vunpack.i.l.bf16 %v7168_v41  ;;  %v7173_v17 = vpop.permute.xlu1 %7172  ;;  %v2811_v1 = vpack.c.bf16 %v2713_v37, %v2712_v21  ;;  %v7387_v37 = vld [vmem:[%s9514_s12 + $0xf8] sm:$0xff]  }
 0x306   : >> { %v7175_v9 = vunpack.i.h.bf16 %v7173_v17  ;;  %v7174_v34 = vunpack.i.l.bf16 %v7173_v17  ;;  %3261 = vmatprep.mubr.bf16.mxu0 %v2818_v39  ;;  %3358 = vmatmul.mubr.bf16.gmra.mrb[8].mxu1 %v10197_v22  ;;  %v7389_v17 = vld [vmem:[%s9514_s12 + $0xb8] sm:$0xff]  }
 0x307   : >> { %v2771_v5 = vsel %vm280_vm12, %v10115_v33, %v7170_v7  ;;  %v2770_v51 = vsel %vm280_vm12, %v10112_v28, %v7169_v36  ;;  %5898 = vmatpush3.bf16.msra.mxu1 %v7382_v10  ;;  %3262 = vmatmul.mubr.bf16.gmra.mrb[8].mxu0 %v2811_v1 }
 0x308   : >> { %v2739_v30 = vsel %vm280_vm12, %v9642_v44, %v7175_v9  ;;  %v2738_v46 = vsel %vm280_vm12, %v9639_v8, %v7174_v34  ;;  %v7178_v57 = vpop.permute.xlu0 %7177  ;;  %5899 = vmatprep.subr.bf16.mxu1 %v7383_v19  ;;  %v2870_v11 = vpack.c.bf16 %v2771_v5, %v2770_v51  ;;  %v7386_v8 = vld [vmem:[%s9514_s12 + $0xb0] sm:$0xff]  }
 0x309   : >> { %v7180_v48 = vunpack.i.h.bf16 %v7178_v57  ;;  %v7179_v0 = vunpack.i.l.bf16 %v7178_v57  ;;  %v7183_v35 = vpop.permute.xlu1 %7182  ;;  %v10220_v12 = vpack.c.bf16 %v2739_v30, %v2738_v46 }
 0x30a   : >> { %v7185_v26 = vunpack.i.h.bf16 %v7183_v35  ;;  %v7184_v31 = vunpack.i.l.bf16 %v7183_v35  ;;  %3365 = vmatprep.mubr.bf16.mxu1 %v2870_v11 }
 0x30b   : >> { %v2747_v44 = vsel %vm280_vm12, %v9822_v49, %v7180_v48  ;;  %v2746_v60 = vsel %vm280_vm12, %v9816_v61, %v7179_v0  ;;  %5900 = vmatpush3.bf16.msra.mxu1 %v7384_v62 }
 0x30c   : >> { %v2715_v43 = vsel %vm280_vm12, %v9666_v14, %v7185_v26  ;;  %v2714_v25 = vsel %vm280_vm12, %v9660_v18, %v7184_v31  ;;  %5901 = vmatprep.subr.bf16.mxu1 %v7385_v47  ;;  %v7188_v6 = vpop.permute.xlu0 %7187  ;;  %v2822_v10 = vpack.c.bf16 %v2747_v44, %v2746_v60 }
 0x30d   : >> { %v7190_v21 = vunpack.i.h.bf16 %v7188_v6  ;;  %v7189_v41 = vunpack.i.l.bf16 %v7188_v6  ;;  %v2816_v39 = vpack.c.bf16 %v2715_v43, %v2714_v25  ;;  %v7193_v19 = vpop.permute.xlu1 %7192  ;;  %v12050_v43 = vld [vmem:[#allocation49_spill] sm:$0xff]  ;;  %v12051_v6 = vld [vmem:[#allocation34_spill] sm:$0xff] }
 0x30e   : >> { %3269 = vmatprep.mubr.bf16.mxu0 %v2822_v10  ;;  %3366 = vmatmul.mubr.bf16.gmra.mrb[12].mxu1 %v10220_v12  ;;  %v7195_v7 = vunpack.i.h.bf16 %v7193_v19  ;;  %v7194_v36 = vunpack.i.l.bf16 %v7193_v19 }
 0x30f   : >> { %v2773_v14 = vsel %vm280_vm12, %v9624_v24, %v7190_v21  ;;  %v2772_v18 = vsel %vm280_vm12, %v9621_v40, %v7189_v41  ;;  %5902 = vmatpush3.bf16.msra.mxu1 %v7386_v8  ;;  %3270 = vmatmul.mubr.bf16.gmra.mrb[12].mxu0 %v2816_v39  ;;  %v12049_v8 = vld [vmem:[#allocation28_spill] sm:$0xff] }
 0x310   : >> { %3406 = vmatprep.mubr.bf16.mxu1 %v2811_v1  ;;  %v2749_v9 = vsel %vm280_vm12, %v9853_v55, %v7195_v7  ;;  %v2748_v34 = vsel %vm280_vm12, %v9850_v52, %v7194_v36  ;;  %5903 = vmatprep.subr.bf16.mxu1 %v7387_v37  ;;  %v7198_v5 = vpop.permute.xlu0 %7197  ;;  %v2810_v24 = vpack.c.bf16 %v2773_v14, %v2772_v18  ;;  %v12052_v37 = vld [vmem:[#allocation33_spill] sm:$0xff] }
 0x311   : >> { %v7200_v51 = vunpack.i.h.bf16 %v7198_v5  ;;  %v7199_v62 = vunpack.i.l.bf16 %v7198_v5  ;;  %v7203_v30 = vpop.permute.xlu1 %7202  ;;  %v2826_v46 = vpack.c.bf16 %v2749_v9, %v2748_v34  ;;  %v12053_v9 = vld [vmem:[#allocation55_spill] sm:$0xff]  ;;  %v12054_v5 = vld [vmem:[#allocation54_spill] sm:$0xff] }
 0x312   : >> { %v7205_v57 = vunpack.i.h.bf16 %v7203_v30  ;;  %v7204_v47 = vunpack.i.l.bf16 %v7203_v30 }
 0x313   : >> { %v2717_v40 = vsel %vm280_vm12, %v9716_v15, %v7200_v51  ;;  %v2716_v1 = vsel %vm280_vm12, %v9705_v45, %v7199_v62  ;;  %5904 = vmatpush3.bf16.msra.mxu1 %v7389_v17  ;;  %3277 = vmatprep.mubr.bf16.mxu0 %v2826_v46 }
 0x314   : >> { %v2820_v11 = vpack.c.bf16 %v2717_v40, %v2716_v1  ;;  %v7208_v48 = vpop.permute.xlu0 %7207  ;;  %v2775_v31 = vsel %vm280_vm12, %v9677_v32, %v7205_v57  ;;  %v2774_v15 = vsel %vm280_vm12, %v12049_v8, %v7204_v47  ;;  %v12055_v40 = vld [vmem:[#allocation32_spill] sm:$0xff]  ;;  %v12056_v47 = vld [vmem:[#allocation31_spill] sm:$0xff] }
 0x315   : >> { %v7210_v0 = vunpack.i.h.bf16 %v7208_v48  ;;  %v7209_v35 = vunpack.i.l.bf16 %v7208_v48  ;;  %v7213_v26 = vpop.permute.xlu1 %7212  ;;  %v2815_v7 = vpack.c.bf16 %v2775_v31, %v2774_v15 }
 0x316   : >> { %3407 = vmatmul.mubr.bf16.vlgmr.msra.gmra.mrb[16].mxu1 %v2810_v24  ;;  %v7215_v44 = vunpack.i.h.bf16 %v7213_v26  ;;  %v7214_v60 = vunpack.i.l.bf16 %v7213_v26  ;;  %v12058_v26 = vld [vmem:[#allocation37_spill] sm:$0xff] }
 0x317   : >> { %3278 = vmatmul.mubr.bf16.gmra.mrb[16].mxu0 %v2820_v11  ;;  %3414 = vmatprep.mubr.bf16.mxu1 %v2816_v39  ;;  %v2751_v45 = vsel %vm280_vm12, %v9894_v23, %v7210_v0  ;;  %v2750_v25 = vsel %vm280_vm12, %v12050_v43, %v7209_v35  ;;  %v12057_v0 = vld [vmem:[#allocation38_spill] sm:$0xff] }
 0x318   : >> { %v2719_v10 = vsel %vm280_vm12, %v12051_v6, %v7215_v44  ;;  %v2718_v32 = vsel %vm280_vm12, %v12052_v37, %v7214_v60  ;;  %v7218_v21 = vpop.permute.xlu0 %7217  ;;  %v2830_v41 = vpack.c.bf16 %v2751_v45, %v2750_v25  ;;  %v12059_v37 = vld [vmem:[#allocation61_spill] sm:$0xff] }
 0x319   : >> { %v7223_v19 = vpop.permute.xlu1 %7222  ;;  %v7220_v39 = vunpack.i.h.bf16 %v7218_v21  ;;  %v7219_v18 = vunpack.i.l.bf16 %v7218_v21  ;;  %v2824_v17 = vpack.c.bf16 %v2719_v10, %v2718_v32  ;;  %v12060_v21 = vld [vmem:[#allocation60_spill] sm:$0xff] }
 0x31a   : >> { %3285 = vmatprep.mubr.bf16.mxu0 %v2830_v41  ;;  %v7225_v36 = vunpack.i.h.bf16 %v7223_v19  ;;  %v7224_v14 = vunpack.i.l.bf16 %v7223_v19 }
 0x31b   : >> { %v2777_v1 = vsel %vm280_vm12, %v12055_v40, %v7220_v39  ;;  %v2776_v48 = vsel %vm280_vm12, %v12056_v47, %v7219_v18 }
 0x31c   : >> { %v2753_v34 = vsel %vm280_vm12, %v12053_v9, %v7225_v36  ;;  %v2752_v51 = vsel %vm280_vm12, %v12054_v5, %v7224_v14  ;;  %v7228_v62 = vpop.permute.xlu0 %7227  ;;  %v2819_v25 = vpack.c.bf16 %v2777_v1, %v2776_v48 }
 0x31d   : >> { %v7230_v30 = vunpack.i.h.bf16 %v7228_v62  ;;  %v7229_v46 = vunpack.i.l.bf16 %v7228_v62  ;;  %v7233_v24 = vpop.permute.xlu1 %7232  ;;  %v2834_v57 = vpack.c.bf16 %v2753_v34, %v2752_v51  ;;  %v12061_v34 = vld [vmem:[#allocation36_spill] sm:$0xff]  ;;  %v12062_v62 = vld [vmem:[#allocation35_spill] sm:$0xff] }
 0x31e   : >> { %3415 = vmatmul.mubr.bf16.gmra.mrb[20].mxu1 %v2815_v7  ;;  %v7235_v45 = vunpack.i.h.bf16 %v7233_v24  ;;  %v7234_v6 = vunpack.i.l.bf16 %v7233_v24 }
 0x31f   : >> { %3286 = vmatmul.mubr.bf16.gmra.mrb[20].mxu0 %v2824_v17  ;;  %3422 = vmatprep.mubr.bf16.mxu1 %v2820_v11  ;;  %v2721_v35 = vsel %vm280_vm12, %v12057_v0, %v7230_v30  ;;  %v2720_v31 = vsel %vm280_vm12, %v12058_v26, %v7229_v46  ;;  %v12063_v46 = vld [vmem:[#allocation42_spill] sm:$0xff] }
 0x320   : >> { %3293 = vmatprep.mubr.bf16.mxu0 %v2834_v57  ;;  %v7238_v44 = vpop.permute.xlu0 %7237  ;;  %v2828_v10 = vpack.c.bf16 %v2721_v35, %v2720_v31  ;;  %v2779_v51 = vsel %vm280_vm12, %v12061_v34, %v7235_v45  ;;  %v2778_v30 = vsel %vm280_vm12, %v12062_v62, %v7234_v6  ;;  %v12064_v57 = vld [vmem:[#allocation41_spill] sm:$0xff] }
 0x321   : >> { %v7240_v60 = vunpack.i.h.bf16 %v7238_v44  ;;  %v7239_v8 = vunpack.i.l.bf16 %v7238_v44  ;;  %v7243_v15 = vpop.permute.xlu1 %7242  ;;  %v2823_v35 = vpack.c.bf16 %v2779_v51, %v2778_v30  ;;  %v12069_v51 = vld [vmem:[#allocation68_spill] sm:$0xff] }
 0x322   : >> { %v7245_v41 = vunpack.i.h.bf16 %v7243_v15  ;;  %v7244_v19 = vunpack.i.l.bf16 %v7243_v15 }
 0x323   : >> { %v2755_v32 = vsel %vm280_vm12, %v12059_v37, %v7240_v60  ;;  %v2754_v11 = vsel %vm280_vm12, %v12060_v21, %v7239_v8 }
 0x324   : >> { %v7248_v7 = vpop.permute.xlu0 %7247  ;;  %v2838_v36 = vpack.c.bf16 %v2755_v32, %v2754_v11  ;;  %v2723_v24 = vsel %vm280_vm12, %v12063_v46, %v7245_v41  ;;  %v2722_v40 = vsel %vm280_vm12, %v12064_v57, %v7244_v19  ;;  %v12065_v32 = vld [vmem:[#allocation40_spill] sm:$0xff]  ;;  %v12066_v41 = vld [vmem:[#allocation39_spill] sm:$0xff] }
 0x325   : >> { %v7253_v14 = vpop.permute.xlu1 %7252  ;;  %v7250_v26 = vunpack.i.h.bf16 %v7248_v7  ;;  %v7249_v31 = vunpack.i.l.bf16 %v7248_v7  ;;  %v2832_v44 = vpack.c.bf16 %v2723_v24, %v2722_v40 }
 0x326   : >> { %3423 = vmatmul.mubr.bf16.gmra.mrb[24].mxu1 %v2819_v25  ;;  %v7255_v39 = vunpack.i.h.bf16 %v7253_v14  ;;  %v7254_v18 = vunpack.i.l.bf16 %v7253_v14  ;;  %v12068_v14 = vld [vmem:[#allocation45_spill] sm:$0xff] }
 0x327   : >> { %3294 = vmatmul.mubr.bf16.gmra.mrb[24].mxu0 %v2828_v10  ;;  %3430 = vmatprep.mubr.bf16.mxu1 %v2824_v17  ;;  %v2781_v11 = vsel %vm280_vm12, %v12065_v32, %v7250_v26  ;;  %v2780_v19 = vsel %vm280_vm12, %v12066_v41, %v7249_v31  ;;  %v12070_v31 = vld [vmem:[#allocation44_spill] sm:$0xff] }
 0x328   : >> { %3301 = vmatprep.mubr.bf16.mxu0 %v2838_v36  ;;  %v7258_v1 = vpop.permute.xlu0 %7257  ;;  %v2757_v47 = vsel %vm280_vm12, %v9994_v16, %v7255_v39  ;;  %v2756_v48 = vsel %vm280_vm12, %v9991_v58, %v7254_v18  ;;  %v12067_v36 = vld [vmem:[#allocation46_spill] sm:$0xff]  ;;  %v2827_v30 = vpack.c.bf16 %v2781_v11, %v2780_v19  ;;  %v12075_v11 = vld [vmem:[#allocation69_spill] sm:$0xff] }
 0x329   : >> { %v7263_v0 = vpop.permute.xlu1 %7262  ;;  %v7260_v17 = vunpack.i.h.bf16 %v7258_v1  ;;  %v7259_v60 = vunpack.i.l.bf16 %v7258_v1  ;;  %v2842_v8 = vpack.c.bf16 %v2757_v47, %v2756_v48 }
 0x32a   : >> { %v7265_v24 = vunpack.i.h.bf16 %v7263_v0  ;;  %v7264_v57 = vunpack.i.l.bf16 %v7263_v0  ;;  %v12073_v0 = vld [vmem:[#allocation50_spill] sm:$0xff] }
 0x32b   : >> { %v2725_v7 = vsel %vm280_vm12, %v12067_v36, %v7260_v17  ;;  %v2724_v39 = vsel %vm280_vm12, %v12068_v14, %v7259_v60  ;;  %v12071_v60 = vld [vmem:[#allocation43_spill] sm:$0xff] }
 0x32c   : >> { %v7268_v15 = vpop.permute.xlu0 %7267  ;;  %v2836_v40 = vpack.c.bf16 %v2725_v7, %v2724_v39  ;;  %v2783_v17 = vsel %vm280_vm12, %v12070_v31, %v7265_v24 }
 0x32d   : >> { %v7270_v45 = vunpack.i.h.bf16 %v7268_v15  ;;  %v7269_v25 = vunpack.i.l.bf16 %v7268_v15  ;;  %v7273_v6 = vpop.permute.xlu1 %7272  ;;  %v12072_v15 = vld [vmem:[#allocation51_spill] sm:$0xff] }
 0x32e   : >> { %3431 = vmatmul.mubr.bf16.gmra.mrb[28].mxu1 %v2823_v35  ;;  %v7274_v1 = vunpack.i.l.bf16 %v7273_v6 }
 0x32f   : >> { %3302 = vmatmul.mubr.bf16.gmra.mrb[28].mxu0 %v2832_v44  ;;  %3438 = vmatprep.mubr.bf16.mxu1 %v2828_v10  ;;  %v2759_v34 = vsel %vm280_vm12, %v10023_v50, %v7270_v45  ;;  %v2758_v62 = vsel %vm280_vm12, %v12069_v51, %v7269_v25  ;;  %v7275_v10 = vunpack.i.h.bf16 %v7273_v6  ;;  %v12074_v6 = vld [vmem:[#allocation70_spill] sm:$0xff] }
 0x330   : >> { %3309 = vmatprep.mubr.bf16.mxu0 %v2842_v8  ;;  %v7278_v18 = vpop.permute.xlu0 %7277  ;;  %v2846_v47 = vpack.c.bf16 %v2759_v34, %v2758_v62  ;;  %v2782_v8 = vsel %vm280_vm12, %v12071_v60, %v7264_v57  ;;  %v2726_v25 = vsel %vm280_vm12, %v12073_v0, %v7274_v1  ;;  %v12076_v57 = vld [vmem:[#allocation48_spill] sm:$0xff]  ;;  %v12077_v1 = vld [vmem:[#allocation47_spill] sm:$0xff] }
 0x331   : >> { %v7283_v46 = vpop.permute.xlu1 %7282  ;;  %v2727_v45 = vsel %vm280_vm12, %v12072_v15, %v7275_v10  ;;  %v2831_v19 = vpack.c.bf16 %v2783_v17, %v2782_v8  ;;  %v7280_v7 = vunpack.i.h.bf16 %v7278_v18  ;;  %v7279_v14 = vunpack.i.l.bf16 %v7278_v18  ;;  %v12079_v18 = vld [vmem:[#allocation56_spill] sm:$0xff]  ;;  %v12081_v60 = vld [vmem:[#allocation71_spill] sm:$0xff] }
 0x332   : >> { %v7285_v48 = vunpack.i.h.bf16 %v7283_v46  ;;  %v7284_v35 = vunpack.i.l.bf16 %v7283_v46  ;;  %v2840_v39 = vpack.c.bf16 %v2727_v45, %v2726_v25 }
 0x333   : >> { %v2785_v10 = vsel %vm280_vm12, %v12076_v57, %v7280_v7 }
 0x334   : >> { %v7288_v26 = vpop.permute.xlu0 %7287  ;;  %v2761_v32 = vsel %vm280_vm12, %v12074_v6, %v7285_v48  ;;  %v2760_v41 = vsel %vm280_vm12, %v12075_v11, %v7284_v35  ;;  %v12078_v48 = vld [vmem:[#allocation57_spill] sm:$0xff] }
 0x335   : >> { %v7293_v34 = vpop.permute.xlu1 %7292  ;;  %v7289_v62 = vunpack.i.l.bf16 %v7288_v26 }
 0x336   : >> { %3439 = vmatmul.mubr.bf16.gmra.mrb[32].mxu1 %v2827_v30  ;;  %v2850_v30 = vpack.c.bf16 %v2761_v32, %v2760_v41  ;;  %v7295_v0 = vunpack.i.h.bf16 %v7293_v34  ;;  %v7294_v25 = vunpack.i.l.bf16 %v7293_v34 }
 0x337   : >> { %3310 = vmatmul.mubr.bf16.gmra.mrb[32].mxu0 %v2836_v40  ;;  %3446 = vmatprep.mubr.bf16.mxu1 %v2832_v44  ;;  %v7290_v44 = vunpack.i.h.bf16 %v7288_v26  ;;  %v2728_v31 = vsel %vm280_vm12, %v12079_v18, %v7289_v62  ;;  %v12080_v26 = vld [vmem:[#allocation72_spill] sm:$0xff]  ;;  %v12084_v62 = vld [vmem:[#allocation63_spill] sm:$0xff]  ;;  %v12087_v18 = vld [vmem:[#allocation58_spill] sm:$0xff] }
 0x338   : >> { %3317 = vmatprep.mubr.bf16.mxu0 %v2846_v47  ;;  %v7298_v36 = vpop.permute.xlu0 %7297  ;;  %v2784_v47 = vsel %vm280_vm12, %v12077_v1, %v7279_v14  ;;  %v12083_v14 = vld [vmem:[#allocation52_spill] sm:$0xff] }
 0x339   : >> { %v7300_v46 = vunpack.i.h.bf16 %v7298_v36  ;;  %v7299_v24 = vunpack.i.l.bf16 %v7298_v36  ;;  %v2729_v35 = vsel %vm280_vm12, %v12078_v48, %v7290_v44  ;;  %v7303_v15 = vpop.permute.xlu1 %7302  ;;  %v2835_v45 = vpack.c.bf16 %v2785_v10, %v2784_v47  ;;  %v12082_v36 = vld [vmem:[#allocation53_spill] sm:$0xff] }
 0x33a   : >> { %v2844_v32 = vpack.c.bf16 %v2729_v35, %v2728_v31  ;;  %v7305_v41 = vunpack.i.h.bf16 %v7303_v15  ;;  %v2787_v7 = vsel %vm280_vm12, %v12082_v36, %v7295_v0  ;;  %v2786_v44 = vsel %vm280_vm12, %v12083_v14, %v7294_v25  ;;  %v12086_v35 = vld [vmem:[#allocation59_spill] sm:$0xff]  ;;  %v12091_v14 = vld [vmem:[#allocation66_spill] sm:$0xff] }
 0x33b   : >> { %v2763_v17 = vsel %vm280_vm12, %v12080_v26, %v7300_v46  ;;  %v2762_v8 = vsel %vm280_vm12, %v12081_v60, %v7299_v24  ;;  %v12085_v46 = vld [vmem:[#allocation62_spill] sm:$0xff]  ;;  %v2839_v57 = vpack.c.bf16 %v2787_v7, %v2786_v44  ;;  %v2812_v48 = vpack.c.bf16 %v9783_v56, %v9780_v59  ;;  %v12088_v56 = vld [vmem:[#allocation65_spill] sm:$0xff] }
 0x33c   : >> { %v7308_v34 = vpop.permute.xlu0 %7307  ;;  %v2821_v59 = vpack.c.bf16 %v9853_v55, %v9850_v52  ;;  %v2829_v52 = vpack.c.bf16 %v12053_v9, %v12054_v5  ;;  %v12090_v55 = vld [vmem:[#allocation67_spill] sm:$0xff] }
 0x33d   : >> { %v7310_v1 = vunpack.i.h.bf16 %v7308_v34  ;;  %v7309_v47 = vunpack.i.l.bf16 %v7308_v34  ;;  %v12092_v5 = vld [vmem:[#allocation23_spill] sm:$0xff] }
 0x33e   : >> { %3447 = vmatmul.mubr.bf16.gmra.mrb[36].mxu1 %v2831_v19  ;;  %v2854_v19 = vpack.c.bf16 %v2763_v17, %v2762_v8  ;;  %v7313_v17 = vpop.permute.xlu1 %7312 }
 0x33f   : >> { %3318 = vmatmul.mubr.bf16.gmra.mrb[36].mxu0 %v2840_v39  ;;  %3454 = vmatprep.mubr.bf16.mxu1 %v2836_v40  ;;  %v7304_v40 = vunpack.i.l.bf16 %v7303_v15  ;;  %v2788_v31 = vsel %vm280_vm12, %v12087_v18, %v7309_v47  ;;  %v2817_v15 = vpack.c.bf16 %v9822_v49, %v9816_v61  ;;  %v7314_v0 = vunpack.i.l.bf16 %v7313_v17  ;;  %v12095_v47 = vld [vmem:[#allocation24_spill] sm:$0xff] }
 0x340   : >> { %3325 = vmatprep.mubr.bf16.mxu0 %v2850_v30  ;;  %v2731_v30 = vsel %vm280_vm12, %v12084_v62, %v7305_v41  ;;  %v2825_v61 = vpack.c.bf16 %v9894_v23, %v12050_v43  ;;  %v2833_v43 = vpack.c.bf16 %v12059_v37, %v12060_v21  ;;  %v2841_v21 = vpack.c.bf16 %v10023_v50, %v12069_v51 }
 0x341   : >> { %v2730_v24 = vsel %vm280_vm12, %v12085_v46, %v7304_v40  ;;  %v7318_v40 = vpop.permute.xlu0 %7317 }
 0x342   : >> { %v2848_v10 = vpack.c.bf16 %v2731_v30, %v2730_v24  ;;  %v7320_v49 = vunpack.i.h.bf16 %v7318_v40  ;;  %v7319_v36 = vunpack.i.l.bf16 %v7318_v40  ;;  %v7323_v62 = vpop.permute.xlu1 %7322  ;;  %v12093_v24 = vld [vmem:[#allocation22_spill] sm:$0xff]  ;;  %v2861_v40 = vpack.c.bf16 %v10088_v38, %v10085_v42 }
 0x343   : >> { %v7325_v30 = vunpack.i.h.bf16 %v7323_v62  ;;  %v7324_v9 = vunpack.i.l.bf16 %v7323_v62 }
 0x344   : >> { %v2793_v7 = vsel %vm280_vm12, %v12090_v55, %v7320_v49  ;;  %v2792_v44 = vsel %vm280_vm12, %v12091_v14, %v7319_v36  ;;  %v12098_v49 = vld [vmem:[#allocation30_spill] sm:$0xff] }
 0x345   : >> { %v2851_v23 = vpack.c.bf16 %v2793_v7, %v2792_v44  ;;  %v2795_v46 = vsel %vm280_vm12, %v12092_v5, %v7325_v30  ;;  %v2794_v34 = vsel %vm280_vm12, %v12093_v24, %v7324_v9  ;;  %v2865_v44 = vpack.c.bf16 %v10115_v33, %v10112_v28  ;;  %v12101_v5 = vld [vmem:[#allocation75_spill] sm:$0xff]  ;;  %v12102_v24 = vld [vmem:[#allocation74_spill] sm:$0xff] }
 0x346   : >> { %3455 = vmatmul.mubr.bf16.gmra.mrb[40].mxu1 %v2835_v45  ;;  %v7315_v45 = vunpack.i.h.bf16 %v7313_v17  ;;  %v2855_v37 = vpack.c.bf16 %v2795_v46, %v2794_v34  ;;  %v7333_v50 = vpop.permute.xlu1 %7332  ;;  %v12096_v17 = vld [vmem:[#allocation27_spill] sm:$0xff]  ;;  %v2700_v9 = vrot.slane %v10079_v29, 2 }
 0x347   : >> { %3326 = vmatmul.mubr.bf16.gmra.mrb[40].mxu0 %v2844_v32  ;;  %3462 = vmatprep.mubr.bf16.mxu1 %v2840_v39  ;;  %v2789_v39 = vsel %vm280_vm12, %v12086_v35, %v7310_v1 }
 0x348   : >> { %3333 = vmatprep.mubr.bf16.mxu0 %v2854_v19  ;;  %v2843_v8 = vpack.c.bf16 %v2789_v39, %v2788_v31  ;;  %v2791_v25 = vsel %vm280_vm12, %v12088_v56, %v7315_v45  ;;  %v2853_v39 = vpack.c.bf16 %v10062_v4, %v10059_v27 }
 0x34a   : >> { %v7343_v27 = vpop.permute.xlu1 %7342 }
 0x34e   : >> { %3463 = vmatmul.mubr.bf16.gmra.mrb[44].mxu1 %v2839_v57  ;;  %v7328_v57 = vpop.permute.xlu0 %7327  ;;  %v7353_v42 = vpop.permute.xlu1 %7352 }
 0x34f   : >> { %3334 = vmatmul.mubr.bf16.gmra.mrb[44].mxu0 %v2848_v10  ;;  %3470 = vmatprep.mubr.bf16.mxu1 %v2844_v32  ;;  %v12089_v32 = vld [vmem:[#allocation64_spill] sm:$0xff]  ;;  %v7355_v62 = vunpack.i.h.bf16 %v7353_v42 }
 0x350   : >> { %6309 = vmatprep.mubr.msk.bf16.mxu0 %vm280_vm12, %v2812_v48  ;;  %v2790_v41 = vsel %vm280_vm12, %v12089_v32, %v7314_v0  ;;  %v7393_v0 = vld [vmem:[%s9526_s15 + $0x180] sm:$0xff]  ;;  %v7344_v32 = vunpack.i.l.bf16 %v7343_v27 }
 0x351   : >> { %v2847_v19 = vpack.c.bf16 %v2791_v25, %v2790_v41  ;;  %v7345_v25 = vunpack.i.h.bf16 %v7343_v27  ;;  %v2803_v46 = vsel %vm280_vm12, %v12101_v5, %v7355_v62 }
 0x352   : >> { %v7338_v51 = vpop.permute.xlu0 %7337 }
 0x353   : >> { %v7340_v18 = vunpack.i.h.bf16 %v7338_v51  ;;  %v7339_v31 = vunpack.i.l.bf16 %v7338_v51  ;;  %v2801_v36 = vsel %vm280_vm12, %v12098_v49, %v7345_v25 }
 0x355   : >> { %v2804_v4 = vsel %vm280_vm12, %v7393_v0, %v7339_v31 }
 0x356   : >> { %3471 = vmatmul.mubr.bf16.gmra.mrb[48].mxu1 %v2843_v8 }
 0x357   : >> { %3478 = vmatprep.mubr.bf16.mxu1 %v2848_v10  ;;  %6310 = vmatmul.mubr.msk.bf16.vlgmr.msra.gmra.mrb[48].mxu0 %vm280_vm12, %v2817_v15  ;;  %v7330_v10 = vunpack.i.h.bf16 %v7328_v57  ;;  %v12097_v15 = vld [vmem:[#allocation26_spill] sm:$0xff] }
 0x358   : >> { %6313 = vmatprep.mubr.msk.bf16.mxu0 %vm280_vm12, %v2821_v59  ;;  %v7348_v59 = vpop.permute.xlu0 %7347 }
 0x35e   : >> { %3479 = vmatmul.mubr.bf16.gmra.mrb[52].mxu1 %v2847_v19  ;;  %v7350_v19 = vunpack.i.h.bf16 %v7348_v59 }
 0x35f   : >> { %3486 = vmatprep.mubr.bf16.mxu1 %v10156_v63  ;;  %6314 = vmatmul.mubr.msk.bf16.gmra.mrb[52].mxu0 %vm280_vm12, %v2825_v61  ;;  %v2837_v63 = vpack.c.bf16 %v9994_v16, %v9991_v58  ;;  %v7329_v16 = vunpack.i.l.bf16 %v7328_v57  ;;  %v2845_v58 = vpack.c.bf16 %v12074_v6, %v12075_v11  ;;  %v2849_v6 = vpack.c.bf16 %v12080_v26, %v12081_v60  ;;  %v7392_v26 = vld [vmem:[%s9526_s15 + $0x188] sm:$0xff] }
 0x360   : >> { %6317 = vmatprep.mubr.msk.bf16.mxu0 %vm280_vm12, %v2829_v52  ;;  %v7335_v11 = vunpack.i.h.bf16 %v7333_v50  ;;  %v2805_v60 = vsel %vm280_vm12, %v7392_v26, %v7340_v18  ;;  %v7349_v61 = vunpack.i.l.bf16 %v7348_v59  ;;  %v12099_v52 = vld [vmem:[#allocation29_spill] sm:$0xff] }
 0x361   : >> { %v2796_v48 = vsel %vm280_vm12, %v12095_v47, %v7329_v16  ;;  %v2868_v41 = vpack.c.bf16 %v2805_v60, %v2804_v4  ;;  %v2800_v55 = vsel %vm280_vm12, %v12099_v52, %v7344_v32 }
 0x362   : >> { %v2799_v8 = vsel %vm280_vm12, %v12096_v17, %v7335_v11  ;;  %v2867_v7 = vpack.c.bf16 %v2801_v36, %v2800_v55 }
 0x366   : >> { %3487 = vmatmul.mubr.bf16.gmra.mrb[56].mxu1 %v2851_v23  ;;  %v7354_v23 = vunpack.i.l.bf16 %v7353_v42 }
 0x367   : >> { %3494 = vmatprep.mubr.bf16.mxu1 %v10173_v3  ;;  %6318 = vmatmul.mubr.msk.bf16.gmra.mrb[56].mxu0 %vm280_vm12, %v2833_v43  ;;  %v12094_v3 = vld [vmem:[#allocation25_spill] sm:$0xff]  ;;  %v2869_v43 = vpack.c.bf16 %v10128_v53, %v10125_v13 }
 0x368   : >> { %6321 = vmatprep.mubr.msk.bf16.mxu0 %vm280_vm12, %v2837_v63  ;;  %v2797_v1 = vsel %vm280_vm12, %v12094_v3, %v7330_v10  ;;  %v2702_v63 = vrot.slane %v10082_v20, 2  ;;  %v2802_v28 = vsel %vm280_vm12, %v12102_v24, %v7354_v23 }
 0x369   : >> { %v2859_v35 = vpack.c.bf16 %v2797_v1, %v2796_v48  ;;  %v2871_v53 = vpack.c.bf16 %v2803_v46, %v2802_v28 }
 0x36a   : >> { %v2703_v13 = vsel %vm669_vm1, %v2700_v9, %v2702_v63 }
 0x36e   : >> { %3495 = vmatmul.mubr.bf16.gmra.mrb[60].mxu1 %v2855_v37 }
 0x36f   : >> { %3502 = vmatprep.mubr.bf16.mxu1 %v10197_v22  ;;  %6322 = vmatmul.mubr.msk.bf16.gmra.mrb[60].mxu0 %vm280_vm12, %v2841_v21  ;;  %v7334_v22 = vunpack.i.l.bf16 %v7333_v50 }
 0x370   : >> { %6325 = vmatprep.mubr.msk.bf16.mxu0 %vm280_vm12, %v2845_v58 }
 0x371   : >> { %v2798_v45 = vsel %vm280_vm12, %v12097_v15, %v7334_v22 }
 0x372   : >> { %v2863_v56 = vpack.c.bf16 %v2799_v8, %v2798_v45 }
 0x376   : >> { %3503 = vmatmul.mubr.bf16.gmra.mrb[64].mxu1 %v2859_v35 }
 0x377   : >> { %3510 = vmatprep.mubr.bf16.mxu1 %v10220_v12  ;;  %6326 = vmatmul.mubr.msk.bf16.gmra.mrb[64].mxu0 %vm280_vm12, %v2849_v6  ;;  %v2857_v12 = vpack.c.bf16 %v10076_v54, %v10073_v2  ;;  %v2807_v2 = vsel %vm280_vm12, %v10079_v29, %v7350_v19  ;;  %v12100_v54 = vld [vmem:[#allocation73_spill] sm:$0xff] }
 0x378   : >> { %6329 = vmatprep.mubr.msk.bf16.mxu0 %vm280_vm12, %v2853_v39  ;;  %v2806_v38 = vsel %vm280_vm12, %v12100_v54, %v7349_v61  ;;  %v2699_v30 = vrot.slane %v12100_v54, 2 }
 0x379   : >> { %v2872_v14 = vpack.c.bf16 %v2807_v2, %v2806_v38 }
 0x37a   : >> { %v2701_v33 = vsel %vm669_vm1, %v2699_v30, %v2700_v9 }
 0x37b   : >> { %v2873_v29 = vpack.c.bf16 %v2703_v13, %v2701_v33 }
 0x37e   : >> { %3511 = vmatmul.mubr.bf16.gmra.mrb[68].mxu1 %v2863_v56 }
 0x37f   : >> { %6330 = vmatmul.mubr.msk.bf16.gmra.mrb[68].mxu0 %vm280_vm12, %v2857_v12  ;;  %3518 = vmatprep.mubr.bf16.mxu1 %v2868_v41 }
 0x380   : >> { %6333 = vmatprep.mubr.msk.bf16.mxu0 %vm280_vm12, %v2861_v40 }
 0x386   : >> { %3519 = vmatmul.mubr.bf16.gmra.mrb[72].mxu1 %v2867_v7 }
 0x387   : >> { %6334 = vmatmul.mubr.msk.bf16.gmra.mrb[72].mxu0 %vm280_vm12, %v2865_v44  ;;  %3526 = vmatprep.mubr.bf16.mxu1 %v2872_v14 }
 0x388   : >> { %6337 = vmatprep.mubr.msk.bf16.mxu0 %vm280_vm12, %v2869_v43 }
 0x38e   : >> { %3527 = vmatmul.mubr.bf16.gmra.mrb[76].mxu1 %v2871_v53 }
 0x38f   : >> { %6338 = vmatmul.mubr.msk.bf16.gmra.mrb[76].mxu0 %vm280_vm12, %v2873_v29 }
 0x3c9   : >> { %v5865_v20 = vpop.f32.mrb[0].mxu1 }
 0x3ca   : >> { %v5793_v34 = vpop.f32.mrb[0].mxu0  ;;  %v5866_v57 = vpop.f32.mrb[1].mxu1 }
 0x3cb   : >> { %v10425_v37 = vadd.f32 %v5866_v57, %v5865_v20  ;;  %v5794_v21 = vpop.f32.mrb[1].mxu0  ;;  %v5868_v10 = vpop.f32.mrb[2].mxu1 }
 0x3cc   : >> { %v5795_v16 = vadd.f32 %v5794_v21, %v5793_v34  ;;  %v5796_v58 = vpop.f32.mrb[2].mxu0  ;;  %v5869_v3 = vpop.f32.mrb[3].mxu1 }
 0x3cd   : >> { %v10427_v1 = vadd.f32 %v5869_v3, %v5868_v10  ;;  %v5797_v47 = vpop.f32.mrb[3].mxu0 }
 0x3ce   : >> { %v5798_v48 = vadd.f32 %v5797_v47, %v5796_v58 }
 0x3d1   : >> { %v5871_v50 = vpop.f32.mrb[4].mxu1 }
 0x3d2   : >> { %v5799_v51 = vpop.f32.mrb[4].mxu0  ;;  %v5872_v35 = vpop.f32.mrb[5].mxu1 }
 0x3d3   : >> { %v10429_v6 = vadd.f32 %v5872_v35, %v5871_v50  ;;  %v5800_v11 = vpop.f32.mrb[5].mxu0  ;;  %v5874_v22 = vpop.f32.mrb[6].mxu1 }
 0x3d4   : >> { %v5801_v39 = vadd.f32 %v5800_v11, %v5799_v51  ;;  %v5802_v18 = vpop.f32.mrb[6].mxu0  ;;  %v5875_v31 = vpop.f32.mrb[7].mxu1 }
 0x3d5   : >> { %v10431_v17 = vadd.f32 %v5875_v31, %v5874_v22  ;;  %v5803_v8 = vpop.f32.mrb[7].mxu0 }
 0x3d6   : >> { %v5804_v15 = vadd.f32 %v5803_v8, %v5802_v18 }
 0x3d9   : >> { %v5877_v45 = vpop.f32.mrb[8].mxu1 }
 0x3da   : >> { %v5805_v26 = vpop.f32.mrb[8].mxu0  ;;  %v5878_v60 = vpop.f32.mrb[9].mxu1 }
 0x3db   : >> { %v10433_v0 = vadd.f32 %v5878_v60, %v5877_v45  ;;  %v5806_v4 = vpop.f32.mrb[9].mxu0  ;;  %v5880_v27 = vpop.f32.mrb[10].mxu1 }
 0x3dc   : >> { %v5807_v59 = vadd.f32 %v5806_v4, %v5805_v26  ;;  %v5808_v56 = vpop.f32.mrb[10].mxu0  ;;  %v5881_v12 = vpop.f32.mrb[11].mxu1 }
 0x3dd   : >> { %v10435_v25 = vadd.f32 %v5881_v12, %v5880_v27  ;;  %v5809_v32 = vpop.f32.mrb[11].mxu0 }
 0x3de   : >> { %v5810_v41 = vadd.f32 %v5809_v32, %v5808_v56 }
 0x3e1   : >> { %v5883_v40 = vpop.f32.mrb[12].mxu1 }
 0x3e2   : >> { %v5811_v19 = vpop.f32.mrb[12].mxu0  ;;  %v5884_v61 = vpop.f32.mrb[13].mxu1 }
 0x3e3   : >> { %v10437_v49 = vadd.f32 %v5884_v61, %v5883_v40  ;;  %v5812_v36 = vpop.f32.mrb[13].mxu0  ;;  %v5886_v52 = vpop.f32.mrb[14].mxu1 }
 0x3e4   : >> { %v5813_v55 = vadd.f32 %v5812_v36, %v5811_v19  ;;  %v5814_v2 = vpop.f32.mrb[14].mxu0  ;;  %v5887_v54 = vpop.f32.mrb[15].mxu1 }
 0x3e5   : >> { %v10439_v38 = vadd.f32 %v5887_v54, %v5886_v52  ;;  %v5815_v42 = vpop.f32.mrb[15].mxu0 }
 0x3e6   : >> { %v5816_v7 = vadd.f32 %v5815_v42, %v5814_v2 }
 0x3e9   : >> { %v5905_v14 = vpop.f32.mrb[16].mxu1 }
 0x3ea   : >> { %v5817_v44 = vpop.f32.mrb[16].mxu0  ;;  %v5906_v62 = vpop.f32.mrb[17].mxu1 }
 0x3eb   : >> { %v5907_v23 = vadd.f32 %v5906_v62, %v5905_v14  ;;  %v5818_v43 = vpop.f32.mrb[17].mxu0  ;;  %v5908_v30 = vpop.f32.mrb[18].mxu1 }
 0x3ec   : >> { %v5819_v9 = vadd.f32 %v5818_v43, %v5817_v44  ;;  %v5820_v63 = vpop.f32.mrb[18].mxu0  ;;  %v5909_v5 = vpop.f32.mrb[19].mxu1 }
 0x3ed   : >> { %v5910_v46 = vadd.f32 %v5909_v5, %v5908_v30  ;;  %v5821_v24 = vpop.f32.mrb[19].mxu0  ;;  %v10441_v28 = vadd.f32 %v5907_v23, %v5795_v16 }
 0x3ee   : >> { %v5822_v33 = vadd.f32 %v5821_v24, %v5820_v63 }
 0x3ef   : >> { %v10443_v13 = vadd.f32 %v5910_v46, %v5798_v48 }
 0x3f1   : >> { %v5911_v53 = vpop.f32.mrb[20].mxu1 }
 0x3f2   : >> { %v5823_v29 = vpop.f32.mrb[20].mxu0  ;;  %v5912_v20 = vpop.f32.mrb[21].mxu1 }
 0x3f3   : >> { %v5913_v34 = vadd.f32 %v5912_v20, %v5911_v53  ;;  %v5824_v57 = vpop.f32.mrb[21].mxu0  ;;  %v5914_v21 = vpop.f32.mrb[22].mxu1 }
 0x3f4   : >> { %v5825_v10 = vadd.f32 %v5824_v57, %v5823_v29  ;;  %v5826_v58 = vpop.f32.mrb[22].mxu0  ;;  %v5915_v3 = vpop.f32.mrb[23].mxu1 }
 0x3f5   : >> { %v5916_v47 = vadd.f32 %v5915_v3, %v5914_v21  ;;  %v5827_v50 = vpop.f32.mrb[23].mxu0  ;;  %v10445_v51 = vadd.f32 %v5913_v34, %v5801_v39 }
 0x3f6   : >> { %v5828_v35 = vadd.f32 %v5827_v50, %v5826_v58 }
 0x3f7   : >> { %v10447_v11 = vadd.f32 %v5916_v47, %v5804_v15 }
 0x3f9   : >> { %v5917_v16 = vpop.f32.mrb[24].mxu1 }
 0x3fa   : >> { %v5829_v22 = vpop.f32.mrb[24].mxu0  ;;  %v5918_v48 = vpop.f32.mrb[25].mxu1 }
 0x3fb   : >> { %v5919_v18 = vadd.f32 %v5918_v48, %v5917_v16  ;;  %v5830_v31 = vpop.f32.mrb[25].mxu0  ;;  %v5920_v8 = vpop.f32.mrb[26].mxu1 }
 0x3fc   : >> { %v5831_v45 = vadd.f32 %v5830_v31, %v5829_v22  ;;  %v5832_v26 = vpop.f32.mrb[26].mxu0  ;;  %v5921_v60 = vpop.f32.mrb[27].mxu1 }
 0x3fd   : >> { %v5922_v4 = vadd.f32 %v5921_v60, %v5920_v8  ;;  %v5833_v27 = vpop.f32.mrb[27].mxu0  ;;  %v10449_v56 = vadd.f32 %v5919_v18, %v5807_v59 }
 0x3fe   : >> { %v5834_v12 = vadd.f32 %v5833_v27, %v5832_v26 }
 0x3ff   : >> { %v10451_v32 = vadd.f32 %v5922_v4, %v5810_v41 }
 0x401   : >> { %v5923_v39 = vpop.f32.mrb[28].mxu1 }
 0x402   : >> { %v5835_v40 = vpop.f32.mrb[28].mxu0  ;;  %v5924_v15 = vpop.f32.mrb[29].mxu1 }
 0x403   : >> { %v5925_v19 = vadd.f32 %v5924_v15, %v5923_v39  ;;  %v5836_v61 = vpop.f32.mrb[29].mxu0  ;;  %v5926_v36 = vpop.f32.mrb[30].mxu1 }
 0x404   : >> { %v5837_v52 = vadd.f32 %v5836_v61, %v5835_v40  ;;  %v5838_v2 = vpop.f32.mrb[30].mxu0  ;;  %v5927_v54 = vpop.f32.mrb[31].mxu1 }
 0x405   : >> { %v5928_v42 = vadd.f32 %v5927_v54, %v5926_v36  ;;  %v5839_v14 = vpop.f32.mrb[31].mxu0  ;;  %v10453_v44 = vadd.f32 %v5925_v19, %v5813_v55 }
 0x406   : >> { %v5840_v62 = vadd.f32 %v5839_v14, %v5838_v2 }
 0x407   : >> { %v10455_v23 = vadd.f32 %v5928_v42, %v5816_v7 }
 0x409   : >> { %v5929_v59 = vpop.f32.mrb[32].mxu1 }
 0x40a   : >> { %v5841_v43 = vpop.f32.mrb[32].mxu0  ;;  %v5930_v41 = vpop.f32.mrb[33].mxu1 }
 0x40b   : >> { %v5931_v30 = vadd.f32 %v5930_v41, %v5929_v59  ;;  %v5842_v63 = vpop.f32.mrb[33].mxu0  ;;  %v5932_v5 = vpop.f32.mrb[34].mxu1 }
 0x40c   : >> { %v10457_v46 = vadd.f32 %v5842_v63, %v5841_v43  ;;  %v5844_v24 = vpop.f32.mrb[34].mxu0  ;;  %v5933_v53 = vpop.f32.mrb[35].mxu1 }
 0x40d   : >> { %v5934_v29 = vadd.f32 %v5933_v53, %v5932_v5  ;;  %v5845_v20 = vpop.f32.mrb[35].mxu0  ;;  %v10459_v34 = vadd.f32 %v5931_v30, %v5819_v9 }
 0x40e   : >> { %v10461_v57 = vadd.f32 %v5845_v20, %v5844_v24 }
 0x40f   : >> { %v10463_v55 = vadd.f32 %v5934_v29, %v5822_v33 }
 0x411   : >> { %v5935_v7 = vpop.f32.mrb[36].mxu1 }
 0x412   : >> { %v5847_v21 = vpop.f32.mrb[36].mxu0  ;;  %v5936_v58 = vpop.f32.mrb[37].mxu1 }
 0x413   : >> { %v5937_v3 = vadd.f32 %v5936_v58, %v5935_v7  ;;  %v5848_v47 = vpop.f32.mrb[37].mxu0  ;;  %v5938_v50 = vpop.f32.mrb[38].mxu1 }
 0x414   : >> { %v10465_v16 = vadd.f32 %v5848_v47, %v5847_v21  ;;  %v5850_v22 = vpop.f32.mrb[38].mxu0  ;;  %v5939_v48 = vpop.f32.mrb[39].mxu1 }
 0x415   : >> { %v5940_v18 = vadd.f32 %v5939_v48, %v5938_v50  ;;  %v5851_v31 = vpop.f32.mrb[39].mxu0  ;;  %v10467_v8 = vadd.f32 %v5937_v3, %v5825_v10  ;;  %v10498_v3 = vld [vmem:[%s3696_s19] ss:$0 sm:$0xff] }
 0x416   : >> { %v10469_v9 = vadd.f32 %v5851_v31, %v5850_v22  ;;  %v10501_v48 = vld [vmem:[%s3736_s23] ss:$0 sm:$0xff] }
 0x417   : >> { %v10471_v26 = vadd.f32 %v5940_v18, %v5828_v35 }
 0x419   : >> { %v5941_v33 = vpop.f32.mrb[40].mxu1 }
 0x41a   : >> { %v5853_v60 = vpop.f32.mrb[40].mxu0  ;;  %v5942_v4 = vpop.f32.mrb[41].mxu1 }
 0x41b   : >> { %v5943_v27 = vadd.f32 %v5942_v4, %v5941_v33  ;;  %v5854_v39 = vpop.f32.mrb[41].mxu0  ;;  %v5944_v40 = vpop.f32.mrb[42].mxu1 }
 0x41c   : >> { %v10473_v15 = vadd.f32 %v5854_v39, %v5853_v60  ;;  %v5856_v19 = vpop.f32.mrb[42].mxu0  ;;  %v5945_v61 = vpop.f32.mrb[43].mxu1 }
 0x41d   : >> { %v5946_v36 = vadd.f32 %v5945_v61, %v5944_v40  ;;  %v5857_v2 = vpop.f32.mrb[43].mxu0  ;;  %v10475_v54 = vadd.f32 %v5943_v27, %v5831_v45 }
 0x41e   : >> { %v10477_v10 = vadd.f32 %v5857_v2, %v5856_v19 }
 0x41f   : >> { %v10479_v42 = vadd.f32 %v5946_v36, %v5834_v12 }
 0x421   : >> { %v5947_v35 = vpop.f32.mrb[44].mxu1 }
 0x422   : >> { %v5859_v14 = vpop.f32.mrb[44].mxu0  ;;  %v5948_v59 = vpop.f32.mrb[45].mxu1 }
 0x423   : >> { %v5949_v43 = vadd.f32 %v5948_v59, %v5947_v35  ;;  %v5860_v41 = vpop.f32.mrb[45].mxu0  ;;  %v5950_v30 = vpop.f32.mrb[46].mxu1 }
 0x424   : >> { %v10481_v63 = vadd.f32 %v5860_v41, %v5859_v14  ;;  %v5862_v5 = vpop.f32.mrb[46].mxu0  ;;  %v5951_v24 = vpop.f32.mrb[47].mxu1 }
 0x425   : >> { %v5952_v53 = vadd.f32 %v5951_v24, %v5950_v30  ;;  %v5863_v45 = vpop.f32.mrb[47].mxu0  ;;  %v10483_v29 = vadd.f32 %v5949_v43, %v5837_v52 }
 0x426   : >> { %v10485_v20 = vadd.f32 %v5863_v45, %v5862_v5 }
 0x427   : >> { %v10491_v12 = vadd.f32 %v5952_v53, %v5840_v62 }
 0x429   : >> { %v5953_v7 = vpop.f32.mrb[48].mxu1 }
 0x42a   : >> { %v5954_v21 = vpop.f32.mrb[49].mxu1  ;;  %v6311_v58 = vpop.f32.mrb[48].mxu0 }
 0x42b   : >> { %v5955_v52 = vadd.f32 %v5954_v21, %v5953_v7  ;;  %v3578_v47 = vadd.f32 %v6311_v58, %v10445_v51  ;;  %v5956_v50 = vpop.f32.mrb[50].mxu1  ;;  %v3569_v22 = vpop.f32.mrb[49].mxu0 }
 0x42c   : >> { %v3570_v62 = vadd.f32 %v3569_v22, %v10441_v28  ;;  %v5957_v18 = vpop.f32.mrb[51].mxu1  ;;  %v6312_v31 = vpop.f32.mrb[50].mxu0 }
 0x42d   : >> { %v3706_v33 = vmul.f32 %v10498_v3, %v3578_v47  ;;  %v5958_v60 = vadd.f32 %v5957_v18, %v5956_v50  ;;  %v3581_v4 = vadd.f32 %v6312_v31, %v10447_v11  ;;  %v3572_v27 = vpop.f32.mrb[51].mxu0  ;;  %v10507_v39 = vadd.f32 %v5955_v52, %v10457_v46 }
 0x42e   : >> { %v3704_v51 = vmul.f32 %v10498_v3, %v3570_v62  ;;  %v3573_v40 = vadd.f32 %v3572_v27, %v10443_v13 }
 0x42f   : >> { %v3746_v19 = vadd.f32 %v10501_v48, %v3706_v33  ;;  %v3707_v61 = vmul.f32 %v10498_v3, %v3581_v4  ;;  %v10514_v28 = vadd.f32 %v5958_v60, %v10461_v57 }
 0x430   : >> { %v3744_v36 = vadd.f32 %v10501_v48, %v3704_v51  ;;  %v3705_v2 = vmul.f32 %v10498_v3, %v3573_v40 }
 0x431   : >> { %v3778_v11 = vmax.f32 %v3746_v19, 0.0  ;;  %v3747_v35 = vadd.f32 %v10501_v48, %v3707_v61  ;;  %v5959_v46 = vpop.f32.mrb[52].mxu1 }
 0x432   : >> { %v3776_v14 = vmax.f32 %v3744_v36, 0.0  ;;  %v3745_v59 = vadd.f32 %v10501_v48, %v3705_v2  ;;  %v5960_v43 = vpop.f32.mrb[53].mxu1  ;;  %v6315_v13 = vpop.f32.mrb[52].mxu0 }
 0x433   : >> { %5673 = vst.msk [vmem:[%s10520_s27 + $0x31] sm:$0xff] %vm280_vm12, %v3778_v11  ;;  %v3779_v57 = vmax.f32 %v3747_v35, 0.0  ;;  %v5961_v41 = vadd.f32 %v5960_v43, %v5959_v46  ;;  %v3594_v30 = vadd.f32 %v6315_v13, %v10453_v44  ;;  %v5962_v5 = vpop.f32.mrb[54].mxu1  ;;  %v3585_v24 = vpop.f32.mrb[53].mxu0 }
 0x434   : >> { %5671 = vst.msk [vmem:[%s10520_s27 + $0x19] sm:$0xff] %vm280_vm12, %v3776_v14  ;;  %v3777_v53 = vmax.f32 %v3745_v59, 0.0  ;;  %v3586_v45 = vadd.f32 %v3585_v24, %v10449_v56  ;;  %v5963_v7 = vpop.f32.mrb[55].mxu1  ;;  %v6316_v21 = vpop.f32.mrb[54].mxu0 }
 0x435   : >> { %5674 = vst.msk [vmem:[%s10520_s27 + $0x39] sm:$0xff] %vm280_vm12, %v3779_v57  ;;  %v3710_v58 = vmul.f32 %v10498_v3, %v3594_v30  ;;  %v5964_v52 = vadd.f32 %v5963_v7, %v5962_v5  ;;  %v3597_v47 = vadd.f32 %v6316_v21, %v10455_v23  ;;  %v3588_v50 = vpop.f32.mrb[55].mxu0  ;;  %v10533_v22 = vadd.f32 %v5961_v41, %v10465_v16 }
 0x436   : >> { %5672 = vst.msk [vmem:[%s10520_s27 + $0x21] sm:$0xff] %vm280_vm12, %v3777_v53  ;;  %v3708_v44 = vmul.f32 %v10498_v3, %v3586_v45  ;;  %v3589_v56 = vadd.f32 %v3588_v50, %v10451_v32 }
 0x437   : >> { %v3750_v62 = vadd.f32 %v10501_v48, %v3710_v58  ;;  %v3711_v18 = vmul.f32 %v10498_v3, %v3597_v47  ;;  %v10542_v31 = vadd.f32 %v5964_v52, %v10469_v9 }
 0x438   : >> { %v3748_v23 = vadd.f32 %v10501_v48, %v3708_v44  ;;  %v3709_v16 = vmul.f32 %v10498_v3, %v3589_v56 }
 0x439   : >> { %v3782_v33 = vmax.f32 %v3750_v62, 0.0  ;;  %v3751_v60 = vadd.f32 %v10501_v48, %v3711_v18  ;;  %v5965_v4 = vpop.f32.mrb[56].mxu1 }
 0x43a   : >> { %v3780_v27 = vmax.f32 %v3748_v23, 0.0  ;;  %v3749_v32 = vadd.f32 %v10501_v48, %v3709_v16  ;;  %v5966_v51 = vpop.f32.mrb[57].mxu1  ;;  %v6319_v40 = vpop.f32.mrb[56].mxu0 }
 0x43b   : >> { %5677 = vst.msk [vmem:[%s10520_s27 + $0x61] sm:$0xff] %vm280_vm12, %v3782_v33  ;;  %v3783_v19 = vmax.f32 %v3751_v60, 0.0  ;;  %v5967_v9 = vadd.f32 %v5966_v51, %v5965_v4  ;;  %v3610_v61 = vadd.f32 %v6319_v40, %v10467_v8  ;;  %v5968_v36 = vpop.f32.mrb[58].mxu1  ;;  %v3601_v2 = vpop.f32.mrb[57].mxu0 }
 0x43c   : >> { %5675 = vst.msk [vmem:[%s10520_s27 + $0x49] sm:$0xff] %vm280_vm12, %v3780_v27  ;;  %v3781_v11 = vmax.f32 %v3749_v32, 0.0  ;;  %v3602_v35 = vadd.f32 %v3601_v2, %v10459_v34  ;;  %v5969_v46 = vpop.f32.mrb[59].mxu1  ;;  %v6320_v14 = vpop.f32.mrb[58].mxu0 }
 0x43d   : >> { %5678 = vst.msk [vmem:[%s10520_s27 + $0x69] sm:$0xff] %vm280_vm12, %v3783_v19  ;;  %v3714_v59 = vmul.f32 %v10498_v3, %v3610_v61  ;;  %v5970_v43 = vadd.f32 %v5969_v46, %v5968_v36  ;;  %v3613_v13 = vadd.f32 %v6320_v14, %v10471_v26  ;;  %v3604_v57 = vpop.f32.mrb[59].mxu0  ;;  %v10559_v41 = vadd.f32 %v5967_v9, %v10473_v15 }
 0x43e   : >> { %5676 = vst.msk [vmem:[%s10520_s27 + $0x51] sm:$0xff] %vm280_vm12, %v3781_v11  ;;  %v3712_v8 = vmul.f32 %v10498_v3, %v3602_v35  ;;  %v3605_v34 = vadd.f32 %v3604_v57, %v10463_v55 }
 0x43f   : >> { %v3754_v30 = vadd.f32 %v10501_v48, %v3714_v59  ;;  %v3715_v5 = vmul.f32 %v10498_v3, %v3613_v13  ;;  %v10568_v24 = vadd.f32 %v5970_v43, %v10477_v10 }
 0x440   : >> { %v3752_v26 = vadd.f32 %v10501_v48, %v3712_v8  ;;  %v3713_v15 = vmul.f32 %v10498_v3, %v3605_v34 }
 0x441   : >> { %v3786_v53 = vmax.f32 %v3754_v30, 0.0  ;;  %v3755_v45 = vadd.f32 %v10501_v48, %v3715_v5  ;;  %v5971_v7 = vpop.f32.mrb[60].mxu1 }
 0x442   : >> { %v3784_v21 = vmax.f32 %v3752_v26, 0.0  ;;  %v3753_v55 = vadd.f32 %v10501_v48, %v3713_v15  ;;  %v5972_v58 = vpop.f32.mrb[61].mxu1  ;;  %v6323_v52 = vpop.f32.mrb[60].mxu0 }
 0x443   : >> { %5681 = vst.msk [vmem:[%s10520_s27 + $0x91] sm:$0xff] %vm280_vm12, %v3786_v53  ;;  %v3787_v47 = vmax.f32 %v3755_v45, 0.0  ;;  %v5973_v10 = vadd.f32 %v5972_v58, %v5971_v7  ;;  %v3626_v50 = vadd.f32 %v6323_v52, %v10483_v29  ;;  %v5974_v44 = vpop.f32.mrb[62].mxu1  ;;  %v3617_v56 = vpop.f32.mrb[61].mxu0 }
 0x444   : >> { %5679 = vst.msk [vmem:[%s10520_s27 + $0x79] sm:$0xff] %vm280_vm12, %v3784_v21  ;;  %v3785_v62 = vmax.f32 %v3753_v55, 0.0  ;;  %v3618_v18 = vadd.f32 %v3617_v56, %v10475_v54  ;;  %v5975_v23 = vpop.f32.mrb[63].mxu1  ;;  %v6324_v16 = vpop.f32.mrb[62].mxu0 }
 0x445   : >> { %5682 = vst.msk [vmem:[%s10520_s27 + $0x99] sm:$0xff] %vm280_vm12, %v3787_v47  ;;  %v3718_v33 = vmul.f32 %v10498_v3, %v3626_v50  ;;  %v5976_v60 = vadd.f32 %v5975_v23, %v5974_v44  ;;  %v3629_v4 = vadd.f32 %v6324_v16, %v10491_v12  ;;  %v3620_v27 = vpop.f32.mrb[63].mxu0  ;;  %v3497_v32 = vadd.f32 %v5973_v10, %v10481_v63 }
 0x446   : >> { %5680 = vst.msk [vmem:[%s10520_s27 + $0x81] sm:$0xff] %vm280_vm12, %v3785_v62  ;;  %v3716_v29 = vmul.f32 %v10498_v3, %v3618_v18  ;;  %v3621_v51 = vadd.f32 %v3620_v27, %v10479_v42 }
 0x447   : >> { %v3758_v54 = vadd.f32 %v10501_v48, %v3718_v33  ;;  %v3719_v40 = vmul.f32 %v10498_v3, %v3629_v4  ;;  %v3500_v19 = vadd.f32 %v5976_v60, %v10485_v20 }
 0x448   : >> { %v3756_v9 = vadd.f32 %v10501_v48, %v3716_v29  ;;  %v3717_v12 = vmul.f32 %v10498_v3, %v3621_v51 }
 0x449   : >> { %v3790_v61 = vmax.f32 %v3758_v54, 0.0  ;;  %v3759_v63 = vadd.f32 %v10501_v48, %v3719_v40  ;;  %v5977_v36 = vpop.f32.mrb[64].mxu1 }
 0x44a   : >> { %v3788_v2 = vmax.f32 %v3756_v9, 0.0  ;;  %v3757_v11 = vadd.f32 %v10501_v48, %v3717_v12  ;;  %v5978_v42 = vpop.f32.mrb[65].mxu1  ;;  %v6327_v35 = vpop.f32.mrb[64].mxu0 }
 0x44b   : >> { %5685 = vst.msk [vmem:[%s10520_s27 + $0xc1] sm:$0xff] %vm280_vm12, %v3790_v61  ;;  %v3791_v46 = vmax.f32 %v3759_v63, 0.0  ;;  %v5979_v20 = vadd.f32 %v5978_v42, %v5977_v36  ;;  %v3642_v14 = vadd.f32 %v6327_v35, %v10533_v22  ;;  %v5980_v59 = vpop.f32.mrb[66].mxu1  ;;  %v3633_v43 = vpop.f32.mrb[65].mxu0 }
 0x44c   : >> { %5683 = vst.msk [vmem:[%s10520_s27 + $0xa9] sm:$0xff] %vm280_vm12, %v3788_v2  ;;  %v3789_v13 = vmax.f32 %v3757_v11, 0.0  ;;  %v3634_v57 = vadd.f32 %v3633_v43, %v10507_v39  ;;  %v5981_v8 = vpop.f32.mrb[67].mxu1  ;;  %v6328_v34 = vpop.f32.mrb[66].mxu0 }
 0x44d   : >> { %5686 = vst.msk [vmem:[%s10520_s27 + $0xc9] sm:$0xff] %vm280_vm12, %v3791_v46  ;;  %v3722_v30 = vmul.f32 %v10498_v3, %v3642_v14  ;;  %v5982_v5 = vadd.f32 %v5981_v8, %v5980_v59  ;;  %v3645_v26 = vadd.f32 %v6328_v34, %v10542_v31  ;;  %v3636_v15 = vpop.f32.mrb[67].mxu0  ;;  %v3505_v53 = vadd.f32 %v5979_v20, %v10425_v37 }
 0x44e   : >> { %5684 = vst.msk [vmem:[%s10520_s27 + $0xb1] sm:$0xff] %vm280_vm12, %v3789_v13  ;;  %v3720_v22 = vmul.f32 %v10498_v3, %v3634_v57  ;;  %v3637_v45 = vadd.f32 %v3636_v15, %v10514_v28 }
 0x44f   : >> { %v3762_v39 = vadd.f32 %v10501_v48, %v3722_v30  ;;  %v3723_v7 = vmul.f32 %v10498_v3, %v3645_v26  ;;  %v3508_v21 = vadd.f32 %v5982_v5, %v10427_v1 }
 0x450   : >> { %v3760_v55 = vadd.f32 %v10501_v48, %v3720_v22  ;;  %v3721_v31 = vmul.f32 %v10498_v3, %v3637_v45 }
 0x451   : >> { %v3794_v58 = vmax.f32 %v3762_v39, 0.0  ;;  %v3763_v37 = vadd.f32 %v10501_v48, %v3723_v7  ;;  %v5983_v52 = vpop.f32.mrb[68].mxu1 }
 0x452   : >> { %v3792_v47 = vmax.f32 %v3760_v55, 0.0  ;;  %v3761_v10 = vadd.f32 %v10501_v48, %v3721_v31  ;;  %v5984_v28 = vpop.f32.mrb[69].mxu1  ;;  %v6331_v50 = vpop.f32.mrb[68].mxu0 }
 0x453   : >> { %5689 = vst.msk [vmem:[%s10520_s27 + $0xf1] sm:$0xff] %vm280_vm12, %v3794_v58  ;;  %v3795_v44 = vmax.f32 %v3763_v37, 0.0  ;;  %v5985_v1 = vadd.f32 %v5984_v28, %v5983_v52  ;;  %v3658_v56 = vadd.f32 %v6331_v50, %v3497_v32  ;;  %v5986_v62 = vpop.f32.mrb[70].mxu1  ;;  %v3649_v18 = vpop.f32.mrb[69].mxu0 }
 0x454   : >> { %5687 = vst.msk [vmem:[%s10520_s27 + $0xd9] sm:$0xff] %vm280_vm12, %v3792_v47  ;;  %v3793_v23 = vmax.f32 %v3761_v10, 0.0  ;;  %v3650_v16 = vadd.f32 %v3649_v18, %v10559_v41  ;;  %v5987_v33 = vpop.f32.mrb[71].mxu1  ;;  %v6332_v60 = vpop.f32.mrb[70].mxu0 }
 0x455   : >> { %5690 = vst.msk [vmem:[%s10520_s27 + $0xf9] sm:$0xff] %vm280_vm12, %v3795_v44  ;;  %v3726_v4 = vmul.f32 %v10498_v3, %v3658_v56  ;;  %v5988_v27 = vadd.f32 %v5987_v33, %v5986_v62  ;;  %v3661_v29 = vadd.f32 %v6332_v60, %v3500_v19  ;;  %v3652_v51 = vpop.f32.mrb[71].mxu0  ;;  %v3513_v54 = vadd.f32 %v5985_v1, %v10429_v6 }
 0x456   : >> { %5688 = vst.msk [vmem:[%s10520_s27 + $0xe1] sm:$0xff] %vm280_vm12, %v3793_v23  ;;  %v3724_v32 = vmul.f32 %v10498_v3, %v3650_v16  ;;  %v3653_v40 = vadd.f32 %v3652_v51, %v10568_v24 }
 0x457   : >> { %v3766_v41 = vadd.f32 %v10501_v48, %v3726_v4  ;;  %v3727_v9 = vmul.f32 %v10498_v3, %v3661_v29  ;;  %v3516_v12 = vadd.f32 %v5988_v27, %v10431_v17 }
 0x458   : >> { %v3764_v61 = vadd.f32 %v10501_v48, %v3724_v32  ;;  %v3725_v19 = vmul.f32 %v10498_v3, %v3653_v40 }
 0x459   : >> { %v3798_v63 = vmax.f32 %v3766_v41, 0.0  ;;  %v3767_v6 = vadd.f32 %v10501_v48, %v3727_v9  ;;  %v5989_v36 = vpop.f32.mrb[72].mxu1 }
 0x45a   : >> { %v3796_v2 = vmax.f32 %v3764_v61, 0.0  ;;  %v3765_v11 = vadd.f32 %v10501_v48, %v3725_v19  ;;  %v5990_v24 = vpop.f32.mrb[73].mxu1  ;;  %v6335_v42 = vpop.f32.mrb[72].mxu0 }
 0x45b   : >> { %5693 = vst.msk [vmem:[%s10520_s27 + $0x121] sm:$0xff] %vm280_vm12, %v3798_v63  ;;  %v3799_v35 = vmax.f32 %v3767_v6, 0.0  ;;  %v5991_v17 = vadd.f32 %v5990_v24, %v5989_v36  ;;  %v3674_v46 = vadd.f32 %v6335_v42, %v3513_v54  ;;  %v5992_v20 = vpop.f32.mrb[74].mxu1  ;;  %v3665_v14 = vpop.f32.mrb[73].mxu0 }
 0x45c   : >> { %5691 = vst.msk [vmem:[%s10520_s27 + $0x109] sm:$0xff] %vm280_vm12, %v3796_v2  ;;  %v3797_v59 = vmax.f32 %v3765_v11, 0.0  ;;  %v3666_v43 = vadd.f32 %v3665_v14, %v3505_v53  ;;  %v5993_v13 = vpop.f32.mrb[75].mxu1  ;;  %v6336_v57 = vpop.f32.mrb[74].mxu0 }
 0x45d   : >> { %5694 = vst.msk [vmem:[%s10520_s27 + $0x129] sm:$0xff] %vm280_vm12, %v3799_v35  ;;  %v3730_v8 = vmul.f32 %v10498_v3, %v3674_v46  ;;  %v5994_v34 = vadd.f32 %v5993_v13, %v5992_v20  ;;  %v3677_v30 = vadd.f32 %v6336_v57, %v3516_v12  ;;  %v3668_v5 = vpop.f32.mrb[75].mxu0  ;;  %v3521_v26 = vadd.f32 %v5991_v17, %v10433_v0 }
 0x45e   : >> { %5692 = vst.msk [vmem:[%s10520_s27 + $0x111] sm:$0xff] %vm280_vm12, %v3797_v59  ;;  %v3728_v15 = vmul.f32 %v10498_v3, %v3666_v43  ;;  %v3669_v22 = vadd.f32 %v3668_v5, %v3508_v21 }
 0x45f   : >> { %v3770_v45 = vadd.f32 %v10501_v48, %v3730_v8  ;;  %v3731_v53 = vmul.f32 %v10498_v3, %v3677_v30  ;;  %v3524_v39 = vadd.f32 %v5994_v34, %v10435_v25 }
 0x460   : >> { %v3768_v7 = vadd.f32 %v10501_v48, %v3728_v15  ;;  %v3729_v55 = vmul.f32 %v10498_v3, %v3669_v22 }
 0x461   : >> { %v3802_v31 = vmax.f32 %v3770_v45, 0.0  ;;  %v3771_v0 = vadd.f32 %v10501_v48, %v3731_v53  ;;  %v5995_v58 = vpop.f32.mrb[76].mxu1 }
 0x462   : >> { %v3800_v37 = vmax.f32 %v3768_v7, 0.0  ;;  %v3769_v52 = vadd.f32 %v10501_v48, %v3729_v55  ;;  %v5996_v21 = vpop.f32.mrb[77].mxu1  ;;  %v6339_v47 = vpop.f32.mrb[76].mxu0 }
 0x463   : >> { %5697 = vst.msk [vmem:[%s10520_s27 + $0x151] sm:$0xff] %vm280_vm12, %v3802_v31  ;;  %v3803_v10 = vmax.f32 %v3771_v0, 0.0  ;;  %v5997_v28 = vadd.f32 %v5996_v21, %v5995_v58  ;;  %v5998_v25 = vpop.f32.mrb[78].mxu1  ;;  %v3681_v50 = vpop.f32.mrb[77].mxu0 }
 0x464   : >> { %5695 = vst.msk [vmem:[%s10520_s27 + $0x139] sm:$0xff] %vm280_vm12, %v3800_v37  ;;  %v3801_v44 = vmax.f32 %v3769_v52, 0.0  ;;  %v3682_v1 = vadd.f32 %v3681_v50, %v3521_v26  ;;  %v5999_v56 = vpop.f32.mrb[79].mxu1  ;;  %v6340_v62 = vpop.f32.mrb[78].mxu0 }
 0x465   : >> { %5698 = vst.msk [vmem:[%s10520_s27 + $0x159] sm:$0xff] %vm280_vm12, %v3803_v10  ;;  %v3529_v18 = vadd.f32 %v5997_v28, %v10437_v49  ;;  %v6000_v23 = vadd.f32 %v5999_v56, %v5998_v25  ;;  %v3684_v16 = vpop.f32.mrb[79].mxu0 }
 0x466   : >> { %5696 = vst.msk [vmem:[%s10520_s27 + $0x141] sm:$0xff] %vm280_vm12, %v3801_v44  ;;  %v3732_v33 = vmul.f32 %v10498_v3, %v3682_v1  ;;  %v3685_v60 = vadd.f32 %v3684_v16, %v3524_v39 }
 0x467   : >> { %v3690_v4 = vadd.f32 %v6339_v47, %v3529_v18  ;;  %v3532_v27 = vadd.f32 %v6000_v23, %v10439_v38 }
 0x468   : >> { %v3772_v29 = vadd.f32 %v10501_v48, %v3732_v33  ;;  %v3733_v51 = vmul.f32 %v10498_v3, %v3685_v60 }
 0x469   : >> { %v3734_v49 = vmul.f32 %v10498_v3, %v3690_v4  ;;  %v3693_v54 = vadd.f32 %v6340_v62, %v3532_v27 }
 0x46a   : >> { %v3804_v32 = vmax.f32 %v3772_v29, 0.0  ;;  %v3773_v40 = vadd.f32 %v10501_v48, %v3733_v51 }
 0x46b   : >> { %v3774_v41 = vadd.f32 %v10501_v48, %v3734_v49  ;;  %v3735_v9 = vmul.f32 %v10498_v3, %v3693_v54  ;;  %2035 = sbr.rel (!%p2033_p6) target bundleno = 619 (0x26b), region = 92 }
 0x46c   : >> { %5699 = vst.msk [vmem:[%s10520_s27 + $0x169] sm:$0xff] %vm280_vm12, %v3804_v32  ;;  %v3805_v12 = vmax.f32 %v3773_v40, 0.0 }
 0x46d   : >> { %v3806_v61 = vmax.f32 %v3774_v41, 0.0  ;;  %v3775_v38 = vadd.f32 %v10501_v48, %v3735_v9 }
 0x46e   : >> { %5700 = vst.msk [vmem:[%s10520_s27 + $0x171] sm:$0xff] %vm280_vm12, %v3805_v12 }
 0x46f   : >> { %5701 = vst.msk [vmem:[%s10520_s27 + $0x181] sm:$0xff] %vm280_vm12, %v3806_v61  ;;  %v3807_v19 = vmax.f32 %v3775_v38, 0.0 }
 0x471   : >> { %5702 = vst.msk [vmem:[%s10520_s27 + $0x189] sm:$0xff] %vm280_vm12, %v3807_v19  ;;  %v7644_v19 = vld [vmem:[%s11769_s6 + $0x40] sm:$0xff] (%p2033_p6)  }
 0x472   : > { %6401 = vmatprep.subr.bf16.mxu1 %v7644_v19  ;;  %6021 = vmatprep.subr.bf16.mxu0 %v7644_v19 }
 0x478   : > { %v10685_v3 = vld [vmem:[#allocation2 + $0x2e8] sm:$0xff]  ;;  %v10687_v63 = vld [vmem:[#allocation2 + $0x2f0] sm:$0xff]  ;;  %v10697_v11 = vld [vmem:[#allocation2 + $0x2d8] sm:$0xff] }
 0x479   : > { %v10689_v6 = vld [vmem:[#allocation2 + $0x1c8] sm:$0xff]  ;;  %v7394_v48 = vpack.i.bf16 %v10687_v63, %v10685_v3  ;;  %v10693_v36 = vld [vmem:[#allocation2 + $0x1d0] sm:$0xff]  ;;  %v4011_v24 = vrot.slane %v10685_v3, 1  ;;  %v4012_v42 = vrot.slane %v10687_v63, 1  ;;  %v10703_v17 = vld [vmem:[#allocation2 + $0x2e0] sm:$0x3] }
 0x47a   : > { %v10695_v2 = vld [vmem:[#allocation2 + $0x2d0] sm:$0xff]  ;;  %v7404_v35 = vpack.i.bf16 %v10693_v36, %v10689_v6  ;;  %v4007_v20 = vrot.slane %v10697_v11, 1  ;;  %v10709_v59 = vld [vmem:[#allocation2 + $0x1b8] sm:$0xff]  ;;  %v4009_v43 = vrot.slane %v10703_v17, 1  ;;  %v10713_v13 = vld [vmem:[#allocation2 + $0x1c0] sm:$0x3] }
 0x47b   : > { %v4006_v46 = vrot.slane %v10695_v2, 1  ;;  %v10707_v14 = vld [vmem:[#allocation2 + $0x1b0] sm:$0xff]  ;;  %7395 = vrot.lane.b32.xlu0 %v7394_v48, %s7717_s26  ;;  %v3947_v8 = vrot.slane %v10709_v59, 1  ;;  %v3949_v30 = vrot.slane %v10713_v13, 1  ;;  %v10722_v5 = vld [vmem:[#allocation2 + $0x2f8] sm:$0x3]  ;;  %v10741_v58 = vsel %vm492_vm0, %v4011_v24, %v4012_v42 }
 0x47c   : > { %v3946_v57 = vrot.slane %v10707_v14, 1  ;;  %7405 = vrot.lane.b32.xlu1 %v7404_v35, %s7717_s26  ;;  %v3951_v26 = vrot.slane %v10689_v6, 1  ;;  %v10726_v15 = vsel %vm492_vm0, %v4007_v20, %v4009_v43  ;;  %v10729_v45 = vld [vmem:[#allocation2 + $0x300] sm:$0xff]  ;;  %v10731_v53 = vld [vmem:[#allocation2 + $0x308] sm:$0xff]  ;;  %v4014_v39 = vrot.slane %v10722_v5, 1  ;;  %12105 = vst [vmem:[#allocation10_spill] sm:$0xff] %v10741_v58 }
 0x47d   : > { %v10719_v34 = vsel %vm492_vm0, %v4006_v46, %v4007_v20  ;;  %12104 = vst [vmem:[#allocation16_spill] sm:$0xff] %v10726_v15  ;;  %v10734_v7 = vld [vmem:[#allocation2 + $0x1d8] sm:$0x3]  ;;  %v3952_v55 = vrot.slane %v10693_v36, 1  ;;  %v3950_v0 = vsel %vm492_vm0, %v3947_v8, %v3949_v30  ;;  %v10747_v47 = vld [vmem:[#allocation2 + $0x310] sm:$0x3]  ;;  %v7409_v10 = vpack.i.bf16 %v10731_v53, %v10729_v45 }
 0x47e   : > { %12103 = vst [vmem:[#allocation18_spill] sm:$0xff] %v10719_v34  ;;  %v3948_v22 = vsel %vm492_vm0, %v3946_v57, %v3947_v8  ;;  %v7399_v31 = vpack.i.bf16 %v10726_v15, %v10719_v34  ;;  %v10744_v52 = vsel %vm492_vm0, %v4012_v42, %v4014_v39  ;;  %v3954_v21 = vrot.slane %v10734_v7, 1  ;;  %v10755_v25 = vld [vmem:[#allocation2 + $0x1e0] sm:$0xff]  ;;  %v10757_v50 = vld [vmem:[#allocation2 + $0x1e8] sm:$0xff]  ;;  %v10768_v23 = vld [vmem:[#allocation2 + $0x1f0] sm:$0x3] }
 0x47f   : > { %v7414_v37 = vpack.i.bf16 %v3950_v0, %v3948_v22  ;;  %12106 = vst [vmem:[#allocation12_spill] sm:$0xff] %v10744_v52  ;;  %v7419_v28 = vpack.i.bf16 %v10744_v52, %v10741_v58  ;;  %v10760_v44 = vsel %vm492_vm0, %v3951_v26, %v3952_v55  ;;  %v4016_v56 = vrot.slane %v10729_v45, 1  ;;  %v10776_v60 = vld [vmem:[#allocation2 + $0x318] sm:$0xff]  ;;  %v10778_v4 = vld [vmem:[#allocation2 + $0x320] sm:$0xff]  ;;  %v10789_v32 = vld [vmem:[#allocation2 + $0x328] sm:$0x3] }
 0x480   : > { %7400 = vrot.lane.b32.xlu0 %v7399_v31, %s7717_s26  ;;  %v10763_v1 = vsel %vm492_vm0, %v3952_v55, %v3954_v21  ;;  %v4017_v62 = vrot.slane %v10731_v53, 1  ;;  %v4019_v18 = vrot.slane %v10747_v47, 1  ;;  %v7424_v16 = vpack.i.bf16 %v10757_v50, %v10755_v25  ;;  %v10794_v41 = vld [vmem:[#allocation2 + $0x1f8] sm:$0xff]  ;;  %v10796_v9 = vld [vmem:[#allocation2 + $0x200] sm:$0xff]  ;;  %v10802_v38 = vld [vmem:[#allocation2 + $0x208] sm:$0x3] }
 0x481   : > { %7415 = vrot.lane.b32.xlu1 %v7414_v37, %s7717_s26  ;;  %v7429_v33 = vpack.i.bf16 %v10763_v1, %v10760_v44  ;;  %v3956_v27 = vrot.slane %v10755_v25, 1  ;;  %v3957_v49 = vrot.slane %v10757_v50, 1  ;;  %v3959_v54 = vrot.slane %v10768_v23, 1  ;;  %v7645_v46 = vld [vmem:[%s11769_s6] sm:$0xff]   ;;  %v7646_v20 = vld [vmem:[%s11769_s6 + $0x48] sm:$0xff]   ;;  %v10824_v57 = vld [vmem:[#allocation2 + $0x330] sm:$0xff] }
 0x482   : > { %v10782_v29 = vsel %vm492_vm0, %v4016_v56, %v4017_v62  ;;  %v10785_v51 = vsel %vm492_vm0, %v4017_v62, %v4019_v18  ;;  %v7434_v40 = vpack.i.bf16 %v10778_v4, %v10776_v60  ;;  %v4021_v61 = vrot.slane %v10776_v60, 1  ;;  %v10826_v8 = vld [vmem:[#allocation2 + $0x338] sm:$0xff]  ;;  %6409 = vmatpush3.bf16.msra.mxu1 %v7645_v46  ;;  %v10840_v0 = vld [vmem:[#allocation2 + $0x210] sm:$0xff]  ;;  %6022 = vmatpush3.bf16.msra.mxu0 %v7645_v46  ;;  %v7647_v37 = vld [vmem:[%s11769_s6 + $0x8] sm:$0xff]  }
 0x483   : > { %12107 = vst [vmem:[#allocation19_spill] sm:$0xff] %v10782_v29  ;;  %12108 = vst [vmem:[#allocation11_spill] sm:$0xff] %v10785_v51  ;;  %v7439_v12 = vpack.i.bf16 %v10785_v51, %v10782_v29  ;;  %v10808_v48 = vsel %vm492_vm0, %v3956_v27, %v3957_v49  ;;  %v10811_v24 = vsel %vm492_vm0, %v3957_v49, %v3959_v54  ;;  %v4022_v42 = vrot.slane %v10778_v4, 1  ;;  %v10845_v21 = vld [vmem:[#allocation2 + $0x220] sm:$0x3]  ;;  %v10853_v56 = vld [vmem:[#allocation2 + $0x218] sm:$0xff] }
 0x484   : > { %7410 = vrot.lane.b32.xlu0 %v7409_v10, %s7717_s26  ;;  %v4024_v35 = vrot.slane %v10789_v32, 1  ;;  %v7444_v43 = vpack.i.bf16 %v10796_v9, %v10794_v41  ;;  %v3961_v30 = vrot.slane %v10794_v41, 1  ;;  %v7449_v26 = vpack.i.bf16 %v10811_v24, %v10808_v48  ;;  %6402 = vmatprep.subr.bf16.mxu1 %v7646_v20  ;;  %v7648_v10 = vld [vmem:[%s11769_s6 + $0x50] sm:$0xff]   ;;  %v10885_v46 = vld [vmem:[#allocation2 + $0x238] sm:$0x3] }
 0x485   : > { %7420 = vrot.lane.b32.xlu1 %v7419_v28, %s7717_s26  ;;  %v3962_v22 = vrot.slane %v10796_v9, 1  ;;  %v3964_v39 = vrot.slane %v10802_v38, 1  ;;  %v10835_v55 = vsel %vm492_vm0, %v4021_v61, %v4022_v42  ;;  %6023 = vmatprep.subr.bf16.mxu0 %v7646_v20  ;;  %v7454_v28 = vpack.i.bf16 %v10826_v8, %v10824_v57  ;;  %v10880_v61 = vld [vmem:[#allocation2 + $0x230] sm:$0xff]  ;;  %v10979_v58 = vld [vmem:[#allocation2 + $0x268] sm:$0x3] }
 0x486   : > { %12109 = vst [vmem:[#allocation13_spill] sm:$0xff] %v10835_v55  ;;  %v10838_v31 = vsel %vm492_vm0, %v4022_v42, %v4024_v35  ;;  %v4127_v62 = vrot.slane %v10689_v6, 2  ;;  %v4128_v18 = vrot.slane %v10693_v36, 2  ;;  %6410 = vmatpush3.bf16.msra.mxu1 %v7647_v37  ;;  %v7649_v6 = vld [vmem:[%s11769_s6 + $0x10] sm:$0xff]   ;;  %v7464_v54 = vpack.i.bf16 %v10853_v56, %v10840_v0  ;;  %6024 = vmatpush3.bf16.msra.mxu0 %v7647_v37 }
 0x487   : > { %12110 = vst [vmem:[#allocation14_spill] sm:$0xff] %v10838_v31  ;;  %v10862_v27 = vsel %vm492_vm0, %v3961_v30, %v3962_v22  ;;  %v10865_v49 = vsel %vm492_vm0, %v3962_v22, %v3964_v39  ;;  %6403 = vmatprep.subr.bf16.mxu1 %v7648_v10  ;;  %v3966_v19 = vrot.slane %v10840_v0, 1  ;;  %v3967_v42 = vrot.slane %v10853_v56, 1  ;;  %6025 = vmatprep.subr.bf16.mxu0 %v7648_v10  ;;  %v7651_v39 = vld [vmem:[%s11769_s6 + $0x18] sm:$0xff]   ;;  %v11011_v34 = vld [vmem:[#allocation2 + $0x270] sm:$0xff] }
 0x488   : > { %7425 = vrot.lane.b32.xlu0 %v7424_v16, %s7717_s26  ;;  %v4130_v16 = vrot.slane %v10734_v7, 2  ;;  %12111 = vst [vmem:[#allocation15_spill] sm:$0xff] %v10862_v27  ;;  %v10872_v7 = vld [vmem:[#allocation2 + $0x228] sm:$0xff]  ;;  %v3969_v35 = vrot.slane %v10845_v21, 1  ;;  %v10889_v20 = vsel %vm669_vm1, %v4127_v62, %v4128_v18  ;;  %v4132_v30 = vrot.slane %v10755_v25, 2  ;;  %12122 = vst [vmem:[#allocation76_spill] sm:$0xff] %v11011_v34 }
 0x489   : > { %7430 = vrot.lane.b32.xlu1 %v7429_v33, %s7717_s26  ;;  %v7459_v33 = vpack.i.bf16 %v10838_v31, %v10835_v55  ;;  %v4135_v22 = vrot.slane %v10768_v23, 2  ;;  %v7479_v10 = vpack.i.bf16 %v10880_v61, %v10872_v7  ;;  %v3971_v25 = vrot.slane %v10872_v7, 1  ;;  %v7652_v23 = vld [vmem:[%s11769_s6 + $0x60] sm:$0xff]   ;;  %v10949_v55 = vld [vmem:[#allocation2 + $0x250] sm:$0x3] }
 0x48a   : > { %6411 = vmatpush3.bf16.msra.mxu1 %v7649_v6  ;;  %6026 = vmatpush3.bf16.msra.mxu0 %v7649_v6  ;;  %v10914_v62 = vsel %vm492_vm0, %v3967_v42, %v3969_v35  ;;  %v4137_v35 = vrot.slane %v10794_v41, 2  ;;  %v7655_v41 = vld [vmem:[%s11769_s6 + $0x28] sm:$0xff]   ;;  %v10973_v31 = vld [vmem:[#allocation2 + $0x260] sm:$0xff]  ;;  %v4142_v29 = vrot.slane %v10840_v0, 2  ;;  %v4145_v51 = vrot.slane %v10845_v21, 2 }
 0x48b   : > { %12113 = vst [vmem:[#allocation3_spill] sm:$0xff] %v10914_v62  ;;  %12119 = vst [vmem:[#allocation8_spill] sm:$0xff] %v10973_v31  ;;  %v4148_v15 = vrot.slane %v10880_v61, 2 }
 0x48c   : > { %7435 = vrot.lane.b32.xlu0 %v7434_v40, %s7717_s26  ;;  %v7650_v40 = vld [vmem:[%s11769_s6 + $0x58] sm:$0xff]  }
 0x48d   : > { %7440 = vrot.lane.b32.xlu1 %v7439_v12, %s7717_s26  ;;  %v7469_v12 = vpack.i.bf16 %v10865_v49, %v10862_v27  ;;  %6404 = vmatprep.subr.bf16.mxu1 %v7650_v40  ;;  %v4160_v27 = vrot.slane %v10979_v58, 2 }
 0x48e   : > { %6027 = vmatprep.subr.bf16.mxu0 %v7650_v40  ;;  %v10926_v40 = vld [vmem:[#allocation2 + $0x248] sm:$0xff]  ;;  %6412 = vmatpush3.bf16.msra.mxu1 %v7651_v39 }
 0x48f   : > { %12115 = vst [vmem:[#allocation21_spill] sm:$0xff] %v10926_v40  ;;  %6028 = vmatpush3.bf16.msra.mxu0 %v7651_v39  ;;  %6405 = vmatprep.subr.bf16.mxu1 %v7652_v23 }
 0x490   : > { %7445 = vrot.lane.b32.xlu0 %v7444_v43, %s7717_s26  ;;  %v10892_v43 = vsel %vm669_vm1, %v4128_v18, %v4130_v16  ;;  %v3972_v18 = vrot.slane %v10880_v61, 1  ;;  %v3974_v16 = vrot.slane %v10885_v46, 1  ;;  %6029 = vmatprep.subr.bf16.mxu0 %v7652_v23  ;;  %v10965_v23 = vld [vmem:[#allocation2 + $0x258] sm:$0xff] }
 0x491   : > { %7450 = vrot.lane.b32.xlu1 %v7449_v26, %s7717_s26  ;;  %v4133_v26 = vrot.slane %v10757_v50, 2  ;;  %v7474_v37 = vpack.i.bf16 %v10892_v43, %v10889_v20  ;;  %12118 = vst [vmem:[#allocation17_spill] sm:$0xff] %v10965_v23  ;;  %v7509_v21 = vpack.i.bf16 %v10973_v31, %v10965_v23  ;;  %v3981_v52 = vrot.slane %v10965_v23, 1 }
 0x492   : > { %v10946_v39 = vsel %vm492_vm0, %v3972_v18, %v3974_v16  ;;  %v3977_v16 = vrot.slane %v10926_v40, 1 }
 0x493   : > { %v10922_v6 = vsel %vm669_vm1, %v4133_v26, %v4135_v22  ;;  %v10943_v22 = vsel %vm492_vm0, %v3971_v25, %v3972_v18  ;;  %12117 = vst [vmem:[#allocation9_spill] sm:$0xff] %v10946_v39 }
 0x494   : > { %7455 = vrot.lane.b32.xlu0 %v7454_v28, %s7717_s26  ;;  %v10911_v28 = vsel %vm492_vm0, %v3966_v19, %v3967_v42  ;;  %v7654_v19 = vld [vmem:[%s11769_s6 + $0x68] sm:$0xff]   ;;  %12116 = vst [vmem:[#allocation6_spill] sm:$0xff] %v10943_v22 }
 0x495   : > { %7460 = vrot.lane.b32.xlu1 %v7459_v33, %s7717_s26  ;;  %12112 = vst [vmem:[#allocation5_spill] sm:$0xff] %v10911_v28  ;;  %v10919_v33 = vsel %vm669_vm1, %v4132_v30, %v4133_v26  ;;  %v7484_v42 = vpack.i.bf16 %v10914_v62, %v10911_v28  ;;  %v4138_v30 = vrot.slane %v10796_v9, 2  ;;  %v4153_v28 = vrot.slane %v10926_v40, 2 }
 0x496   : > { %v7489_v26 = vpack.i.bf16 %v10922_v6, %v10919_v33  ;;  %v4155_v62 = vrot.slane %v10949_v55, 2 }
 0x497   : > { %v10963_v25 = vsel %vm669_vm1, %v4137_v35, %v4138_v30  ;;  %v4143_v35 = vrot.slane %v10853_v56, 2 }
 0x498   : > { %7465 = vrot.lane.b32.xlu0 %v7464_v54, %s7717_s26  ;;  %v10924_v54 = vld [vmem:[#allocation2 + $0x240] sm:$0xff] }
 0x499   : > { %7470 = vrot.lane.b32.xlu1 %v7469_v12, %s7717_s26  ;;  %12114 = vst [vmem:[#allocation20_spill] sm:$0xff] %v10924_v54  ;;  %v7653_v12 = vld [vmem:[%s11769_s6 + $0x20] sm:$0xff]   ;;  %v7494_v9 = vpack.i.bf16 %v10926_v40, %v10924_v54  ;;  %v3976_v18 = vrot.slane %v10924_v54, 1 }
 0x49a   : > { %6413 = vmatpush3.bf16.msra.mxu1 %v7653_v12  ;;  %6030 = vmatpush3.bf16.msra.mxu0 %v7653_v12  ;;  %v11086_v40 = vld [vmem:[#allocation2 + $0x2a0] sm:$0xff] }
 0x49b   : > { %6406 = vmatprep.subr.bf16.mxu1 %v7654_v19  ;;  %6031 = vmatprep.subr.bf16.mxu0 %v7654_v19  ;;  %v10994_v19 = vsel %vm492_vm0, %v3976_v18, %v3977_v16  ;;  %v7659_v18 = vld [vmem:[%s11769_s6 + $0x38] sm:$0xff]   ;;  %12130 = vst [vmem:[#allocation84_spill] sm:$0xff] %v11086_v40 }
 0x49c   : > { %7475 = vrot.lane.b32.xlu0 %v7474_v37, %s7717_s26  ;;  %v4140_v37 = vrot.slane %v10802_v38, 2  ;;  %v7499_v38 = vpack.i.bf16 %v10946_v39, %v10943_v22  ;;  %12120 = vst [vmem:[#allocation7_spill] sm:$0xff] %v10994_v19  ;;  %v4152_v39 = vrot.slane %v10924_v54, 2  ;;  %v11084_v54 = vsel %vm669_vm1, %v4153_v28, %v4155_v62 }
 0x49d   : > { %7480 = vrot.lane.b32.xlu1 %v7479_v10, %s7717_s26  ;;  %v7656_v10 = vld [vmem:[%s11769_s6 + $0x70] sm:$0xff]  }
 0x49e   : > { %v10971_v12 = vsel %vm669_vm1, %v4138_v30, %v4140_v37  ;;  %6414 = vmatpush3.bf16.msra.mxu1 %v7655_v41  ;;  %6032 = vmatpush3.bf16.msra.mxu0 %v7655_v41  ;;  %v7658_v30 = vld [vmem:[%s11769_s6 + $0x78] sm:$0xff]   ;;  %v11000_v41 = vsel %vm669_vm1, %v4142_v29, %v4143_v35  ;;  %v7660_v29 = vld [vmem:[%s11769_s6 + $0xc0] sm:$0xff]  }
 0x49f   : > { %6407 = vmatprep.subr.bf16.mxu1 %v7656_v10  ;;  %v7504_v0 = vpack.i.bf16 %v10971_v12, %v10963_v25  ;;  %6033 = vmatprep.subr.bf16.mxu0 %v7656_v10  ;;  %v3982_v10 = vrot.slane %v10973_v31, 1 }
 0x4a0   : > { %7485 = vrot.lane.b32.xlu0 %v7484_v42, %s7717_s26  ;;  %v3979_v42 = vrot.slane %v10949_v55, 1 }
 0x4a1   : > { %7490 = vrot.lane.b32.xlu1 %v7489_v26, %s7717_s26  ;;  %v7657_v26 = vld [vmem:[%s11769_s6 + $0x30] sm:$0xff]   ;;  %v11033_v22 = vsel %vm492_vm0, %v3981_v52, %v3982_v10 }
 0x4a2   : > { %v10997_v37 = vsel %vm492_vm0, %v3977_v16, %v3979_v42  ;;  %6415 = vmatpush3.bf16.msra.mxu1 %v7657_v26  ;;  %v11013_v16 = vld [vmem:[#allocation2 + $0x278] sm:$0xff]  ;;  %6034 = vmatpush3.bf16.msra.mxu0 %v7657_v26  ;;  %v4147_v42 = vrot.slane %v10872_v7, 2  ;;  %12124 = vst [vmem:[#allocation78_spill] sm:$0xff] %v11033_v22 }
 0x4a3   : > { %12121 = vst [vmem:[#allocation4_spill] sm:$0xff] %v10997_v37  ;;  %12123 = vst [vmem:[#allocation77_spill] sm:$0xff] %v11013_v16  ;;  %6408 = vmatprep.subr.bf16.mxu1 %v7658_v30  ;;  %6035 = vmatprep.subr.bf16.mxu0 %v7658_v30  ;;  %v11038_v30 = vld [vmem:[#allocation2 + $0x280] sm:$0x3]  ;;  %v3987_v52 = vrot.slane %v11013_v16, 1 }
 0x4a4   : > { %7495 = vrot.lane.b32.xlu0 %v7494_v9, %s7717_s26  ;;  %v11003_v9 = vsel %vm669_vm1, %v4143_v35, %v4145_v51  ;;  %v7514_v51 = vpack.i.bf16 %v10997_v37, %v10994_v19  ;;  %v11025_v35 = vld [vmem:[%s11769_s6 + $0x100] sm:$0xff]   ;;  %v11040_v19 = vld [vmem:[#allocation2 + $0x288] sm:$0xff]  ;;  %v11047_v37 = vld [vmem:[#allocation2 + $0x298] sm:$0x3] }
 0x4a5   : > { %7500 = vrot.lane.b32.xlu1 %v7499_v38, %s7717_s26  ;;  %v3984_v38 = vrot.slane %v10979_v58, 1  ;;  %v7519_v26 = vpack.i.bf16 %v11003_v9, %v11000_v41  ;;  %12126 = vst [vmem:[#allocation80_spill] sm:$0xff] %v11040_v19 }
 0x4a6   : > { %6416 = vmatpush3.bf16.msra.mxu1 %v7659_v18  ;;  %6036 = vmatpush3.bf16.msra.mxu0 %v7659_v18 }
 0x4a7   : > { %v11036_v7 = vsel %vm492_vm0, %v3982_v10, %v3984_v38  ;;  %6133 = vmatprep.subr.bf16.mxu1 %v7660_v29  ;;  %6341 = vmatprep.subr.bf16.mxu0 %v11025_v35  ;;  %v11054_v38 = vsel %vm669_vm1, %v4147_v42, %v4148_v15  ;;  %v11059_v29 = vld [vmem:[#allocation2 + $0x290] sm:$0xff] }
 0x4a8   : > { %7505 = vrot.lane.b32.xlu0 %v7504_v0, %s7717_s26  ;;  %v4150_v0 = vrot.slane %v10885_v46, 2  ;;  %12125 = vst [vmem:[#allocation79_spill] sm:$0xff] %v11036_v7  ;;  %v3986_v46 = vrot.slane %v11011_v34, 1  ;;  %v7529_v10 = vpack.i.bf16 %v11036_v7, %v11033_v22  ;;  %12127 = vst [vmem:[#allocation81_spill] sm:$0xff] %v11059_v29  ;;  %v7539_v42 = vpack.i.bf16 %v11059_v29, %v11040_v19 }
 0x4a9   : > { %7510 = vrot.lane.b32.xlu1 %v7509_v21, %s7717_s26  ;;  %v7524_v21 = vpack.i.bf16 %v11013_v16, %v11011_v34  ;;  %v3992_v55 = vrot.slane %v11059_v29, 1  ;;  %v11081_v7 = vsel %vm669_vm1, %v4152_v39, %v4153_v28 }
 0x4aa   : > { %v11057_v18 = vsel %vm669_vm1, %v4148_v15, %v4150_v0  ;;  %v3991_v15 = vrot.slane %v11040_v19, 1  ;;  %v11073_v0 = vsel %vm492_vm0, %v3986_v46, %v3987_v52  ;;  %v7549_v28 = vpack.i.bf16 %v11084_v54, %v11081_v7 }
 0x4ab   : > { %12128 = vst [vmem:[#allocation82_spill] sm:$0xff] %v11073_v0 }
 0x4ac   : > { %7515 = vrot.lane.b32.xlu0 %v7514_v51, %s7717_s26  ;;  %v3989_v51 = vrot.slane %v11038_v30, 1  ;;  %v11100_v62 = vsel %vm492_vm0, %v3991_v15, %v3992_v55 }
 0x4ad   : > { %7520 = vrot.lane.b32.xlu1 %v7519_v26, %s7717_s26  ;;  %v7534_v26 = vpack.i.bf16 %v11057_v18, %v11054_v38  ;;  %12132 = vst [vmem:[#allocation86_spill] sm:$0xff] %v11100_v62 }
 0x4ae   : > { %v11076_v22 = vsel %vm492_vm0, %v3987_v52, %v3989_v51  ;;  %v4157_v52 = vrot.slane %v10965_v23, 2  ;;  %v4158_v51 = vrot.slane %v10973_v31, 2  ;;  %v4162_v31 = vrot.slane %v11011_v34, 2 }
 0x4af   : > { %12129 = vst [vmem:[#allocation83_spill] sm:$0xff] %v11076_v22  ;;  %v7544_v46 = vpack.i.bf16 %v11076_v22, %v11073_v0  ;;  %v11117_v22 = vld [vmem:[#allocation2 + $0x2b8] sm:$0xff] }
 0x4b0   : > { %7525 = vrot.lane.b32.xlu0 %v7524_v21, %s7717_s26  ;;  %v3994_v21 = vrot.slane %v11047_v37, 1  ;;  %v11115_v15 = vsel %vm669_vm1, %v4158_v51, %v4160_v27  ;;  %12136 = vst [vmem:[#allocation90_spill] sm:$0xff] %v11117_v22 }
 0x4b1   : > { %7530 = vrot.lane.b32.xlu1 %v7529_v10, %s7717_s26  ;;  %v11091_v10 = vld [vmem:[#allocation2 + $0x2a8] sm:$0xff]  ;;  %12135 = vst [vmem:[#allocation89_spill] sm:$0xff] %v11115_v15 }
 0x4b2   : > { %12131 = vst [vmem:[#allocation85_spill] sm:$0xff] %v11091_v10  ;;  %v11103_v39 = vsel %vm492_vm0, %v3992_v55, %v3994_v21  ;;  %v7554_v0 = vpack.i.bf16 %v11091_v10, %v11086_v40  ;;  %v11119_v55 = vld [vmem:[#allocation2 + $0x2c0] sm:$0xff]  ;;  %v3996_v21 = vrot.slane %v11086_v40, 1 }
 0x4b3   : > { %12133 = vst [vmem:[#allocation87_spill] sm:$0xff] %v11103_v39  ;;  %v7559_v58 = vpack.i.bf16 %v11103_v39, %v11100_v62  ;;  %12137 = vst [vmem:[#allocation91_spill] sm:$0xff] %v11119_v55  ;;  %v4163_v62 = vrot.slane %v11013_v16, 2  ;;  %v3879_v39 = vld [vmem:[#allocation2 + $0x2c8] sm:$0x3]  ;;  %v4001_v16 = vrot.slane %v11117_v22, 1 }
 0x4b4   : > { %7535 = vrot.lane.b32.xlu0 %v7534_v26, %s7717_s26  ;;  %v3876_v26 = vld [vmem:[#allocation2 + $0x2b0] sm:$0x3] }
 0x4b5   : > { %7540 = vrot.lane.b32.xlu1 %v7539_v42, %s7717_s26  ;;  %v11111_v42 = vsel %vm669_vm1, %v4157_v52, %v4158_v51  ;;  %v3999_v23 = vrot.slane %v3876_v26, 1  ;;  %v4165_v52 = vrot.slane %v11038_v30, 2  ;;  %v7569_v51 = vpack.i.bf16 %v11119_v55, %v11117_v22 }
 0x4b6   : > { %12134 = vst [vmem:[#allocation88_spill] sm:$0xff] %v11111_v42  ;;  %v7564_v27 = vpack.i.bf16 %v11115_v15, %v11111_v42  ;;  %v4002_v30 = vrot.slane %v11119_v55, 1  ;;  %v4004_v15 = vrot.slane %v3879_v39, 1 }
 0x4b7   : > { %v11144_v42 = vsel %vm669_vm1, %v4163_v62, %v4165_v52 }
 0x4b8   : > { %7545 = vrot.lane.b32.xlu0 %v7544_v46, %s7717_s26  ;;  %v3997_v46 = vrot.slane %v11091_v10, 1  ;;  %v11159_v52 = vsel %vm492_vm0, %v4002_v30, %v4004_v15 }
 0x4b9   : > { %7550 = vrot.lane.b32.xlu1 %v7549_v28, %s7717_s26  ;;  %12141 = vst [vmem:[#allocation95_spill] sm:$0xff] %v11159_v52 }
 0x4ba   : > { %v11133_v28 = vsel %vm492_vm0, %v3996_v21, %v3997_v46  ;;  %v11136_v34 = vsel %vm492_vm0, %v3997_v46, %v3999_v23  ;;  %v4167_v21 = vrot.slane %v11040_v19, 2  ;;  %v4168_v23 = vrot.slane %v11059_v29, 2 }
 0x4bb   : > { %12138 = vst [vmem:[#allocation92_spill] sm:$0xff] %v11133_v28  ;;  %12139 = vst [vmem:[#allocation93_spill] sm:$0xff] %v11136_v34  ;;  %v4170_v46 = vrot.slane %v11047_v37, 2  ;;  %v4177_v19 = vrot.slane %v11117_v22, 2  ;;  %v4178_v37 = vrot.slane %v11119_v55, 2 }
 0x4bc   : > { %7555 = vrot.lane.b32.xlu0 %v7554_v0, %s7717_s26  ;;  %v11141_v0 = vsel %vm669_vm1, %v4162_v31, %v4163_v62  ;;  %v11156_v62 = vsel %vm492_vm0, %v4001_v16, %v4002_v30  ;;  %v11169_v16 = vsel %vm669_vm1, %v4167_v21, %v4168_v23  ;;  %v4180_v30 = vrot.slane %v3879_v39, 2 }
 0x4bd   : > { %7560 = vrot.lane.b32.xlu1 %v7559_v58, %s7717_s26  ;;  %v7574_v58 = vpack.i.bf16 %v11136_v34, %v11133_v28  ;;  %v7579_v31 = vpack.i.bf16 %v11144_v42, %v11141_v0  ;;  %12140 = vst [vmem:[#allocation94_spill] sm:$0xff] %v11156_v62  ;;  %v4173_v28 = vrot.slane %v11091_v10, 2  ;;  %v4175_v34 = vrot.slane %v3876_v26, 2 }
 0x4be   : > { %v11172_v15 = vsel %vm669_vm1, %v4168_v23, %v4170_v46  ;;  %v7589_v26 = vpack.i.bf16 %v11159_v52, %v11156_v62  ;;  %v11186_v21 = vsel %vm669_vm1, %v4177_v19, %v4178_v37  ;;  %v11190_v39 = vsel %vm669_vm1, %v4178_v37, %v4180_v30 }
 0x4bf   : > { %v7594_v55 = vpack.i.bf16 %v11172_v15, %v11169_v16  ;;  %12144 = vst [vmem:[#allocation98_spill] sm:$0xff] %v11186_v21  ;;  %12145 = vst [vmem:[#allocation99_spill] sm:$0xff] %v11190_v39  ;;  %v4182_v23 = vrot.slane %v10695_v2, 2  ;;  %v4183_v46 = vrot.slane %v10697_v11, 2  ;;  %v4188_v19 = vrot.slane %v10687_v63, 2 }
 0x4c0   : > { %7565 = vrot.lane.b32.xlu0 %v7564_v27, %s7717_s26  ;;  %v4172_v27 = vrot.slane %v11086_v40, 2  ;;  %v7604_v37 = vpack.i.bf16 %v11190_v39, %v11186_v21  ;;  %v4192_v30 = vrot.slane %v10729_v45, 2  ;;  %v4193_v62 = vrot.slane %v10731_v53, 2 }
 0x4c1   : > { %7570 = vrot.lane.b32.xlu1 %v7569_v51, %s7717_s26  ;;  %v7584_v51 = vpack.i.bf16 %v10697_v11, %v10695_v2  ;;  %v4334_v40 = vrot.slane %v10826_v8, 1 }
 0x4c2   : > { %v11178_v22 = vsel %vm669_vm1, %v4172_v27, %v4173_v28  ;;  %v4190_v27 = vrot.slane %v10722_v5, 2  ;;  %v4333_v5 = vrot.slane %v10824_v57, 1  ;;  %v11231_v10 = vsel %vm669_vm1, %v4192_v30, %v4193_v62 }
 0x4c3   : > { %12142 = vst [vmem:[#allocation96_spill] sm:$0xff] %v11178_v22 }
 0x4c4   : > { %7575 = vrot.lane.b32.xlu0 %v7574_v58, %s7717_s26  ;;  %v11181_v58 = vsel %vm669_vm1, %v4173_v28, %v4175_v34  ;;  %v4187_v28 = vrot.slane %v10685_v3, 2  ;;  %v11245_v30 = vsel %vm492_vm0, %v4333_v5, %v4334_v40 }
 0x4c5   : > { %7580 = vrot.lane.b32.xlu1 %v7579_v31, %s7717_s26  ;;  %12143 = vst [vmem:[#allocation97_spill] sm:$0xff] %v11181_v58  ;;  %v4185_v31 = vrot.slane %v10703_v17, 2  ;;  %v7599_v34 = vpack.i.bf16 %v11181_v58, %v11178_v22  ;;  %v4195_v17 = vrot.slane %v10747_v47, 2  ;;  %12147 = vst [vmem:[#allocation101_spill] sm:$0xff] %v11245_v30 }
 0x4c6   : > { %v11219_v47 = vsel %vm669_vm1, %v4187_v28, %v4188_v19  ;;  %v4197_v28 = vrot.slane %v10776_v60, 2 }
 0x4c7   : > { %v11211_v52 = vsel %vm669_vm1, %v4183_v46, %v4185_v31  ;;  %v11228_v31 = vld [vmem:[#allocation2 + $0x358] sm:$0x3] }
 0x4c8   : > { %7585 = vrot.lane.b32.xlu0 %v7584_v51, %s7717_s26  ;;  %v3894_v51 = vld [vmem:[#allocation2 + $0x340] sm:$0x3]  ;;  %12146 = vst [vmem:[#allocation100_spill] sm:$0xff] %v11228_v31 }
 0x4c9   : > { %7590 = vrot.lane.b32.xlu1 %v7589_v26, %s7717_s26  ;;  %v11208_v26 = vsel %vm669_vm1, %v4182_v23, %v4183_v46  ;;  %v4336_v39 = vrot.slane %v3894_v51, 1  ;;  %v11224_v23 = vld [vmem:[#allocation2 + $0x348] sm:$0xff]  ;;  %v11226_v46 = vld [vmem:[#allocation2 + $0x350] sm:$0xff]  ;;  %v4373_v29 = vrot.slane %v3894_v51, 2 }
 0x4ca   : > { %v7609_v21 = vpack.i.bf16 %v11211_v52, %v11208_v26  ;;  %v4475_v60 = vrot.slane %v11226_v46, 1 }
 0x4cc   : > { %7595 = vrot.lane.b32.xlu0 %v7594_v55, %s7717_s26  ;;  %v11222_v55 = vsel %vm669_vm1, %v4188_v19, %v4190_v27  ;;  %v4198_v19 = vrot.slane %v10778_v4, 2  ;;  %v4200_v27 = vrot.slane %v10789_v32, 2  ;;  %v4370_v4 = vrot.slane %v10824_v57, 2 }
 0x4cd   : > { %7600 = vrot.lane.b32.xlu1 %v7599_v34, %s7717_s26  ;;  %v11234_v34 = vsel %vm669_vm1, %v4193_v62, %v4195_v17  ;;  %v7614_v22 = vpack.i.bf16 %v11222_v55, %v11219_v47  ;;  %v11249_v62 = vsel %vm492_vm0, %v4334_v40, %v4336_v39  ;;  %v4474_v17 = vrot.slane %v11224_v23, 1 }
 0x4ce   : > { %v7619_v58 = vpack.i.bf16 %v11234_v34, %v11231_v10  ;;  %12148 = vst [vmem:[#allocation102_spill] sm:$0xff] %v11249_v62  ;;  %v4371_v32 = vrot.slane %v10826_v8, 2  ;;  %v11258_v5 = vsel %vm669_vm1, %v4197_v28, %v4198_v19  ;;  %v7624_v40 = vpack.i.bf16 %v11249_v62, %v11245_v30 }
 0x4cf   : > { %v4476_v57 = vsel %vm492_vm0, %v4474_v17, %v4475_v60  ;;  %v4125_v17 = vrot.slane %v10713_v13, 2 }
 0x4d0   : > { %7605 = vrot.lane.b32.xlu0 %v7604_v37, %s7717_s26  ;;  %v4477_v37 = vrot.slane %v11228_v31, 1  ;;  %v11274_v51 = vsel %vm669_vm1, %v4371_v32, %v4373_v29 }
 0x4d1   : > { %7610 = vrot.lane.b32.xlu1 %v7609_v21, %s7717_s26  ;;  %v11261_v21 = vsel %vm669_vm1, %v4198_v19, %v4200_v27  ;;  %12149 = vst [vmem:[#allocation103_spill] sm:$0xff] %v11274_v51  ;;  %v4122_v19 = vrot.slane %v10707_v14, 2  ;;  %v4123_v27 = vrot.slane %v10709_v59, 2 }
 0x4d2   : > { %v7629_v39 = vpack.i.bf16 %v11261_v21, %v11258_v5  ;;  %v4478_v8 = vsel %vm492_vm0, %v4475_v60, %v4477_v37 }
 0x4d3   : > { %v7634_v28 = vpack.i.bf16 %v4478_v8, %v4476_v57 }
 0x4d4   : > { %7615 = vrot.lane.b32.xlu0 %v7614_v22, %s7717_s26  ;;  %v11271_v22 = vsel %vm669_vm1, %v4370_v4, %v4371_v32  ;;  %v4124_v32 = vsel %vm669_vm1, %v4122_v19, %v4123_v27 }
 0x4d5   : > { %7620 = vrot.lane.b32.xlu1 %v7619_v58, %s7717_s26  ;;  %v7639_v58 = vpack.i.bf16 %v11274_v51, %v11271_v22 }
 0x4d8   : > { %7625 = vrot.lane.b32.xlu0 %v7624_v40, %s7717_s26  ;;  %v4126_v40 = vsel %vm669_vm1, %v4123_v27, %v4125_v17 }
 0x4d9   : > { %7630 = vrot.lane.b32.xlu1 %v7629_v39, %s7717_s26 }
 0x4dc   : > { %7635 = vrot.lane.b32.xlu0 %v7634_v28, %s7717_s26 }
 0x4dd   : > { %7640 = vrot.lane.b32.xlu1 %v7639_v58, %s7717_s26 }
 0x4ed   : > { %v7396_v29 = vpop.permute.xlu0 %7395 }
 0x4ee   : > { %v7398_v60 = vunpack.i.h.bf16 %v7396_v29  ;;  %v7397_v37 = vunpack.i.l.bf16 %v7396_v29  ;;  %v7406_v4 = vpop.permute.xlu1 %7405 }
 0x4ef   : > { %v7408_v39 = vunpack.i.h.bf16 %v7406_v4  ;;  %v7407_v57 = vunpack.i.l.bf16 %v7406_v4  ;;  %v7661_v4 = vld [vmem:[%s11769_s6 + $0x80] sm:$0xff]  }
 0x4f0   : > { %v4556_v8 = vsel %vm280_vm12, %v11208_v26, %v7397_v37  ;;  %v4557_v28 = vsel %vm280_vm12, %v11211_v52, %v7398_v60 }
 0x4f1   : > { %v4650_v58 = vpack.c.bf16 %v4557_v28, %v4556_v8  ;;  %v4532_v30 = vsel %vm280_vm12, %v4124_v32, %v7407_v57  ;;  %v4533_v13 = vsel %vm280_vm12, %v4126_v40, %v7408_v39  ;;  %v7676_v57 = vld [vmem:[%s11769_s6 + $0x108] sm:$0xff]  }
 0x4f2   : > { %v7401_v62 = vpop.permute.xlu0 %7400  ;;  %v4601_v29 = vpack.c.bf16 %v4533_v13, %v4532_v30 }
 0x4f3   : > { %v7403_v31 = vunpack.i.h.bf16 %v7401_v62  ;;  %v7402_v51 = vunpack.i.l.bf16 %v7401_v62  ;;  %v7416_v19 = vpop.permute.xlu1 %7415  ;;  %5130 = vmatprep.mubr.bf16.mxu1 %v4650_v58  ;;  %v7664_v58 = vld [vmem:[%s11769_s6 + $0x88] sm:$0xff]  }
 0x4f4   : > { %v7418_v27 = vunpack.i.h.bf16 %v7416_v19  ;;  %v7417_v17 = vunpack.i.l.bf16 %v7416_v19  ;;  %5034 = vmatprep.mubr.bf16.mxu0 %v4601_v29 }
 0x4f5   : > { %v4525_v37 = vsel %vm280_vm12, %v10697_v11, %v7403_v31  ;;  %v4524_v60 = vsel %vm280_vm12, %v10695_v2, %v7402_v51  ;;  %v7662_v11 = vld [vmem:[%s11769_s6 + $0xc8] sm:$0xff]  }
 0x4f6   : > { %v4501_v30 = vsel %vm280_vm12, %v10709_v59, %v7418_v27  ;;  %v4500_v62 = vsel %vm280_vm12, %v10707_v14, %v7417_v17  ;;  %v7411_v32 = vpop.permute.xlu0 %7410  ;;  %v11304_v40 = vpack.c.bf16 %v4525_v37, %v4524_v60  ;;  %v7665_v17 = vld [vmem:[%s11769_s6 + $0xd0] sm:$0xff]  }
 0x4f7   : > { %v7413_v31 = vunpack.i.h.bf16 %v7411_v32  ;;  %v7412_v39 = vunpack.i.l.bf16 %v7411_v32  ;;  %v7421_v2 = vpop.permute.xlu1 %7420  ;;  %v4600_v51 = vpack.c.bf16 %v4501_v30, %v4500_v62 }
 0x4f8   : > { %v7423_v8 = vunpack.i.h.bf16 %v7421_v2  ;;  %v7422_v59 = vunpack.i.l.bf16 %v7421_v2  ;;  %5131 = vmatmul.mubr.bf16.vlgmr.msra.gmra.mrb[0].mxu1 %v11304_v40 }
 0x4f9   : > { %v4559_v14 = vsel %vm280_vm12, %v11222_v55, %v7413_v31  ;;  %v4558_v28 = vsel %vm280_vm12, %v11219_v47, %v7412_v39  ;;  %6134 = vmatpush3.bf16.msra.mxu1 %v7661_v4  ;;  %5035 = vmatmul.mubr.bf16.vlgmr.msra.gmra.mrb[0].mxu0 %v4600_v51  ;;  %v7680_v39 = vld [vmem:[#allocation2 + $0x1c8] sm:$0xff] }
 0x4fa   : > { %v4527_v13 = vsel %vm280_vm12, %v10687_v63, %v7423_v8  ;;  %v4526_v29 = vsel %vm280_vm12, %v10685_v3, %v7422_v59  ;;  %v7426_v19 = vpop.permute.xlu0 %7425  ;;  %6135 = vmatprep.subr.bf16.mxu1 %v7662_v11  ;;  %6342 = vmatpush3.bf16.msra.mxu0 %v11025_v35  ;;  %v4654_v27 = vpack.c.bf16 %v4559_v14, %v4558_v28  ;;  %v7678_v63 = vld [vmem:[%s11769_s6 + $0x110] sm:$0xff]  }
 0x4fb   : > { %v7428_v37 = vunpack.i.h.bf16 %v7426_v19  ;;  %v7427_v60 = vunpack.i.l.bf16 %v7426_v19  ;;  %v7431_v4 = vpop.permute.xlu1 %7430  ;;  %6343 = vmatprep.subr.bf16.mxu0 %v7676_v57  ;;  %v11331_v3 = vpack.c.bf16 %v4527_v13, %v4526_v29  ;;  %v7666_v11 = vld [vmem:[%s11769_s6 + $0x90] sm:$0xff]   ;;  %v7668_v19 = vld [vmem:[%s11769_s6 + $0x98] sm:$0xff]  }
 0x4fc   : > { %v7433_v30 = vunpack.i.h.bf16 %v7431_v4  ;;  %v7432_v62 = vunpack.i.l.bf16 %v7431_v4  ;;  %5138 = vmatprep.mubr.bf16.mxu1 %v4654_v27 }
 0x4fd   : > { %v4534_v35 = vsel %vm280_vm12, %v10889_v20, %v7427_v60  ;;  %v4535_v32 = vsel %vm280_vm12, %v10892_v43, %v7428_v37  ;;  %6136 = vmatpush3.bf16.msra.mxu1 %v7664_v58  ;;  %v7667_v20 = vld [vmem:[%s11769_s6 + $0xd8] sm:$0xff]   ;;  %v7669_v60 = vld [vmem:[%s11769_s6 + $0xe0] sm:$0xff]  }
 0x4fe   : > { %v4503_v31 = vsel %vm280_vm12, %v10693_v36, %v7433_v30  ;;  %v4502_v2 = vsel %vm280_vm12, %v7680_v39, %v7432_v62  ;;  %v7436_v51 = vpop.permute.xlu0 %7435  ;;  %6137 = vmatprep.subr.bf16.mxu1 %v7665_v17  ;;  %v4606_v8 = vpack.c.bf16 %v4535_v32, %v4534_v35  ;;  %6344 = vmatpush3.bf16.msra.mxu0 %v7676_v57  ;;  %v7679_v36 = vld [vmem:[%s11769_s6 + $0x118] sm:$0xff]  }
 0x4ff   : > { %v7438_v43 = vunpack.i.h.bf16 %v7436_v51  ;;  %v7437_v59 = vunpack.i.l.bf16 %v7436_v51  ;;  %v7441_v14 = vpop.permute.xlu1 %7440  ;;  %v4605_v28 = vpack.c.bf16 %v4503_v31, %v4502_v2  ;;  %6345 = vmatprep.subr.bf16.mxu0 %v7678_v63  ;;  %v7681_v2 = vld [vmem:[#allocation2 + $0x1e0] sm:$0xff] }
 0x500   : > { %v7443_v58 = vunpack.i.h.bf16 %v7441_v14  ;;  %v7442_v13 = vunpack.i.l.bf16 %v7441_v14  ;;  %5042 = vmatprep.mubr.bf16.mxu0 %v4606_v8  ;;  %5139 = vmatmul.mubr.bf16.gmra.mrb[4].mxu1 %v11331_v3 }
 0x501   : > { %v4561_v29 = vsel %vm280_vm12, %v11234_v34, %v7438_v43  ;;  %v4560_v57 = vsel %vm280_vm12, %v11231_v10, %v7437_v59  ;;  %6138 = vmatpush3.bf16.msra.mxu1 %v7666_v11  ;;  %5043 = vmatmul.mubr.bf16.gmra.mrb[4].mxu0 %v4605_v28  ;;  %v7671_v43 = vld [vmem:[%s11769_s6 + $0xe8] sm:$0xff]  }
 0x502   : > { %v4529_v27 = vsel %vm280_vm12, %v10731_v53, %v7443_v58  ;;  %v4528_v17 = vsel %vm280_vm12, %v10729_v45, %v7442_v13  ;;  %v7446_v37 = vpop.permute.xlu0 %7445  ;;  %6139 = vmatprep.subr.bf16.mxu1 %v7667_v20  ;;  %v4658_v4 = vpack.c.bf16 %v4561_v29, %v4560_v57  ;;  %6346 = vmatpush3.bf16.msra.mxu0 %v7678_v63  ;;  %v7670_v63 = vld [vmem:[%s11769_s6 + $0xa0] sm:$0xff]  }
 0x503   : > { %v7448_v30 = vunpack.i.h.bf16 %v7446_v37  ;;  %v7447_v62 = vunpack.i.l.bf16 %v7446_v37  ;;  %v7451_v35 = vpop.permute.xlu1 %7450  ;;  %6347 = vmatprep.subr.bf16.mxu0 %v7679_v36  ;;  %v11364_v31 = vpack.c.bf16 %v4529_v27, %v4528_v17  ;;  %v7683_v17 = vld [vmem:[#allocation2 + $0x318] sm:$0xff] }
 0x504   : > { %v7453_v32 = vunpack.i.h.bf16 %v7451_v35  ;;  %v7452_v11 = vunpack.i.l.bf16 %v7451_v35  ;;  %5146 = vmatprep.mubr.bf16.mxu1 %v4658_v4  ;;  %v7673_v4 = vld [vmem:[%s11769_s6 + $0xf0] sm:$0xff]  }
 0x505   : > { %v4537_v45 = vsel %vm280_vm12, %v10922_v6, %v7448_v30  ;;  %v4536_v53 = vsel %vm280_vm12, %v10919_v33, %v7447_v62  ;;  %6140 = vmatpush3.bf16.msra.mxu1 %v7668_v19  ;;  %v7682_v19 = vld [vmem:[#allocation2 + $0x320] sm:$0xff] }
 0x506   : > { %v4505_v39 = vsel %vm280_vm12, %v10757_v50, %v7453_v32  ;;  %v4504_v51 = vsel %vm280_vm12, %v7681_v2, %v7452_v11  ;;  %v7456_v8 = vpop.permute.xlu0 %7455  ;;  %6141 = vmatprep.subr.bf16.mxu1 %v7669_v60  ;;  %v4610_v20 = vpack.c.bf16 %v4537_v45, %v4536_v53  ;;  %6348 = vmatpush3.bf16.msra.mxu0 %v7679_v36  ;;  %v7672_v36 = vld [vmem:[%s11769_s6 + $0xa8] sm:$0xff]   ;;  %v7674_v2 = vld [vmem:[%s11769_s6 + $0xb0] sm:$0xff]  }
 0x507   : > { %v7458_v59 = vunpack.i.h.bf16 %v7456_v8  ;;  %v7457_v14 = vunpack.i.l.bf16 %v7456_v8  ;;  %v7461_v28 = vpop.permute.xlu1 %7460  ;;  %v4603_v58 = vpack.c.bf16 %v4505_v39, %v4504_v51  ;;  %v7684_v51 = vld [vmem:[#allocation2 + $0x200] sm:$0xff] }
 0x508   : > { %v7463_v13 = vunpack.i.h.bf16 %v7461_v28  ;;  %v7462_v29 = vunpack.i.l.bf16 %v7461_v28  ;;  %5050 = vmatprep.mubr.bf16.mxu0 %v4610_v20  ;;  %5147 = vmatmul.mubr.bf16.gmra.mrb[8].mxu1 %v11364_v31  ;;  %v7685_v20 = vld [vmem:[#allocation2 + $0x1f8] sm:$0xff] }
 0x509   : > { %v4563_v50 = vsel %vm280_vm12, %v11261_v21, %v7458_v59  ;;  %v4562_v57 = vsel %vm280_vm12, %v11258_v5, %v7457_v14  ;;  %6142 = vmatpush3.bf16.msra.mxu1 %v7670_v63  ;;  %5051 = vmatmul.mubr.bf16.gmra.mrb[8].mxu0 %v4603_v58  ;;  %v7675_v28 = vld [vmem:[%s11769_s6 + $0xf8] sm:$0xff]  }
 0x50a   : > { %v4531_v27 = vsel %vm280_vm12, %v7682_v19, %v7463_v13  ;;  %v4530_v37 = vsel %vm280_vm12, %v7683_v17, %v7462_v29  ;;  %v7466_v60 = vpop.permute.xlu0 %7465  ;;  %6143 = vmatprep.subr.bf16.mxu1 %v7671_v43  ;;  %v4662_v30 = vpack.c.bf16 %v4563_v50, %v4562_v57 }
 0x50b   : > { %v7468_v62 = vunpack.i.h.bf16 %v7466_v60  ;;  %v7467_v35 = vunpack.i.l.bf16 %v7466_v60  ;;  %v7471_v32 = vpop.permute.xlu1 %7470  ;;  %v11392_v53 = vpack.c.bf16 %v4531_v27, %v4530_v37  ;;  %v7677_v37 = vld [vmem:[%s11769_s6 + $0xb8] sm:$0xff]  }
 0x50c   : > { %v7473_v11 = vunpack.i.h.bf16 %v7471_v32  ;;  %v7472_v45 = vunpack.i.l.bf16 %v7471_v32  ;;  %5154 = vmatprep.mubr.bf16.mxu1 %v4662_v30 }
 0x50d   : > { %v4539_v63 = vsel %vm280_vm12, %v10971_v12, %v7468_v62  ;;  %v4538_v39 = vsel %vm280_vm12, %v10963_v25, %v7467_v35  ;;  %6144 = vmatpush3.bf16.msra.mxu1 %v7672_v36 }
 0x50e   : > { %v4507_v8 = vsel %vm280_vm12, %v7684_v51, %v7473_v11  ;;  %v4506_v43 = vsel %vm280_vm12, %v7685_v20, %v7472_v45  ;;  %6145 = vmatprep.subr.bf16.mxu1 %v7673_v4  ;;  %v7476_v59 = vpop.permute.xlu0 %7475  ;;  %v4614_v14 = vpack.c.bf16 %v4539_v63, %v4538_v39  ;;  %v7686_v63 = vld [vmem:[#allocation2 + $0x210] sm:$0xff] }
 0x50f   : > { %v7478_v13 = vunpack.i.h.bf16 %v7476_v59  ;;  %v7477_v29 = vunpack.i.l.bf16 %v7476_v59  ;;  %v4608_v50 = vpack.c.bf16 %v4507_v8, %v4506_v43  ;;  %v7481_v57 = vpop.permute.xlu1 %7480 }
 0x510   : > { %5058 = vmatprep.mubr.bf16.mxu0 %v4614_v14  ;;  %5155 = vmatmul.mubr.bf16.gmra.mrb[12].mxu1 %v11392_v53  ;;  %v7483_v36 = vunpack.i.h.bf16 %v7481_v57  ;;  %v7482_v19 = vunpack.i.l.bf16 %v7481_v57 }
 0x511   : > { %v4565_v27 = vsel %vm280_vm12, %v10763_v1, %v7478_v13  ;;  %v4564_v17 = vsel %vm280_vm12, %v10760_v44, %v7477_v29  ;;  %6146 = vmatpush3.bf16.msra.mxu1 %v7674_v2  ;;  %5059 = vmatmul.mubr.bf16.gmra.mrb[12].mxu0 %v4608_v50 }
 0x512   : > { %5195 = vmatprep.mubr.bf16.mxu1 %v4603_v58  ;;  %v4541_v60 = vsel %vm280_vm12, %v11003_v9, %v7483_v36  ;;  %v4540_v4 = vsel %vm280_vm12, %v11000_v41, %v7482_v19  ;;  %6147 = vmatprep.subr.bf16.mxu1 %v7675_v28  ;;  %v7486_v30 = vpop.permute.xlu0 %7485  ;;  %v4602_v44 = vpack.c.bf16 %v4565_v27, %v4564_v17  ;;  %v7687_v36 = vld [vmem:[#allocation2 + $0x228] sm:$0xff] }
 0x513   : > { %v7488_v62 = vunpack.i.h.bf16 %v7486_v30  ;;  %v7487_v1 = vunpack.i.l.bf16 %v7486_v30  ;;  %v7491_v35 = vpop.permute.xlu1 %7490  ;;  %v4618_v32 = vpack.c.bf16 %v4541_v60, %v4540_v4 }
 0x514   : > { %v7493_v11 = vunpack.i.h.bf16 %v7491_v35  ;;  %v7492_v39 = vunpack.i.l.bf16 %v7491_v35 }
 0x515   : > { %v4509_v45 = vsel %vm280_vm12, %v10853_v56, %v7488_v62  ;;  %v4508_v58 = vsel %vm280_vm12, %v7686_v63, %v7487_v1  ;;  %6148 = vmatpush3.bf16.msra.mxu1 %v7677_v37  ;;  %5066 = vmatprep.mubr.bf16.mxu0 %v4618_v32  ;;  %v12150_v63 = vld [vmem:[#allocation15_spill] sm:$0xff] }
 0x516   : > { %v4612_v2 = vpack.c.bf16 %v4509_v45, %v4508_v58  ;;  %v7496_v51 = vpop.permute.xlu0 %7495  ;;  %v4567_v59 = vsel %vm280_vm12, %v10811_v24, %v7493_v11  ;;  %v4566_v56 = vsel %vm280_vm12, %v10808_v48, %v7492_v39  ;;  %v12151_v39 = vld [vmem:[#allocation21_spill] sm:$0xff] }
 0x517   : > { %v7498_v8 = vunpack.i.h.bf16 %v7496_v51  ;;  %v7497_v20 = vunpack.i.l.bf16 %v7496_v51  ;;  %v7501_v43 = vpop.permute.xlu1 %7500  ;;  %v4607_v37 = vpack.c.bf16 %v4567_v59, %v4566_v56 }
 0x518   : > { %5196 = vmatmul.mubr.bf16.vlgmr.msra.gmra.mrb[16].mxu1 %v4602_v44  ;;  %v7503_v14 = vunpack.i.h.bf16 %v7501_v43  ;;  %v7502_v28 = vunpack.i.l.bf16 %v7501_v43 }
 0x519   : > { %5067 = vmatmul.mubr.bf16.gmra.mrb[16].mxu0 %v4612_v2  ;;  %5203 = vmatprep.mubr.bf16.mxu1 %v4608_v50  ;;  %v4543_v13 = vsel %vm280_vm12, %v11057_v18, %v7498_v8  ;;  %v4542_v29 = vsel %vm280_vm12, %v11054_v38, %v7497_v20  ;;  %v12152_v8 = vld [vmem:[#allocation20_spill] sm:$0xff] }
 0x51a   : > { %v4511_v57 = vsel %vm280_vm12, %v10880_v61, %v7503_v14  ;;  %v4510_v24 = vsel %vm280_vm12, %v7687_v36, %v7502_v28  ;;  %v7506_v19 = vpop.permute.xlu0 %7505  ;;  %v4622_v27 = vpack.c.bf16 %v4543_v13, %v4542_v29 }
 0x51b   : > { %v7511_v17 = vpop.permute.xlu1 %7510  ;;  %v7508_v50 = vunpack.i.h.bf16 %v7506_v19  ;;  %v7507_v4 = vunpack.i.l.bf16 %v7506_v19  ;;  %v4616_v30 = vpack.c.bf16 %v4511_v57, %v4510_v24  ;;  %v12153_v57 = vld [vmem:[#allocation89_spill] sm:$0xff]  ;;  %v12154_v24 = vld [vmem:[#allocation88_spill] sm:$0xff] }
 0x51c   : > { %5074 = vmatprep.mubr.bf16.mxu0 %v4622_v27  ;;  %v7513_v48 = vunpack.i.h.bf16 %v7511_v17  ;;  %v7512_v60 = vunpack.i.l.bf16 %v7511_v17 }
 0x51d   : > { %v4569_v45 = vsel %vm280_vm12, %v10865_v49, %v7508_v50  ;;  %v4568_v58 = vsel %vm280_vm12, %v12150_v63, %v7507_v4  ;;  %v12155_v4 = vld [vmem:[#allocation3_spill] sm:$0xff] }
 0x51e   : > { %v4545_v62 = vsel %vm280_vm12, %v11084_v54, %v7513_v48  ;;  %v4544_v1 = vsel %vm280_vm12, %v11081_v7, %v7512_v60  ;;  %v7516_v61 = vpop.permute.xlu0 %7515  ;;  %v4611_v13 = vpack.c.bf16 %v4569_v45, %v4568_v58 }
 0x51f   : > { %v7518_v35 = vunpack.i.h.bf16 %v7516_v61  ;;  %v7517_v32 = vunpack.i.l.bf16 %v7516_v61  ;;  %v7521_v44 = vpop.permute.xlu1 %7520  ;;  %v4626_v11 = vpack.c.bf16 %v4545_v62, %v4544_v1  ;;  %v12156_v1 = vld [vmem:[#allocation5_spill] sm:$0xff] }
 0x520   : > { %5204 = vmatmul.mubr.bf16.gmra.mrb[20].mxu1 %v4607_v37  ;;  %v7523_v56 = vunpack.i.h.bf16 %v7521_v44  ;;  %v7522_v29 = vunpack.i.l.bf16 %v7521_v44  ;;  %v12158_v44 = vld [vmem:[#allocation17_spill] sm:$0xff] }
 0x521   : > { %5075 = vmatmul.mubr.bf16.gmra.mrb[20].mxu0 %v4616_v30  ;;  %5211 = vmatprep.mubr.bf16.mxu1 %v4612_v2  ;;  %v4513_v51 = vsel %vm280_vm12, %v12151_v39, %v7518_v35  ;;  %v4512_v20 = vsel %vm280_vm12, %v12152_v8, %v7517_v32  ;;  %v12157_v35 = vld [vmem:[#allocation8_spill] sm:$0xff] }
 0x522   : > { %5082 = vmatprep.mubr.bf16.mxu0 %v4626_v11  ;;  %v7526_v43 = vpop.permute.xlu0 %7525  ;;  %v4620_v49 = vpack.c.bf16 %v4513_v51, %v4512_v20  ;;  %v4571_v62 = vsel %vm280_vm12, %v12155_v4, %v7523_v56  ;;  %v4570_v61 = vsel %vm280_vm12, %v12156_v1, %v7522_v29 }
 0x523   : > { %v7528_v59 = vunpack.i.h.bf16 %v7526_v43  ;;  %v7527_v14 = vunpack.i.l.bf16 %v7526_v43  ;;  %v7531_v28 = vpop.permute.xlu1 %7530  ;;  %v4615_v51 = vpack.c.bf16 %v4571_v62, %v4570_v61 }
 0x524   : > { %v7533_v19 = vunpack.i.h.bf16 %v7531_v28  ;;  %v7532_v27 = vunpack.i.l.bf16 %v7531_v28 }
 0x525   : > { %v4547_v36 = vsel %vm280_vm12, %v12153_v57, %v7528_v59  ;;  %v4546_v2 = vsel %vm280_vm12, %v12154_v24, %v7527_v14 }
 0x526   : > { %v7536_v17 = vpop.permute.xlu0 %7535  ;;  %v4630_v37 = vpack.c.bf16 %v4547_v36, %v4546_v2  ;;  %v4515_v32 = vsel %vm280_vm12, %v12157_v35, %v7533_v19  ;;  %v4514_v11 = vsel %vm280_vm12, %v12158_v44, %v7532_v27  ;;  %v12159_v36 = vld [vmem:[#allocation9_spill] sm:$0xff]  ;;  %v12160_v19 = vld [vmem:[#allocation6_spill] sm:$0xff] }
 0x527   : > { %v7541_v48 = vpop.permute.xlu1 %7540  ;;  %v7538_v8 = vunpack.i.h.bf16 %v7536_v17  ;;  %v7537_v20 = vunpack.i.l.bf16 %v7536_v17  ;;  %v4624_v43 = vpack.c.bf16 %v4515_v32, %v4514_v11 }
 0x528   : > { %5212 = vmatmul.mubr.bf16.gmra.mrb[24].mxu1 %v4611_v13  ;;  %v7543_v60 = vunpack.i.h.bf16 %v7541_v48  ;;  %v7542_v50 = vunpack.i.l.bf16 %v7541_v48  ;;  %v12162_v48 = vld [vmem:[#allocation76_spill] sm:$0xff] }
 0x529   : > { %5083 = vmatmul.mubr.bf16.gmra.mrb[24].mxu0 %v4620_v49  ;;  %5219 = vmatprep.mubr.bf16.mxu1 %v4616_v30  ;;  %v4573_v2 = vsel %vm280_vm12, %v12159_v36, %v7538_v8  ;;  %v4572_v27 = vsel %vm280_vm12, %v12160_v19, %v7537_v20  ;;  %v12163_v8 = vld [vmem:[#allocation4_spill] sm:$0xff]  ;;  %v12168_v36 = vld [vmem:[#allocation96_spill] sm:$0xff] }
 0x52a   : > { %5090 = vmatprep.mubr.bf16.mxu0 %v4630_v37  ;;  %v7546_v45 = vpop.permute.xlu0 %7545  ;;  %v4549_v63 = vsel %vm280_vm12, %v11144_v42, %v7543_v60  ;;  %v4548_v58 = vsel %vm280_vm12, %v11141_v0, %v7542_v50  ;;  %v12161_v37 = vld [vmem:[#allocation77_spill] sm:$0xff]  ;;  %v4619_v1 = vpack.c.bf16 %v4573_v2, %v4572_v27 }
 0x52b   : > { %v7551_v39 = vpop.permute.xlu1 %7550  ;;  %v7548_v30 = vunpack.i.h.bf16 %v7546_v45  ;;  %v7547_v59 = vunpack.i.l.bf16 %v7546_v45  ;;  %v4634_v14 = vpack.c.bf16 %v4549_v63, %v4548_v58 }
 0x52c   : > { %v7553_v35 = vunpack.i.h.bf16 %v7551_v39  ;;  %v7552_v32 = vunpack.i.l.bf16 %v7551_v39  ;;  %v12166_v39 = vld [vmem:[#allocation80_spill] sm:$0xff] }
 0x52d   : > { %v4517_v17 = vsel %vm280_vm12, %v12161_v37, %v7548_v30  ;;  %v4516_v60 = vsel %vm280_vm12, %v12162_v48, %v7547_v59  ;;  %v12164_v30 = vld [vmem:[#allocation7_spill] sm:$0xff] }
 0x52e   : > { %v7556_v28 = vpop.permute.xlu0 %7555  ;;  %v4628_v44 = vpack.c.bf16 %v4517_v17, %v4516_v60  ;;  %v4575_v20 = vsel %vm280_vm12, %v12163_v8, %v7553_v35  ;;  %v4574_v59 = vsel %vm280_vm12, %v12164_v30, %v7552_v32  ;;  %v12169_v35 = vld [vmem:[#allocation79_spill] sm:$0xff] }
 0x52f   : > { %v7558_v56 = vunpack.i.h.bf16 %v7556_v28  ;;  %v7557_v13 = vunpack.i.l.bf16 %v7556_v28  ;;  %v7561_v29 = vpop.permute.xlu1 %7560  ;;  %v4623_v19 = vpack.c.bf16 %v4575_v20, %v4574_v59  ;;  %v12174_v20 = vld [vmem:[#allocation98_spill] sm:$0xff] }
 0x530   : > { %5220 = vmatmul.mubr.bf16.gmra.mrb[28].mxu1 %v4615_v51  ;;  %v7562_v11 = vunpack.i.l.bf16 %v7561_v29 }
 0x531   : > { %5091 = vmatmul.mubr.bf16.gmra.mrb[28].mxu0 %v4624_v43  ;;  %5227 = vmatprep.mubr.bf16.mxu1 %v4620_v49  ;;  %v4551_v4 = vsel %vm280_vm12, %v11172_v15, %v7558_v56  ;;  %v4550_v62 = vsel %vm280_vm12, %v11169_v16, %v7557_v13  ;;  %v7563_v49 = vunpack.i.h.bf16 %v7561_v29  ;;  %v12167_v13 = vld [vmem:[#allocation97_spill] sm:$0xff] }
 0x532   : > { %5098 = vmatprep.mubr.bf16.mxu0 %v4634_v14  ;;  %v7566_v50 = vpop.permute.xlu0 %7565  ;;  %v4638_v45 = vpack.c.bf16 %v4551_v4, %v4550_v62  ;;  %v12165_v14 = vld [vmem:[#allocation81_spill] sm:$0xff]  ;;  %v4518_v56 = vsel %vm280_vm12, %v12166_v39, %v7562_v11 }
 0x533   : > { %v7571_v61 = vpop.permute.xlu1 %7570  ;;  %v4519_v28 = vsel %vm280_vm12, %v12165_v14, %v7563_v49  ;;  %v7568_v37 = vunpack.i.h.bf16 %v7566_v50  ;;  %v7567_v17 = vunpack.i.l.bf16 %v7566_v50  ;;  %v12170_v49 = vld [vmem:[#allocation78_spill] sm:$0xff]  ;;  %v12172_v50 = vld [vmem:[#allocation84_spill] sm:$0xff] }
 0x534   : > { %v7573_v63 = vunpack.i.h.bf16 %v7571_v61  ;;  %v7572_v58 = vunpack.i.l.bf16 %v7571_v61  ;;  %v4632_v48 = vpack.c.bf16 %v4519_v28, %v4518_v56 }
 0x535   : > { %v4577_v32 = vsel %vm280_vm12, %v12169_v35, %v7568_v37  ;;  %v4576_v11 = vsel %vm280_vm12, %v12170_v49, %v7567_v17  ;;  %v12176_v37 = vld [vmem:[#allocation82_spill] sm:$0xff] }
 0x536   : > { %v7576_v51 = vpop.permute.xlu0 %7575  ;;  %v4553_v29 = vsel %vm280_vm12, %v12167_v13, %v7573_v63  ;;  %v4552_v2 = vsel %vm280_vm12, %v12168_v36, %v7572_v58  ;;  %v4627_v14 = vpack.c.bf16 %v4577_v32, %v4576_v11  ;;  %v4604_v11 = vpack.c.bf16 %v10922_v6, %v10919_v33  ;;  %v12181_v6 = vld [vmem:[#allocation93_spill] sm:$0xff] }
 0x537   : > { %v7581_v60 = vpop.permute.xlu1 %7580  ;;  %v7577_v4 = vunpack.i.l.bf16 %v7576_v51  ;;  %v4642_v62 = vpack.c.bf16 %v4553_v29, %v4552_v2  ;;  %v4613_v33 = vpack.c.bf16 %v11003_v9, %v11000_v41  ;;  %v4621_v41 = vpack.c.bf16 %v11084_v54, %v11081_v7  ;;  %v12183_v9 = vld [vmem:[#allocation95_spill] sm:$0xff] }
 0x538   : > { %5228 = vmatmul.mubr.bf16.gmra.mrb[32].mxu1 %v4619_v1  ;;  %v7583_v28 = vunpack.i.h.bf16 %v7581_v60  ;;  %v7582_v39 = vunpack.i.l.bf16 %v7581_v60  ;;  %v4629_v7 = vpack.c.bf16 %v11144_v42, %v11141_v0  ;;  %v4637_v0 = vpack.c.bf16 %v12167_v13, %v12168_v36 }
 0x539   : > { %5099 = vmatmul.mubr.bf16.gmra.mrb[32].mxu0 %v4628_v44  ;;  %5235 = vmatprep.mubr.bf16.mxu1 %v4624_v43  ;;  %v7578_v43 = vunpack.i.h.bf16 %v7576_v51  ;;  %v4520_v58 = vsel %vm280_vm12, %v12172_v50, %v7577_v4  ;;  %v12173_v51 = vld [vmem:[#allocation99_spill] sm:$0xff] }
 0x53a   : > { %5106 = vmatprep.mubr.bf16.mxu0 %v4638_v45  ;;  %v7586_v27 = vpop.permute.xlu0 %7585  ;;  %v12171_v45 = vld [vmem:[#allocation85_spill] sm:$0xff]  ;;  %v4578_v17 = vsel %vm280_vm12, %v12176_v37, %v7582_v39  ;;  %v12182_v39 = vld [vmem:[#allocation92_spill] sm:$0xff] }
 0x53b   : > { %v7588_v1 = vunpack.i.h.bf16 %v7586_v27  ;;  %v7587_v61 = vunpack.i.l.bf16 %v7586_v27  ;;  %v4521_v63 = vsel %vm280_vm12, %v12171_v45, %v7578_v43  ;;  %v7591_v59 = vpop.permute.xlu1 %7590  ;;  %v12177_v43 = vld [vmem:[#allocation91_spill] sm:$0xff] }
 0x53c   : > { %v4636_v56 = vpack.c.bf16 %v4521_v63, %v4520_v58  ;;  %v7593_v29 = vunpack.i.h.bf16 %v7591_v59  ;;  %v12179_v45 = vld [vmem:[#allocation87_spill] sm:$0xff]  ;;  %v12180_v63 = vld [vmem:[#allocation86_spill] sm:$0xff] }
 0x53d   : > { %v4555_v8 = vsel %vm280_vm12, %v12173_v51, %v7588_v1  ;;  %v4554_v30 = vsel %vm280_vm12, %v12174_v20, %v7587_v61 }
 0x53e   : > { %v4646_v2 = vpack.c.bf16 %v4555_v8, %v4554_v30  ;;  %v4523_v4 = vsel %vm280_vm12, %v12177_v43, %v7593_v29  ;;  %v7596_v60 = vpop.permute.xlu0 %7595  ;;  %v4609_v30 = vpack.c.bf16 %v10971_v12, %v10963_v25  ;;  %v4617_v25 = vpack.c.bf16 %v11057_v18, %v11054_v38 }
 0x53f   : > { %v7598_v32 = vunpack.i.h.bf16 %v7596_v60  ;;  %v7597_v49 = vunpack.i.l.bf16 %v7596_v60  ;;  %v7601_v58 = vpop.permute.xlu1 %7600  ;;  %v4625_v18 = vpack.c.bf16 %v12153_v57, %v12154_v24  ;;  %v4633_v24 = vpack.c.bf16 %v11172_v15, %v11169_v16 }
 0x540   : > { %5236 = vmatmul.mubr.bf16.gmra.mrb[36].mxu1 %v4623_v19  ;;  %v12175_v19 = vld [vmem:[#allocation83_spill] sm:$0xff] }
 0x541   : > { %5107 = vmatmul.mubr.bf16.gmra.mrb[36].mxu0 %v4632_v48  ;;  %5243 = vmatprep.mubr.bf16.mxu1 %v4628_v44  ;;  %v7592_v44 = vunpack.i.l.bf16 %v7591_v59  ;;  %v4579_v27 = vsel %vm280_vm12, %v12175_v19, %v7583_v28  ;;  %v4580_v50 = vsel %vm280_vm12, %v12180_v63, %v7597_v49  ;;  %v7603_v59 = vunpack.i.h.bf16 %v7601_v58 }
 0x542   : > { %5114 = vmatprep.mubr.bf16.mxu0 %v4642_v62  ;;  %v12178_v62 = vld [vmem:[#allocation90_spill] sm:$0xff]  ;;  %v4631_v61 = vpack.c.bf16 %v4579_v27, %v4578_v17  ;;  %v7606_v29 = vpop.permute.xlu0 %7605 }
 0x543   : > { %v4522_v1 = vsel %vm280_vm12, %v12178_v62, %v7592_v44  ;;  %v4583_v28 = vsel %vm280_vm12, %v12181_v6, %v7603_v59  ;;  %v7608_v12 = vunpack.i.h.bf16 %v7606_v29  ;;  %v12184_v27 = vld [vmem:[#allocation94_spill] sm:$0xff]  ;;  %v7611_v17 = vpop.permute.xlu1 %7610  ;;  %v12186_v62 = vld [vmem:[#allocation18_spill] sm:$0xff]  ;;  %v7689_v59 = vld [vmem:[#allocation2 + $0x330] sm:$0xff] }
 0x544   : > { %v4640_v35 = vpack.c.bf16 %v4523_v4, %v4522_v1  ;;  %v7613_v43 = vunpack.i.h.bf16 %v7611_v17  ;;  %v7612_v54 = vunpack.i.l.bf16 %v7611_v17  ;;  %v12193_v17 = vld [vmem:[#allocation103_spill] sm:$0xff] }
 0x545   : > { %v4585_v19 = vsel %vm280_vm12, %v12183_v9, %v7608_v12 }
 0x546   : > { %v4586_v1 = vsel %vm280_vm12, %v12186_v62, %v7612_v54  ;;  %v7616_v60 = vpop.permute.xlu0 %7615  ;;  %v12194_v54 = vld [vmem:[#allocation100_spill] sm:$0xff]  ;;  %v12196_v62 = vld [vmem:[#allocation101_spill] sm:$0xff] }
 0x547   : > { %v7617_v42 = vunpack.i.l.bf16 %v7616_v60 }
 0x548   : > { %5244 = vmatmul.mubr.bf16.gmra.mrb[40].mxu1 %v4627_v14  ;;  %v7602_v14 = vunpack.i.l.bf16 %v7601_v58 }
 0x549   : > { %5115 = vmatmul.mubr.bf16.gmra.mrb[40].mxu0 %v4636_v56  ;;  %5251 = vmatprep.mubr.bf16.mxu1 %v4632_v48  ;;  %v4581_v48 = vsel %vm280_vm12, %v12179_v45, %v7598_v32  ;;  %v12188_v32 = vld [vmem:[#allocation10_spill] sm:$0xff]  ;;  %v4641_v45 = vpack.c.bf16 %v12173_v51, %v12174_v20 }
 0x54a   : > { %5122 = vmatprep.mubr.bf16.mxu0 %v4646_v2  ;;  %v4635_v8 = vpack.c.bf16 %v4581_v48, %v4580_v50  ;;  %v7607_v2 = vunpack.i.l.bf16 %v7606_v29  ;;  %v4588_v49 = vsel %vm280_vm12, %v12188_v32, %v7617_v42  ;;  %v7626_v16 = vpop.permute.xlu0 %7625  ;;  %v12189_v50 = vld [vmem:[#allocation11_spill] sm:$0xff]  ;;  %v7688_v51 = vld [vmem:[#allocation2 + $0x338] sm:$0xff] }
 0x54b   : > { %v7628_v48 = vunpack.i.h.bf16 %v7626_v16  ;;  %v7627_v63 = vunpack.i.l.bf16 %v7626_v16 }
 0x54c   : > { %v4584_v37 = vsel %vm280_vm12, %v12184_v27, %v7607_v2  ;;  %v12192_v2 = vld [vmem:[#allocation13_spill] sm:$0xff] }
 0x54d   : > { %v4643_v38 = vpack.c.bf16 %v4585_v19, %v4584_v37  ;;  %v4597_v20 = vsel %vm280_vm12, %v7688_v51, %v7628_v48  ;;  %v4657_v19 = vpack.c.bf16 %v11261_v21, %v11258_v5 }
 0x550   : > { %5252 = vmatmul.mubr.bf16.gmra.mrb[44].mxu1 %v4631_v61  ;;  %v7618_v61 = vunpack.i.h.bf16 %v7616_v60 }
 0x551   : > { %5123 = vmatmul.mubr.bf16.gmra.mrb[44].mxu0 %v4640_v35  ;;  %5259 = vmatprep.mubr.bf16.mxu1 %v4636_v56  ;;  %v4582_v56 = vsel %vm280_vm12, %v12182_v39, %v7602_v14  ;;  %v7636_v14 = vpop.permute.xlu0 %7635 }
 0x552   : > { %6349 = vmatprep.mubr.msk.bf16.mxu0 %vm280_vm12, %v4604_v11  ;;  %v4639_v44 = vpack.c.bf16 %v4583_v28, %v4582_v56  ;;  %v7621_v11 = vpop.permute.xlu1 %7620  ;;  %v4653_v56 = vpack.c.bf16 %v11234_v34, %v11231_v10  ;;  %v7638_v29 = vunpack.i.h.bf16 %v7636_v14 }
 0x553   : > { %v7623_v13 = vunpack.i.h.bf16 %v7621_v11  ;;  %v7622_v36 = vunpack.i.l.bf16 %v7621_v11 }
 0x555   : > { %v4591_v58 = vsel %vm280_vm12, %v12189_v50, %v7623_v13 }
 0x558   : > { %5260 = vmatmul.mubr.bf16.gmra.mrb[48].mxu1 %v4635_v8  ;;  %v12190_v8 = vld [vmem:[#allocation19_spill] sm:$0xff] }
 0x559   : > { %5267 = vmatprep.mubr.bf16.mxu1 %v4640_v35  ;;  %6350 = vmatmul.mubr.msk.bf16.vlgmr.msra.gmra.mrb[48].mxu0 %vm280_vm12, %v4609_v30  ;;  %v4590_v30 = vsel %vm280_vm12, %v12190_v8, %v7622_v36 }
 0x55a   : > { %6353 = vmatprep.mubr.msk.bf16.mxu0 %vm280_vm12, %v4613_v33  ;;  %v4655_v33 = vpack.c.bf16 %v4591_v58, %v4590_v30 }
 0x560   : > { %5268 = vmatmul.mubr.bf16.gmra.mrb[52].mxu1 %v4639_v44  ;;  %v7637_v44 = vunpack.i.l.bf16 %v7636_v14 }
 0x561   : > { %5275 = vmatprep.mubr.bf16.mxu1 %v11304_v40  ;;  %6354 = vmatmul.mubr.msk.bf16.gmra.mrb[52].mxu0 %vm280_vm12, %v4617_v25  ;;  %v12185_v40 = vld [vmem:[#allocation16_spill] sm:$0xff]  ;;  %v12191_v25 = vld [vmem:[#allocation14_spill] sm:$0xff] }
 0x562   : > { %6357 = vmatprep.mubr.msk.bf16.mxu0 %vm280_vm12, %v4621_v41  ;;  %v4587_v4 = vsel %vm280_vm12, %v12185_v40, %v7613_v43  ;;  %v4598_v10 = vsel %vm280_vm12, %v11224_v23, %v7637_v44  ;;  %v4492_v43 = vrot.slane %v11226_v46, 2  ;;  %v12195_v40 = vld [vmem:[#allocation102_spill] sm:$0xff] }
 0x563   : > { %v4647_v57 = vpack.c.bf16 %v4587_v4, %v4586_v1 }
 0x568   : > { %5276 = vmatmul.mubr.bf16.gmra.mrb[56].mxu1 %v4643_v38  ;;  %v4661_v38 = vpack.c.bf16 %v12193_v17, %v11271_v22 }
 0x569   : > { %5283 = vmatprep.mubr.bf16.mxu1 %v11331_v3  ;;  %6358 = vmatmul.mubr.msk.bf16.gmra.mrb[56].mxu0 %vm280_vm12, %v4625_v18  ;;  %v12187_v3 = vld [vmem:[#allocation12_spill] sm:$0xff]  ;;  %v4491_v18 = vrot.slane %v11224_v23, 2 }
 0x56a   : > { %6361 = vmatprep.mubr.msk.bf16.mxu0 %vm280_vm12, %v4629_v7  ;;  %v4589_v35 = vsel %vm280_vm12, %v12187_v3, %v7618_v61  ;;  %v4494_v7 = vrot.slane %v12194_v54, 2 }
 0x56b   : > { %v4651_v15 = vpack.c.bf16 %v4589_v35, %v4588_v49  ;;  %v4493_v21 = vsel %vm669_vm1, %v4491_v18, %v4492_v43 }
 0x56c   : > { %v4495_v23 = vsel %vm669_vm1, %v4492_v43, %v4494_v7 }
 0x570   : > { %5284 = vmatmul.mubr.bf16.gmra.mrb[60].mxu1 %v4647_v57 }
 0x571   : > { %5291 = vmatprep.mubr.bf16.mxu1 %v11364_v31  ;;  %6362 = vmatmul.mubr.msk.bf16.gmra.mrb[60].mxu0 %vm280_vm12, %v4633_v24  ;;  %v4645_v31 = vpack.c.bf16 %v11211_v52, %v11208_v26  ;;  %v4596_v52 = vsel %vm280_vm12, %v7689_v59, %v7627_v63  ;;  %v7631_v26 = vpop.permute.xlu1 %7630 }
 0x572   : > { %6365 = vmatprep.mubr.msk.bf16.mxu0 %vm280_vm12, %v4637_v0  ;;  %v7633_v6 = vunpack.i.h.bf16 %v7631_v26  ;;  %v7632_v28 = vunpack.i.l.bf16 %v7631_v26  ;;  %v4660_v39 = vpack.c.bf16 %v4597_v20, %v4596_v52 }
 0x574   : > { %v4593_v12 = vsel %vm280_vm12, %v12191_v25, %v7633_v6  ;;  %v4592_v41 = vsel %vm280_vm12, %v12192_v2, %v7632_v28 }
 0x575   : > { %v4659_v34 = vpack.c.bf16 %v4593_v12, %v4592_v41 }
 0x578   : > { %5292 = vmatmul.mubr.bf16.gmra.mrb[64].mxu1 %v4651_v15 }
 0x579   : > { %5299 = vmatprep.mubr.bf16.mxu1 %v11392_v53  ;;  %6366 = vmatmul.mubr.msk.bf16.gmra.mrb[64].mxu0 %vm280_vm12, %v4641_v45  ;;  %v4649_v53 = vpack.c.bf16 %v11222_v55, %v11219_v47  ;;  %v4599_v47 = vsel %vm280_vm12, %v11226_v46, %v7638_v29  ;;  %v7641_v55 = vpop.permute.xlu1 %7640  ;;  %v4665_v46 = vpack.c.bf16 %v4495_v23, %v4493_v21 }
 0x57a   : > { %6369 = vmatprep.mubr.msk.bf16.mxu0 %vm280_vm12, %v4645_v31  ;;  %v4664_v9 = vpack.c.bf16 %v4599_v47, %v4598_v10  ;;  %v7643_v27 = vunpack.i.h.bf16 %v7641_v55  ;;  %v7642_v37 = vunpack.i.l.bf16 %v7641_v55 }
 0x57c   : > { %v4595_v4 = vsel %vm280_vm12, %v12195_v40, %v7643_v27  ;;  %v4594_v5 = vsel %vm280_vm12, %v12196_v62, %v7642_v37 }
 0x57d   : > { %v4663_v22 = vpack.c.bf16 %v4595_v4, %v4594_v5 }
 0x580   : > { %5300 = vmatmul.mubr.bf16.gmra.mrb[68].mxu1 %v4655_v33 }
 0x581   : > { %6370 = vmatmul.mubr.msk.bf16.gmra.mrb[68].mxu0 %vm280_vm12, %v4649_v53  ;;  %5307 = vmatprep.mubr.bf16.mxu1 %v4660_v39 }
 0x582   : > { %6373 = vmatprep.mubr.msk.bf16.mxu0 %vm280_vm12, %v4653_v56 }
 0x588   : > { %5308 = vmatmul.mubr.bf16.gmra.mrb[72].mxu1 %v4659_v34 }
 0x589   : > { %6374 = vmatmul.mubr.msk.bf16.gmra.mrb[72].mxu0 %vm280_vm12, %v4657_v19  ;;  %5315 = vmatprep.mubr.bf16.mxu1 %v4664_v9 }
 0x58a   : > { %6377 = vmatprep.mubr.msk.bf16.mxu0 %vm280_vm12, %v4661_v38 }
 0x590   : > { %5316 = vmatmul.mubr.bf16.gmra.mrb[76].mxu1 %v4663_v22 }
 0x591   : > { %6378 = vmatmul.mubr.msk.bf16.gmra.mrb[76].mxu0 %vm280_vm12, %v4665_v46 }
 0x5cb   : > { %v6109_v1 = vpop.f32.mrb[0].mxu1 }
 0x5cc   : > { %v6037_v60 = vpop.f32.mrb[0].mxu0  ;;  %v6110_v57 = vpop.f32.mrb[1].mxu1 }
 0x5cd   : > { %v11597_v24 = vadd.f32 %v6110_v57, %v6109_v1  ;;  %v6038_v61 = vpop.f32.mrb[1].mxu0  ;;  %v6112_v42 = vpop.f32.mrb[2].mxu1 }
 0x5ce   : > { %v6039_v0 = vadd.f32 %v6038_v61, %v6037_v60  ;;  %v6040_v3 = vpop.f32.mrb[2].mxu0  ;;  %v6113_v35 = vpop.f32.mrb[3].mxu1 }
 0x5cf   : > { %v11599_v32 = vadd.f32 %v6113_v35, %v6112_v42  ;;  %v6041_v49 = vpop.f32.mrb[3].mxu0 }
 0x5d0   : > { %v6042_v11 = vadd.f32 %v6041_v49, %v6040_v3 }
 0x5d3   : > { %v6115_v16 = vpop.f32.mrb[4].mxu1 }
 0x5d4   : > { %v6043_v15 = vpop.f32.mrb[4].mxu0  ;;  %v6116_v45 = vpop.f32.mrb[5].mxu1 }
 0x5d5   : > { %v11601_v13 = vadd.f32 %v6116_v45, %v6115_v16  ;;  %v6044_v36 = vpop.f32.mrb[5].mxu0  ;;  %v6118_v31 = vpop.f32.mrb[6].mxu1 }
 0x5d6   : > { %v6045_v48 = vadd.f32 %v6044_v36, %v6043_v15  ;;  %v6046_v63 = vpop.f32.mrb[6].mxu0  ;;  %v6119_v50 = vpop.f32.mrb[7].mxu1 }
 0x5d7   : > { %v11603_v58 = vadd.f32 %v6119_v50, %v6118_v31  ;;  %v6047_v8 = vpop.f32.mrb[7].mxu0 }
 0x5d8   : > { %v6048_v30 = vadd.f32 %v6047_v8, %v6046_v63 }
 0x5db   : > { %v6121_v51 = vpop.f32.mrb[8].mxu1 }
 0x5dc   : > { %v6049_v20 = vpop.f32.mrb[8].mxu0  ;;  %v6122_v59 = vpop.f32.mrb[9].mxu1 }
 0x5dd   : > { %v11605_v52 = vadd.f32 %v6122_v59, %v6121_v51  ;;  %v6050_v26 = vpop.f32.mrb[9].mxu0  ;;  %v6124_v14 = vpop.f32.mrb[10].mxu1 }
 0x5de   : > { %v6051_v33 = vadd.f32 %v6050_v26, %v6049_v20  ;;  %v6052_v53 = vpop.f32.mrb[10].mxu0  ;;  %v6125_v6 = vpop.f32.mrb[11].mxu1 }
 0x5df   : > { %v11607_v28 = vadd.f32 %v6125_v6, %v6124_v14  ;;  %v6053_v39 = vpop.f32.mrb[11].mxu0 }
 0x5e0   : > { %v6054_v56 = vadd.f32 %v6053_v39, %v6052_v53 }
 0x5e3   : > { %v6127_v29 = vpop.f32.mrb[12].mxu1 }
 0x5e4   : > { %v6055_v44 = vpop.f32.mrb[12].mxu0  ;;  %v6128_v25 = vpop.f32.mrb[13].mxu1 }
 0x5e5   : > { %v11609_v12 = vadd.f32 %v6128_v25, %v6127_v29  ;;  %v6056_v2 = vpop.f32.mrb[13].mxu0  ;;  %v6130_v41 = vpop.f32.mrb[14].mxu1 }
 0x5e6   : > { %v6057_v47 = vadd.f32 %v6056_v2, %v6055_v44  ;;  %v6058_v10 = vpop.f32.mrb[14].mxu0  ;;  %v6131_v55 = vpop.f32.mrb[15].mxu1 }
 0x5e7   : > { %v11611_v34 = vadd.f32 %v6131_v55, %v6130_v41  ;;  %v6059_v9 = vpop.f32.mrb[15].mxu0 }
 0x5e8   : > { %v6060_v19 = vadd.f32 %v6059_v9, %v6058_v10 }
 0x5eb   : > { %v6149_v27 = vpop.f32.mrb[16].mxu1 }
 0x5ec   : > { %v6061_v37 = vpop.f32.mrb[16].mxu0  ;;  %v6150_v17 = vpop.f32.mrb[17].mxu1 }
 0x5ed   : > { %v6151_v38 = vadd.f32 %v6150_v17, %v6149_v27  ;;  %v6062_v18 = vpop.f32.mrb[17].mxu0  ;;  %v6152_v43 = vpop.f32.mrb[18].mxu1 }
 0x5ee   : > { %v6063_v54 = vadd.f32 %v6062_v18, %v6061_v37  ;;  %v6064_v7 = vpop.f32.mrb[18].mxu0  ;;  %v6153_v40 = vpop.f32.mrb[19].mxu1 }
 0x5ef   : > { %v6154_v4 = vadd.f32 %v6153_v40, %v6152_v43  ;;  %v6065_v62 = vpop.f32.mrb[19].mxu0  ;;  %v11613_v5 = vadd.f32 %v6151_v38, %v6039_v0 }
 0x5f0   : > { %v6066_v21 = vadd.f32 %v6065_v62, %v6064_v7 }
 0x5f1   : > { %v11615_v23 = vadd.f32 %v6154_v4, %v6042_v11 }
 0x5f3   : > { %v6155_v22 = vpop.f32.mrb[20].mxu1 }
 0x5f4   : > { %v6067_v46 = vpop.f32.mrb[20].mxu0  ;;  %v6156_v1 = vpop.f32.mrb[21].mxu1 }
 0x5f5   : > { %v6157_v60 = vadd.f32 %v6156_v1, %v6155_v22  ;;  %v6068_v57 = vpop.f32.mrb[21].mxu0  ;;  %v6158_v61 = vpop.f32.mrb[22].mxu1 }
 0x5f6   : > { %v6069_v42 = vadd.f32 %v6068_v57, %v6067_v46  ;;  %v6070_v3 = vpop.f32.mrb[22].mxu0  ;;  %v6159_v35 = vpop.f32.mrb[23].mxu1 }
 0x5f7   : > { %v6160_v49 = vadd.f32 %v6159_v35, %v6158_v61  ;;  %v6071_v16 = vpop.f32.mrb[23].mxu0  ;;  %v11617_v15 = vadd.f32 %v6157_v60, %v6045_v48 }
 0x5f8   : > { %v6072_v45 = vadd.f32 %v6071_v16, %v6070_v3 }
 0x5f9   : > { %v11619_v36 = vadd.f32 %v6160_v49, %v6048_v30 }
 0x5fb   : > { %v6161_v0 = vpop.f32.mrb[24].mxu1 }
 0x5fc   : > { %v6073_v31 = vpop.f32.mrb[24].mxu0  ;;  %v6162_v11 = vpop.f32.mrb[25].mxu1 }
 0x5fd   : > { %v6163_v63 = vadd.f32 %v6162_v11, %v6161_v0  ;;  %v6074_v50 = vpop.f32.mrb[25].mxu0  ;;  %v6164_v8 = vpop.f32.mrb[26].mxu1 }
 0x5fe   : > { %v6075_v51 = vadd.f32 %v6074_v50, %v6073_v31  ;;  %v6076_v20 = vpop.f32.mrb[26].mxu0  ;;  %v6165_v59 = vpop.f32.mrb[27].mxu1 }
 0x5ff   : > { %v6166_v26 = vadd.f32 %v6165_v59, %v6164_v8  ;;  %v6077_v14 = vpop.f32.mrb[27].mxu0  ;;  %v11621_v53 = vadd.f32 %v6163_v63, %v6051_v33 }
 0x600   : > { %v6078_v6 = vadd.f32 %v6077_v14, %v6076_v20 }
 0x601   : > { %v11623_v39 = vadd.f32 %v6166_v26, %v6054_v56 }
 0x603   : > { %v6167_v48 = vpop.f32.mrb[28].mxu1 }
 0x604   : > { %v6079_v29 = vpop.f32.mrb[28].mxu0  ;;  %v6168_v30 = vpop.f32.mrb[29].mxu1 }
 0x605   : > { %v6169_v44 = vadd.f32 %v6168_v30, %v6167_v48  ;;  %v6080_v25 = vpop.f32.mrb[29].mxu0  ;;  %v6170_v2 = vpop.f32.mrb[30].mxu1 }
 0x606   : > { %v6081_v41 = vadd.f32 %v6080_v25, %v6079_v29  ;;  %v6082_v10 = vpop.f32.mrb[30].mxu0  ;;  %v6171_v55 = vpop.f32.mrb[31].mxu1 }
 0x607   : > { %v6172_v9 = vadd.f32 %v6171_v55, %v6170_v2  ;;  %v6083_v27 = vpop.f32.mrb[31].mxu0  ;;  %v11625_v37 = vadd.f32 %v6169_v44, %v6057_v47 }
 0x608   : > { %v6084_v17 = vadd.f32 %v6083_v27, %v6082_v10 }
 0x609   : > { %v11627_v38 = vadd.f32 %v6172_v9, %v6060_v19 }
 0x60b   : > { %v6173_v33 = vpop.f32.mrb[32].mxu1 }
 0x60c   : > { %v6085_v18 = vpop.f32.mrb[32].mxu0  ;;  %v6174_v56 = vpop.f32.mrb[33].mxu1 }
 0x60d   : > { %v6175_v43 = vadd.f32 %v6174_v56, %v6173_v33  ;;  %v6086_v7 = vpop.f32.mrb[33].mxu0  ;;  %v6176_v40 = vpop.f32.mrb[34].mxu1 }
 0x60e   : > { %v11629_v4 = vadd.f32 %v6086_v7, %v6085_v18  ;;  %v6088_v62 = vpop.f32.mrb[34].mxu0  ;;  %v6177_v22 = vpop.f32.mrb[35].mxu1 }
 0x60f   : > { %v6178_v46 = vadd.f32 %v6177_v22, %v6176_v40  ;;  %v6089_v1 = vpop.f32.mrb[35].mxu0  ;;  %v11631_v60 = vadd.f32 %v6175_v43, %v6063_v54 }
 0x610   : > { %v6090_v57 = vadd.f32 %v6089_v1, %v6088_v62 }
 0x611   : > { %v11633_v47 = vadd.f32 %v6178_v46, %v6066_v21 }
 0x613   : > { %v6179_v61 = vpop.f32.mrb[36].mxu1 }
 0x614   : > { %v6091_v19 = vpop.f32.mrb[36].mxu0  ;;  %v6180_v3 = vpop.f32.mrb[37].mxu1 }
 0x615   : > { %v6181_v35 = vadd.f32 %v6180_v3, %v6179_v61  ;;  %v6092_v49 = vpop.f32.mrb[37].mxu0  ;;  %v6182_v16 = vpop.f32.mrb[38].mxu1 }
 0x616   : > { %v11635_v0 = vadd.f32 %v6092_v49, %v6091_v19  ;;  %v6094_v31 = vpop.f32.mrb[38].mxu0  ;;  %v6183_v11 = vpop.f32.mrb[39].mxu1 }
 0x617   : > { %v6184_v63 = vadd.f32 %v6183_v11, %v6182_v16  ;;  %v6095_v50 = vpop.f32.mrb[39].mxu0  ;;  %v11637_v8 = vadd.f32 %v6181_v35, %v6069_v42 }
 0x618   : > { %v11639_v20 = vadd.f32 %v6095_v50, %v6094_v31 }
 0x619   : > { %v11641_v54 = vadd.f32 %v6184_v63, %v6072_v45 }
 0x61b   : > { %v6185_v21 = vpop.f32.mrb[40].mxu1 }
 0x61c   : > { %v6097_v59 = vpop.f32.mrb[40].mxu0  ;;  %v6186_v26 = vpop.f32.mrb[41].mxu1 }
 0x61d   : > { %v6187_v14 = vadd.f32 %v6186_v26, %v6185_v21  ;;  %v6098_v48 = vpop.f32.mrb[41].mxu0  ;;  %v6188_v29 = vpop.f32.mrb[42].mxu1 }
 0x61e   : > { %v11643_v30 = vadd.f32 %v6098_v48, %v6097_v59  ;;  %v6100_v44 = vpop.f32.mrb[42].mxu0  ;;  %v6189_v25 = vpop.f32.mrb[43].mxu1 }
 0x61f   : > { %v6190_v2 = vadd.f32 %v6189_v25, %v6188_v29  ;;  %v6101_v10 = vpop.f32.mrb[43].mxu0  ;;  %v11645_v55 = vadd.f32 %v6187_v14, %v6075_v51 }
 0x620   : > { %v11647_v42 = vadd.f32 %v6101_v10, %v6100_v44 }
 0x621   : > { %v11649_v9 = vadd.f32 %v6190_v2, %v6078_v6 }
 0x623   : > { %v6191_v45 = vpop.f32.mrb[44].mxu1 }
 0x624   : > { %v6103_v27 = vpop.f32.mrb[44].mxu0  ;;  %v6192_v33 = vpop.f32.mrb[45].mxu1 }
 0x625   : > { %v6193_v18 = vadd.f32 %v6192_v33, %v6191_v45  ;;  %v6104_v56 = vpop.f32.mrb[45].mxu0  ;;  %v6194_v43 = vpop.f32.mrb[46].mxu1 }
 0x626   : > { %v11651_v7 = vadd.f32 %v6104_v56, %v6103_v27  ;;  %v6106_v40 = vpop.f32.mrb[46].mxu0  ;;  %v6195_v62 = vpop.f32.mrb[47].mxu1 }
 0x627   : > { %v6196_v22 = vadd.f32 %v6195_v62, %v6194_v43  ;;  %v6107_v46 = vpop.f32.mrb[47].mxu0  ;;  %v11653_v1 = vadd.f32 %v6193_v18, %v6081_v41 }
 0x628   : > { %v11655_v51 = vadd.f32 %v6107_v46, %v6106_v40 }
 0x629   : > { %v11657_v61 = vadd.f32 %v6196_v22, %v6084_v17 }
 0x62b   : > { %v6197_v6 = vpop.f32.mrb[48].mxu1 }
 0x62c   : > { %v6198_v19 = vpop.f32.mrb[49].mxu1  ;;  %v6351_v3 = vpop.f32.mrb[48].mxu0 }
 0x62d   : > { %v6199_v35 = vadd.f32 %v6198_v19, %v6197_v6  ;;  %v5367_v49 = vadd.f32 %v6351_v3, %v11617_v15  ;;  %v6200_v16 = vpop.f32.mrb[50].mxu1  ;;  %v5358_v31 = vpop.f32.mrb[49].mxu0 }
 0x62e   : > { %v5359_v11 = vadd.f32 %v5358_v31, %v11613_v5  ;;  %v6201_v63 = vpop.f32.mrb[51].mxu1  ;;  %v6352_v41 = vpop.f32.mrb[50].mxu0 }
 0x62f   : > { %5487 = vst.msk [vmem:[%s7769_s30 + $0x10] sm:$0xff] %vm1448_vm3, %v5367_v49  ;;  %v6202_v50 = vadd.f32 %v6201_v63, %v6200_v16  ;;  %v5370_v17 = vadd.f32 %v6352_v41, %v11619_v36  ;;  %v5361_v21 = vpop.f32.mrb[51].mxu0  ;;  %v11665_v59 = vadd.f32 %v6199_v35, %v11629_v4 }
 0x630   : > { %5485 = vst.msk [vmem:[%s7769_s30] sm:$0xff] %vm1448_vm3, %v5359_v11  ;;  %v5362_v15 = vadd.f32 %v5361_v21, %v11615_v23 }
 0x631   : > { %5488 = vst.msk [vmem:[%s7769_s30 + $0x18] sm:$0xff] %vm1448_vm3, %v5370_v17  ;;  %v11672_v26 = vadd.f32 %v6202_v50, %v6090_v57 }
 0x632   : > { %5486 = vst.msk [vmem:[%s7769_s30 + $0x8] sm:$0xff] %vm1448_vm3, %v5362_v15 }
 0x633   : > { %v6203_v5 = vpop.f32.mrb[52].mxu1 }
 0x634   : > { %v6204_v14 = vpop.f32.mrb[53].mxu1  ;;  %v6355_v36 = vpop.f32.mrb[52].mxu0 }
 0x635   : > { %v6205_v48 = vadd.f32 %v6204_v14, %v6203_v5  ;;  %v5383_v4 = vadd.f32 %v6355_v36, %v11625_v37  ;;  %v6206_v29 = vpop.f32.mrb[54].mxu1  ;;  %v5374_v44 = vpop.f32.mrb[53].mxu0 }
 0x636   : > { %v5375_v25 = vadd.f32 %v5374_v44, %v11621_v53  ;;  %v6207_v23 = vpop.f32.mrb[55].mxu1  ;;  %v6356_v2 = vpop.f32.mrb[54].mxu0 }
 0x637   : > { %5491 = vst.msk [vmem:[%s7769_s30 + $0x30] sm:$0xff] %vm1448_vm3, %v5383_v4  ;;  %v6208_v57 = vadd.f32 %v6207_v23, %v6206_v29  ;;  %v5386_v10 = vadd.f32 %v6356_v2, %v11627_v38  ;;  %v5377_v45 = vpop.f32.mrb[55].mxu0  ;;  %v5270_v27 = vadd.f32 %v6205_v48, %v11635_v0 }
 0x638   : > { %5489 = vst.msk [vmem:[%s7769_s30 + $0x20] sm:$0xff] %vm1448_vm3, %v5375_v25  ;;  %v5378_v33 = vadd.f32 %v5377_v45, %v11623_v39 }
 0x639   : > { %5492 = vst.msk [vmem:[%s7769_s30 + $0x38] sm:$0xff] %vm1448_vm3, %v5386_v10  ;;  %v5273_v37 = vadd.f32 %v6208_v57, %v11639_v20 }
 0x63a   : > { %5490 = vst.msk [vmem:[%s7769_s30 + $0x28] sm:$0xff] %vm1448_vm3, %v5378_v33 }
 0x63b   : > { %v6209_v53 = vpop.f32.mrb[56].mxu1 }
 0x63c   : > { %v6210_v18 = vpop.f32.mrb[57].mxu1  ;;  %v6359_v56 = vpop.f32.mrb[56].mxu0 }
 0x63d   : > { %v6211_v38 = vadd.f32 %v6210_v18, %v6209_v53  ;;  %v5399_v0 = vadd.f32 %v6359_v56, %v11637_v8  ;;  %v6212_v43 = vpop.f32.mrb[58].mxu1  ;;  %v5390_v40 = vpop.f32.mrb[57].mxu0 }
 0x63e   : > { %v5391_v62 = vadd.f32 %v5390_v40, %v11631_v60  ;;  %v6213_v39 = vpop.f32.mrb[59].mxu1  ;;  %v6360_v22 = vpop.f32.mrb[58].mxu0 }
 0x63f   : > { %5495 = vst.msk [vmem:[%s7769_s30 + $0x50] sm:$0xff] %vm1448_vm3, %v5399_v0  ;;  %v6214_v20 = vadd.f32 %v6213_v39, %v6212_v43  ;;  %v5402_v46 = vadd.f32 %v6360_v22, %v11641_v54  ;;  %v5393_v6 = vpop.f32.mrb[59].mxu0  ;;  %v5278_v19 = vadd.f32 %v6211_v38, %v11643_v30 }
 0x640   : > { %5493 = vst.msk [vmem:[%s7769_s30 + $0x40] sm:$0xff] %vm1448_vm3, %v5391_v62  ;;  %v5394_v3 = vadd.f32 %v5393_v6, %v11633_v47 }
 0x641   : > { %5496 = vst.msk [vmem:[%s7769_s30 + $0x58] sm:$0xff] %vm1448_vm3, %v5402_v46  ;;  %v5281_v8 = vadd.f32 %v6214_v20, %v11647_v42 }
 0x642   : > { %5494 = vst.msk [vmem:[%s7769_s30 + $0x48] sm:$0xff] %vm1448_vm3, %v5394_v3 }
 0x643   : > { %v6215_v60 = vpop.f32.mrb[60].mxu1 }
 0x644   : > { %v6216_v35 = vpop.f32.mrb[61].mxu1  ;;  %v6363_v49 = vpop.f32.mrb[60].mxu0 }
 0x645   : > { %v6217_v54 = vadd.f32 %v6216_v35, %v6215_v60  ;;  %v5415_v30 = vadd.f32 %v6363_v49, %v11653_v1  ;;  %v6218_v16 = vpop.f32.mrb[62].mxu1  ;;  %v5406_v31 = vpop.f32.mrb[61].mxu0 }
 0x646   : > { %v5407_v11 = vadd.f32 %v5406_v31, %v11645_v55  ;;  %v6219_v47 = vpop.f32.mrb[63].mxu1  ;;  %v6364_v63 = vpop.f32.mrb[62].mxu0 }
 0x647   : > { %5499 = vst.msk [vmem:[%s7769_s30 + $0x70] sm:$0xff] %vm1448_vm3, %v5415_v30  ;;  %v6220_v42 = vadd.f32 %v6219_v47, %v6218_v16  ;;  %v5418_v41 = vadd.f32 %v6364_v63, %v11657_v61  ;;  %v5409_v50 = vpop.f32.mrb[63].mxu0  ;;  %v5286_v17 = vadd.f32 %v6217_v54, %v11651_v7 }
 0x648   : > { %5497 = vst.msk [vmem:[%s7769_s30 + $0x60] sm:$0xff] %vm1448_vm3, %v5407_v11  ;;  %v5410_v21 = vadd.f32 %v5409_v50, %v11649_v9 }
 0x649   : > { %5500 = vst.msk [vmem:[%s7769_s30 + $0x78] sm:$0xff] %vm1448_vm3, %v5418_v41  ;;  %v5289_v1 = vadd.f32 %v6220_v42, %v11655_v51 }
 0x64a   : > { %5498 = vst.msk [vmem:[%s7769_s30 + $0x68] sm:$0xff] %vm1448_vm3, %v5410_v21 }
 0x64b   : > { %v6221_v55 = vpop.f32.mrb[64].mxu1 }
 0x64c   : > { %v6222_v15 = vpop.f32.mrb[65].mxu1  ;;  %v6367_v5 = vpop.f32.mrb[64].mxu0 }
 0x64d   : > { %v6223_v61 = vadd.f32 %v6222_v15, %v6221_v55  ;;  %v5431_v14 = vadd.f32 %v6367_v5, %v5270_v27  ;;  %v6224_v7 = vpop.f32.mrb[66].mxu1  ;;  %v5422_v36 = vpop.f32.mrb[65].mxu0 }
 0x64e   : > { %v5423_v48 = vadd.f32 %v5422_v36, %v11665_v59  ;;  %v6225_v4 = vpop.f32.mrb[67].mxu1  ;;  %v6368_v9 = vpop.f32.mrb[66].mxu0 }
 0x64f   : > { %5503 = vst.msk [vmem:[%s7769_s30 + $0x90] sm:$0xff] %vm1448_vm3, %v5431_v14  ;;  %v6226_v29 = vadd.f32 %v6225_v4, %v6224_v7  ;;  %v5434_v51 = vadd.f32 %v6368_v9, %v5273_v37  ;;  %v5425_v44 = vpop.f32.mrb[67].mxu0  ;;  %v5294_v25 = vadd.f32 %v6223_v61, %v11597_v24 }
 0x650   : > { %5501 = vst.msk [vmem:[%s7769_s30 + $0x80] sm:$0xff] %vm1448_vm3, %v5423_v48  ;;  %v5426_v23 = vadd.f32 %v5425_v44, %v11672_v26 }
 0x651   : > { %5504 = vst.msk [vmem:[%s7769_s30 + $0x98] sm:$0xff] %vm1448_vm3, %v5434_v51  ;;  %v5297_v2 = vadd.f32 %v6226_v29, %v11599_v32 }
 0x652   : > { %5502 = vst.msk [vmem:[%s7769_s30 + $0x88] sm:$0xff] %vm1448_vm3, %v5426_v23 }
 0x653   : > { %v6227_v59 = vpop.f32.mrb[68].mxu1 }
 0x654   : > { %v6228_v57 = vpop.f32.mrb[69].mxu1  ;;  %v6371_v10 = vpop.f32.mrb[68].mxu0 }
 0x655   : > { %v6229_v45 = vadd.f32 %v6228_v57, %v6227_v59  ;;  %v5447_v27 = vadd.f32 %v6371_v10, %v5286_v17  ;;  %v6230_v24 = vpop.f32.mrb[70].mxu1  ;;  %v5438_v33 = vpop.f32.mrb[69].mxu0 }
 0x656   : > { %v5439_v37 = vadd.f32 %v5438_v33, %v5278_v19  ;;  %v6231_v53 = vpop.f32.mrb[71].mxu1  ;;  %v6372_v18 = vpop.f32.mrb[70].mxu0 }
 0x657   : > { %5507 = vst.msk [vmem:[%s7769_s30 + $0xb0] sm:$0xff] %vm1448_vm3, %v5447_v27  ;;  %v6232_v26 = vadd.f32 %v6231_v53, %v6230_v24  ;;  %v5450_v56 = vadd.f32 %v6372_v18, %v5289_v1  ;;  %v5441_v32 = vpop.f32.mrb[71].mxu0  ;;  %v5302_v38 = vadd.f32 %v6229_v45, %v11601_v13 }
 0x658   : > { %5505 = vst.msk [vmem:[%s7769_s30 + $0xa0] sm:$0xff] %vm1448_vm3, %v5439_v37  ;;  %v5442_v0 = vadd.f32 %v5441_v32, %v5281_v8 }
 0x659   : > { %5508 = vst.msk [vmem:[%s7769_s30 + $0xb8] sm:$0xff] %vm1448_vm3, %v5450_v56  ;;  %v5305_v43 = vadd.f32 %v6232_v26, %v11603_v58 }
 0x65a   : > { %5506 = vst.msk [vmem:[%s7769_s30 + $0xa8] sm:$0xff] %vm1448_vm3, %v5442_v0 }
 0x65b   : > { %v6233_v40 = vpop.f32.mrb[72].mxu1 }
 0x65c   : > { %v6234_v62 = vpop.f32.mrb[73].mxu1  ;;  %v6375_v39 = vpop.f32.mrb[72].mxu0 }
 0x65d   : > { %v6235_v22 = vadd.f32 %v6234_v62, %v6233_v40  ;;  %v5463_v20 = vadd.f32 %v6375_v39, %v5302_v38  ;;  %v6236_v46 = vpop.f32.mrb[74].mxu1  ;;  %v5454_v13 = vpop.f32.mrb[73].mxu0 }
 0x65e   : > { %v5455_v6 = vadd.f32 %v5454_v13, %v5294_v25  ;;  %v6237_v19 = vpop.f32.mrb[75].mxu1  ;;  %v6376_v3 = vpop.f32.mrb[74].mxu0 }
 0x65f   : > { %5511 = vst.msk [vmem:[%s7769_s30 + $0xd0] sm:$0xff] %vm1448_vm3, %v5463_v20  ;;  %v6238_v8 = vadd.f32 %v6237_v19, %v6236_v46  ;;  %v5466_v60 = vadd.f32 %v6376_v3, %v5305_v43  ;;  %v5457_v58 = vpop.f32.mrb[75].mxu0  ;;  %v5310_v35 = vadd.f32 %v6235_v22, %v11605_v52 }
 0x660   : > { %5509 = vst.msk [vmem:[%s7769_s30 + $0xc0] sm:$0xff] %vm1448_vm3, %v5455_v6  ;;  %v5458_v49 = vadd.f32 %v5457_v58, %v5297_v2 }
 0x661   : > { %5512 = vst.msk [vmem:[%s7769_s30 + $0xd8] sm:$0xff] %vm1448_vm3, %v5466_v60  ;;  %v5313_v54 = vadd.f32 %v6238_v8, %v11607_v28 }
 0x662   : > { %5510 = vst.msk [vmem:[%s7769_s30 + $0xc8] sm:$0xff] %vm1448_vm3, %v5458_v49 }
 0x663   : > { %v6239_v30 = vpop.f32.mrb[76].mxu1 }
 0x664   : > { %v6240_v16 = vpop.f32.mrb[77].mxu1  ;;  %v6379_v31 = vpop.f32.mrb[76].mxu0 }
 0x665   : > { %v6241_v11 = vadd.f32 %v6240_v16, %v6239_v30  ;;  %v6242_v47 = vpop.f32.mrb[78].mxu1  ;;  %v5470_v63 = vpop.f32.mrb[77].mxu0 }
 0x666   : > { %v5471_v52 = vadd.f32 %v5470_v63, %v5310_v35  ;;  %v6243_v42 = vpop.f32.mrb[79].mxu1  ;;  %v6380_v41 = vpop.f32.mrb[78].mxu0 }
 0x667   : > { %v5318_v50 = vadd.f32 %v6241_v11, %v11609_v12  ;;  %v6244_v17 = vadd.f32 %v6243_v42, %v6242_v47  ;;  %v5473_v21 = vpop.f32.mrb[79].mxu0 }
 0x668   : > { %5513 = vst.msk [vmem:[%s7769_s30 + $0xe0] sm:$0xff] %vm1448_vm3, %v5471_v52  ;;  %v5474_v28 = vadd.f32 %v5473_v21, %v5313_v54 }
 0x669   : > { %v5479_v1 = vadd.f32 %v6379_v31, %v5318_v50  ;;  %v5321_v55 = vadd.f32 %v6244_v17, %v11611_v34 }
 0x66a   : > { %5514 = vst.msk [vmem:[%s7769_s30 + $0xe8] sm:$0xff] %vm1448_vm3, %v5474_v28 }
 0x66b   : > { %5515 = vst.msk [vmem:[%s7769_s30 + $0xf0] sm:$0xff] %vm1448_vm3, %v5479_v1  ;;  %v5482_v15 = vadd.f32 %v6380_v41, %v5321_v55 }
 0x66d   : > { %5516 = vst.msk [vmem:[%s7769_s30 + $0xf8] sm:$0xff] %vm1448_vm3, %v5482_v15 }
 0x66e PF: > { %s17_s24 = sadd.s32 1, %s7700_s24  }
 0x66f   : > { %p14_p7 = scmp.ge.s32.totalorder %s17_s24, 4  }
 0x671   :  { %16 = sbr.rel (!%p14_p7) target bundleno = 1 (0x1), region = 103 }

</bundles_post_ra>
